<compile_context>
chip_gen: v7x
topology: tpu7x:2x2x1
jax: 0.10.0
libtpu: 0.0.40
codegen_flags: <defaults>
</compile_context>

<pallas_src>
import functools

import jax
import jax.numpy as jnp
from jax.experimental import pallas as pl
from jax.experimental.pallas import tpu as pltpu

BN_EPS = 1e-5
LANE = 128


def _tpu_vmem_config():
    """Generation-aware VMEM sizing (v5e/v6e: 128 MiB, v7x: 64 MiB).

    Falls back to the conservative (v7x-safe) numbers if the query fails.
    """
    try:
        cap = int(pltpu.get_tpu_info().vmem_capacity_bytes)
    except Exception:
        cap = 0
    if cap >= 96 * 1024 * 1024:          # v5e / v6e
        return 28 * 1024 * 1024, 64 * 1024 * 1024, 1024
    return 14 * 1024 * 1024, 32 * 1024 * 1024, 512


TILE_VMEM_BUDGET, VMEM_LIMIT, TM_CAP = _tpu_vmem_config()


# ---------------------------------------------------------------------------
# small helpers
# ---------------------------------------------------------------------------
def _round_up(x, m):
    return (x + m - 1) // m * m


def _pad_rows(x2d, mp):
    m = x2d.shape[0]
    if mp == m:
        return x2d
    return jnp.pad(x2d, ((0, mp - m), (0, 0)))


def _pad_last(a, cp):
    c = a.shape[-1]
    if cp == c:
        return a
    pad = [(0, 0)] * (a.ndim - 1) + [(0, cp - c)]
    return jnp.pad(a, pad)


def _pad_gb(v, coutp):
    """Pad a per-channel gamma/beta vector to (1, Coutp); padded lanes are 0."""
    return _pad_last(v.reshape(1, -1), coutp)


def _prep_w(w9, cin_patch, coutp):
    """Pad conv weights to the patch channel count / lane-dense Cout, flatten,
    cast to bf16.  w9: (kk, cin, cout)."""
    kk, cin_w, cout = w9.shape
    w = jnp.pad(w9, ((0, 0), (0, cin_patch - cin_w), (0, coutp - cout)))
    return w.reshape(kk * cin_patch, coutp).astype(jnp.bfloat16)


def _choose_tm(m, k_cols, out_bf16_cols, out_f32_cols=0, budget=None, cap=None):
    """Largest M tile (multiple of 16) whose double-buffered set fits VMEM."""
    budget = TILE_VMEM_BUDGET if budget is None else budget
    cap = TM_CAP if cap is None else cap
    tm = min(cap, _round_up(m, 16))
    while True:
        est = (2 * tm * k_cols * 2              # bf16 patch tile (x2 buffers)
               + 2 * tm * out_bf16_cols * 2     # bf16 pre-BN output tile
               + 2 * tm * out_f32_cols * 4      # optional f32 output (pool)
               + 2 * k_cols * out_bf16_cols * 2)  # bf16 weights
        if est <= budget or tm <= 16:
            return tm
        tm = max(16, _round_up(tm // 2, 16))


def _choose_bn_tile(mp, tm, in_cols, out_cols, budget=None):
    """BN/ReLU is pure elementwise: use the largest multiple of the GEMM tile
    that divides Mp and still fits the VMEM budget."""
    budget = TILE_VMEM_BUDGET if budget is None else budget
    d = mp // tm
    for f in range(d, 0, -1):
        if d % f == 0 and 2 * tm * f * (in_cols * 2 + out_cols * 4) <= budget:
            return tm * f
    return tm


# ---------------------------------------------------------------------------
# Pallas kernels
# ---------------------------------------------------------------------------
def _gemm_stats_pool_kernel(p_ref, w_ref, y_ref, stats_ref, pool_ref, *, cin, kk):
    """branch3x3 conv GEMM + BN partial stats + fused 3x3/stride-2 maxpool.

    p_ref:     (TM, kk*cin)    bf16 shared stride-2 im2col patches
    w_ref:     (kk*cin, Coutp) bf16 weights
    y_ref:     (TM, Coutp)     bf16 pre-BN conv output
    stats_ref: (1, 2, Coutp)   f32 per-tile [sum; sum of squares]
    pool_ref:  (TM, Cpoolp)    f32 maxpool output (lane-dense, zero padded)
    """
    p = p_ref[...]
    y = jnp.dot(p, w_ref[...], preferred_element_type=jnp.float32)
    y_ref[...] = y.astype(y_ref.dtype)
    stats_ref[0, 0:1, :] = jnp.sum(y, axis=0, keepdims=True)
    stats_ref[0, 1:2, :] = jnp.sum(y * y, axis=0, keepdims=True)
    # Maxpool over the same 9 window taps: pure VPU work, hides under the MXU.
    mx = p[:, 0:cin]
    for t in range(1, kk):
        mx = jnp.maximum(mx, p[:, t * cin:(t + 1) * cin])
    mx = mx.astype(jnp.float32)
    cpoolp = pool_ref.shape[-1]
    if cpoolp > cin:                       # keep the store lane-dense
        mx = jnp.concatenate(
            [mx, jnp.zeros((mx.shape[0], cpoolp - cin), jnp.float32)], axis=-1)
    pool_ref[...] = mx


def _gemm_stats_kernel(p_ref, w_ref, y_ref, stats_ref):
    """Tiled conv-as-GEMM (bf16 MXU, f32 accumulate) + BN partial stats."""
    y = jnp.dot(p_ref[...], w_ref[...], preferred_element_type=jnp.float32)
    y_ref[...] = y.astype(y_ref.dtype)
    stats_ref[0, 0:1, :] = jnp.sum(y, axis=0, keepdims=True)
    stats_ref[0, 1:2, :] = jnp.sum(y * y, axis=0, keepdims=True)


def _gemm_bnin_stats_kernel(p_ref, sk_ref, bk_ref, mask_ref, w_ref,
                            y_ref, stats_ref):
    """stack3 GEMM with stack2's BN scale/shift + ReLU fused into the patch
    load (safe: stack3 is a VALID conv, no zero padding is affected).

    p_ref:    (TM, K)  bf16 pre-BN stack2 patches;  sk/bk: (1, K) f32
    mask_ref: (TM, 1)  f32 row validity (padded rows excluded from stats)
    """
    p = jnp.maximum(p_ref[...].astype(jnp.float32) * sk_ref[...] + bk_ref[...],
                    0.0)
    y = jnp.dot(p.astype(jnp.bfloat16), w_ref[...],
                preferred_element_type=jnp.float32)
    y_ref[...] = y.astype(y_ref.dtype)
    ym = y * mask_ref[...]
    stats_ref[0, 0:1, :] = jnp.sum(ym, axis=0, keepdims=True)
    stats_ref[0, 1:2, :] = jnp.sum(ym * y, axis=0, keepdims=True)


def _bn_relu_kernel(y_ref, scale_ref, shift_ref, o_ref):
    """Second pass: y * scale + shift, ReLU.  The output may keep fewer
    (true) channels than the lane-padded input."""
    out_c = o_ref.shape[-1]
    r = jnp.maximum(
        y_ref[...].astype(jnp.float32) * scale_ref[...] + shift_ref[...], 0.0)
    o_ref[...] = r[:, :out_c].astype(o_ref.dtype)


def _conv3x3s1_stats_kernel(x_ref, w_ref, mask_ref, y_ref, stats_ref, pbuf,
                            *, wb, tm, n_mt, cin):
    """3x3 / stride-1 / pad-1 conv without HBM im2col (per-image grid).

    The zero-padded image is flattened over (H', W') so each of the 9 taps of
    an output tile is a contiguous shifted slice of the resident image.  Per
    tm-row tile: the 9 slices are copied into a VMEM scratch and issued as ONE
    K = 9*cin matmul (full MXU K, no zero-padded channels); rows outside the
    true output grid are masked out of the BN statistics.

    x_ref:     (1, Mbig, cin)        f32 flattened zero-padded image
    w_ref:     (9*cin, Coutp)        bf16 weights
    mask_ref:  (Mout_pad, 1)         f32 validity of the over-computed rows
    y_ref:     (1, Mout_pad, Coutp)  bf16 pre-BN conv output
    stats_ref: (1, n_mt, 2, Coutp)   f32 per-tile masked [sum; sum of squares]
    pbuf:      (tm, 9*cin)           f32 VMEM scratch
    """
    for mt in range(n_mt):
        r0 = mt * tm
        for t in range(9):
            i, j = divmod(t, 3)
            pbuf[:, t * cin:(t + 1) * cin] = (
                x_ref[0, pl.ds(r0 + i * wb + j, tm), :])
        y = jnp.dot(pbuf[...].astype(jnp.bfloat16), w_ref[...],
                    preferred_element_type=jnp.float32)
        y_ref[0, pl.ds(r0, tm), :] = y.astype(y_ref.dtype)
        ym = y * mask_ref[pl.ds(r0, tm), :]
        stats_ref[0, mt, 0:1, :] = jnp.sum(ym, axis=0, keepdims=True)
        stats_ref[0, mt, 1:2, :] = jnp.sum(ym * y, axis=0, keepdims=True)


# ---------------------------------------------------------------------------
# pallas_call wrappers
# ---------------------------------------------------------------------------
def _compiler_params(n_axes):
    return pltpu.CompilerParams(
        dimension_semantics=("parallel",) * n_axes,
        vmem_limit_bytes=VMEM_LIMIT)


def _gemm_stats_pool(xp, wp, cin, cpoolp, tm):
    mp, k = xp.shape
    coutp = wp.shape[1]
    nt = mp // tm
    return pl.pallas_call(
        functools.partial(_gemm_stats_pool_kernel, cin=cin, kk=k // cin),
        grid=(nt,),
        in_specs=[
            pl.BlockSpec((tm, k), lambda i: (i, 0)),
            pl.BlockSpec((k, coutp), lambda i: (0, 0)),
        ],
        out_specs=[
            pl.BlockSpec((tm, coutp), lambda i: (i, 0)),
            pl.BlockSpec((1, 2, coutp), lambda i: (i, 0, 0)),
            pl.BlockSpec((tm, cpoolp), lambda i: (i, 0)),
        ],
        out_shape=[
            jax.ShapeDtypeStruct((mp, coutp), jnp.bfloat16),
            jax.ShapeDtypeStruct((nt, 2, coutp), jnp.float32),
            jax.ShapeDtypeStruct((mp, cpoolp), jnp.float32),
        ],
        compiler_params=_compiler_params(1),
    )(xp, wp)


def _gemm_stats(xp, wp, tm):
    mp, k = xp.shape
    coutp = wp.shape[1]
    nt = mp // tm
    return pl.pallas_call(
        _gemm_stats_kernel,
        grid=(nt,),
        in_specs=[
            pl.BlockSpec((tm, k), lambda i: (i, 0)),
            pl.BlockSpec((k, coutp), lambda i: (0, 0)),
        ],
        out_specs=[
            pl.BlockSpec((tm, coutp), lambda i: (i, 0)),
            pl.BlockSpec((1, 2, coutp), lambda i: (i, 0, 0)),
        ],
        out_shape=[
            jax.ShapeDtypeStruct((mp, coutp), jnp.bfloat16),
            jax.ShapeDtypeStruct((nt, 2, coutp), jnp.float32),
        ],
        compiler_params=_compiler_params(1),
    )(xp, wp)


def _gemm_bnin_stats(xp, scale_k, shift_k, maskp, wp, tm):
    mp, k = xp.shape
    coutp = wp.shape[1]
    nt = mp // tm
    return pl.pallas_call(
        _gemm_bnin_stats_kernel,
        grid=(nt,),
        in_specs=[
            pl.BlockSpec((tm, k), lambda i: (i, 0)),
            pl.BlockSpec((1, k), lambda i: (0, 0)),
            pl.BlockSpec((1, k), lambda i: (0, 0)),
            pl.BlockSpec((tm, 1), lambda i: (i, 0)),
            pl.BlockSpec((k, coutp), lambda i: (0, 0)),
        ],
        out_specs=[
            pl.BlockSpec((tm, coutp), lambda i: (i, 0)),
            pl.BlockSpec((1, 2, coutp), lambda i: (i, 0, 0)),
        ],
        out_shape=[
            jax.ShapeDtypeStruct((mp, coutp), jnp.bfloat16),
            jax.ShapeDtypeStruct((nt, 2, coutp), jnp.float32),
        ],
        compiler_params=_compiler_params(1),
    )(xp, scale_k, shift_k, maskp, wp)


def _bn_relu(yp, scale, shift, tm, out_cols=None, out_dtype=jnp.float32):
    mp, cin_w = yp.shape
    out_cols = cin_w if out_cols is None else out_cols
    nt = mp // tm
    return pl.pallas_call(
        _bn_relu_kernel,
        grid=(nt,),
        in_specs=[
            pl.BlockSpec((tm, cin_w), lambda i: (i, 0)),
            pl.BlockSpec((1, cin_w), lambda i: (0, 0)),
            pl.BlockSpec((1, cin_w), lambda i: (0, 0)),
        ],
        out_specs=pl.BlockSpec((tm, out_cols), lambda i: (i, 0)),
        out_shape=jax.ShapeDtypeStruct((mp, out_cols), out_dtype),
        compiler_params=_compiler_params(1),
    )(yp, scale, shift)


def _conv3x3s1_pre_bn(x_nhwc, w9):
    """Pre-BN output of a 3x3 / stride-1 / pad-1 conv plus BN partial stats.

    Returns (y, stats, wb, mout): y is (N, Mout_pad, Coutp) bf16 laid out on
    the over-computed (H+2, W+4) grid (true outputs at rows/cols [1..H]/[1..W]).
    """
    N, H, W, cin = x_nhwc.shape
    kk, cin_w, cout = w9.shape
    assert kk == 9 and cin_w == cin
    coutp = _round_up(cout, LANE)
    wb = W + 4
    mout = (H + 2) * wb
    tm = min(512, _round_up(mout, 16))
    n_mt = -(-mout // tm)
    mout_pad = n_mt * tm

    w_flat = jnp.pad(
        w9, ((0, 0), (0, 0), (0, coutp - cout))
    ).reshape(kk * cin, coutp).astype(jnp.bfloat16)

    # Zero-padded canvas (image at rows [2, 2+H), cols [2, 2+W)), flattened so
    # tap (i, j) of output over-row r reads canvas_flat[r + i*wb + j].
    # TODO(synk): the canvas stays f32 here (robust 32-bit unaligned sublane
    # slicing); a bf16 canvas would halve this small tensor's HBM traffic.
    xpad = jnp.pad(x_nhwc, ((0, 0), (2, 3), (2, 2), (0, 0)))
    xflat = xpad.reshape(N, (H + 5) * wb, cin)
    mbig = _round_up(max((H + 5) * wb, mout_pad + 2 * wb + 2), 16)
    if mbig > xflat.shape[1]:
        xflat = jnp.pad(xflat, ((0, 0), (0, mbig - xflat.shape[1]), (0, 0)))

    # Valid rows of the over-computed output grid: a in [1, H], b in [1, W].
    r = jnp.arange(mout_pad)
    a, b = r // wb, r % wb
    mask = ((r < mout) & (a >= 1) & (a <= H) & (b >= 1) & (b <= W)
            ).astype(jnp.float32).reshape(mout_pad, 1)

    y, stats = pl.pallas_call(
        functools.partial(_conv3x3s1_stats_kernel,
                          wb=wb, tm=tm, n_mt=n_mt, cin=cin),
        grid=(N,),
        in_specs=[
            pl.BlockSpec((1, mbig, cin), lambda n: (n, 0, 0)),
            pl.BlockSpec((kk * cin, coutp), lambda n: (0, 0)),
            pl.BlockSpec((mout_pad, 1), lambda n: (0, 0)),
        ],
        out_specs=[
            pl.BlockSpec((1, mout_pad, coutp), lambda n: (n, 0, 0)),
            pl.BlockSpec((1, n_mt, 2, coutp), lambda n: (n, 0, 0, 0)),
        ],
        out_shape=[
            jax.ShapeDtypeStruct((N, mout_pad, coutp), jnp.bfloat16),
            jax.ShapeDtypeStruct((N, n_mt, 2, coutp), jnp.float32),
        ],
        scratch_shapes=[pltpu.VMEM((tm, kk * cin), jnp.float32)],
        compiler_params=_compiler_params(1),
    )(xflat, w_flat, mask)
    return y, stats, wb, mout


def _finalize_bn(stats, gamma_p, beta_p, count):
    """Tiny glue reduction of the per-tile partial sums (length-Coutp)."""
    tot = jnp.sum(stats, axis=0)                       # (2, Coutp)
    mean = tot[0] / count
    # Note: E[x^2] - mean^2 in f32 can cancel when |mean| >> std; a shifted /
    # Welford-style accumulation would be preferable for production networks.
    var = jnp.maximum(tot[1] / count - mean * mean, 0.0)
    scale = gamma_p * jax.lax.rsqrt(var + BN_EPS)      # (1, Coutp)
    shift = beta_p - mean * scale                      # (1, Coutp)
    return scale, shift


# ---------------------------------------------------------------------------
# Glue: stride-2 im2col window extraction (pure data movement, no FLOPs)
# ---------------------------------------------------------------------------
def _im2col(x_nhwc, kh, kw, stride):
    N, H, W, C = x_nhwc.shape
    OH = (H - kh) // stride + 1
    OW = (W - kw) // stride + 1
    cols = []
    for i in range(kh):
        for j in range(kw):
            cols.append(
                x_nhwc[:, i:i + stride * OH:stride, j:j + stride * OW:stride, :])
    patches = jnp.concatenate(cols, axis=-1)           # (N, OH, OW, kh*kw*C)
    return patches.reshape(N * OH * OW, kh * kw * C)


# ---------------------------------------------------------------------------
# Parameters (true, unpadded shapes; padding / bf16 casting happens in the
# forward pass).  No conv bias: it cancels exactly under train-mode BN.
# ---------------------------------------------------------------------------
def make_basic_conv_params(key, cin, cout, kernel_size):
    kw_, kg_, kb_ = jax.random.split(key, 3)
    kk = kernel_size * kernel_size
    w = 0.05 * jax.random.normal(kw_, (kk, cin, cout), jnp.float32)
    gamma = 1.0 + 0.05 * jax.random.normal(kg_, (cout,), jnp.float32)
    beta = 0.05 * jax.random.normal(kb_, (cout,), jnp.float32)
    return {"w": w, "gamma": gamma, "beta": beta}


def make_inception_b_params(key, in_channels):
    k0, k1, k2, k3 = jax.random.split(key, 4)
    return {
        "branch3x3": make_basic_conv_params(k0, in_channels, 384, 3),
        "stack1": make_basic_conv_params(k1, in_channels, 64, 1),
        "stack2": make_basic_conv_params(k2, 64, 96, 3),
        "stack3": make_basic_conv_params(k3, 96, 96, 3),
    }


# ---------------------------------------------------------------------------
# InceptionB forward
# ---------------------------------------------------------------------------
@jax.jit
def inception_b_forward(x_nchw, params):
    x = jnp.transpose(x_nchw, (0, 2, 3, 1)).astype(jnp.float32)   # NCHW -> NHWC
    N, H, W, C = x.shape
    OH = (H - 3) // 2 + 1
    OW = (W - 3) // 2 + 1
    m = N * OH * OW
    xb = x.astype(jnp.bfloat16)           # all GEMM activations travel as bf16

    # ---- shared stride-2 3x3 window patches: feed BOTH the branch3x3 conv
    #      GEMM and the fused maxpool (single HBM read of the largest tensor).
    x2d = _im2col(xb, 3, 3, 2)                                    # (m, 9C) bf16
    cpoolp = _round_up(C, LANE)
    cout3p = _round_up(384, LANE)
    tm = _choose_tm(m, 9 * C, cout3p, out_f32_cols=cpoolp)
    xp = _pad_rows(x2d, _round_up(m, tm))

    # ---- branch3x3 (3x3 conv, stride 2) + branch_pool (maxpool 3x3, stride 2)
    p = params["branch3x3"]
    y3, st3, pool = _gemm_stats_pool(xp, _prep_w(p["w"], C, cout3p), C,
                                     cpoolp, tm)
    sc3, sh3 = _finalize_bn(st3, _pad_gb(p["gamma"], cout3p),
                            _pad_gb(p["beta"], cout3p), m)
    b3 = _bn_relu(y3, sc3, sh3, _choose_bn_tile(xp.shape[0], tm, cout3p, cout3p))
    b3 = b3[:m, :384].reshape(N, OH, OW, 384)
    bp = pool[:m, :C].reshape(N, OH, OW, C)

    # ---- branch3x3stack
    # stack1: 1x1 conv == pure GEMM ("patches" are x reshaped, no HBM copy)
    p1 = params["stack1"]
    m1 = N * H * W
    c1p = _round_up(64, LANE)
    x1 = xb.reshape(m1, C)
    tm1 = _choose_tm(m1, C, c1p)
    x1p = _pad_rows(x1, _round_up(m1, tm1))
    y1, st1 = _gemm_stats(x1p, _prep_w(p1["w"], C, c1p), tm1)
    sc1, sh1 = _finalize_bn(st1, _pad_gb(p1["gamma"], c1p),
                            _pad_gb(p1["beta"], c1p), m1)
    # s1 keeps its true 64 channels so stack2's MXU K has no zero padding.
    s1 = _bn_relu(y1, sc1, sh1,
                  _choose_bn_tile(x1p.shape[0], tm1, c1p, 64),
                  out_cols=64, out_dtype=jnp.float32)
    s1 = s1[:m1].reshape(N, H, W, 64)

    # stack2: 3x3 conv, stride 1, pad 1 -- pre-BN only (its BN+ReLU is fused
    # into stack3's patch load below).
    p2 = params["stack2"]
    c2p = _round_up(96, LANE)
    y2, st2, wb, mout = _conv3x3s1_pre_bn(s1, p2["w"])
    sc2, sh2 = _finalize_bn(st2.reshape(-1, 2, c2p),
                            _pad_gb(p2["gamma"], c2p),
                            _pad_gb(p2["beta"], c2p), m1)

    # stack3: 3x3 conv, stride 2.  Window-extract the *pre-BN* bf16 stack2
    # activations and apply stack2's scale/shift + ReLU inside the GEMM kernel
    # (VALID conv -> safe), fused with stack3's own BN statistics.
    p3 = params["stack3"]
    y2t = y2[:, :mout, :].reshape(N, H + 2, wb, c2p)[:, 1:H + 1, 1:W + 1, :]
    x3 = _im2col(y2t, 3, 3, 2)                                # (m, 9*c2p) bf16
    c3p = _round_up(96, LANE)
    tm3 = _choose_tm(m, x3.shape[1], c3p)
    mp3 = _round_up(m, tm3)
    x3p = _pad_rows(x3, mp3)
    mask3 = (jnp.arange(mp3) < m).astype(jnp.float32).reshape(mp3, 1)
    y3s, st3s = _gemm_bnin_stats(x3p, jnp.tile(sc2, (1, 9)),
                                 jnp.tile(sh2, (1, 9)), mask3,
                                 _prep_w(p3["w"], c2p, c3p), tm3)
    sc3s, sh3s = _finalize_bn(st3s, _pad_gb(p3["gamma"], c3p),
                              _pad_gb(p3["beta"], c3p), m)
    s3 = _bn_relu(y3s, sc3s, sh3s, _choose_bn_tile(mp3, tm3, c3p, c3p))
    s3 = s3[:m, :96].reshape(N, OH, OW, 96)

    # torch.cat([branch_pool, branch3x3, branch3x3stack], dim=1)
    out_nhwc = jnp.concatenate([bp, b3, s3], axis=-1)
    return jnp.transpose(out_nhwc, (0, 3, 1, 2))       # back to NCHW


# ---------------------------------------------------------------------------
# Pure-JAX (XLA, f32) reference of the same module for a sanity cross-check
# ---------------------------------------------------------------------------
@jax.jit
def _reference_forward(x_nchw, params):
    x = jnp.transpose(x_nchw, (0, 2, 3, 1)).astype(jnp.float32)

    def bconv(inp, p, ksize, stride, padding):
        kk, cin, cout = p["w"].shape
        w4 = p["w"].reshape(ksize, ksize, cin, cout)
        y = jax.lax.conv_general_dilated(
            inp, w4, (stride, stride), [(padding, padding)] * 2,
            dimension_numbers=("NHWC", "HWIO", "NHWC"))
        mean = jnp.mean(y, axis=(0, 1, 2))
        var = jnp.mean((y - mean) ** 2, axis=(0, 1, 2))
        out = (y - mean) * jax.lax.rsqrt(var + BN_EPS) * p["gamma"] + p["beta"]
        return jnp.maximum(out, 0.0)

    b3 = bconv(x, params["branch3x3"], 3, 2, 0)
    s = bconv(x, params["stack1"], 1, 1, 0)
    s = bconv(s, params["stack2"], 3, 1, 1)
    s = bconv(s, params["stack3"], 3, 2, 0)
    bp = jax.lax.reduce_window(x, -jnp.inf, jax.lax.max,
                               (1, 3, 3, 1), (1, 2, 2, 1), "VALID")
    out = jnp.concatenate([bp, b3, s], axis=-1)
    return jnp.transpose(out, (0, 3, 1, 2))


if __name__ == "__main__":
    key = jax.random.PRNGKey(0)
    kx, kp = jax.random.split(key)

    N, C, H, W = 2, 4, 16, 16
    x = jax.random.normal(kx, (N, C, H, W), jnp.float32)
    params = make_inception_b_params(kp, C)

    out = jax.block_until_ready(inception_b_forward(x, params))

    expected = (N, C + 384 + 96, (H - 3) // 2 + 1, (W - 3) // 2 + 1)
    assert out.shape == expected, (out.shape, expected)
    assert bool(jnp.all(jnp.isfinite(out)))

    # Cross-check against the all-f32 XLA reference.  bf16 MXU matmuls plus
    # bf16-staged pre-BN activations => loose max tolerance, tight mean bound.
    ref = jax.block_until_ready(_reference_forward(x, params))
    err = jnp.abs(out - ref)
    max_err = float(jnp.max(err))
    mean_err = float(jnp.mean(err))
    assert max_err < 0.25, f"mismatch vs reference: max abs err = {max_err}"
    assert mean_err < 0.02, f"mismatch vs reference: mean abs err = {mean_err}"

    print("KERNEL_OK")
</pallas_src>

<mosaic_0001>
module attributes {stable_mosaic.version = 11 : i64} {
  func.func @_bn_relu_kernel(%arg0: i32, %arg1: memref<512x128xbf16, #tpu.memory_space<vmem>>, %arg2: memref<1x128xf32, #tpu.memory_space<vmem>>, %arg3: memref<1x128xf32, #tpu.memory_space<vmem>>, %arg4: memref<512x64xf32, #tpu.memory_space<vmem>>) attributes {dimension_semantics = [#tpu.dimension_semantics<parallel>], iteration_bounds = array<i64: 1>, scalar_prefetch = 0 : i64, scratch_operands = 0 : i64, tpu.core_type = #tpu.core_type<tc>, window_params = [{transform_indices = @transform_0, window_bounds = array<i64: 512, 128>}, {pipeline_mode = #tpu.pipeline_mode<synchronous>, transform_indices = @transform_1, window_bounds = array<i64: 1, 128>}, {pipeline_mode = #tpu.pipeline_mode<synchronous>, transform_indices = @transform_2, window_bounds = array<i64: 1, 128>}, {transform_indices = @transform_3, window_bounds = array<i64: 512, 64>}]} {
    %c0 = arith.constant 0 : index
    %c0_0 = arith.constant 0 : index
    %0 = vector.load %arg1[%c0, %c0_0] : memref<512x128xbf16, #tpu.memory_space<vmem>>, vector<512x128xbf16>
    %1 = arith.extf %0 : vector<512x128xbf16> to vector<512x128xf32>
    %c0_1 = arith.constant 0 : index
    %c0_2 = arith.constant 0 : index
    %2 = vector.load %arg2[%c0_1, %c0_2] : memref<1x128xf32, #tpu.memory_space<vmem>>, vector<1x128xf32>
    %3 = vector.broadcast %2 : vector<1x128xf32> to vector<512x128xf32>
    %4 = arith.mulf %1, %3 : vector<512x128xf32>
    %c0_3 = arith.constant 0 : index
    %c0_4 = arith.constant 0 : index
    %5 = vector.load %arg3[%c0_3, %c0_4] : memref<1x128xf32, #tpu.memory_space<vmem>>, vector<1x128xf32>
    %6 = vector.broadcast %5 : vector<1x128xf32> to vector<512x128xf32>
    %7 = arith.addf %4, %6 : vector<512x128xf32>
    %cst = arith.constant 0.000000e+00 : f32
    %8 = vector.broadcast %cst : f32 to vector<512x128xf32>
    %9 = arith.maximumf %7, %8 : vector<512x128xf32>
    %10 = vector.extract_strided_slice %9 {offsets = [0, 0], sizes = [512, 64], strides = [1, 1]} : vector<512x128xf32> to vector<512x64xf32>
    %c0_5 = arith.constant 0 : index
    %c0_6 = arith.constant 0 : index
    %11 = vector.load %arg4[%c0_5, %c0_6] : memref<512x64xf32, #tpu.memory_space<vmem>>, vector<512x64xf32>
    tpu.vector_store %arg4[%c0_5, %c0_6], %10 {strides = array<i32>} : memref<512x64xf32, #tpu.memory_space<vmem>>, vector<512x64xf32>,
    return
  }
  func.func @transform_0(%arg0: i32) -> (i32, i32) {
    %c0_i32 = arith.constant 0 : i32
    %c0_i32_0 = arith.constant 0 : i32
    return %arg0, %c0_i32 : i32, i32
  }
  func.func @transform_1(%arg0: i32) -> (i32, i32) {
    %c0_i32 = arith.constant 0 : i32
    %c0_i32_0 = arith.constant 0 : i32
    %c0_i32_1 = arith.constant 0 : i32
    return %c0_i32, %c0_i32_0 : i32, i32
  }
  func.func @transform_2(%arg0: i32) -> (i32, i32) {
    %c0_i32 = arith.constant 0 : i32
    %c0_i32_0 = arith.constant 0 : i32
    %c0_i32_1 = arith.constant 0 : i32
    return %c0_i32, %c0_i32_0 : i32, i32
  }
  func.func @transform_3(%arg0: i32) -> (i32, i32) {
    %c0_i32 = arith.constant 0 : i32
    %c0_i32_0 = arith.constant 0 : i32
    return %arg0, %c0_i32 : i32, i32
  }
}

module attributes {stable_mosaic.version = 11 : i64} {
  func.func @_gemm_stats_kernel(%arg0: i32, %arg1: memref<512x4xbf16, #tpu.memory_space<vmem>>, %arg2: memref<4x128xbf16, #tpu.memory_space<vmem>>, %arg3: memref<512x128xbf16, #tpu.memory_space<vmem>>, %arg4: memref<1x2x128xf32, #tpu.memory_space<vmem>>) attributes {dimension_semantics = [#tpu.dimension_semantics<parallel>], iteration_bounds = array<i64: 1>, scalar_prefetch = 0 : i64, scratch_operands = 0 : i64, tpu.core_type = #tpu.core_type<tc>, window_params = [{transform_indices = @transform_0, window_bounds = array<i64: 512, 4>}, {pipeline_mode = #tpu.pipeline_mode<synchronous>, transform_indices = @transform_1, window_bounds = array<i64: 4, 128>}, {transform_indices = @transform_2, window_bounds = array<i64: 512, 128>}, {transform_indices = @transform_3, window_bounds = array<i64: 1, 2, 128>}]} {
    %c0 = arith.constant 0 : index
    %c0_0 = arith.constant 0 : index
    %0 = vector.load %arg1[%c0, %c0_0] : memref<512x4xbf16, #tpu.memory_space<vmem>>, vector<512x4xbf16>
    %c0_1 = arith.constant 0 : index
    %c0_2 = arith.constant 0 : index
    %1 = vector.load %arg2[%c0_1, %c0_2] : memref<4x128xbf16, #tpu.memory_space<vmem>>, vector<4x128xbf16>
    %cst = arith.constant dense<0.000000e+00> : vector<512x128xf32>
    %2 = tpu.matmul %0, %1, %cst {dimension_numbers = #tpu.dot_dimension_numbers<[1], [0], [0], [1], [0, 0, 1, 1], [], []>} : vector<512x4xbf16>, vector<4x128xbf16>, vector<512x128xf32> -> vector<512x128xf32>
    %3 = arith.truncf %2 : vector<512x128xf32> to vector<512x128xbf16>
    %c0_3 = arith.constant 0 : index
    %c0_4 = arith.constant 0 : index
    %4 = vector.load %arg3[%c0_3, %c0_4] : memref<512x128xbf16, #tpu.memory_space<vmem>>, vector<512x128xbf16>
    tpu.vector_store %arg3[%c0_3, %c0_4], %3 {strides = array<i32>} : memref<512x128xbf16, #tpu.memory_space<vmem>>, vector<512x128xbf16>,
    %cst_5 = arith.constant dense<0.000000e+00> : vector<128xf32>
    %5 = vector.multi_reduction <add>, %2, %cst_5 [0] : vector<512x128xf32> to vector<128xf32>
    %6 = vector.shape_cast %5 : vector<128xf32> to vector<1x128xf32>
    %c0_6 = arith.constant 0 : index
    %c0_7 = arith.constant 0 : index
    %c0_8 = arith.constant 0 : index
    %7 = vector.load %arg4[%c0_6, %c0_7, %c0_8] : memref<1x2x128xf32, #tpu.memory_space<vmem>>, vector<1x1x128xf32>
    %8 = vector.shape_cast %7 : vector<1x1x128xf32> to vector<1x128xf32>
    %9 = vector.shape_cast %6 : vector<1x128xf32> to vector<1x1x128xf32>
    tpu.vector_store %arg4[%c0_6, %c0_7, %c0_8], %9 {strides = array<i32>} : memref<1x2x128xf32, #tpu.memory_space<vmem>>, vector<1x1x128xf32>,
    %10 = arith.mulf %2, %2 : vector<512x128xf32>
    %cst_9 = arith.constant dense<0.000000e+00> : vector<128xf32>
    %11 = vector.multi_reduction <add>, %10, %cst_9 [0] : vector<512x128xf32> to vector<128xf32>
    %12 = vector.shape_cast %11 : vector<128xf32> to vector<1x128xf32>
    %c0_10 = arith.constant 0 : index
    %c1 = arith.constant 1 : index
    %c0_11 = arith.constant 0 : index
    %13 = vector.load %arg4[%c0_10, %c1, %c0_11] : memref<1x2x128xf32, #tpu.memory_space<vmem>>, vector<1x1x128xf32>
    %14 = vector.shape_cast %13 : vector<1x1x128xf32> to vector<1x128xf32>
    %15 = vector.shape_cast %12 : vector<1x128xf32> to vector<1x1x128xf32>
    tpu.vector_store %arg4[%c0_10, %c1, %c0_11], %15 {strides = array<i32>} : memref<1x2x128xf32, #tpu.memory_space<vmem>>, vector<1x1x128xf32>,
    return
  }
  func.func @transform_0(%arg0: i32) -> (i32, i32) {
    %c0_i32 = arith.constant 0 : i32
    %c0_i32_0 = arith.constant 0 : i32
    return %arg0, %c0_i32 : i32, i32
  }
  func.func @transform_1(%arg0: i32) -> (i32, i32) {
    %c0_i32 = arith.constant 0 : i32
    %c0_i32_0 = arith.constant 0 : i32
    %c0_i32_1 = arith.constant 0 : i32
    return %c0_i32, %c0_i32_0 : i32, i32
  }
  func.func @transform_2(%arg0: i32) -> (i32, i32) {
    %c0_i32 = arith.constant 0 : i32
    %c0_i32_0 = arith.constant 0 : i32
    return %arg0, %c0_i32 : i32, i32
  }
  func.func @transform_3(%arg0: i32) -> (i32, i32, i32) {
    %c0_i32 = arith.constant 0 : i32
    %c0_i32_0 = arith.constant 0 : i32
    %c0_i32_1 = arith.constant 0 : i32
    return %arg0, %c0_i32, %c0_i32_0 : i32, i32, i32
  }
}

module attributes {stable_mosaic.version = 11 : i64} {
  func.func @_conv3x3s1_stats_kernel(%arg0: i32, %arg1: memref<1x432x64xf32, #tpu.memory_space<vmem>>, %arg2: memref<576x128xbf16, #tpu.memory_space<vmem>>, %arg3: memref<368x1xf32, #tpu.memory_space<vmem>>, %arg4: memref<1x368x128xbf16, #tpu.memory_space<vmem>>, %arg5: memref<1x1x2x128xf32, #tpu.memory_space<vmem>>, %arg6: memref<368x576xf32, #tpu.memory_space<vmem>>) attributes {dimension_semantics = [#tpu.dimension_semantics<parallel>], iteration_bounds = array<i64: 2>, scalar_prefetch = 0 : i64, scratch_operands = 1 : i64, tpu.core_type = #tpu.core_type<tc>, window_params = [{transform_indices = @transform_0, window_bounds = array<i64: 1, 432, 64>}, {pipeline_mode = #tpu.pipeline_mode<synchronous>, transform_indices = @transform_1, window_bounds = array<i64: 576, 128>}, {pipeline_mode = #tpu.pipeline_mode<synchronous>, transform_indices = @transform_2, window_bounds = array<i64: 368, 1>}, {transform_indices = @transform_3, window_bounds = array<i64: 1, 368, 128>}, {transform_indices = @transform_4, window_bounds = array<i64: 1, 1, 2, 128>}]} {
    %c0 = arith.constant 0 : index
    %c0_0 = arith.constant 0 : index
    %c0_1 = arith.constant 0 : index
    %0 = vector.load %arg1[%c0, %c0_0, %c0_1] : memref<1x432x64xf32, #tpu.memory_space<vmem>>, vector<1x368x64xf32>
    %1 = vector.shape_cast %0 : vector<1x368x64xf32> to vector<368x64xf32>
    %c0_2 = arith.constant 0 : index
    %c0_3 = arith.constant 0 : index
    %2 = vector.load %arg6[%c0_2, %c0_3] : memref<368x576xf32, #tpu.memory_space<vmem>>, vector<368x64xf32>
    tpu.vector_store %arg6[%c0_2, %c0_3], %1 {strides = array<i32>} : memref<368x576xf32, #tpu.memory_space<vmem>>, vector<368x64xf32>,
    %c0_4 = arith.constant 0 : index
    %c1 = arith.constant 1 : index
    %c0_5 = arith.constant 0 : index
    %3 = vector.load %arg1[%c0_4, %c1, %c0_5] : memref<1x432x64xf32, #tpu.memory_space<vmem>>, vector<1x368x64xf32>
    %4 = vector.shape_cast %3 : vector<1x368x64xf32> to vector<368x64xf32>
    %c0_6 = arith.constant 0 : index
    %c64 = arith.constant 64 : index
    %5 = vector.load %arg6[%c0_6, %c64] : memref<368x576xf32, #tpu.memory_space<vmem>>, vector<368x64xf32>
    tpu.vector_store %arg6[%c0_6, %c64], %4 {strides = array<i32>} : memref<368x576xf32, #tpu.memory_space<vmem>>, vector<368x64xf32>,
    %c0_7 = arith.constant 0 : index
    %c2 = arith.constant 2 : index
    %c0_8 = arith.constant 0 : index
    %6 = vector.load %arg1[%c0_7, %c2, %c0_8] : memref<1x432x64xf32, #tpu.memory_space<vmem>>, vector<1x368x64xf32>
    %7 = vector.shape_cast %6 : vector<1x368x64xf32> to vector<368x64xf32>
    %c0_9 = arith.constant 0 : index
    %c128 = arith.constant 128 : index
    %8 = vector.load %arg6[%c0_9, %c128] : memref<368x576xf32, #tpu.memory_space<vmem>>, vector<368x64xf32>
    tpu.vector_store %arg6[%c0_9, %c128], %7 {strides = array<i32>} : memref<368x576xf32, #tpu.memory_space<vmem>>, vector<368x64xf32>,
    %c0_10 = arith.constant 0 : index
    %c20 = arith.constant 20 : index
    %c0_11 = arith.constant 0 : index
    %9 = vector.load %arg1[%c0_10, %c20, %c0_11] : memref<1x432x64xf32, #tpu.memory_space<vmem>>, vector<1x368x64xf32>
    %10 = vector.shape_cast %9 : vector<1x368x64xf32> to vector<368x64xf32>
    %c0_12 = arith.constant 0 : index
    %c192 = arith.constant 192 : index
    %11 = vector.load %arg6[%c0_12, %c192] : memref<368x576xf32, #tpu.memory_space<vmem>>, vector<368x64xf32>
    tpu.vector_store %arg6[%c0_12, %c192], %10 {strides = array<i32>} : memref<368x576xf32, #tpu.memory_space<vmem>>, vector<368x64xf32>,
    %c0_13 = arith.constant 0 : index
    %c21 = arith.constant 21 : index
    %c0_14 = arith.constant 0 : index
    %12 = vector.load %arg1[%c0_13, %c21, %c0_14] : memref<1x432x64xf32, #tpu.memory_space<vmem>>, vector<1x368x64xf32>
    %13 = vector.shape_cast %12 : vector<1x368x64xf32> to vector<368x64xf32>
    %c0_15 = arith.constant 0 : index
    %c256 = arith.constant 256 : index
    %14 = vector.load %arg6[%c0_15, %c256] : memref<368x576xf32, #tpu.memory_space<vmem>>, vector<368x64xf32>
    tpu.vector_store %arg6[%c0_15, %c256], %13 {strides = array<i32>} : memref<368x576xf32, #tpu.memory_space<vmem>>, vector<368x64xf32>,
    %c0_16 = arith.constant 0 : index
    %c22 = arith.constant 22 : index
    %c0_17 = arith.constant 0 : index
    %15 = vector.load %arg1[%c0_16, %c22, %c0_17] : memref<1x432x64xf32, #tpu.memory_space<vmem>>, vector<1x368x64xf32>
    %16 = vector.shape_cast %15 : vector<1x368x64xf32> to vector<368x64xf32>
    %c0_18 = arith.constant 0 : index
    %c320 = arith.constant 320 : index
    %17 = vector.load %arg6[%c0_18, %c320] : memref<368x576xf32, #tpu.memory_space<vmem>>, vector<368x64xf32>
    tpu.vector_store %arg6[%c0_18, %c320], %16 {strides = array<i32>} : memref<368x576xf32, #tpu.memory_space<vmem>>, vector<368x64xf32>,
    %c0_19 = arith.constant 0 : index
    %c40 = arith.constant 40 : index
    %c0_20 = arith.constant 0 : index
    %18 = vector.load %arg1[%c0_19, %c40, %c0_20] : memref<1x432x64xf32, #tpu.memory_space<vmem>>, vector<1x368x64xf32>
    %19 = vector.shape_cast %18 : vector<1x368x64xf32> to vector<368x64xf32>
    %c0_21 = arith.constant 0 : index
    %c384 = arith.constant 384 : index
    %20 = vector.load %arg6[%c0_21, %c384] : memref<368x576xf32, #tpu.memory_space<vmem>>, vector<368x64xf32>
    tpu.vector_store %arg6[%c0_21, %c384], %19 {strides = array<i32>} : memref<368x576xf32, #tpu.memory_space<vmem>>, vector<368x64xf32>,
    %c0_22 = arith.constant 0 : index
    %c41 = arith.constant 41 : index
    %c0_23 = arith.constant 0 : index
    %21 = vector.load %arg1[%c0_22, %c41, %c0_23] : memref<1x432x64xf32, #tpu.memory_space<vmem>>, vector<1x368x64xf32>
    %22 = vector.shape_cast %21 : vector<1x368x64xf32> to vector<368x64xf32>
    %c0_24 = arith.constant 0 : index
    %c448 = arith.constant 448 : index
    %23 = vector.load %arg6[%c0_24, %c448] : memref<368x576xf32, #tpu.memory_space<vmem>>, vector<368x64xf32>
    tpu.vector_store %arg6[%c0_24, %c448], %22 {strides = array<i32>} : memref<368x576xf32, #tpu.memory_space<vmem>>, vector<368x64xf32>,
    %c0_25 = arith.constant 0 : index
    %c42 = arith.constant 42 : index
    %c0_26 = arith.constant 0 : index
    %24 = vector.load %arg1[%c0_25, %c42, %c0_26] : memref<1x432x64xf32, #tpu.memory_space<vmem>>, vector<1x368x64xf32>
    %25 = vector.shape_cast %24 : vector<1x368x64xf32> to vector<368x64xf32>
    %c0_27 = arith.constant 0 : index
    %c512 = arith.constant 512 : index
    %26 = vector.load %arg6[%c0_27, %c512] : memref<368x576xf32, #tpu.memory_space<vmem>>, vector<368x64xf32>
    tpu.vector_store %arg6[%c0_27, %c512], %25 {strides = array<i32>} : memref<368x576xf32, #tpu.memory_space<vmem>>, vector<368x64xf32>,
    %c0_28 = arith.constant 0 : index
    %c0_29 = arith.constant 0 : index
    %27 = vector.load %arg6[%c0_28, %c0_29] : memref<368x576xf32, #tpu.memory_space<vmem>>, vector<368x576xf32>
    %28 = arith.truncf %27 : vector<368x576xf32> to vector<368x576xbf16>
    %c0_30 = arith.constant 0 : index
    %c0_31 = arith.constant 0 : index
    %29 = vector.load %arg2[%c0_30, %c0_31] : memref<576x128xbf16, #tpu.memory_space<vmem>>, vector<576x128xbf16>
    %cst = arith.constant dense<0.000000e+00> : vector<368x128xf32>
    %30 = tpu.matmul %28, %29, %cst {dimension_numbers = #tpu.dot_dimension_numbers<[1], [0], [0], [1], [0, 0, 1, 1], [], []>} : vector<368x576xbf16>, vector<576x128xbf16>, vector<368x128xf32> -> vector<368x128xf32>
    %31 = arith.truncf %30 : vector<368x128xf32> to vector<368x128xbf16>
    %c0_32 = arith.constant 0 : index
    %c0_33 = arith.constant 0 : index
    %c0_34 = arith.constant 0 : index
    %32 = vector.load %arg4[%c0_32, %c0_33, %c0_34] : memref<1x368x128xbf16, #tpu.memory_space<vmem>>, vector<1x368x128xbf16>
    %33 = vector.shape_cast %32 : vector<1x368x128xbf16> to vector<368x128xbf16>
    %34 = vector.shape_cast %31 : vector<368x128xbf16> to vector<1x368x128xbf16>
    tpu.vector_store %arg4[%c0_32, %c0_33, %c0_34], %34 {strides = array<i32>} : memref<1x368x128xbf16, #tpu.memory_space<vmem>>, vector<1x368x128xbf16>,
    %c0_35 = arith.constant 0 : index
    %c0_36 = arith.constant 0 : index
    %35 = vector.load %arg3[%c0_35, %c0_36] : memref<368x1xf32, #tpu.memory_space<vmem>>, vector<368x1xf32>
    %36 = vector.broadcast %35 : vector<368x1xf32> to vector<368x128xf32>
    %37 = arith.mulf %30, %36 : vector<368x128xf32>
    %cst_37 = arith.constant dense<0.000000e+00> : vector<128xf32>
    %38 = vector.multi_reduction <add>, %37, %cst_37 [0] : vector<368x128xf32> to vector<128xf32>
    %39 = vector.shape_cast %38 : vector<128xf32> to vector<1x128xf32>
    %c0_38 = arith.constant 0 : index
    %c0_39 = arith.constant 0 : index
    %c0_40 = arith.constant 0 : index
    %c0_41 = arith.constant 0 : index
    %40 = vector.load %arg5[%c0_38, %c0_39, %c0_40, %c0_41] : memref<1x1x2x128xf32, #tpu.memory_space<vmem>>, vector<1x1x1x128xf32>
    %41 = vector.shape_cast %40 : vector<1x1x1x128xf32> to vector<1x128xf32>
    %42 = vector.shape_cast %39 : vector<1x128xf32> to vector<1x1x1x128xf32>
    tpu.vector_store %arg5[%c0_38, %c0_39, %c0_40, %c0_41], %42 {strides = array<i32>} : memref<1x1x2x128xf32, #tpu.memory_space<vmem>>, vector<1x1x1x128xf32>,
    %43 = arith.mulf %37, %30 : vector<368x128xf32>
    %cst_42 = arith.constant dense<0.000000e+00> : vector<128xf32>
    %44 = vector.multi_reduction <add>, %43, %cst_42 [0] : vector<368x128xf32> to vector<128xf32>
    %45 = vector.shape_cast %44 : vector<128xf32> to vector<1x128xf32>
    %c0_43 = arith.constant 0 : index
    %c0_44 = arith.constant 0 : index
    %c1_45 = arith.constant 1 : index
    %c0_46 = arith.constant 0 : index
    %46 = vector.load %arg5[%c0_43, %c0_44, %c1_45, %c0_46] : memref<1x1x2x128xf32, #tpu.memory_space<vmem>>, vector<1x1x1x128xf32>
    %47 = vector.shape_cast %46 : vector<1x1x1x128xf32> to vector<1x128xf32>
    %48 = vector.shape_cast %45 : vector<1x128xf32> to vector<1x1x1x128xf32>
    tpu.vector_store %arg5[%c0_43, %c0_44, %c1_45, %c0_46], %48 {strides = array<i32>} : memref<1x1x2x128xf32, #tpu.memory_space<vmem>>, vector<1x1x1x128xf32>,
    return
  }
  func.func @transform_0(%arg0: i32) -> (i32, i32, i32) {
    %c0_i32 = arith.constant 0 : i32
    %c0_i32_0 = arith.constant 0 : i32
    %c0_i32_1 = arith.constant 0 : i32
    return %arg0, %c0_i32, %c0_i32_0 : i32, i32, i32
  }
  func.func @transform_1(%arg0: i32) -> (i32, i32) {
    %c0_i32 = arith.constant 0 : i32
    %c0_i32_0 = arith.constant 0 : i32
    %c0_i32_1 = arith.constant 0 : i32
    return %c0_i32, %c0_i32_0 : i32, i32
  }
  func.func @transform_2(%arg0: i32) -> (i32, i32) {
    %c0_i32 = arith.constant 0 : i32
    %c0_i32_0 = arith.constant 0 : i32
    %c0_i32_1 = arith.constant 0 : i32
    return %c0_i32, %c0_i32_0 : i32, i32
  }
  func.func @transform_3(%arg0: i32) -> (i32, i32, i32) {
    %c0_i32 = arith.constant 0 : i32
    %c0_i32_0 = arith.constant 0 : i32
    %c0_i32_1 = arith.constant 0 : i32
    return %arg0, %c0_i32, %c0_i32_0 : i32, i32, i32
  }
  func.func @transform_4(%arg0: i32) -> (i32, i32, i32, i32) {
    %c0_i32 = arith.constant 0 : i32
    %c0_i32_0 = arith.constant 0 : i32
    %c0_i32_1 = arith.constant 0 : i32
    %c0_i32_2 = arith.constant 0 : i32
    return %arg0, %c0_i32, %c0_i32_0, %c0_i32_1 : i32, i32, i32, i32
  }
}

module attributes {stable_mosaic.version = 11 : i64} {
  func.func @_gemm_bnin_stats_kernel(%arg0: i32, %arg1: memref<112x1152xbf16, #tpu.memory_space<vmem>>, %arg2: memref<1x1152xf32, #tpu.memory_space<vmem>>, %arg3: memref<1x1152xf32, #tpu.memory_space<vmem>>, %arg4: memref<112x1xf32, #tpu.memory_space<vmem>>, %arg5: memref<1152x128xbf16, #tpu.memory_space<vmem>>, %arg6: memref<112x128xbf16, #tpu.memory_space<vmem>>, %arg7: memref<1x2x128xf32, #tpu.memory_space<vmem>>) attributes {dimension_semantics = [#tpu.dimension_semantics<parallel>], iteration_bounds = array<i64: 1>, scalar_prefetch = 0 : i64, scratch_operands = 0 : i64, tpu.core_type = #tpu.core_type<tc>, window_params = [{transform_indices = @transform_0, window_bounds = array<i64: 112, 1152>}, {pipeline_mode = #tpu.pipeline_mode<synchronous>, transform_indices = @transform_1, window_bounds = array<i64: 1, 1152>}, {pipeline_mode = #tpu.pipeline_mode<synchronous>, transform_indices = @transform_2, window_bounds = array<i64: 1, 1152>}, {transform_indices = @transform_3, window_bounds = array<i64: 112, 1>}, {pipeline_mode = #tpu.pipeline_mode<synchronous>, transform_indices = @transform_4, window_bounds = array<i64: 1152, 128>}, {transform_indices = @transform_5, window_bounds = array<i64: 112, 128>}, {transform_indices = @transform_6, window_bounds = array<i64: 1, 2, 128>}]} {
    %c0 = arith.constant 0 : index
    %c0_0 = arith.constant 0 : index
    %0 = vector.load %arg1[%c0, %c0_0] : memref<112x1152xbf16, #tpu.memory_space<vmem>>, vector<112x1152xbf16>
    %1 = arith.extf %0 : vector<112x1152xbf16> to vector<112x1152xf32>
    %c0_1 = arith.constant 0 : index
    %c0_2 = arith.constant 0 : index
    %2 = vector.load %arg2[%c0_1, %c0_2] : memref<1x1152xf32, #tpu.memory_space<vmem>>, vector<1x1152xf32>
    %3 = vector.broadcast %2 : vector<1x1152xf32> to vector<112x1152xf32>
    %4 = arith.mulf %1, %3 : vector<112x1152xf32>
    %c0_3 = arith.constant 0 : index
    %c0_4 = arith.constant 0 : index
    %5 = vector.load %arg3[%c0_3, %c0_4] : memref<1x1152xf32, #tpu.memory_space<vmem>>, vector<1x1152xf32>
    %6 = vector.broadcast %5 : vector<1x1152xf32> to vector<112x1152xf32>
    %7 = arith.addf %4, %6 : vector<112x1152xf32>
    %cst = arith.constant 0.000000e+00 : f32
    %8 = vector.broadcast %cst : f32 to vector<112x1152xf32>
    %9 = arith.maximumf %7, %8 : vector<112x1152xf32>
    %10 = arith.truncf %9 : vector<112x1152xf32> to vector<112x1152xbf16>
    %c0_5 = arith.constant 0 : index
    %c0_6 = arith.constant 0 : index
    %11 = vector.load %arg5[%c0_5, %c0_6] : memref<1152x128xbf16, #tpu.memory_space<vmem>>, vector<1152x128xbf16>
    %cst_7 = arith.constant dense<0.000000e+00> : vector<112x128xf32>
    %12 = tpu.matmul %10, %11, %cst_7 {dimension_numbers = #tpu.dot_dimension_numbers<[1], [0], [0], [1], [0, 0, 1, 1], [], []>} : vector<112x1152xbf16>, vector<1152x128xbf16>, vector<112x128xf32> -> vector<112x128xf32>
    %13 = arith.truncf %12 : vector<112x128xf32> to vector<112x128xbf16>
    %c0_8 = arith.constant 0 : index
    %c0_9 = arith.constant 0 : index
    %14 = vector.load %arg6[%c0_8, %c0_9] : memref<112x128xbf16, #tpu.memory_space<vmem>>, vector<112x128xbf16>
    tpu.vector_store %arg6[%c0_8, %c0_9], %13 {strides = array<i32>} : memref<112x128xbf16, #tpu.memory_space<vmem>>, vector<112x128xbf16>,
    %c0_10 = arith.constant 0 : index
    %c0_11 = arith.constant 0 : index
    %15 = vector.load %arg4[%c0_10, %c0_11] : memref<112x1xf32, #tpu.memory_space<vmem>>, vector<112x1xf32>
    %16 = vector.broadcast %15 : vector<112x1xf32> to vector<112x128xf32>
    %17 = arith.mulf %12, %16 : vector<112x128xf32>
    %cst_12 = arith.constant dense<0.000000e+00> : vector<128xf32>
    %18 = vector.multi_reduction <add>, %17, %cst_12 [0] : vector<112x128xf32> to vector<128xf32>
    %19 = vector.shape_cast %18 : vector<128xf32> to vector<1x128xf32>
    %c0_13 = arith.constant 0 : index
    %c0_14 = arith.constant 0 : index
    %c0_15 = arith.constant 0 : index
    %20 = vector.load %arg7[%c0_13, %c0_14, %c0_15] : memref<1x2x128xf32, #tpu.memory_space<vmem>>, vector<1x1x128xf32>
    %21 = vector.shape_cast %20 : vector<1x1x128xf32> to vector<1x128xf32>
    %22 = vector.shape_cast %19 : vector<1x128xf32> to vector<1x1x128xf32>
    tpu.vector_store %arg7[%c0_13, %c0_14, %c0_15], %22 {strides = array<i32>} : memref<1x2x128xf32, #tpu.memory_space<vmem>>, vector<1x1x128xf32>,
    %23 = arith.mulf %17, %12 : vector<112x128xf32>
    %cst_16 = arith.constant dense<0.000000e+00> : vector<128xf32>
    %24 = vector.multi_reduction <add>, %23, %cst_16 [0] : vector<112x128xf32> to vector<128xf32>
    %25 = vector.shape_cast %24 : vector<128xf32> to vector<1x128xf32>
    %c0_17 = arith.constant 0 : index
    %c1 = arith.constant 1 : index
    %c0_18 = arith.constant 0 : index
    %26 = vector.load %arg7[%c0_17, %c1, %c0_18] : memref<1x2x128xf32, #tpu.memory_space<vmem>>, vector<1x1x128xf32>
    %27 = vector.shape_cast %26 : vector<1x1x128xf32> to vector<1x128xf32>
    %28 = vector.shape_cast %25 : vector<1x128xf32> to vector<1x1x128xf32>
    tpu.vector_store %arg7[%c0_17, %c1, %c0_18], %28 {strides = array<i32>} : memref<1x2x128xf32, #tpu.memory_space<vmem>>, vector<1x1x128xf32>,
    return
  }
  func.func @transform_0(%arg0: i32) -> (i32, i32) {
    %c0_i32 = arith.constant 0 : i32
    %c0_i32_0 = arith.constant 0 : i32
    return %arg0, %c0_i32 : i32, i32
  }
  func.func @transform_1(%arg0: i32) -> (i32, i32) {
    %c0_i32 = arith.constant 0 : i32
    %c0_i32_0 = arith.constant 0 : i32
    %c0_i32_1 = arith.constant 0 : i32
    return %c0_i32, %c0_i32_0 : i32, i32
  }
  func.func @transform_2(%arg0: i32) -> (i32, i32) {
    %c0_i32 = arith.constant 0 : i32
    %c0_i32_0 = arith.constant 0 : i32
    %c0_i32_1 = arith.constant 0 : i32
    return %c0_i32, %c0_i32_0 : i32, i32
  }
  func.func @transform_3(%arg0: i32) -> (i32, i32) {
    %c0_i32 = arith.constant 0 : i32
    %c0_i32_0 = arith.constant 0 : i32
    return %arg0, %c0_i32 : i32, i32
  }
  func.func @transform_4(%arg0: i32) -> (i32, i32) {
    %c0_i32 = arith.constant 0 : i32
    %c0_i32_0 = arith.constant 0 : i32
    %c0_i32_1 = arith.constant 0 : i32
    return %c0_i32, %c0_i32_0 : i32, i32
  }
  func.func @transform_5(%arg0: i32) -> (i32, i32) {
    %c0_i32 = arith.constant 0 : i32
    %c0_i32_0 = arith.constant 0 : i32
    return %arg0, %c0_i32 : i32, i32
  }
  func.func @transform_6(%arg0: i32) -> (i32, i32, i32) {
    %c0_i32 = arith.constant 0 : i32
    %c0_i32_0 = arith.constant 0 : i32
    %c0_i32_1 = arith.constant 0 : i32
    return %arg0, %c0_i32, %c0_i32_0 : i32, i32, i32
  }
}

module attributes {stable_mosaic.version = 11 : i64} {
  func.func @_bn_relu_kernel(%arg0: i32, %arg1: memref<112x128xbf16, #tpu.memory_space<vmem>>, %arg2: memref<1x128xf32, #tpu.memory_space<vmem>>, %arg3: memref<1x128xf32, #tpu.memory_space<vmem>>, %arg4: memref<112x128xf32, #tpu.memory_space<vmem>>) attributes {dimension_semantics = [#tpu.dimension_semantics<parallel>], iteration_bounds = array<i64: 1>, scalar_prefetch = 0 : i64, scratch_operands = 0 : i64, tpu.core_type = #tpu.core_type<tc>, window_params = [{transform_indices = @transform_0, window_bounds = array<i64: 112, 128>}, {pipeline_mode = #tpu.pipeline_mode<synchronous>, transform_indices = @transform_1, window_bounds = array<i64: 1, 128>}, {pipeline_mode = #tpu.pipeline_mode<synchronous>, transform_indices = @transform_2, window_bounds = array<i64: 1, 128>}, {transform_indices = @transform_3, window_bounds = array<i64: 112, 128>}]} {
    %c0 = arith.constant 0 : index
    %c0_0 = arith.constant 0 : index
    %0 = vector.load %arg1[%c0, %c0_0] : memref<112x128xbf16, #tpu.memory_space<vmem>>, vector<112x128xbf16>
    %1 = arith.extf %0 : vector<112x128xbf16> to vector<112x128xf32>
    %c0_1 = arith.constant 0 : index
    %c0_2 = arith.constant 0 : index
    %2 = vector.load %arg2[%c0_1, %c0_2] : memref<1x128xf32, #tpu.memory_space<vmem>>, vector<1x128xf32>
    %3 = vector.broadcast %2 : vector<1x128xf32> to vector<112x128xf32>
    %4 = arith.mulf %1, %3 : vector<112x128xf32>
    %c0_3 = arith.constant 0 : index
    %c0_4 = arith.constant 0 : index
    %5 = vector.load %arg3[%c0_3, %c0_4] : memref<1x128xf32, #tpu.memory_space<vmem>>, vector<1x128xf32>
    %6 = vector.broadcast %5 : vector<1x128xf32> to vector<112x128xf32>
    %7 = arith.addf %4, %6 : vector<112x128xf32>
    %cst = arith.constant 0.000000e+00 : f32
    %8 = vector.broadcast %cst : f32 to vector<112x128xf32>
    %9 = arith.maximumf %7, %8 : vector<112x128xf32>
    %c0_5 = arith.constant 0 : index
    %c0_6 = arith.constant 0 : index
    %10 = vector.load %arg4[%c0_5, %c0_6] : memref<112x128xf32, #tpu.memory_space<vmem>>, vector<112x128xf32>
    tpu.vector_store %arg4[%c0_5, %c0_6], %9 {strides = array<i32>} : memref<112x128xf32, #tpu.memory_space<vmem>>, vector<112x128xf32>,
    return
  }
  func.func @transform_0(%arg0: i32) -> (i32, i32) {
    %c0_i32 = arith.constant 0 : i32
    %c0_i32_0 = arith.constant 0 : i32
    return %arg0, %c0_i32 : i32, i32
  }
  func.func @transform_1(%arg0: i32) -> (i32, i32) {
    %c0_i32 = arith.constant 0 : i32
    %c0_i32_0 = arith.constant 0 : i32
    %c0_i32_1 = arith.constant 0 : i32
    return %c0_i32, %c0_i32_0 : i32, i32
  }
  func.func @transform_2(%arg0: i32) -> (i32, i32) {
    %c0_i32 = arith.constant 0 : i32
    %c0_i32_0 = arith.constant 0 : i32
    %c0_i32_1 = arith.constant 0 : i32
    return %c0_i32, %c0_i32_0 : i32, i32
  }
  func.func @transform_3(%arg0: i32) -> (i32, i32) {
    %c0_i32 = arith.constant 0 : i32
    %c0_i32_0 = arith.constant 0 : i32
    return %arg0, %c0_i32 : i32, i32
  }
}

module attributes {stable_mosaic.version = 11 : i64} {
  func.func @_gemm_stats_pool_kernel(%arg0: i32, %arg1: memref<112x36xbf16, #tpu.memory_space<vmem>>, %arg2: memref<36x384xbf16, #tpu.memory_space<vmem>>, %arg3: memref<112x384xbf16, #tpu.memory_space<vmem>>, %arg4: memref<1x2x384xf32, #tpu.memory_space<vmem>>, %arg5: memref<112x128xf32, #tpu.memory_space<vmem>>) attributes {dimension_semantics = [#tpu.dimension_semantics<parallel>], iteration_bounds = array<i64: 1>, scalar_prefetch = 0 : i64, scratch_operands = 0 : i64, tpu.core_type = #tpu.core_type<tc>, window_params = [{transform_indices = @transform_0, window_bounds = array<i64: 112, 36>}, {pipeline_mode = #tpu.pipeline_mode<synchronous>, transform_indices = @transform_1, window_bounds = array<i64: 36, 384>}, {transform_indices = @transform_2, window_bounds = array<i64: 112, 384>}, {transform_indices = @transform_3, window_bounds = array<i64: 1, 2, 384>}, {transform_indices = @transform_4, window_bounds = array<i64: 112, 128>}]} {
    %c0 = arith.constant 0 : index
    %c0_0 = arith.constant 0 : index
    %0 = vector.load %arg1[%c0, %c0_0] : memref<112x36xbf16, #tpu.memory_space<vmem>>, vector<112x36xbf16>
    %c0_1 = arith.constant 0 : index
    %c0_2 = arith.constant 0 : index
    %1 = vector.load %arg2[%c0_1, %c0_2] : memref<36x384xbf16, #tpu.memory_space<vmem>>, vector<36x384xbf16>
    %cst = arith.constant dense<0.000000e+00> : vector<112x384xf32>
    %2 = tpu.matmul %0, %1, %cst {dimension_numbers = #tpu.dot_dimension_numbers<[1], [0], [0], [1], [0, 0, 1, 1], [], []>} : vector<112x36xbf16>, vector<36x384xbf16>, vector<112x384xf32> -> vector<112x384xf32>
    %3 = arith.truncf %2 : vector<112x384xf32> to vector<112x384xbf16>
    %c0_3 = arith.constant 0 : index
    %c0_4 = arith.constant 0 : index
    %4 = vector.load %arg3[%c0_3, %c0_4] : memref<112x384xbf16, #tpu.memory_space<vmem>>, vector<112x384xbf16>
    tpu.vector_store %arg3[%c0_3, %c0_4], %3 {strides = array<i32>} : memref<112x384xbf16, #tpu.memory_space<vmem>>, vector<112x384xbf16>,
    %cst_5 = arith.constant dense<0.000000e+00> : vector<384xf32>
    %5 = vector.multi_reduction <add>, %2, %cst_5 [0] : vector<112x384xf32> to vector<384xf32>
    %6 = vector.shape_cast %5 : vector<384xf32> to vector<1x384xf32>
    %c0_6 = arith.constant 0 : index
    %c0_7 = arith.constant 0 : index
    %c0_8 = arith.constant 0 : index
    %7 = vector.load %arg4[%c0_6, %c0_7, %c0_8] : memref<1x2x384xf32, #tpu.memory_space<vmem>>, vector<1x1x384xf32>
    %8 = vector.shape_cast %7 : vector<1x1x384xf32> to vector<1x384xf32>
    %9 = vector.shape_cast %6 : vector<1x384xf32> to vector<1x1x384xf32>
    tpu.vector_store %arg4[%c0_6, %c0_7, %c0_8], %9 {strides = array<i32>} : memref<1x2x384xf32, #tpu.memory_space<vmem>>, vector<1x1x384xf32>,
    %10 = arith.mulf %2, %2 : vector<112x384xf32>
    %cst_9 = arith.constant dense<0.000000e+00> : vector<384xf32>
    %11 = vector.multi_reduction <add>, %10, %cst_9 [0] : vector<112x384xf32> to vector<384xf32>
    %12 = vector.shape_cast %11 : vector<384xf32> to vector<1x384xf32>
    %c0_10 = arith.constant 0 : index
    %c1 = arith.constant 1 : index
    %c0_11 = arith.constant 0 : index
    %13 = vector.load %arg4[%c0_10, %c1, %c0_11] : memref<1x2x384xf32, #tpu.memory_space<vmem>>, vector<1x1x384xf32>
    %14 = vector.shape_cast %13 : vector<1x1x384xf32> to vector<1x384xf32>
    %15 = vector.shape_cast %12 : vector<1x384xf32> to vector<1x1x384xf32>
    tpu.vector_store %arg4[%c0_10, %c1, %c0_11], %15 {strides = array<i32>} : memref<1x2x384xf32, #tpu.memory_space<vmem>>, vector<1x1x384xf32>,
    %16 = vector.extract_strided_slice %0 {offsets = [0, 0], sizes = [112, 4], strides = [1, 1]} : vector<112x36xbf16> to vector<112x4xbf16>
    %17 = vector.extract_strided_slice %0 {offsets = [0, 4], sizes = [112, 4], strides = [1, 1]} : vector<112x36xbf16> to vector<112x4xbf16>
    %18 = arith.maximumf %16, %17 : vector<112x4xbf16>
    %19 = vector.extract_strided_slice %0 {offsets = [0, 8], sizes = [112, 4], strides = [1, 1]} : vector<112x36xbf16> to vector<112x4xbf16>
    %20 = arith.maximumf %18, %19 : vector<112x4xbf16>
    %21 = vector.extract_strided_slice %0 {offsets = [0, 12], sizes = [112, 4], strides = [1, 1]} : vector<112x36xbf16> to vector<112x4xbf16>
    %22 = arith.maximumf %20, %21 : vector<112x4xbf16>
    %23 = vector.extract_strided_slice %0 {offsets = [0, 16], sizes = [112, 4], strides = [1, 1]} : vector<112x36xbf16> to vector<112x4xbf16>
    %24 = arith.maximumf %22, %23 : vector<112x4xbf16>
    %25 = vector.extract_strided_slice %0 {offsets = [0, 20], sizes = [112, 4], strides = [1, 1]} : vector<112x36xbf16> to vector<112x4xbf16>
    %26 = arith.maximumf %24, %25 : vector<112x4xbf16>
    %27 = vector.extract_strided_slice %0 {offsets = [0, 24], sizes = [112, 4], strides = [1, 1]} : vector<112x36xbf16> to vector<112x4xbf16>
    %28 = arith.maximumf %26, %27 : vector<112x4xbf16>
    %29 = vector.extract_strided_slice %0 {offsets = [0, 28], sizes = [112, 4], strides = [1, 1]} : vector<112x36xbf16> to vector<112x4xbf16>
    %30 = arith.maximumf %28, %29 : vector<112x4xbf16>
    %31 = vector.extract_strided_slice %0 {offsets = [0, 32], sizes = [112, 4], strides = [1, 1]} : vector<112x36xbf16> to vector<112x4xbf16>
    %32 = arith.maximumf %30, %31 : vector<112x4xbf16>
    %33 = arith.extf %32 : vector<112x4xbf16> to vector<112x4xf32>
    %cst_12 = arith.constant 0.000000e+00 : f32
    %34 = vector.broadcast %cst_12 : f32 to vector<112x124xf32>
    %35 = tpu.concatenate %33, %34 in 1 : vector<112x4xf32>, vector<112x124xf32> -> vector<112x128xf32>
    %c0_13 = arith.constant 0 : index
    %c0_14 = arith.constant 0 : index
    %36 = vector.load %arg5[%c0_13, %c0_14] : memref<112x128xf32, #tpu.memory_space<vmem>>, vector<112x128xf32>
    tpu.vector_store %arg5[%c0_13, %c0_14], %35 {strides = array<i32>} : memref<112x128xf32, #tpu.memory_space<vmem>>, vector<112x128xf32>,
    return
  }
  func.func @transform_0(%arg0: i32) -> (i32, i32) {
    %c0_i32 = arith.constant 0 : i32
    %c0_i32_0 = arith.constant 0 : i32
    return %arg0, %c0_i32 : i32, i32
  }
  func.func @transform_1(%arg0: i32) -> (i32, i32) {
    %c0_i32 = arith.constant 0 : i32
    %c0_i32_0 = arith.constant 0 : i32
    %c0_i32_1 = arith.constant 0 : i32
    return %c0_i32, %c0_i32_0 : i32, i32
  }
  func.func @transform_2(%arg0: i32) -> (i32, i32) {
    %c0_i32 = arith.constant 0 : i32
    %c0_i32_0 = arith.constant 0 : i32
    return %arg0, %c0_i32 : i32, i32
  }
  func.func @transform_3(%arg0: i32) -> (i32, i32, i32) {
    %c0_i32 = arith.constant 0 : i32
    %c0_i32_0 = arith.constant 0 : i32
    %c0_i32_1 = arith.constant 0 : i32
    return %arg0, %c0_i32, %c0_i32_0 : i32, i32, i32
  }
  func.func @transform_4(%arg0: i32) -> (i32, i32) {
    %c0_i32 = arith.constant 0 : i32
    %c0_i32_0 = arith.constant 0 : i32
    return %arg0, %c0_i32 : i32, i32
  }
}

module attributes {stable_mosaic.version = 11 : i64} {
  func.func @_bn_relu_kernel(%arg0: i32, %arg1: memref<112x384xbf16, #tpu.memory_space<vmem>>, %arg2: memref<1x384xf32, #tpu.memory_space<vmem>>, %arg3: memref<1x384xf32, #tpu.memory_space<vmem>>, %arg4: memref<112x384xf32, #tpu.memory_space<vmem>>) attributes {dimension_semantics = [#tpu.dimension_semantics<parallel>], iteration_bounds = array<i64: 1>, scalar_prefetch = 0 : i64, scratch_operands = 0 : i64, tpu.core_type = #tpu.core_type<tc>, window_params = [{transform_indices = @transform_0, window_bounds = array<i64: 112, 384>}, {pipeline_mode = #tpu.pipeline_mode<synchronous>, transform_indices = @transform_1, window_bounds = array<i64: 1, 384>}, {pipeline_mode = #tpu.pipeline_mode<synchronous>, transform_indices = @transform_2, window_bounds = array<i64: 1, 384>}, {transform_indices = @transform_3, window_bounds = array<i64: 112, 384>}]} {
    %c0 = arith.constant 0 : index
    %c0_0 = arith.constant 0 : index
    %0 = vector.load %arg1[%c0, %c0_0] : memref<112x384xbf16, #tpu.memory_space<vmem>>, vector<112x384xbf16>
    %1 = arith.extf %0 : vector<112x384xbf16> to vector<112x384xf32>
    %c0_1 = arith.constant 0 : index
    %c0_2 = arith.constant 0 : index
    %2 = vector.load %arg2[%c0_1, %c0_2] : memref<1x384xf32, #tpu.memory_space<vmem>>, vector<1x384xf32>
    %3 = vector.broadcast %2 : vector<1x384xf32> to vector<112x384xf32>
    %4 = arith.mulf %1, %3 : vector<112x384xf32>
    %c0_3 = arith.constant 0 : index
    %c0_4 = arith.constant 0 : index
    %5 = vector.load %arg3[%c0_3, %c0_4] : memref<1x384xf32, #tpu.memory_space<vmem>>, vector<1x384xf32>
    %6 = vector.broadcast %5 : vector<1x384xf32> to vector<112x384xf32>
    %7 = arith.addf %4, %6 : vector<112x384xf32>
    %cst = arith.constant 0.000000e+00 : f32
    %8 = vector.broadcast %cst : f32 to vector<112x384xf32>
    %9 = arith.maximumf %7, %8 : vector<112x384xf32>
    %c0_5 = arith.constant 0 : index
    %c0_6 = arith.constant 0 : index
    %10 = vector.load %arg4[%c0_5, %c0_6] : memref<112x384xf32, #tpu.memory_space<vmem>>, vector<112x384xf32>
    tpu.vector_store %arg4[%c0_5, %c0_6], %9 {strides = array<i32>} : memref<112x384xf32, #tpu.memory_space<vmem>>, vector<112x384xf32>,
    return
  }
  func.func @transform_0(%arg0: i32) -> (i32, i32) {
    %c0_i32 = arith.constant 0 : i32
    %c0_i32_0 = arith.constant 0 : i32
    return %arg0, %c0_i32 : i32, i32
  }
  func.func @transform_1(%arg0: i32) -> (i32, i32) {
    %c0_i32 = arith.constant 0 : i32
    %c0_i32_0 = arith.constant 0 : i32
    %c0_i32_1 = arith.constant 0 : i32
    return %c0_i32, %c0_i32_0 : i32, i32
  }
  func.func @transform_2(%arg0: i32) -> (i32, i32) {
    %c0_i32 = arith.constant 0 : i32
    %c0_i32_0 = arith.constant 0 : i32
    %c0_i32_1 = arith.constant 0 : i32
    return %c0_i32, %c0_i32_0 : i32, i32
  }
  func.func @transform_3(%arg0: i32) -> (i32, i32) {
    %c0_i32 = arith.constant 0 : i32
    %c0_i32_0 = arith.constant 0 : i32
    return %arg0, %c0_i32 : i32, i32
  }
}

</mosaic_0001>

<bundles_post_ra>
// kernel: inception_b_forward.10
= control target key start
LH: loop header
LB: loop body
LE: loop exit
PB: predicated region body
PF: predicated region fallthrough
CT: control target
= control target key end

     0   :  { %vm348_vm0 = vcmask 523264   ;;  %s1088_s0 = inlined_call_operand.vmem [shape: bf16[512,128], index: 0, kind: input, shape index: {}]   ;;  %s1089_s1 = inlined_call_operand.vmem [shape: f32[1,128], index: 1, kind: input, shape index: {}]   ;;  %s1090_s2 = inlined_call_operand.vmem [shape: f32[1,128], index: 2, kind: input, shape index: {}]   ;;  %s1091_s3 = inlined_call_operand.vmem [shape: f32[512,64], index: 3, kind: output, shape index: {}]  }
   0x1   :  { %v420_v0 = vld [vmem:[%s1088_s0] sm:$0xff]   ;;  %v547_v4 = vld [vmem:[%s1088_s0 + $0x8] sm:$0xff]   ;;  %v548_v5 = vld [vmem:[%s1088_s0 + $0x10] sm:$0xff]  }
   0x2   :  { %v604_v1 = vld [vmem:[%s1089_s1] ss:$0 sm:$0xff]  ;;  %v421_v2 = vunpack.c.l.bf16 %v420_v0  ;;  %v422_v3 = vunpack.c.h.bf16 %v420_v0  ;;  %v549_v6 = vld [vmem:[%s1088_s0 + $0x18] sm:$0xff]   ;;  %v425_v8 = vunpack.c.l.bf16 %v547_v4  ;;  %v426_v9 = vunpack.c.h.bf16 %v547_v4  ;;  %v551_v33 = vld [vmem:[%s1088_s0 + $0x28] sm:$0xff]  }
   0x3   :  { %v618_v7 = vld [vmem:[%s1090_s2] ss:$0 sm:$0xff]  ;;  %v429_v10 = vunpack.c.l.bf16 %v548_v5  ;;  %v430_v11 = vunpack.c.h.bf16 %v548_v5  ;;  %v433_v14 = vunpack.c.l.bf16 %v549_v6  ;;  %v434_v15 = vunpack.c.h.bf16 %v549_v6  ;;  %v552_v34 = vld [vmem:[%s1088_s0 + $0x30] sm:$0xff]   ;;  %v553_v39 = vld [vmem:[%s1088_s0 + $0x38] sm:$0xff]  }
   0x4   :  { %v149_v12 = vmul.f32 %v421_v2, %v604_v1  ;;  %v150_v13 = vmul.f32 %v422_v3, %v604_v1  ;;  %v151_v16 = vmul.f32 %v425_v8, %v604_v1  ;;  %v152_v17 = vmul.f32 %v426_v9, %v604_v1  ;;  %v550_v28 = vld [vmem:[%s1088_s0 + $0x20] sm:$0xff]   ;;  %v555_v6 = vld [vmem:[%s1088_s0 + $0x48] sm:$0xff]   ;;  %v556_v8 = vld [vmem:[%s1088_s0 + $0x50] sm:$0xff]  }
   0x5   :  { %v153_v18 = vmul.f32 %v429_v10, %v604_v1  ;;  %v154_v19 = vmul.f32 %v430_v11, %v604_v1  ;;  %v155_v22 = vmul.f32 %v433_v14, %v604_v1  ;;  %v156_v23 = vmul.f32 %v434_v15, %v604_v1  ;;  %v554_v0 = vld [vmem:[%s1088_s0 + $0x40] sm:$0xff]  }
   0x6   :  { %v220_v20 = vadd.f32 %v618_v7, %v149_v12  ;;  %v221_v21 = vadd.f32 %v618_v7, %v150_v13  ;;  %v222_v24 = vadd.f32 %v618_v7, %v151_v16  ;;  %v223_v25 = vadd.f32 %v618_v7, %v152_v17  ;;  %v557_v13 = vld [vmem:[%s1088_s0 + $0x58] sm:$0xff]  }
   0x7   :  { %v224_v26 = vadd.f32 %v618_v7, %v153_v18  ;;  %v225_v27 = vadd.f32 %v618_v7, %v154_v19  ;;  %v226_v31 = vadd.f32 %v618_v7, %v155_v22  ;;  %v227_v32 = vadd.f32 %v618_v7, %v156_v23 }
   0x8   :  { %v284_v29 = vmax.f32 %v220_v20, 0.0  ;;  %v285_v30 = vmax.f32 %v221_v21, 0.0  ;;  %v286_v35 = vmax.f32 %v222_v24, 0.0  ;;  %v287_v36 = vmax.f32 %v223_v25, 0.0 }
   0x9   :  { %v288_v37 = vmax.f32 %v224_v26, 0.0  ;;  %v289_v38 = vmax.f32 %v225_v27, 0.0  ;;  %v290_v40 = vmax.f32 %v226_v31, 0.0  ;;  %v291_v41 = vmax.f32 %v227_v32, 0.0 }
   0xa   :  { %349 = vst.msk [vmem:[%s1091_s3] sm:$0xff] %vm348_vm0, %v284_v29  ;;  %350 = vst.msk [vmem:[%s1091_s3 + $0x8] sm:$0xff] %vm348_vm0, %v285_v30  ;;  %v437_v42 = vunpack.c.l.bf16 %v550_v28  ;;  %v438_v43 = vunpack.c.h.bf16 %v550_v28  ;;  %v441_v44 = vunpack.c.l.bf16 %v551_v33  ;;  %v442_v45 = vunpack.c.h.bf16 %v551_v33 }
   0xb   :  { %351 = vst.msk [vmem:[%s1091_s3 + $0x10] sm:$0xff] %vm348_vm0, %v286_v35  ;;  %352 = vst.msk [vmem:[%s1091_s3 + $0x18] sm:$0xff] %vm348_vm0, %v287_v36  ;;  %v445_v46 = vunpack.c.l.bf16 %v552_v34  ;;  %v446_v47 = vunpack.c.h.bf16 %v552_v34  ;;  %v449_v50 = vunpack.c.l.bf16 %v553_v39  ;;  %v450_v51 = vunpack.c.h.bf16 %v553_v39 }
   0xc   :  { %353 = vst.msk [vmem:[%s1091_s3 + $0x20] sm:$0xff] %vm348_vm0, %v288_v37  ;;  %354 = vst.msk [vmem:[%s1091_s3 + $0x28] sm:$0xff] %vm348_vm0, %v289_v38  ;;  %v157_v48 = vmul.f32 %v437_v42, %v604_v1  ;;  %v158_v49 = vmul.f32 %v438_v43, %v604_v1  ;;  %v159_v52 = vmul.f32 %v441_v44, %v604_v1  ;;  %v453_v16 = vunpack.c.l.bf16 %v554_v0  ;;  %v558_v38 = vld [vmem:[%s1088_s0 + $0x60] sm:$0xff]   ;;  %v559_v43 = vld [vmem:[%s1088_s0 + $0x68] sm:$0xff]  }
   0xd   :  { %355 = vst.msk [vmem:[%s1091_s3 + $0x30] sm:$0xff] %vm348_vm0, %v290_v40  ;;  %356 = vst.msk [vmem:[%s1091_s3 + $0x38] sm:$0xff] %vm348_vm0, %v291_v41  ;;  %v160_v53 = vmul.f32 %v442_v45, %v604_v1  ;;  %v161_v54 = vmul.f32 %v445_v46, %v604_v1  ;;  %v162_v55 = vmul.f32 %v446_v47, %v604_v1  ;;  %v454_v17 = vunpack.c.h.bf16 %v554_v0  ;;  %v560_v44 = vld [vmem:[%s1088_s0 + $0x70] sm:$0xff]  }
   0xe   :  { %v228_v56 = vadd.f32 %v618_v7, %v157_v48  ;;  %v229_v57 = vadd.f32 %v618_v7, %v158_v49  ;;  %v163_v58 = vmul.f32 %v449_v50, %v604_v1  ;;  %v164_v59 = vmul.f32 %v450_v51, %v604_v1  ;;  %v561_v49 = vld [vmem:[%s1088_s0 + $0x78] sm:$0xff]  }
   0xf   :  { %v230_v60 = vadd.f32 %v618_v7, %v159_v52  ;;  %v231_v61 = vadd.f32 %v618_v7, %v160_v53  ;;  %v232_v62 = vadd.f32 %v618_v7, %v161_v54  ;;  %v233_v63 = vadd.f32 %v618_v7, %v162_v55 }
  0x10   :  { %v292_v2 = vmax.f32 %v228_v56, 0.0  ;;  %v293_v3 = vmax.f32 %v229_v57, 0.0  ;;  %v234_v4 = vadd.f32 %v618_v7, %v163_v58  ;;  %v235_v5 = vadd.f32 %v618_v7, %v164_v59 }
  0x11   :  { %v294_v9 = vmax.f32 %v230_v60, 0.0  ;;  %v295_v10 = vmax.f32 %v231_v61, 0.0  ;;  %v296_v11 = vmax.f32 %v232_v62, 0.0  ;;  %v297_v12 = vmax.f32 %v233_v63, 0.0 }
  0x12   :  { %357 = vst.msk [vmem:[%s1091_s3 + $0x40] sm:$0xff] %vm348_vm0, %v292_v2  ;;  %358 = vst.msk [vmem:[%s1091_s3 + $0x48] sm:$0xff] %vm348_vm0, %v293_v3  ;;  %v298_v14 = vmax.f32 %v234_v4, 0.0  ;;  %v299_v15 = vmax.f32 %v235_v5, 0.0  ;;  %v457_v18 = vunpack.c.l.bf16 %v555_v6  ;;  %v458_v19 = vunpack.c.h.bf16 %v555_v6 }
  0x13   :  { %359 = vst.msk [vmem:[%s1091_s3 + $0x50] sm:$0xff] %vm348_vm0, %v294_v9  ;;  %360 = vst.msk [vmem:[%s1091_s3 + $0x58] sm:$0xff] %vm348_vm0, %v295_v10  ;;  %v461_v20 = vunpack.c.l.bf16 %v556_v8  ;;  %v462_v21 = vunpack.c.h.bf16 %v556_v8  ;;  %v165_v22 = vmul.f32 %v453_v16, %v604_v1  ;;  %v166_v23 = vmul.f32 %v454_v17, %v604_v1  ;;  %v563_v17 = vld [vmem:[%s1088_s0 + $0x88] sm:$0xff]  }
  0x14   :  { %361 = vst.msk [vmem:[%s1091_s3 + $0x60] sm:$0xff] %vm348_vm0, %v296_v11  ;;  %362 = vst.msk [vmem:[%s1091_s3 + $0x68] sm:$0xff] %vm348_vm0, %v297_v12  ;;  %v465_v24 = vunpack.c.l.bf16 %v557_v13  ;;  %v466_v25 = vunpack.c.h.bf16 %v557_v13  ;;  %v167_v26 = vmul.f32 %v457_v18, %v604_v1  ;;  %v168_v27 = vmul.f32 %v458_v19, %v604_v1  ;;  %v562_v12 = vld [vmem:[%s1088_s0 + $0x80] sm:$0xff]   ;;  %v564_v18 = vld [vmem:[%s1088_s0 + $0x90] sm:$0xff]  }
  0x15   :  { %363 = vst.msk [vmem:[%s1091_s3 + $0x70] sm:$0xff] %vm348_vm0, %v298_v14  ;;  %364 = vst.msk [vmem:[%s1091_s3 + $0x78] sm:$0xff] %vm348_vm0, %v299_v15  ;;  %v169_v28 = vmul.f32 %v461_v20, %v604_v1  ;;  %v170_v29 = vmul.f32 %v462_v21, %v604_v1  ;;  %v236_v30 = vadd.f32 %v618_v7, %v165_v22  ;;  %v469_v52 = vunpack.c.l.bf16 %v558_v38 }
  0x16   :  { %v237_v31 = vadd.f32 %v618_v7, %v166_v23  ;;  %v171_v32 = vmul.f32 %v465_v24, %v604_v1  ;;  %v172_v33 = vmul.f32 %v466_v25, %v604_v1  ;;  %v238_v34 = vadd.f32 %v618_v7, %v167_v26  ;;  %v565_v23 = vld [vmem:[%s1088_s0 + $0x98] sm:$0xff]  }
  0x17   :  { %v239_v35 = vadd.f32 %v618_v7, %v168_v27  ;;  %v240_v36 = vadd.f32 %v618_v7, %v169_v28  ;;  %v241_v37 = vadd.f32 %v618_v7, %v170_v29  ;;  %v300_v39 = vmax.f32 %v236_v30, 0.0 }
  0x18   :  { %v301_v40 = vmax.f32 %v237_v31, 0.0  ;;  %v242_v41 = vadd.f32 %v618_v7, %v171_v32  ;;  %v243_v42 = vadd.f32 %v618_v7, %v172_v33  ;;  %v302_v45 = vmax.f32 %v238_v34, 0.0 }
  0x19   :  { %v303_v46 = vmax.f32 %v239_v35, 0.0  ;;  %v304_v47 = vmax.f32 %v240_v36, 0.0  ;;  %v305_v48 = vmax.f32 %v241_v37, 0.0  ;;  %365 = vst.msk [vmem:[%s1091_s3 + $0x80] sm:$0xff] %vm348_vm0, %v300_v39  ;;  %v470_v53 = vunpack.c.h.bf16 %v558_v38 }
  0x1a   :  { %366 = vst.msk [vmem:[%s1091_s3 + $0x88] sm:$0xff] %vm348_vm0, %v301_v40  ;;  %v306_v50 = vmax.f32 %v242_v41, 0.0  ;;  %v307_v51 = vmax.f32 %v243_v42, 0.0  ;;  %367 = vst.msk [vmem:[%s1091_s3 + $0x90] sm:$0xff] %vm348_vm0, %v302_v45  ;;  %v473_v54 = vunpack.c.l.bf16 %v559_v43  ;;  %v474_v55 = vunpack.c.h.bf16 %v559_v43 }
  0x1b   :  { %368 = vst.msk [vmem:[%s1091_s3 + $0x98] sm:$0xff] %vm348_vm0, %v303_v46  ;;  %369 = vst.msk [vmem:[%s1091_s3 + $0xa0] sm:$0xff] %vm348_vm0, %v304_v47  ;;  %v477_v56 = vunpack.c.l.bf16 %v560_v44  ;;  %v478_v57 = vunpack.c.h.bf16 %v560_v44  ;;  %v173_v58 = vmul.f32 %v469_v52, %v604_v1  ;;  %v174_v59 = vmul.f32 %v470_v53, %v604_v1  ;;  %v567_v53 = vld [vmem:[%s1088_s0 + $0xa8] sm:$0xff]  }
  0x1c   :  { %370 = vst.msk [vmem:[%s1091_s3 + $0xa8] sm:$0xff] %vm348_vm0, %v305_v48  ;;  %371 = vst.msk [vmem:[%s1091_s3 + $0xb0] sm:$0xff] %vm348_vm0, %v306_v50  ;;  %v481_v60 = vunpack.c.l.bf16 %v561_v49  ;;  %v482_v61 = vunpack.c.h.bf16 %v561_v49  ;;  %v175_v62 = vmul.f32 %v473_v54, %v604_v1  ;;  %v176_v63 = vmul.f32 %v474_v55, %v604_v1  ;;  %v566_v48 = vld [vmem:[%s1088_s0 + $0xa0] sm:$0xff]   ;;  %v568_v54 = vld [vmem:[%s1088_s0 + $0xb0] sm:$0xff]  }
  0x1d   :  { %372 = vst.msk [vmem:[%s1091_s3 + $0xb8] sm:$0xff] %vm348_vm0, %v307_v51  ;;  %v177_v0 = vmul.f32 %v477_v56, %v604_v1  ;;  %v178_v2 = vmul.f32 %v478_v57, %v604_v1  ;;  %v244_v3 = vadd.f32 %v618_v7, %v173_v58  ;;  %v245_v4 = vadd.f32 %v618_v7, %v174_v59  ;;  %v569_v59 = vld [vmem:[%s1088_s0 + $0xb8] sm:$0xff]  }
  0x1e   :  { %v179_v5 = vmul.f32 %v481_v60, %v604_v1  ;;  %v180_v6 = vmul.f32 %v482_v61, %v604_v1  ;;  %v246_v8 = vadd.f32 %v618_v7, %v175_v62  ;;  %v247_v9 = vadd.f32 %v618_v7, %v176_v63 }
  0x1f   :  { %v248_v10 = vadd.f32 %v618_v7, %v177_v0  ;;  %v249_v11 = vadd.f32 %v618_v7, %v178_v2  ;;  %v308_v13 = vmax.f32 %v244_v3, 0.0  ;;  %v309_v14 = vmax.f32 %v245_v4, 0.0 }
  0x20   :  { %v250_v15 = vadd.f32 %v618_v7, %v179_v5  ;;  %v251_v16 = vadd.f32 %v618_v7, %v180_v6  ;;  %v310_v19 = vmax.f32 %v246_v8, 0.0  ;;  %v311_v20 = vmax.f32 %v247_v9, 0.0 }
  0x21   :  { %v312_v21 = vmax.f32 %v248_v10, 0.0  ;;  %v313_v22 = vmax.f32 %v249_v11, 0.0  ;;  %373 = vst.msk [vmem:[%s1091_s3 + $0xc0] sm:$0xff] %vm348_vm0, %v308_v13  ;;  %374 = vst.msk [vmem:[%s1091_s3 + $0xc8] sm:$0xff] %vm348_vm0, %v309_v14  ;;  %v485_v26 = vunpack.c.l.bf16 %v562_v12  ;;  %v486_v27 = vunpack.c.h.bf16 %v562_v12 }
  0x22   :  { %v314_v24 = vmax.f32 %v250_v15, 0.0  ;;  %v315_v25 = vmax.f32 %v251_v16, 0.0  ;;  %375 = vst.msk [vmem:[%s1091_s3 + $0xd0] sm:$0xff] %vm348_vm0, %v310_v19  ;;  %376 = vst.msk [vmem:[%s1091_s3 + $0xd8] sm:$0xff] %vm348_vm0, %v311_v20  ;;  %v489_v28 = vunpack.c.l.bf16 %v563_v17  ;;  %v490_v29 = vunpack.c.h.bf16 %v563_v17 }
  0x23   :  { %377 = vst.msk [vmem:[%s1091_s3 + $0xe0] sm:$0xff] %vm348_vm0, %v312_v21  ;;  %378 = vst.msk [vmem:[%s1091_s3 + $0xe8] sm:$0xff] %vm348_vm0, %v313_v22  ;;  %v493_v30 = vunpack.c.l.bf16 %v564_v18  ;;  %v494_v31 = vunpack.c.h.bf16 %v564_v18  ;;  %v181_v32 = vmul.f32 %v485_v26, %v604_v1  ;;  %v182_v33 = vmul.f32 %v486_v27, %v604_v1  ;;  %v570_v22 = vld [vmem:[%s1088_s0 + $0xc0] sm:$0xff]   ;;  %v571_v27 = vld [vmem:[%s1088_s0 + $0xc8] sm:$0xff]  }
  0x24   :  { %379 = vst.msk [vmem:[%s1091_s3 + $0xf0] sm:$0xff] %vm348_vm0, %v314_v24  ;;  %380 = vst.msk [vmem:[%s1091_s3 + $0xf8] sm:$0xff] %vm348_vm0, %v315_v25  ;;  %v497_v34 = vunpack.c.l.bf16 %v565_v23  ;;  %v498_v35 = vunpack.c.h.bf16 %v565_v23  ;;  %v183_v36 = vmul.f32 %v489_v28, %v604_v1  ;;  %v184_v37 = vmul.f32 %v490_v29, %v604_v1  ;;  %v572_v28 = vld [vmem:[%s1088_s0 + $0xd0] sm:$0xff]  }
  0x25   :  { %v185_v38 = vmul.f32 %v493_v30, %v604_v1  ;;  %v186_v39 = vmul.f32 %v494_v31, %v604_v1  ;;  %v252_v40 = vadd.f32 %v618_v7, %v181_v32  ;;  %v253_v41 = vadd.f32 %v618_v7, %v182_v33  ;;  %v573_v33 = vld [vmem:[%s1088_s0 + $0xd8] sm:$0xff]  }
  0x26   :  { %v187_v42 = vmul.f32 %v497_v34, %v604_v1  ;;  %v188_v43 = vmul.f32 %v498_v35, %v604_v1  ;;  %v254_v44 = vadd.f32 %v618_v7, %v183_v36  ;;  %v255_v45 = vadd.f32 %v618_v7, %v184_v37 }
  0x27   :  { %v256_v46 = vadd.f32 %v618_v7, %v185_v38  ;;  %v257_v47 = vadd.f32 %v618_v7, %v186_v39  ;;  %v316_v49 = vmax.f32 %v252_v40, 0.0  ;;  %v317_v50 = vmax.f32 %v253_v41, 0.0 }
  0x28   :  { %v258_v51 = vadd.f32 %v618_v7, %v187_v42  ;;  %v259_v52 = vadd.f32 %v618_v7, %v188_v43  ;;  %v318_v55 = vmax.f32 %v254_v44, 0.0  ;;  %v319_v56 = vmax.f32 %v255_v45, 0.0 }
  0x29   :  { %v320_v57 = vmax.f32 %v256_v46, 0.0  ;;  %v321_v58 = vmax.f32 %v257_v47, 0.0  ;;  %381 = vst.msk [vmem:[%s1091_s3 + $0x100] sm:$0xff] %vm348_vm0, %v316_v49  ;;  %382 = vst.msk [vmem:[%s1091_s3 + $0x108] sm:$0xff] %vm348_vm0, %v317_v50  ;;  %v501_v62 = vunpack.c.l.bf16 %v566_v48  ;;  %v502_v63 = vunpack.c.h.bf16 %v566_v48 }
  0x2a   :  { %v322_v60 = vmax.f32 %v258_v51, 0.0  ;;  %v323_v61 = vmax.f32 %v259_v52, 0.0  ;;  %383 = vst.msk [vmem:[%s1091_s3 + $0x110] sm:$0xff] %vm348_vm0, %v318_v55  ;;  %384 = vst.msk [vmem:[%s1091_s3 + $0x118] sm:$0xff] %vm348_vm0, %v319_v56  ;;  %v505_v0 = vunpack.c.l.bf16 %v567_v53  ;;  %v506_v2 = vunpack.c.h.bf16 %v567_v53 }
  0x2b   :  { %385 = vst.msk [vmem:[%s1091_s3 + $0x120] sm:$0xff] %vm348_vm0, %v320_v57  ;;  %386 = vst.msk [vmem:[%s1091_s3 + $0x128] sm:$0xff] %vm348_vm0, %v321_v58  ;;  %v509_v3 = vunpack.c.l.bf16 %v568_v54  ;;  %v510_v4 = vunpack.c.h.bf16 %v568_v54  ;;  %v189_v5 = vmul.f32 %v501_v62, %v604_v1  ;;  %v190_v6 = vmul.f32 %v502_v63, %v604_v1  ;;  %v574_v58 = vld [vmem:[%s1088_s0 + $0xe0] sm:$0xff]   ;;  %v575_v63 = vld [vmem:[%s1088_s0 + $0xe8] sm:$0xff]  }
  0x2c   :  { %387 = vst.msk [vmem:[%s1091_s3 + $0x130] sm:$0xff] %vm348_vm0, %v322_v60  ;;  %388 = vst.msk [vmem:[%s1091_s3 + $0x138] sm:$0xff] %vm348_vm0, %v323_v61  ;;  %v513_v8 = vunpack.c.l.bf16 %v569_v59  ;;  %v514_v9 = vunpack.c.h.bf16 %v569_v59  ;;  %v191_v10 = vmul.f32 %v505_v0, %v604_v1  ;;  %v192_v11 = vmul.f32 %v506_v2, %v604_v1  ;;  %v576_v0 = vld [vmem:[%s1088_s0 + $0xf0] sm:$0xff]  }
  0x2d   :  { %v193_v12 = vmul.f32 %v509_v3, %v604_v1  ;;  %v194_v13 = vmul.f32 %v510_v4, %v604_v1  ;;  %v260_v14 = vadd.f32 %v618_v7, %v189_v5  ;;  %v261_v15 = vadd.f32 %v618_v7, %v190_v6  ;;  %v577_v6 = vld [vmem:[%s1088_s0 + $0xf8] sm:$0xff]  }
  0x2e   :  { %v195_v16 = vmul.f32 %v513_v8, %v604_v1  ;;  %v196_v17 = vmul.f32 %v514_v9, %v604_v1  ;;  %v262_v18 = vadd.f32 %v618_v7, %v191_v10  ;;  %v263_v19 = vadd.f32 %v618_v7, %v192_v11 }
  0x2f   :  { %v264_v20 = vadd.f32 %v618_v7, %v193_v12  ;;  %v265_v21 = vadd.f32 %v618_v7, %v194_v13  ;;  %v324_v23 = vmax.f32 %v260_v14, 0.0  ;;  %v325_v24 = vmax.f32 %v261_v15, 0.0 }
  0x30   :  { %v266_v25 = vadd.f32 %v618_v7, %v195_v16  ;;  %v267_v26 = vadd.f32 %v618_v7, %v196_v17  ;;  %v326_v29 = vmax.f32 %v262_v18, 0.0  ;;  %v327_v30 = vmax.f32 %v263_v19, 0.0 }
  0x31   :  { %v328_v31 = vmax.f32 %v264_v20, 0.0  ;;  %v329_v32 = vmax.f32 %v265_v21, 0.0  ;;  %389 = vst.msk [vmem:[%s1091_s3 + $0x140] sm:$0xff] %vm348_vm0, %v324_v23  ;;  %390 = vst.msk [vmem:[%s1091_s3 + $0x148] sm:$0xff] %vm348_vm0, %v325_v24  ;;  %v517_v36 = vunpack.c.l.bf16 %v570_v22  ;;  %v518_v37 = vunpack.c.h.bf16 %v570_v22 }
  0x32   :  { %v330_v34 = vmax.f32 %v266_v25, 0.0  ;;  %v331_v35 = vmax.f32 %v267_v26, 0.0  ;;  %391 = vst.msk [vmem:[%s1091_s3 + $0x150] sm:$0xff] %vm348_vm0, %v326_v29  ;;  %392 = vst.msk [vmem:[%s1091_s3 + $0x158] sm:$0xff] %vm348_vm0, %v327_v30  ;;  %v521_v38 = vunpack.c.l.bf16 %v571_v27  ;;  %v522_v39 = vunpack.c.h.bf16 %v571_v27 }
  0x33   :  { %393 = vst.msk [vmem:[%s1091_s3 + $0x160] sm:$0xff] %vm348_vm0, %v328_v31  ;;  %394 = vst.msk [vmem:[%s1091_s3 + $0x168] sm:$0xff] %vm348_vm0, %v329_v32  ;;  %v525_v40 = vunpack.c.l.bf16 %v572_v28  ;;  %v526_v41 = vunpack.c.h.bf16 %v572_v28  ;;  %v197_v42 = vmul.f32 %v517_v36, %v604_v1  ;;  %v198_v43 = vmul.f32 %v518_v37, %v604_v1 }
  0x34   :  { %395 = vst.msk [vmem:[%s1091_s3 + $0x170] sm:$0xff] %vm348_vm0, %v330_v34  ;;  %396 = vst.msk [vmem:[%s1091_s3 + $0x178] sm:$0xff] %vm348_vm0, %v331_v35  ;;  %v529_v44 = vunpack.c.l.bf16 %v573_v33  ;;  %v530_v45 = vunpack.c.h.bf16 %v573_v33  ;;  %v199_v46 = vmul.f32 %v521_v38, %v604_v1  ;;  %v200_v47 = vmul.f32 %v522_v39, %v604_v1 }
  0x35   :  { %v201_v48 = vmul.f32 %v525_v40, %v604_v1  ;;  %v202_v49 = vmul.f32 %v526_v41, %v604_v1  ;;  %v268_v50 = vadd.f32 %v618_v7, %v197_v42  ;;  %v269_v51 = vadd.f32 %v618_v7, %v198_v43 }
  0x36   :  { %v203_v52 = vmul.f32 %v529_v44, %v604_v1  ;;  %v204_v53 = vmul.f32 %v530_v45, %v604_v1  ;;  %v270_v54 = vadd.f32 %v618_v7, %v199_v46  ;;  %v271_v55 = vadd.f32 %v618_v7, %v200_v47 }
  0x37   :  { %v272_v56 = vadd.f32 %v618_v7, %v201_v48  ;;  %v273_v57 = vadd.f32 %v618_v7, %v202_v49  ;;  %v332_v59 = vmax.f32 %v268_v50, 0.0  ;;  %v333_v60 = vmax.f32 %v269_v51, 0.0 }
  0x38   :  { %v274_v61 = vadd.f32 %v618_v7, %v203_v52  ;;  %v275_v62 = vadd.f32 %v618_v7, %v204_v53  ;;  %v334_v2 = vmax.f32 %v270_v54, 0.0  ;;  %v335_v3 = vmax.f32 %v271_v55, 0.0 }
  0x39   :  { %v336_v4 = vmax.f32 %v272_v56, 0.0  ;;  %v337_v5 = vmax.f32 %v273_v57, 0.0  ;;  %397 = vst.msk [vmem:[%s1091_s3 + $0x180] sm:$0xff] %vm348_vm0, %v332_v59  ;;  %398 = vst.msk [vmem:[%s1091_s3 + $0x188] sm:$0xff] %vm348_vm0, %v333_v60  ;;  %v533_v10 = vunpack.c.l.bf16 %v574_v58  ;;  %v534_v11 = vunpack.c.h.bf16 %v574_v58 }
  0x3a   :  { %v338_v8 = vmax.f32 %v274_v61, 0.0  ;;  %v339_v9 = vmax.f32 %v275_v62, 0.0  ;;  %399 = vst.msk [vmem:[%s1091_s3 + $0x190] sm:$0xff] %vm348_vm0, %v334_v2  ;;  %400 = vst.msk [vmem:[%s1091_s3 + $0x198] sm:$0xff] %vm348_vm0, %v335_v3  ;;  %v537_v12 = vunpack.c.l.bf16 %v575_v63  ;;  %v538_v13 = vunpack.c.h.bf16 %v575_v63 }
  0x3b   :  { %401 = vst.msk [vmem:[%s1091_s3 + $0x1a0] sm:$0xff] %vm348_vm0, %v336_v4  ;;  %402 = vst.msk [vmem:[%s1091_s3 + $0x1a8] sm:$0xff] %vm348_vm0, %v337_v5  ;;  %v541_v14 = vunpack.c.l.bf16 %v576_v0  ;;  %v542_v15 = vunpack.c.h.bf16 %v576_v0  ;;  %v205_v16 = vmul.f32 %v533_v10, %v604_v1  ;;  %v206_v17 = vmul.f32 %v534_v11, %v604_v1 }
  0x3c   :  { %403 = vst.msk [vmem:[%s1091_s3 + $0x1b0] sm:$0xff] %vm348_vm0, %v338_v8  ;;  %404 = vst.msk [vmem:[%s1091_s3 + $0x1b8] sm:$0xff] %vm348_vm0, %v339_v9  ;;  %v545_v18 = vunpack.c.l.bf16 %v577_v6  ;;  %v546_v19 = vunpack.c.h.bf16 %v577_v6  ;;  %v207_v20 = vmul.f32 %v537_v12, %v604_v1  ;;  %v208_v21 = vmul.f32 %v538_v13, %v604_v1 }
  0x3d   :  { %v209_v22 = vmul.f32 %v541_v14, %v604_v1  ;;  %v210_v23 = vmul.f32 %v542_v15, %v604_v1  ;;  %v276_v24 = vadd.f32 %v618_v7, %v205_v16  ;;  %v277_v25 = vadd.f32 %v618_v7, %v206_v17 }
  0x3e   :  { %v211_v26 = vmul.f32 %v545_v18, %v604_v1  ;;  %v212_v27 = vmul.f32 %v546_v19, %v604_v1  ;;  %v278_v28 = vadd.f32 %v618_v7, %v207_v20  ;;  %v279_v29 = vadd.f32 %v618_v7, %v208_v21 }
  0x3f   :  { %v280_v30 = vadd.f32 %v618_v7, %v209_v22  ;;  %v281_v31 = vadd.f32 %v618_v7, %v210_v23  ;;  %v340_v32 = vmax.f32 %v276_v24, 0.0  ;;  %v341_v33 = vmax.f32 %v277_v25, 0.0 }
  0x40   :  { %v282_v34 = vadd.f32 %v618_v7, %v211_v26  ;;  %v283_v35 = vadd.f32 %v618_v7, %v212_v27  ;;  %v342_v36 = vmax.f32 %v278_v28, 0.0  ;;  %v343_v37 = vmax.f32 %v279_v29, 0.0 }
  0x41   :  { %v344_v38 = vmax.f32 %v280_v30, 0.0  ;;  %v345_v39 = vmax.f32 %v281_v31, 0.0  ;;  %405 = vst.msk [vmem:[%s1091_s3 + $0x1c0] sm:$0xff] %vm348_vm0, %v340_v32  ;;  %406 = vst.msk [vmem:[%s1091_s3 + $0x1c8] sm:$0xff] %vm348_vm0, %v341_v33 }
  0x42   :  { %v346_v1 = vmax.f32 %v282_v34, 0.0  ;;  %v347_v40 = vmax.f32 %v283_v35, 0.0  ;;  %407 = vst.msk [vmem:[%s1091_s3 + $0x1d0] sm:$0xff] %vm348_vm0, %v342_v36  ;;  %408 = vst.msk [vmem:[%s1091_s3 + $0x1d8] sm:$0xff] %vm348_vm0, %v343_v37 }
  0x43   :  { %409 = vst.msk [vmem:[%s1091_s3 + $0x1e0] sm:$0xff] %vm348_vm0, %v344_v38  ;;  %410 = vst.msk [vmem:[%s1091_s3 + $0x1e8] sm:$0xff] %vm348_vm0, %v345_v39 }
  0x44   :  { %411 = vst.msk [vmem:[%s1091_s3 + $0x1f0] sm:$0xff] %vm348_vm0, %v346_v1  ;;  %412 = vst.msk [vmem:[%s1091_s3 + $0x1f8] sm:$0xff] %vm348_vm0, %v347_v40 }

// kernel: inception_b_forward.9
= control target key start
LH: loop header
LB: loop body
LE: loop exit
PB: predicated region body
PF: predicated region fallthrough
CT: control target
= control target key end

     0   :  { %vm336_vm0 = vcmask 1041408   ;;  %vm239_vm1 = vcmask 31744   ;;  %s2124_s1 = inlined_call_operand.vmem [shape: bf16[4,128], index: 1, kind: input, shape index: {}]   ;;  %s2125_s0 = inlined_call_operand.vmem [shape: bf16[512,4], index: 0, kind: input, shape index: {}]   ;;  %s2126_s2 = inlined_call_operand.vmem [shape: bf16[512,128], index: 2, kind: output, shape index: {0}]   ;;  %s2127_s3 = inlined_call_operand.vmem [shape: f32[1,2,128], index: 3, kind: output, shape index: {1}]  }
   0x1   :  { %v78_v0 = vld [vmem:[%s2124_s1] sm:$0x3]  ;;  %v1648_v3 = vld [vmem:[%s2125_s0 + $0x8] sm:$0xff]   ;;  %v1649_v4 = vld [vmem:[%s2125_s0 + $0x10] sm:$0xff]  }
   0x2   :  { %1645 = vmatprep.subr.msk.bf16.mxu0 %vm336_vm0, %v78_v0  ;;  %v338_v1 = vsel %vm336_vm0, %v78_v0, 0  ;;  %v1647_v2 = vld [vmem:[%s2125_s0] sm:$0xff]   ;;  %1646 = vmatprep.subr.msk.bf16.mxu1 %vm336_vm0, %v78_v0  ;;  %v1650_v5 = vld [vmem:[%s2125_s0 + $0x18] sm:$0xff]   ;;  %v1652_v7 = vld [vmem:[%s2125_s0 + $0x28] sm:$0xff]  }
   0x3   :  { %1578 = vmatpush3.bf16.msra.mxu0 %v338_v1  ;;  %1644 = vmatpush3.bf16.msra.mxu1 %v338_v1  ;;  %v1651_v6 = vld [vmem:[%s2125_s0 + $0x20] sm:$0xff]   ;;  %v1653_v8 = vld [vmem:[%s2125_s0 + $0x30] sm:$0xff]   ;;  %v1664_v10 = vld [vmem:[%s2125_s0 + $0x88] sm:$0xff]  }
   0x4   :  { %1579 = vmatprep.mubr.msk.bf16.mxu0 %vm239_vm1, %v1647_v2  ;;  %v1663_v9 = vld [vmem:[%s2125_s0 + $0x80] sm:$0xff]   ;;  %v1665_v11 = vld [vmem:[%s2125_s0 + $0x90] sm:$0xff]   ;;  %v1654_v12 = vld [vmem:[%s2125_s0 + $0x38] sm:$0xff]  }
   0x5   :  { %1611 = vmatprep.mubr.msk.bf16.mxu1 %vm239_vm1, %v1663_v9  ;;  %v1666_v13 = vld [vmem:[%s2125_s0 + $0x98] sm:$0xff]   ;;  %v1667_v14 = vld [vmem:[%s2125_s0 + $0xa0] sm:$0xff]   ;;  %v1668_v16 = vld [vmem:[%s2125_s0 + $0xa8] sm:$0xff]  }
   0x6   :  { %1580 = vmatmul.mubr.msk.bf16.vlgmr.msra.gmra.mrb[0].mxu0 %vm239_vm1, %v1648_v3  ;;  %1612 = vmatmul.mubr.msk.bf16.vlgmr.msra.gmra.mrb[0].mxu1 %vm239_vm1, %v1664_v10  ;;  %v1655_v15 = vld [vmem:[%s2125_s0 + $0x40] sm:$0xff]   ;;  %v1656_v17 = vld [vmem:[%s2125_s0 + $0x48] sm:$0xff]   ;;  %v1669_v18 = vld [vmem:[%s2125_s0 + $0xb0] sm:$0xff]  }
   0x7   :  { %1583 = vmatprep.mubr.msk.bf16.mxu0 %vm239_vm1, %v1649_v4  ;;  %1615 = vmatprep.mubr.msk.bf16.mxu1 %vm239_vm1, %v1665_v11  ;;  %v1657_v19 = vld [vmem:[%s2125_s0 + $0x50] sm:$0xff]   ;;  %v1670_v20 = vld [vmem:[%s2125_s0 + $0xb8] sm:$0xff]   ;;  %v1671_v22 = vld [vmem:[%s2125_s0 + $0xc0] sm:$0xff]  }
   0x8   :  { %v1658_v21 = vld [vmem:[%s2125_s0 + $0x58] sm:$0xff]   ;;  %v1659_v23 = vld [vmem:[%s2125_s0 + $0x60] sm:$0xff]   ;;  %v1672_v24 = vld [vmem:[%s2125_s0 + $0xc8] sm:$0xff]  }
   0x9   :  { %v1660_v25 = vld [vmem:[%s2125_s0 + $0x68] sm:$0xff]   ;;  %v1673_v26 = vld [vmem:[%s2125_s0 + $0xd0] sm:$0xff]   ;;  %v1674_v28 = vld [vmem:[%s2125_s0 + $0xd8] sm:$0xff]  }
   0xa   :  { %v1661_v27 = vld [vmem:[%s2125_s0 + $0x70] sm:$0xff]   ;;  %v1662_v29 = vld [vmem:[%s2125_s0 + $0x78] sm:$0xff]   ;;  %v1675_v30 = vld [vmem:[%s2125_s0 + $0xe0] sm:$0xff]  }
   0xb   :  { %v1676_v31 = vld [vmem:[%s2125_s0 + $0xe8] sm:$0xff]   ;;  %v1677_v32 = vld [vmem:[%s2125_s0 + $0xf0] sm:$0xff]   ;;  %v1678_v33 = vld [vmem:[%s2125_s0 + $0xf8] sm:$0xff]  }
   0xe   :  { %1584 = vmatmul.mubr.msk.bf16.gmra.mrb[4].mxu0 %vm239_vm1, %v1650_v5  ;;  %1616 = vmatmul.mubr.msk.bf16.gmra.mrb[4].mxu1 %vm239_vm1, %v1666_v13 }
   0xf   :  { %1587 = vmatprep.mubr.msk.bf16.mxu0 %vm239_vm1, %v1651_v6  ;;  %1619 = vmatprep.mubr.msk.bf16.mxu1 %vm239_vm1, %v1667_v14 }
  0x16   :  { %1588 = vmatmul.mubr.msk.bf16.gmra.mrb[8].mxu0 %vm239_vm1, %v1652_v7  ;;  %1620 = vmatmul.mubr.msk.bf16.gmra.mrb[8].mxu1 %vm239_vm1, %v1668_v16 }
  0x17   :  { %1591 = vmatprep.mubr.msk.bf16.mxu0 %vm239_vm1, %v1653_v8  ;;  %1623 = vmatprep.mubr.msk.bf16.mxu1 %vm239_vm1, %v1669_v18 }
  0x1e   :  { %1592 = vmatmul.mubr.msk.bf16.gmra.mrb[12].mxu0 %vm239_vm1, %v1654_v12  ;;  %1624 = vmatmul.mubr.msk.bf16.gmra.mrb[12].mxu1 %vm239_vm1, %v1670_v20 }
  0x1f   :  { %1595 = vmatprep.mubr.msk.bf16.mxu0 %vm239_vm1, %v1655_v15  ;;  %1627 = vmatprep.mubr.msk.bf16.mxu1 %vm239_vm1, %v1671_v22 }
  0x26   :  { %1596 = vmatmul.mubr.msk.bf16.gmra.mrb[16].mxu0 %vm239_vm1, %v1656_v17  ;;  %1628 = vmatmul.mubr.msk.bf16.gmra.mrb[16].mxu1 %vm239_vm1, %v1672_v24 }
  0x27   :  { %1599 = vmatprep.mubr.msk.bf16.mxu0 %vm239_vm1, %v1657_v19  ;;  %1631 = vmatprep.mubr.msk.bf16.mxu1 %vm239_vm1, %v1673_v26 }
  0x2e   :  { %1600 = vmatmul.mubr.msk.bf16.gmra.mrb[20].mxu0 %vm239_vm1, %v1658_v21  ;;  %1632 = vmatmul.mubr.msk.bf16.gmra.mrb[20].mxu1 %vm239_vm1, %v1674_v28 }
  0x2f   :  { %1603 = vmatprep.mubr.msk.bf16.mxu0 %vm239_vm1, %v1659_v23  ;;  %1635 = vmatprep.mubr.msk.bf16.mxu1 %vm239_vm1, %v1675_v30 }
  0x36   :  { %1604 = vmatmul.mubr.msk.bf16.gmra.mrb[24].mxu0 %vm239_vm1, %v1660_v25  ;;  %1636 = vmatmul.mubr.msk.bf16.gmra.mrb[24].mxu1 %vm239_vm1, %v1676_v31 }
  0x37   :  { %1607 = vmatprep.mubr.msk.bf16.mxu0 %vm239_vm1, %v1661_v27  ;;  %1639 = vmatprep.mubr.msk.bf16.mxu1 %vm239_vm1, %v1677_v32 }
  0x3e   :  { %1608 = vmatmul.mubr.msk.bf16.gmra.mrb[28].mxu0 %vm239_vm1, %v1662_v29  ;;  %1640 = vmatmul.mubr.msk.bf16.gmra.mrb[28].mxu1 %vm239_vm1, %v1678_v33 }
  0xd9   :  { %v1581_v34 = vpop.f32.mrb[0].mxu0  ;;  %v1842_v0 = vpop.f32.mrb[0].mxu1 }
  0xda   :  { %v374_v35 = vpop.f32.mrb[1].mxu0  ;;  %v1021_v43 = vmul.f32 %v1581_v34, %v1581_v34  ;;  %v1844_v5 = vpop.f32.mrb[1].mxu1 }
  0xdb   :  { %v1582_v36 = vpop.f32.mrb[2].mxu0  ;;  %v1019_v39 = vmul.f32 %v374_v35, %v374_v35  ;;  %v1846_v7 = vpop.f32.mrb[2].mxu1 }
  0xdc   :  { %v1361_v37 = vpack.c.bf16 %v1582_v36, %v1581_v34  ;;  %v377_v38 = vpop.f32.mrb[3].mxu0  ;;  %v1022_v46 = vmul.f32 %v1582_v36, %v1582_v36  ;;  %v1441_v12 = vpack.c.bf16 %v1846_v7, %v1842_v0  ;;  %v1850_v13 = vpop.f32.mrb[3].mxu1 }
  0xdd   :  { %v1356_v40 = vpack.c.bf16 %v377_v38, %v374_v35  ;;  %v949_v41 = vadd.f32 %v377_v38, %v374_v35  ;;  %v1020_v42 = vmul.f32 %v377_v38, %v377_v38  ;;  %v1436_v16 = vpack.c.bf16 %v1850_v13, %v1844_v5 }
  0xde   :  { %1513 = vst [vmem:[%s2126_s2 + $0x8] sm:$0xff] %v1361_v37   ;;  %1529 = vst [vmem:[%s2126_s2 + $0x88] sm:$0xff] %v1441_v12  }
  0xdf   :  { %1357 = vst [vmem:[%s2126_s2] sm:$0xff] %v1356_v40   ;;  %v950_v44 = vadd.f32 %v1581_v34, %v949_v41  ;;  %v1083_v45 = vadd.f32 %v1020_v42, %v1019_v39  ;;  %1528 = vst [vmem:[%s2126_s2 + $0x80] sm:$0xff] %v1436_v16  }
  0xe1   :  { %v1084_v47 = vadd.f32 %v1083_v45, %v1021_v43  ;;  %v1585_v48 = vpop.f32.mrb[4].mxu0  ;;  %v951_v49 = vadd.f32 %v1582_v36, %v950_v44  ;;  %v1866_v24 = vpop.f32.mrb[4].mxu1 }
  0xe2   :  { %v390_v50 = vpop.f32.mrb[5].mxu0  ;;  %v1025_v61 = vmul.f32 %v1585_v48, %v1585_v48  ;;  %v1868_v29 = vpop.f32.mrb[5].mxu1 }
  0xe3   :  { %v952_v51 = vadd.f32 %v951_v49, %v390_v50  ;;  %v1023_v52 = vmul.f32 %v390_v50, %v390_v50  ;;  %v1085_v53 = vadd.f32 %v1084_v47, %v1022_v46  ;;  %v1586_v54 = vpop.f32.mrb[6].mxu0  ;;  %v1870_v31 = vpop.f32.mrb[6].mxu1 }
  0xe4   :  { %v1371_v55 = vpack.c.bf16 %v1586_v54, %v1585_v48  ;;  %v393_v56 = vpop.f32.mrb[7].mxu0  ;;  %v1026_v1 = vmul.f32 %v1586_v54, %v1586_v54  ;;  %v1451_v36 = vpack.c.bf16 %v1870_v31, %v1866_v24  ;;  %v1874_v37 = vpop.f32.mrb[7].mxu1 }
  0xe5   :  { %v1086_v57 = vadd.f32 %v1085_v53, %v1023_v52  ;;  %v1366_v58 = vpack.c.bf16 %v393_v56, %v390_v50  ;;  %v953_v59 = vadd.f32 %v952_v51, %v393_v56  ;;  %v1024_v60 = vmul.f32 %v393_v56, %v393_v56 }
  0xe6   :  { %1515 = vst [vmem:[%s2126_s2 + $0x18] sm:$0xff] %v1371_v55   ;;  %v1446_v40 = vpack.c.bf16 %v1874_v37, %v1868_v29  ;;  %1531 = vst [vmem:[%s2126_s2 + $0x98] sm:$0xff] %v1451_v36  }
  0xe7   :  { %1514 = vst [vmem:[%s2126_s2 + $0x10] sm:$0xff] %v1366_v58   ;;  %v954_v62 = vadd.f32 %v1585_v48, %v953_v59  ;;  %v1087_v63 = vadd.f32 %v1086_v57, %v1024_v60 }
  0xe8   :  { %1530 = vst [vmem:[%s2126_s2 + $0x90] sm:$0xff] %v1446_v40  }
  0xe9   :  { %v1088_v2 = vadd.f32 %v1087_v63, %v1025_v61  ;;  %v1589_v3 = vpop.f32.mrb[8].mxu0  ;;  %v955_v4 = vadd.f32 %v1586_v54, %v954_v62  ;;  %v1890_v48 = vpop.f32.mrb[8].mxu1 }
  0xea   :  { %v406_v6 = vpop.f32.mrb[9].mxu0  ;;  %v1029_v21 = vmul.f32 %v1589_v3, %v1589_v3  ;;  %v1892_v53 = vpop.f32.mrb[9].mxu1 }
  0xeb   :  { %v956_v8 = vadd.f32 %v955_v4, %v406_v6  ;;  %v1027_v9 = vmul.f32 %v406_v6, %v406_v6  ;;  %v1089_v10 = vadd.f32 %v1088_v2, %v1026_v1  ;;  %v1590_v11 = vpop.f32.mrb[10].mxu0  ;;  %v1894_v55 = vpop.f32.mrb[10].mxu1 }
  0xec   :  { %v1381_v14 = vpack.c.bf16 %v1590_v11, %v1589_v3  ;;  %v409_v15 = vpop.f32.mrb[11].mxu0  ;;  %v1030_v25 = vmul.f32 %v1590_v11, %v1590_v11  ;;  %v1461_v60 = vpack.c.bf16 %v1894_v55, %v1890_v48  ;;  %v1898_v61 = vpop.f32.mrb[11].mxu1 }
  0xed   :  { %v1090_v17 = vadd.f32 %v1089_v10, %v1027_v9  ;;  %v1376_v18 = vpack.c.bf16 %v409_v15, %v406_v6  ;;  %v957_v19 = vadd.f32 %v956_v8, %v409_v15  ;;  %v1028_v20 = vmul.f32 %v409_v15, %v409_v15 }
  0xee   :  { %1517 = vst [vmem:[%s2126_s2 + $0x28] sm:$0xff] %v1381_v14   ;;  %v1456_v1 = vpack.c.bf16 %v1898_v61, %v1892_v53  ;;  %1533 = vst [vmem:[%s2126_s2 + $0xa8] sm:$0xff] %v1461_v60  }
  0xef   :  { %1516 = vst [vmem:[%s2126_s2 + $0x20] sm:$0xff] %v1376_v18   ;;  %v958_v22 = vadd.f32 %v1589_v3, %v957_v19  ;;  %v1091_v23 = vadd.f32 %v1090_v17, %v1028_v20 }
  0xf0   :  { %1532 = vst [vmem:[%s2126_s2 + $0xa0] sm:$0xff] %v1456_v1  }
  0xf1   :  { %v1092_v26 = vadd.f32 %v1091_v23, %v1029_v21  ;;  %v1593_v27 = vpop.f32.mrb[12].mxu0  ;;  %v959_v28 = vadd.f32 %v1590_v11, %v958_v22  ;;  %v1914_v11 = vpop.f32.mrb[12].mxu1 }
  0xf2   :  { %v422_v30 = vpop.f32.mrb[13].mxu0  ;;  %v1033_v45 = vmul.f32 %v1593_v27, %v1593_v27  ;;  %v1916_v17 = vpop.f32.mrb[13].mxu1 }
  0xf3   :  { %v960_v32 = vadd.f32 %v959_v28, %v422_v30  ;;  %v1031_v33 = vmul.f32 %v422_v30, %v422_v30  ;;  %v1093_v34 = vadd.f32 %v1092_v26, %v1030_v25  ;;  %v1594_v35 = vpop.f32.mrb[14].mxu0  ;;  %v1918_v19 = vpop.f32.mrb[14].mxu1 }
  0xf4   :  { %v1391_v38 = vpack.c.bf16 %v1594_v35, %v1593_v27  ;;  %v425_v39 = vpop.f32.mrb[15].mxu0  ;;  %v1034_v49 = vmul.f32 %v1594_v35, %v1594_v35  ;;  %v1471_v25 = vpack.c.bf16 %v1918_v19, %v1914_v11  ;;  %v1922_v26 = vpop.f32.mrb[15].mxu1 }
  0xf5   :  { %v1094_v41 = vadd.f32 %v1093_v34, %v1031_v33  ;;  %v1386_v42 = vpack.c.bf16 %v425_v39, %v422_v30  ;;  %v961_v43 = vadd.f32 %v960_v32, %v425_v39  ;;  %v1032_v44 = vmul.f32 %v425_v39, %v425_v39 }
  0xf6   :  { %1519 = vst [vmem:[%s2126_s2 + $0x38] sm:$0xff] %v1391_v38   ;;  %v1466_v30 = vpack.c.bf16 %v1922_v26, %v1916_v17  ;;  %1535 = vst [vmem:[%s2126_s2 + $0xb8] sm:$0xff] %v1471_v25  }
  0xf7   :  { %1518 = vst [vmem:[%s2126_s2 + $0x30] sm:$0xff] %v1386_v42   ;;  %v962_v46 = vadd.f32 %v1593_v27, %v961_v43  ;;  %v1095_v47 = vadd.f32 %v1094_v41, %v1032_v44 }
  0xf8   :  { %1534 = vst [vmem:[%s2126_s2 + $0xb0] sm:$0xff] %v1466_v30  }
  0xf9   :  { %v1096_v50 = vadd.f32 %v1095_v47, %v1033_v45  ;;  %v1597_v51 = vpop.f32.mrb[16].mxu0  ;;  %v963_v52 = vadd.f32 %v1594_v35, %v962_v46  ;;  %v1938_v40 = vpop.f32.mrb[16].mxu1 }
  0xfa   :  { %v438_v54 = vpop.f32.mrb[17].mxu0  ;;  %v1037_v8 = vmul.f32 %v1597_v51, %v1597_v51  ;;  %v1940_v45 = vpop.f32.mrb[17].mxu1 }
  0xfb   :  { %v964_v56 = vadd.f32 %v963_v52, %v438_v54  ;;  %v1035_v57 = vmul.f32 %v438_v54, %v438_v54  ;;  %v1097_v58 = vadd.f32 %v1096_v50, %v1034_v49  ;;  %v1598_v59 = vpop.f32.mrb[18].mxu0  ;;  %v1942_v47 = vpop.f32.mrb[18].mxu1 }
  0xfc   :  { %v1401_v62 = vpack.c.bf16 %v1598_v59, %v1597_v51  ;;  %v441_v63 = vpop.f32.mrb[19].mxu0  ;;  %v1038_v12 = vmul.f32 %v1598_v59, %v1598_v59 }
  0xfd   :  { %v1098_v2 = vadd.f32 %v1097_v58, %v1035_v57  ;;  %v1396_v3 = vpack.c.bf16 %v441_v63, %v438_v54  ;;  %v965_v4 = vadd.f32 %v964_v56, %v441_v63  ;;  %v1036_v6 = vmul.f32 %v441_v63, %v441_v63  ;;  %v1946_v56 = vpop.f32.mrb[19].mxu1 }
  0xfe   :  { %1521 = vst [vmem:[%s2126_s2 + $0x48] sm:$0xff] %v1401_v62   ;;  %v1481_v54 = vpack.c.bf16 %v1942_v47, %v1938_v40 }
  0xff   :  { %1520 = vst [vmem:[%s2126_s2 + $0x40] sm:$0xff] %v1396_v3   ;;  %v966_v9 = vadd.f32 %v1597_v51, %v965_v4  ;;  %v1099_v10 = vadd.f32 %v1098_v2, %v1036_v6 }
 0x100   :  { %1537 = vst [vmem:[%s2126_s2 + $0xc8] sm:$0xff] %v1481_v54  }
 0x101   :  { %v1100_v14 = vadd.f32 %v1099_v10, %v1037_v8  ;;  %v1601_v15 = vpop.f32.mrb[20].mxu0  ;;  %v967_v16 = vadd.f32 %v1598_v59, %v966_v9  ;;  %v1476_v59 = vpack.c.bf16 %v1946_v56, %v1940_v45  ;;  %v1962_v6 = vpop.f32.mrb[20].mxu1 }
 0x102   :  { %v454_v18 = vpop.f32.mrb[21].mxu0  ;;  %v1041_v36 = vmul.f32 %v1601_v15, %v1601_v15 }
 0x103   :  { %v968_v20 = vadd.f32 %v967_v16, %v454_v18  ;;  %v1039_v21 = vmul.f32 %v454_v18, %v454_v18  ;;  %v1101_v22 = vadd.f32 %v1100_v14, %v1038_v12  ;;  %v1602_v23 = vpop.f32.mrb[22].mxu0  ;;  %1536 = vst [vmem:[%s2126_s2 + $0xc0] sm:$0xff] %v1476_v59   ;;  %v1964_v14 = vpop.f32.mrb[21].mxu1 }
 0x104   :  { %v1411_v27 = vpack.c.bf16 %v1602_v23, %v1601_v15  ;;  %v457_v28 = vpop.f32.mrb[23].mxu0  ;;  %v1042_v41 = vmul.f32 %v1602_v23, %v1602_v23  ;;  %v1966_v16 = vpop.f32.mrb[22].mxu1 }
 0x105   :  { %v1102_v32 = vadd.f32 %v1101_v22, %v1039_v21  ;;  %v1406_v33 = vpack.c.bf16 %v457_v28, %v454_v18  ;;  %v969_v34 = vadd.f32 %v968_v20, %v457_v28  ;;  %v1040_v35 = vmul.f32 %v457_v28, %v457_v28  ;;  %v1970_v25 = vpop.f32.mrb[23].mxu1 }
 0x106   :  { %1523 = vst [vmem:[%s2126_s2 + $0x58] sm:$0xff] %v1411_v27   ;;  %v1486_v30 = vpack.c.bf16 %v1970_v25, %v1964_v14 }
 0x107   :  { %1522 = vst [vmem:[%s2126_s2 + $0x50] sm:$0xff] %v1406_v33   ;;  %v970_v38 = vadd.f32 %v1601_v15, %v969_v34  ;;  %v1103_v39 = vadd.f32 %v1102_v32, %v1040_v35 }
 0x108   :  { %1538 = vst [vmem:[%s2126_s2 + $0xd0] sm:$0xff] %v1486_v30  }
 0x109   :  { %v1104_v42 = vadd.f32 %v1103_v39, %v1041_v36  ;;  %v1605_v43 = vpop.f32.mrb[24].mxu0  ;;  %v971_v44 = vadd.f32 %v1602_v23, %v970_v38  ;;  %v1491_v23 = vpack.c.bf16 %v1966_v16, %v1962_v6 }
 0x10a   :  { %v470_v46 = vpop.f32.mrb[25].mxu0  ;;  %v1045_v2 = vmul.f32 %v1605_v43, %v1605_v43 }
 0x10b   :  { %v972_v49 = vadd.f32 %v971_v44, %v470_v46  ;;  %v1043_v50 = vmul.f32 %v470_v46, %v470_v46  ;;  %v1105_v51 = vadd.f32 %v1104_v42, %v1042_v41  ;;  %v1606_v52 = vpop.f32.mrb[26].mxu0  ;;  %1539 = vst [vmem:[%s2126_s2 + $0xd8] sm:$0xff] %v1491_v23   ;;  %v1986_v41 = vpop.f32.mrb[24].mxu1 }
 0x10c   :  { %v1421_v57 = vpack.c.bf16 %v1606_v52, %v1605_v43  ;;  %v473_v58 = vpop.f32.mrb[27].mxu0  ;;  %v1046_v8 = vmul.f32 %v1606_v52, %v1606_v52 }
 0x10d   :  { %v1106_v60 = vadd.f32 %v1105_v51, %v1043_v50  ;;  %v1416_v62 = vpack.c.bf16 %v473_v58, %v470_v46  ;;  %v973_v63 = vadd.f32 %v972_v49, %v473_v58  ;;  %v1044_v1 = vmul.f32 %v473_v58, %v473_v58  ;;  %v1990_v49 = vpop.f32.mrb[25].mxu1 }
 0x10e   :  { %1525 = vst [vmem:[%s2126_s2 + $0x68] sm:$0xff] %v1421_v57   ;;  %v1051_v46 = vmul.f32 %v1844_v5, %v1844_v5  ;;  %v1992_v50 = vpop.f32.mrb[26].mxu1 }
 0x10f   :  { %1524 = vst [vmem:[%s2126_s2 + $0x60] sm:$0xff] %v1416_v62   ;;  %v974_v3 = vadd.f32 %v1605_v43, %v973_v63  ;;  %v1107_v4 = vadd.f32 %v1106_v60, %v1044_v1  ;;  %v1501_v54 = vpack.c.bf16 %v1992_v50, %v1986_v41  ;;  %v1997_v57 = vpop.f32.mrb[27].mxu1  ;;  %v1052_v62 = vmul.f32 %v1850_v13, %v1850_v13 }
 0x110   :  { %v1496_v58 = vpack.c.bf16 %v1997_v57, %v1990_v49 }
 0x111   :  { %v1108_v9 = vadd.f32 %v1107_v4, %v1045_v2  ;;  %v1609_v10 = vpop.f32.mrb[28].mxu0  ;;  %v975_v12 = vadd.f32 %v1606_v52, %v974_v3  ;;  %1541 = vst [vmem:[%s2126_s2 + $0xe8] sm:$0xff] %v1501_v54   ;;  %v2013_v2 = vpop.f32.mrb[28].mxu1  ;;  %v1054_v3 = vmul.f32 %v1846_v7, %v1846_v7  ;;  %v1064_v54 = vmul.f32 %v1922_v26, %v1922_v26 }
 0x112   :  { %v486_v15 = vpop.f32.mrb[29].mxu0  ;;  %v1049_v36 = vmul.f32 %v1609_v10, %v1609_v10  ;;  %1540 = vst [vmem:[%s2126_s2 + $0xe0] sm:$0xff] %v1496_v58  }
 0x113   :  { %v976_v18 = vadd.f32 %v975_v12, %v486_v15  ;;  %v1047_v20 = vmul.f32 %v486_v15, %v486_v15  ;;  %v1109_v21 = vadd.f32 %v1108_v9, %v1046_v8  ;;  %v1610_v22 = vpop.f32.mrb[30].mxu0  ;;  %v1055_v8 = vmul.f32 %v1868_v29, %v1868_v29  ;;  %v2020_v9 = vpop.f32.mrb[29].mxu1 }
 0x114   :  { %v1431_v27 = vpack.c.bf16 %v1610_v22, %v1609_v10  ;;  %v489_v28 = vpop.f32.mrb[31].mxu0  ;;  %v1050_v42 = vmul.f32 %v1610_v22, %v1610_v22 }
 0x115   :  { %v1110_v32 = vadd.f32 %v1109_v21, %v1047_v20  ;;  %v1426_v33 = vpack.c.bf16 %v489_v28, %v486_v15  ;;  %v977_v34 = vadd.f32 %v976_v18, %v489_v28  ;;  %v1048_v35 = vmul.f32 %v489_v28, %v489_v28 }
 0x116   :  { %1527 = vst [vmem:[%s2126_s2 + $0x78] sm:$0xff] %v1431_v27   ;;  %v1058_v28 = vmul.f32 %v1870_v31, %v1870_v31 }
 0x117   :  { %1526 = vst [vmem:[%s2126_s2 + $0x70] sm:$0xff] %v1426_v33   ;;  %v978_v38 = vadd.f32 %v1609_v10, %v977_v34  ;;  %v1111_v39 = vadd.f32 %v1110_v32, %v1048_v35  ;;  %v2022_v10 = vpop.f32.mrb[30].mxu1  ;;  %v1059_v32 = vmul.f32 %v1892_v53, %v1892_v53 }
 0x118   :  { %v2027_v18 = vpop.f32.mrb[31].mxu1 }
 0x119   :  { %v1112_v43 = vadd.f32 %v1111_v39, %v1049_v36  ;;  %v979_v44 = vadd.f32 %v1610_v22, %v978_v38  ;;  %v1506_v20 = vpack.c.bf16 %v2027_v18, %v2020_v9  ;;  %v1056_v22 = vmul.f32 %v1874_v37, %v1874_v37 }
 0x11a   :  { %v1060_v38 = vmul.f32 %v1898_v61, %v1898_v61 }
 0x11b   :  { %v980_v51 = vadd.f32 %v979_v44, %v1844_v5  ;;  %v1113_v52 = vadd.f32 %v1112_v43, %v1050_v42  ;;  %v1053_v5 = vmul.f32 %v1842_v0, %v1842_v0  ;;  %1542 = vst [vmem:[%s2126_s2 + $0xf0] sm:$0xff] %v1506_v20  }
 0x11d   :  { %v1114_v59 = vadd.f32 %v1113_v52, %v1051_v46  ;;  %v981_v60 = vadd.f32 %v980_v51, %v1850_v13 }
 0x11f   :  { %v982_v63 = vadd.f32 %v1842_v0, %v981_v60  ;;  %v1115_v1 = vadd.f32 %v1114_v59, %v1052_v62  ;;  %v1511_v0 = vpack.c.bf16 %v2022_v10, %v2013_v2 }
 0x121   :  { %v1116_v13 = vadd.f32 %v1115_v1, %v1053_v5  ;;  %v983_v4 = vadd.f32 %v1846_v7, %v982_v63  ;;  %1543 = vst [vmem:[%s2126_s2 + $0xf8] sm:$0xff] %v1511_v0  }
 0x123   :  { %v984_v12 = vadd.f32 %v983_v4, %v1868_v29  ;;  %v1117_v15 = vadd.f32 %v1116_v13, %v1054_v3  ;;  %v1057_v29 = vmul.f32 %v1866_v24, %v1866_v24  ;;  %v1068_v3 = vmul.f32 %v1946_v56, %v1946_v56 }
 0x125   :  { %v1118_v21 = vadd.f32 %v1117_v15, %v1055_v8  ;;  %v985_v7 = vadd.f32 %v984_v12, %v1874_v37 }
 0x127   :  { %v986_v23 = vadd.f32 %v1866_v24, %v985_v7  ;;  %v1119_v27 = vadd.f32 %v1118_v21, %v1056_v22  ;;  %v1061_v24 = vmul.f32 %v1890_v48, %v1890_v48  ;;  %v1072_v21 = vmul.f32 %v1970_v25, %v1970_v25 }
 0x129   :  { %v1120_v30 = vadd.f32 %v1119_v27, %v1057_v29  ;;  %v987_v37 = vadd.f32 %v1870_v31, %v986_v23  ;;  %v1062_v31 = vmul.f32 %v1894_v55, %v1894_v55 }
 0x12b   :  { %v988_v33 = vadd.f32 %v987_v37, %v1892_v53  ;;  %v1121_v34 = vadd.f32 %v1120_v30, %v1058_v28  ;;  %v1063_v53 = vmul.f32 %v1916_v17, %v1916_v17  ;;  %v1076_v37 = vmul.f32 %v1997_v57, %v1997_v57 }
 0x12d   :  { %v1122_v35 = vadd.f32 %v1121_v34, %v1059_v32  ;;  %v989_v36 = vadd.f32 %v988_v33, %v1898_v61 }
 0x12f   :  { %v990_v39 = vadd.f32 %v1890_v48, %v989_v36  ;;  %v1123_v42 = vadd.f32 %v1122_v35, %v1060_v38  ;;  %v1065_v48 = vmul.f32 %v1914_v11, %v1914_v11 }
 0x131   :  { %v1124_v43 = vadd.f32 %v1123_v42, %v1061_v24  ;;  %v991_v44 = vadd.f32 %v1894_v55, %v990_v39  ;;  %v1066_v55 = vmul.f32 %v1918_v19, %v1918_v19  ;;  %v1080_v39 = vmul.f32 %v2027_v18, %v2027_v18 }
 0x133   :  { %v992_v46 = vadd.f32 %v991_v44, %v1916_v17  ;;  %v1125_v51 = vadd.f32 %v1124_v43, %v1062_v31  ;;  %v1067_v17 = vmul.f32 %v1940_v45, %v1940_v45 }
 0x135   :  { %v1126_v52 = vadd.f32 %v1125_v51, %v1063_v53  ;;  %v993_v61 = vadd.f32 %v992_v46, %v1922_v26 }
 0x137   :  { %v994_v58 = vadd.f32 %v1914_v11, %v993_v61  ;;  %v1127_v59 = vadd.f32 %v1126_v52, %v1064_v54  ;;  %v1069_v11 = vmul.f32 %v1938_v40, %v1938_v40 }
 0x139   :  { %v1128_v60 = vadd.f32 %v1127_v59, %v1065_v48  ;;  %v995_v62 = vadd.f32 %v1918_v19, %v994_v58  ;;  %v1070_v19 = vmul.f32 %v1942_v47, %v1942_v47 }
 0x13b   :  { %v996_v5 = vadd.f32 %v995_v62, %v1940_v45  ;;  %v1129_v63 = vadd.f32 %v1128_v60, %v1066_v55  ;;  %v1071_v45 = vmul.f32 %v1964_v14, %v1964_v14 }
 0x13d   :  { %v1130_v1 = vadd.f32 %v1129_v63, %v1067_v17  ;;  %v997_v26 = vadd.f32 %v996_v5, %v1946_v56 }
 0x13f   :  { %v998_v13 = vadd.f32 %v1938_v40, %v997_v26  ;;  %v1131_v4 = vadd.f32 %v1130_v1, %v1068_v3  ;;  %v1073_v40 = vmul.f32 %v1962_v6, %v1962_v6 }
 0x141   :  { %v1132_v8 = vadd.f32 %v1131_v4, %v1069_v11  ;;  %v999_v12 = vadd.f32 %v1942_v47, %v998_v13  ;;  %v1074_v47 = vmul.f32 %v1966_v16, %v1966_v16 }
 0x143   :  { %v1000_v15 = vadd.f32 %v999_v12, %v1964_v14  ;;  %v1133_v0 = vadd.f32 %v1132_v8, %v1070_v19  ;;  %v1075_v14 = vmul.f32 %v1990_v49, %v1990_v49 }
 0x145   :  { %v1134_v20 = vadd.f32 %v1133_v0, %v1071_v45  ;;  %v1001_v56 = vadd.f32 %v1000_v15, %v1970_v25 }
 0x147   :  { %v1002_v7 = vadd.f32 %v1962_v6, %v1001_v56  ;;  %v1135_v22 = vadd.f32 %v1134_v20, %v1072_v21  ;;  %v1077_v6 = vmul.f32 %v1986_v41, %v1986_v41 }
 0x149   :  { %v1136_v29 = vadd.f32 %v1135_v22, %v1073_v40  ;;  %v1003_v23 = vadd.f32 %v1966_v16, %v1002_v7  ;;  %v1078_v16 = vmul.f32 %v1992_v50, %v1992_v50 }
 0x14b   :  { %v1004_v27 = vadd.f32 %v1003_v23, %v1990_v49  ;;  %v1137_v28 = vadd.f32 %v1136_v29, %v1074_v47  ;;  %v1079_v49 = vmul.f32 %v2020_v9, %v2020_v9 }
 0x14d   :  { %v1138_v30 = vadd.f32 %v1137_v28, %v1075_v14  ;;  %v1005_v25 = vadd.f32 %v1004_v27, %v1997_v57 }
 0x14f   :  { %v1006_v32 = vadd.f32 %v1986_v41, %v1005_v25  ;;  %v1139_v33 = vadd.f32 %v1138_v30, %v1076_v37  ;;  %v1081_v41 = vmul.f32 %v2013_v2, %v2013_v2 }
 0x151   :  { %v1140_v34 = vadd.f32 %v1139_v33, %v1077_v6  ;;  %v1007_v35 = vadd.f32 %v1992_v50, %v1006_v32  ;;  %v1082_v50 = vmul.f32 %v2022_v10, %v2022_v10 }
 0x153   :  { %v1008_v36 = vadd.f32 %v1007_v35, %v2020_v9  ;;  %v1141_v38 = vadd.f32 %v1140_v34, %v1078_v16 }
 0x155   :  { %v1142_v24 = vadd.f32 %v1141_v38, %v1079_v49  ;;  %v1009_v57 = vadd.f32 %v1008_v36, %v2027_v18 }
 0x157   :  { %v1010_v42 = vadd.f32 %v2013_v2, %v1009_v57  ;;  %v1143_v31 = vadd.f32 %v1142_v24, %v1080_v39 }
 0x159   :  { %v1011_v43 = vadd.f32 %v2022_v10, %v1010_v42  ;;  %v1144_v44 = vadd.f32 %v1143_v31, %v1081_v41 }
 0x15b   :  { %v1012_v9 = vrot.slane %v1011_v43, 4  ;;  %v1145_v53 = vadd.f32 %v1144_v44, %v1082_v50 }
 0x15d   :  { %v1013_v46 = vadd.f32 %v1012_v9, %v1011_v43  ;;  %v1146_v51 = vrot.slane %v1145_v53, 4 }
 0x15f   :  { %v1014_v52 = vrot.slane %v1013_v46, 2  ;;  %v1147_v61 = vadd.f32 %v1146_v51, %v1145_v53 }
 0x161   :  { %v1015_v54 = vadd.f32 %v1014_v52, %v1013_v46  ;;  %v1148_v18 = vrot.slane %v1147_v61, 2 }
 0x163   :  { %v1016_v48 = vrot.slane %v1015_v54, 1  ;;  %v1149_v58 = vadd.f32 %v1148_v18, %v1147_v61 }
 0x165   :  { %v1017_v59 = vadd.f32 %v1016_v48, %v1015_v54  ;;  %v1150_v55 = vrot.slane %v1149_v58, 1 }
 0x167   :  { %1018 = vst [vmem:[%s2127_s3] sm:$0x1] %v1017_v59  ;;  %v1151_v2 = vadd.f32 %v1150_v55, %v1149_v58 }
 0x169   :  { %1152 = vst [vmem:[%s2127_s3 + $0x1] sm:$0x1] %v1151_v2 }

// kernel: inception_b_forward.13
= control target key start
LH: loop header
LB: loop body
LE: loop exit
PB: predicated region body
PF: predicated region fallthrough
CT: control target
= control target key end

     0   :  { %s241_s0 = inlined_call_operand.vmem [shape: bf16[112,128], index: 0, kind: input, shape index: {}]   ;;  %s242_s1 = inlined_call_operand.vmem [shape: f32[1,128], index: 1, kind: input, shape index: {}]   ;;  %s243_s2 = inlined_call_operand.vmem [shape: f32[1,128], index: 2, kind: input, shape index: {}]   ;;  %s244_s3 = inlined_call_operand.vmem [shape: f32[112,128], index: 3, kind: output, shape index: {}]  }
   0x1   :  { %v119_v0 = vld [vmem:[%s241_s0] sm:$0xff]   ;;  %v146_v4 = vld [vmem:[%s241_s0 + $0x8] sm:$0xff]   ;;  %v147_v5 = vld [vmem:[%s241_s0 + $0x10] sm:$0xff]  }
   0x2   :  { %v116_v1 = vld [vmem:[%s242_s1] ss:$0 sm:$0xff]  ;;  %v120_v2 = vunpack.c.l.bf16 %v119_v0  ;;  %v121_v3 = vunpack.c.h.bf16 %v119_v0  ;;  %v148_v6 = vld [vmem:[%s241_s0 + $0x18] sm:$0xff]   ;;  %v124_v8 = vunpack.c.l.bf16 %v146_v4  ;;  %v125_v9 = vunpack.c.h.bf16 %v146_v4  ;;  %v150_v33 = vld [vmem:[%s241_s0 + $0x28] sm:$0xff]  }
   0x3   :  { %v117_v7 = vld [vmem:[%s243_s2] ss:$0 sm:$0xff]  ;;  %v128_v10 = vunpack.c.l.bf16 %v147_v5  ;;  %v129_v11 = vunpack.c.h.bf16 %v147_v5  ;;  %v132_v14 = vunpack.c.l.bf16 %v148_v6  ;;  %v133_v15 = vunpack.c.h.bf16 %v148_v6  ;;  %v151_v34 = vld [vmem:[%s241_s0 + $0x30] sm:$0xff]  }
   0x4   :  { %v49_v12 = vmul.f32 %v120_v2, %v116_v1  ;;  %v50_v13 = vmul.f32 %v121_v3, %v116_v1  ;;  %v51_v16 = vmul.f32 %v124_v8, %v116_v1  ;;  %v52_v17 = vmul.f32 %v125_v9, %v116_v1  ;;  %v149_v28 = vld [vmem:[%s241_s0 + $0x20] sm:$0xff]  }
   0x5   :  { %v53_v18 = vmul.f32 %v128_v10, %v116_v1  ;;  %v54_v19 = vmul.f32 %v129_v11, %v116_v1  ;;  %v55_v22 = vmul.f32 %v132_v14, %v116_v1  ;;  %v56_v23 = vmul.f32 %v133_v15, %v116_v1 }
   0x6   :  { %v70_v20 = vadd.f32 %v117_v7, %v49_v12  ;;  %v71_v21 = vadd.f32 %v117_v7, %v50_v13  ;;  %v72_v24 = vadd.f32 %v117_v7, %v51_v16  ;;  %v73_v25 = vadd.f32 %v117_v7, %v52_v17 }
   0x7   :  { %v74_v26 = vadd.f32 %v117_v7, %v53_v18  ;;  %v75_v27 = vadd.f32 %v117_v7, %v54_v19  ;;  %v76_v31 = vadd.f32 %v117_v7, %v55_v22  ;;  %v77_v32 = vadd.f32 %v117_v7, %v56_v23 }
   0x8   :  { %v84_v29 = vmax.f32 %v70_v20, 0.0  ;;  %v85_v30 = vmax.f32 %v71_v21, 0.0  ;;  %v86_v35 = vmax.f32 %v72_v24, 0.0  ;;  %v87_v36 = vmax.f32 %v73_v25, 0.0 }
   0x9   :  { %v88_v37 = vmax.f32 %v74_v26, 0.0  ;;  %v89_v38 = vmax.f32 %v75_v27, 0.0  ;;  %v90_v39 = vmax.f32 %v76_v31, 0.0  ;;  %v91_v40 = vmax.f32 %v77_v32, 0.0 }
   0xa   :  { %98 = vst [vmem:[%s244_s3] sm:$0xff] %v84_v29  ;;  %99 = vst [vmem:[%s244_s3 + $0x8] sm:$0xff] %v85_v30  ;;  %v136_v41 = vunpack.c.l.bf16 %v149_v28  ;;  %v137_v42 = vunpack.c.h.bf16 %v149_v28  ;;  %v140_v43 = vunpack.c.l.bf16 %v150_v33  ;;  %v141_v44 = vunpack.c.h.bf16 %v150_v33 }
   0xb   :  { %100 = vst [vmem:[%s244_s3 + $0x10] sm:$0xff] %v86_v35  ;;  %101 = vst [vmem:[%s244_s3 + $0x18] sm:$0xff] %v87_v36  ;;  %v144_v45 = vunpack.c.l.bf16 %v151_v34  ;;  %v145_v46 = vunpack.c.h.bf16 %v151_v34 }
   0xc   :  { %102 = vst [vmem:[%s244_s3 + $0x20] sm:$0xff] %v88_v37  ;;  %103 = vst [vmem:[%s244_s3 + $0x28] sm:$0xff] %v89_v38  ;;  %v57_v47 = vmul.f32 %v136_v41, %v116_v1  ;;  %v58_v48 = vmul.f32 %v137_v42, %v116_v1  ;;  %v59_v49 = vmul.f32 %v140_v43, %v116_v1 }
   0xd   :  { %104 = vst [vmem:[%s244_s3 + $0x30] sm:$0xff] %v90_v39  ;;  %105 = vst [vmem:[%s244_s3 + $0x38] sm:$0xff] %v91_v40  ;;  %v60_v50 = vmul.f32 %v141_v44, %v116_v1  ;;  %v61_v51 = vmul.f32 %v144_v45, %v116_v1  ;;  %v62_v52 = vmul.f32 %v145_v46, %v116_v1 }
   0xe   :  { %v78_v53 = vadd.f32 %v117_v7, %v57_v47  ;;  %v79_v54 = vadd.f32 %v117_v7, %v58_v48  ;;  %v80_v55 = vadd.f32 %v117_v7, %v59_v49 }
   0xf   :  { %v81_v56 = vadd.f32 %v117_v7, %v60_v50  ;;  %v82_v57 = vadd.f32 %v117_v7, %v61_v51  ;;  %v83_v58 = vadd.f32 %v117_v7, %v62_v52 }
  0x10   :  { %v92_v59 = vmax.f32 %v78_v53, 0.0  ;;  %v93_v60 = vmax.f32 %v79_v54, 0.0  ;;  %v94_v61 = vmax.f32 %v80_v55, 0.0 }
  0x11   :  { %v95_v62 = vmax.f32 %v81_v56, 0.0  ;;  %v96_v63 = vmax.f32 %v82_v57, 0.0  ;;  %v97_v0 = vmax.f32 %v83_v58, 0.0 }
  0x12   :  { %106 = vst [vmem:[%s244_s3 + $0x40] sm:$0xff] %v92_v59  ;;  %107 = vst [vmem:[%s244_s3 + $0x48] sm:$0xff] %v93_v60 }
  0x13   :  { %108 = vst [vmem:[%s244_s3 + $0x50] sm:$0xff] %v94_v61  ;;  %109 = vst [vmem:[%s244_s3 + $0x58] sm:$0xff] %v95_v62 }
  0x14   :  { %110 = vst [vmem:[%s244_s3 + $0x60] sm:$0xff] %v96_v63  ;;  %111 = vst [vmem:[%s244_s3 + $0x68] sm:$0xff] %v97_v0 }

// kernel: inception_b_forward.11
= control target key start
LH: loop header
LB: loop body
LE: loop exit
PB: predicated region body
PF: predicated region fallthrough
CT: control target
= control target key end

     0   :  { %s4617_s15 = smov 0   ;;  %s6223_s0 = inlined_call_operand.vmem [shape: f32[2,432,64], index: 0, kind: input, shape index: {}]   ;;  %s6224_s1 = inlined_call_operand.vmem [shape: bf16[576,128], index: 1, kind: input, shape index: {}]   ;;  %s6225_s2 = inlined_call_operand.vmem [shape: f32[368,1], index: 2, kind: input, shape index: {}]   ;;  %s6226_s3 = inlined_call_operand.vmem [shape: bf16[2,368,128], index: 3, kind: output, shape index: {0}]   ;;  %s6227_s4 = inlined_call_operand.vmem [shape: f32[2,1,2,128], index: 4, kind: output, shape index: {1}]  }
   0x1 LB: > { %s3917_s16 = sadd.s32 4294967295, %s4586_s15   ;;  %p3921_p0 = scmp.ge.s32.totalorder %s4586_s15, 1  ;;  %s4586_s15 = sphi %s4617_s15, %s15_s15  }
   0x2   : > { %p165_p1 = scmp.lt.s32.totalorder %s4586_s15, 3 }
   0x4   : > { %p166_p2 = pnand %p3921_p0, %p165_p1 }
   0x5   : > { %p195_p3 = scmp.lt.s32.totalorder (!%p166_p2), %s3917_s16, 1  ;;  %v4528_v0 = vld [vmem:[%s6224_s1 + $0x80] sm:$0xff] (!%p166_p2)   ;;  %v4588_v1 = vmov (!%p166_p2), 0   ;;  %v4529_v2 = vld [vmem:[%s6224_s1 + $0x88] sm:$0xff] (!%p166_p2)   ;;  %v4530_v4 = vld [vmem:[%s6224_s1 + $0x90] sm:$0xff] (!%p166_p2)   ;;  %s4589_s5 = smov (!%p166_p2), 64  }
   0x6   : > { %169 = sbr.rel (%p166_p2) target bundleno = 742 (0x2e6), region = 32  ;;  %2695 = vmatprep.subr.bf16.mxu0 (!%p166_p2), %v4588_v1  ;;  %2478 = vmatprep.subr.bf16.mxu1 (!%p166_p2), %v4588_v1  ;;  %v4531_v3 = vld [vmem:[%s6224_s1] sm:$0xff] (!%p166_p2)   ;;  %v4533_v5 = vld [vmem:[%s6224_s1 + $0x8] sm:$0xff] (!%p166_p2)   ;;  %v4532_v10 = vld [vmem:[%s6224_s1 + $0x98] sm:$0xff] (!%p166_p2)   ;;  %vm256_vm0 = vcmask (!%p166_p2), 523264   ;;  %vm533_vm1 = vcmask (!%p166_p2), 1048064  }
   0x7   : > { %2696 = vmatpush1.bf16.msra.mxu0 (!%p166_p2), %v4528_v0  ;;  %4527 = vset.pattern.permute.xlu1 (!%p166_p2), %v4588_v1  ;;  %v4534_v15 = vld [vmem:[%s6224_s1 + $0xa0] sm:$0xff] (!%p166_p2)   ;;  %v4535_v18 = vld [vmem:[%s6224_s1 + $0x10] sm:$0xff] (!%p166_p2)   ;;  %v4536_v20 = vld [vmem:[%s6224_s1 + $0xa8] sm:$0xff] (!%p166_p2)   ;;  %vm4591_vm2 = vmmov (!%p166_p2), 0  }
   0x8   : > { %2697 = vmatprep.subr.bf16.mxu0 (!%p166_p2), %v4588_v1  ;;  %4526 = vset.pattern.permute.xlu0 (!%p166_p2), %v4588_v1  ;;  %v4537_v22 = vld [vmem:[%s6224_s1 + $0x18] sm:$0xff] (!%p166_p2)   ;;  %v4538_v23 = vld [vmem:[%s6224_s1 + $0xb0] sm:$0xff] (!%p166_p2)   ;;  %v4539_v26 = vld [vmem:[%s6224_s1 + $0x20] sm:$0xff] (!%p166_p2)  }
   0x9   : > { %2479 = vmatpush1.bf16.msra.mxu1 (!%p166_p2), %v4531_v3  ;;  %v4540_v27 = vld [vmem:[%s6224_s1 + $0xb8] sm:$0xff] (!%p166_p2)   ;;  %v4541_v30 = vld [vmem:[%s6224_s1 + $0x28] sm:$0xff] (!%p166_p2)   ;;  %v4542_v31 = vld [vmem:[%s6224_s1 + $0xc0] sm:$0xff] (!%p166_p2)  }
   0xa   : > { %2480 = vmatprep.subr.bf16.mxu1 (!%p166_p2), %v4588_v1  ;;  %v4543_v34 = vld [vmem:[%s6224_s1 + $0x30] sm:$0xff] (!%p166_p2)   ;;  %v4544_v35 = vld [vmem:[%s6224_s1 + $0xc8] sm:$0xff] (!%p166_p2)   ;;  %v4545_v38 = vld [vmem:[%s6224_s1 + $0x38] sm:$0xff] (!%p166_p2)  }
   0xb   : > { %2698 = vmatpush1.bf16.msra.mxu0 (!%p166_p2), %v4529_v2  ;;  %v4546_v39 = vld [vmem:[%s6224_s1 + $0xd0] sm:$0xff] (!%p166_p2)   ;;  %v4547_v44 = vld [vmem:[%s6224_s1 + $0x40] sm:$0xff] (!%p166_p2)   ;;  %v4548_v47 = vld [vmem:[%s6224_s1 + $0xd8] sm:$0xff] (!%p166_p2)  }
   0xc   : > { %2699 = vmatprep.subr.bf16.mxu0 (!%p166_p2), %v4588_v1  ;;  %v4549_v50 = vld [vmem:[%s6224_s1 + $0x48] sm:$0xff] (!%p166_p2)   ;;  %v4550_v53 = vld [vmem:[%s6224_s1 + $0xe0] sm:$0xff] (!%p166_p2)   ;;  %v4551_v55 = vld [vmem:[%s6224_s1 + $0x50] sm:$0xff] (!%p166_p2)  }
   0xd   : > { %s6229_s16 = smov (!%p195_p3, %s3917_s16), 1  ;;  %2481 = vmatpush1.bf16.msra.mxu1 %v4533_v5  ;;  %v4552_v58 = vld [vmem:[%s6224_s1 + $0xe8] sm:$0xff]   ;;  %v4553_v63 = vld [vmem:[%s6224_s1 + $0x58] sm:$0xff]   ;;  %v4554_v0 = vld [vmem:[%s6224_s1 + $0xf0] sm:$0xff]  }
   0xe   : > { %s4512_s21 = smul.u32 432, %s6229_s16  ;;  %2482 = vmatprep.subr.bf16.mxu1 %v4588_v1 }
   0xf   : > { %2700 = vmatpush1.bf16.msra.mxu0 %v4530_v4  ;;  %s4513_s8 = smul.u32 184, %s6229_s16 }
  0x10   : > { %s4648_s28 = scalar_lea.vmem %s6223_s0, %s4512_s21  ;;  %2701 = vmatprep.subr.bf16.mxu0 %v4588_v1 }
  0x11   : > { %v4654_v6 = vld [vmem:[%s4648_s28 + $0x29] sm:$0xff]  ;;  %v1040_v7 = vld [vmem:[%s4648_s28 + $0x16] sm:$0xff]  ;;  %v1041_v9 = vld [vmem:[%s4648_s28 + $0x1e] sm:$0xff]  ;;  %2483 = vmatpush1.bf16.msra.mxu1 %v4535_v18  ;;  %s6169_s11 = scalar_lea.vmem %s6226_s3, %s4513_s8 }
  0x12   : > { %1500 = vrot.lane.b32.xlu0 %v4654_v6, %s4589_s5  ;;  %1132 = vrot.lane.b32.xlu1 %v1040_v7, %s4589_s5  ;;  %v4663_v8 = vld [vmem:[%s4648_s28 + $0x31] sm:$0xff]  ;;  %v673_v11 = vld [vmem:[%s4648_s28 + $0x1c] sm:$0xff] }
  0x13   : > { %v672_v12 = vld [vmem:[%s4648_s28 + $0x14] sm:$0xff]  ;;  %2702 = vmatpush1.bf16.msra.mxu0 %v4532_v10  ;;  %v4680_v13 = vld [vmem:[%s4648_s28 + $0x41] sm:$0xff]  ;;  %v304_v16 = vld [vmem:[%s4648_s28 + $0x9] sm:$0xff]  ;;  %2484 = vmatprep.subr.bf16.mxu1 %v4588_v1 }
  0x14   : > { %2703 = vmatprep.subr.bf16.mxu0 %v4588_v1  ;;  %v4683_v14 = vld [vmem:[%s4648_s28 + $0x39] sm:$0xff]  ;;  %v303_v17 = vld [vmem:[%s4648_s28 + $0x1] sm:$0xff]  ;;  %v1043_v19 = vld [vmem:[%s4648_s28 + $0x2e] sm:$0xff] }
  0x15   : > { %v1042_v21 = vld [vmem:[%s4648_s28 + $0x26] sm:$0xff]  ;;  %2485 = vmatpush1.bf16.msra.mxu1 %v4537_v22  ;;  %v4725_v28 = vld [vmem:[%s4648_s28 + $0x51] sm:$0xff]  ;;  %v306_v32 = vld [vmem:[%s4648_s28 + $0x19] sm:$0xff] }
  0x16   : > { %1502 = vrot.lane.b32.xlu0 %v4663_v8, %s4589_s5  ;;  %1134 = vrot.lane.b32.xlu1 %v1041_v9, %s4589_s5  ;;  %v675_v24 = vld [vmem:[%s4648_s28 + $0x2c] sm:$0xff]  ;;  %v674_v25 = vld [vmem:[%s4648_s28 + $0x24] sm:$0xff] }
  0x17   : > { %2704 = vmatpush1.bf16.msra.mxu0 %v4534_v15  ;;  %2486 = vmatprep.subr.bf16.mxu1 %v4588_v1  ;;  %v4731_v29 = vld [vmem:[%s4648_s28 + $0x49] sm:$0xff]  ;;  %v305_v33 = vld [vmem:[%s4648_s28 + $0x11] sm:$0xff]  ;;  %v1045_v36 = vld [vmem:[%s4648_s28 + $0x3e] sm:$0xff] }
  0x18   : > { %2705 = vmatprep.subr.bf16.mxu0 %v4588_v1  ;;  %v1044_v37 = vld [vmem:[%s4648_s28 + $0x36] sm:$0xff]  ;;  %v1316_v40 = vld [vmem:[%s4648_s28 + $0x28] sm:$0xff]  ;;  %v1319_v56 = vld [vmem:[%s4648_s28 + $0x40] sm:$0xff] }
  0x19   : > { %2487 = vmatpush1.bf16.msra.mxu1 %v4539_v26  ;;  %1362 = vst.msk [vmem:[#allocation2 + $0x18] sm:$0xff] %vm256_vm0, %v1316_v40  ;;  %v948_v41 = vld [vmem:[%s4648_s28 + $0x15] sm:$0xff]  ;;  %262 = vst.msk [vmem:[#allocation2 + $0xc8] sm:$0xff] %vm256_vm0, %v1316_v40  ;;  %v949_v46 = vld [vmem:[%s4648_s28 + $0x1d] sm:$0xff] }
  0x1a   : > { %766 = vrot.lane.b32.xlu1 %v673_v11, %s4589_s5  ;;  %764 = vrot.lane.b32.xlu0 %v672_v12, %s4589_s5  ;;  %v677_v42 = vld [vmem:[%s4648_s28 + $0x3c] sm:$0xff]  ;;  %v676_v43 = vld [vmem:[%s4648_s28 + $0x34] sm:$0xff]  ;;  %994 = vst.msk [vmem:[#allocation2 + $0x10] sm:$0xff] %vm256_vm0, %v948_v41  ;;  %995 = vst.msk [vmem:[#allocation2 + $0x38] sm:$0xff] %vm256_vm0, %v949_v46 }
  0x1b   : > { %2706 = vmatpush1.bf16.msra.mxu0 %v4536_v20  ;;  %2488 = vmatprep.subr.bf16.mxu1 %v4588_v1  ;;  %v1317_v45 = vld [vmem:[%s4648_s28 + $0x30] sm:$0xff]  ;;  %v4789_v48 = vld [vmem:[%s4648_s28 + $0x61] sm:$0xff]  ;;  %v4792_v49 = vld [vmem:[%s4648_s28 + $0x59] sm:$0xff]  ;;  %1365 = vst.msk [vmem:[#allocation2 + $0x90] sm:$0xff] %vm256_vm0, %v1319_v56 }
  0x1c   : > { %2707 = vmatprep.subr.bf16.mxu0 %v4588_v1  ;;  %1363 = vst.msk [vmem:[#allocation2 + $0x40] sm:$0xff] %vm256_vm0, %v1317_v45  ;;  %263 = vst.msk [vmem:[#allocation2 + $0xf0] sm:$0xff] %vm256_vm0, %v1317_v45  ;;  %v581_v51 = vld [vmem:[%s4648_s28 + $0xa] sm:$0xff]  ;;  %v580_v52 = vld [vmem:[%s4648_s28 + $0x2] sm:$0xff] }
  0x1d   : > { %2489 = vmatpush1.bf16.msra.mxu1 %v4541_v30  ;;  %627 = vst.msk [vmem:[#allocation2 + $0x30] sm:$0xff] %vm256_vm0, %v581_v51  ;;  %626 = vst.msk [vmem:[#allocation2 + $0x8] sm:$0xff] %vm256_vm0, %v580_v52  ;;  %v307_v54 = vld [vmem:[%s4648_s28 + $0x21] sm:$0xff]  ;;  %v1318_v57 = vld [vmem:[%s4648_s28 + $0x38] sm:$0xff] }
  0x1e   : > { %1506 = vrot.lane.b32.xlu1 %v4680_v13, %s4589_s5  ;;  %1504 = vrot.lane.b32.xlu0 %v4683_v14, %s4589_s5  ;;  %265 = vst.msk [vmem:[#allocation2 + $0x140] sm:$0xff] %vm256_vm0, %v1319_v56  ;;  %1364 = vst.msk [vmem:[#allocation2 + $0x68] sm:$0xff] %vm256_vm0, %v1318_v57  ;;  %v211_v59 = vld [vmem:[%s4648_s28 + $0x8] sm:$0xff]  ;;  %v210_v60 = vld [vmem:[%s4648_s28] sm:$0xff] }
  0x1f   : > { %2708 = vmatpush1.bf16.msra.mxu0 %v4538_v23  ;;  %2490 = vmatprep.subr.bf16.mxu1 %v4588_v1  ;;  %264 = vst.msk [vmem:[#allocation2 + $0x118] sm:$0xff] %vm256_vm0, %v1318_v57  ;;  %v1047_v61 = vld [vmem:[%s4648_s28 + $0x4e] sm:$0xff]  ;;  %v1046_v62 = vld [vmem:[%s4648_s28 + $0x46] sm:$0xff]  ;;  %258 = vst.msk [vmem:[#allocation2 + $0x28] sm:$0xff] %vm256_vm0, %v211_v59 }
  0x20   : > { %2709 = vmatprep.subr.bf16.mxu0 %v4588_v1  ;;  %257 = vst.msk [vmem:[#allocation2] sm:$0xff] %vm256_vm0, %v210_v60  ;;  %v951_v2 = vld [vmem:[%s4648_s28 + $0x2d] sm:$0xff]  ;;  %v950_v3 = vld [vmem:[%s4648_s28 + $0x25] sm:$0xff]  ;;  %v4556_v9 = vld [vmem:[%s6224_s1 + $0xf8] sm:$0xff]  }
  0x21   : > { %2491 = vmatpush1.bf16.msra.mxu1 %v4543_v34  ;;  %v679_v4 = vld [vmem:[%s4648_s28 + $0x4c] sm:$0xff]  ;;  %997 = vst.msk [vmem:[#allocation2 + $0x88] sm:$0xff] %vm256_vm0, %v951_v2  ;;  %996 = vst.msk [vmem:[#allocation2 + $0x60] sm:$0xff] %vm256_vm0, %v950_v3  ;;  %v678_v5 = vld [vmem:[%s4648_s28 + $0x44] sm:$0xff] }
  0x22   : > { %397 = vrot.lane.b32.xlu1 %v304_v16, %s4589_s5  ;;  %395 = vrot.lane.b32.xlu0 %v303_v17, %s4589_s5  ;;  %v4555_v7 = vld [vmem:[%s6224_s1 + $0x60] sm:$0xff]   ;;  %v582_v10 = vld [vmem:[%s4648_s28 + $0x12] sm:$0xff] }
  0x23   : > { %2710 = vmatpush1.bf16.msra.mxu0 %v4540_v27  ;;  %2492 = vmatprep.subr.bf16.mxu1 %v4588_v1  ;;  %628 = vst.msk [vmem:[#allocation2 + $0x58] sm:$0xff] %vm256_vm0, %v582_v10  ;;  %v1321_v11 = vld [vmem:[%s4648_s28 + $0x50] sm:$0xff]  ;;  %v1320_v12 = vld [vmem:[%s4648_s28 + $0x48] sm:$0xff]  ;;  %v213_v15 = vld [vmem:[%s4648_s28 + $0x18] sm:$0xff] }
  0x24   : > { %2711 = vmatprep.subr.bf16.mxu0 %v4588_v1  ;;  %v4868_v16 = vld [vmem:[%s4648_s28 + $0x71] sm:$0xff]  ;;  %1367 = vst.msk [vmem:[#allocation2 + $0xe0] sm:$0xff] %vm256_vm0, %v1321_v11  ;;  %1366 = vst.msk [vmem:[#allocation2 + $0xb8] sm:$0xff] %vm256_vm0, %v1320_v12  ;;  %v953_v18 = vld [vmem:[%s4648_s28 + $0x3d] sm:$0xff] }
  0x25   : > { %2493 = vmatpush1.bf16.msra.mxu1 %v4545_v38  ;;  %260 = vst.msk [vmem:[#allocation2 + $0x78] sm:$0xff] %vm256_vm0, %v213_v15  ;;  %v212_v17 = vld [vmem:[%s4648_s28 + $0x10] sm:$0xff]  ;;  %266 = vst.msk [vmem:[#allocation2 + $0x168] sm:$0xff] %vm256_vm0, %v1320_v12  ;;  %v584_v23 = vld [vmem:[%s4648_s28 + $0x22] sm:$0xff] }
  0x26   : > { %1138 = vrot.lane.b32.xlu1 %v1043_v19, %s4589_s5  ;;  %1136 = vrot.lane.b32.xlu0 %v1042_v21, %s4589_s5  ;;  %267 = vst.msk [vmem:[#allocation2 + $0x190] sm:$0xff] %vm256_vm0, %v1321_v11  ;;  %259 = vst.msk [vmem:[#allocation2 + $0x50] sm:$0xff] %vm256_vm0, %v212_v17  ;;  %v952_v19 = vld [vmem:[%s4648_s28 + $0x35] sm:$0xff]  ;;  %v4883_v20 = vld [vmem:[%s4648_s28 + $0x69] sm:$0xff] }
  0x27   : > { %2712 = vmatpush1.bf16.msra.mxu0 %v4542_v31  ;;  %2494 = vmatprep.subr.bf16.mxu1 %v4588_v1  ;;  %v4557_v21 = vld [vmem:[%s6224_s1 + $0x68] sm:$0xff]   ;;  %999 = vst.msk [vmem:[#allocation2 + $0xd8] sm:$0xff] %vm256_vm0, %v953_v18  ;;  %998 = vst.msk [vmem:[#allocation2 + $0xb0] sm:$0xff] %vm256_vm0, %v952_v19  ;;  %v214_v26 = vld [vmem:[%s4648_s28 + $0x20] sm:$0xff] }
  0x28   : > { %2713 = vmatprep.subr.bf16.mxu0 %v4588_v1  ;;  %v585_v22 = vld [vmem:[%s4648_s28 + $0x2a] sm:$0xff]  ;;  %630 = vst.msk [vmem:[#allocation2 + $0xa8] sm:$0xff] %vm256_vm0, %v584_v23  ;;  %261 = vst.msk [vmem:[#allocation2 + $0xa0] sm:$0xff] %vm256_vm0, %v214_v26  ;;  %v1049_v34 = vld [vmem:[%s4648_s28 + $0x5e] sm:$0xff] }
  0x29   : > { %2495 = vmatpush1.bf16.msra.mxu1 %v4547_v44  ;;  %631 = vst.msk [vmem:[#allocation2 + $0xd0] sm:$0xff] %vm256_vm0, %v585_v22  ;;  %v4558_v27 = vld [vmem:[%s6224_s1 + $0x70] sm:$0xff]   ;;  %v954_v31 = vld [vmem:[%s4648_s28 + $0x45] sm:$0xff]  ;;  %v4559_v38 = vld [vmem:[%s6224_s1 + $0x78] sm:$0xff]  }
  0x2a   : > { %770 = vrot.lane.b32.xlu1 %v675_v24, %s4589_s5  ;;  %768 = vrot.lane.b32.xlu0 %v674_v25, %s4589_s5  ;;  %v1323_v24 = vld [vmem:[%s4648_s28 + $0x60] sm:$0xff]  ;;  %v1322_v25 = vld [vmem:[%s4648_s28 + $0x58] sm:$0xff]  ;;  %1000 = vst.msk [vmem:[#allocation2 + $0x100] sm:$0xff] %vm256_vm0, %v954_v31 }
  0x2b   : > { %2714 = vmatpush1.bf16.msra.mxu0 %v4544_v35  ;;  %2496 = vmatprep.subr.bf16.mxu1 %v4588_v1  ;;  %1369 = vst.msk [vmem:[#allocation2 + $0x130] sm:$0xff] %vm256_vm0, %v1323_v24  ;;  %1368 = vst.msk [vmem:[#allocation2 + $0x108] sm:$0xff] %vm256_vm0, %v1322_v25  ;;  %v955_v30 = vld [vmem:[%s4648_s28 + $0x4d] sm:$0xff]  ;;  %v588_v40 = vld [vmem:[%s4648_s28 + $0x42] sm:$0xff] }
  0x2c   : > { %2715 = vmatprep.subr.bf16.mxu0 %v4588_v1  ;;  %268 = vst.msk [vmem:[#allocation2 + $0x1b8] sm:$0xff] %vm256_vm0, %v1322_v25  ;;  %269 = vst.msk [vmem:[#allocation2 + $0x1e0] sm:$0xff] %vm256_vm0, %v1323_v24  ;;  %v1325_v35 = vld [vmem:[%s4648_s28 + $0x70] sm:$0xff]  ;;  %v1327_v41 = vld [vmem:[%s4648_s28 + $0x80] sm:$0xff] }
  0x2d   : > { %2497 = vmatpush1.bf16.msra.mxu1 %v4549_v50  ;;  %1001 = vst.msk [vmem:[#allocation2 + $0x128] sm:$0xff] %vm256_vm0, %v955_v30  ;;  %1371 = vst.msk [vmem:[#allocation2 + $0x180] sm:$0xff] %vm256_vm0, %v1325_v35  ;;  %v680_v44 = vld [vmem:[%s4648_s28 + $0x54] sm:$0xff]  ;;  %v958_v46 = vld [vmem:[%s4648_s28 + $0x65] sm:$0xff] }
  0x2e   : > { %1510 = vrot.lane.b32.xlu1 %v4725_v28, %s4589_s5  ;;  %1508 = vrot.lane.b32.xlu0 %v4731_v29, %s4589_s5  ;;  %271 = vst.msk [vmem:[#allocation2 + $0x230] sm:$0xff] %vm256_vm0, %v1325_v35  ;;  %634 = vst.msk [vmem:[#allocation2 + $0x148] sm:$0xff] %vm256_vm0, %v588_v40  ;;  %v959_v45 = vld [vmem:[%s4648_s28 + $0x6d] sm:$0xff]  ;;  %v4962_v50 = vld [vmem:[%s4648_s28 + $0x79] sm:$0xff] }
  0x2f   : > { %2716 = vmatpush1.bf16.msra.mxu0 %v4546_v39  ;;  %2498 = vmatprep.subr.bf16.mxu1 %v4588_v1  ;;  %v589_v39 = vld [vmem:[%s4648_s28 + $0x4a] sm:$0xff]  ;;  %1373 = vst.msk [vmem:[#allocation2 + $0x1d0] sm:$0xff] %vm256_vm0, %v1327_v41  ;;  %273 = vst.msk [vmem:[#allocation2 + $0x280] sm:$0xff] %vm256_vm0, %v1327_v41  ;;  %v591_v51 = vld [vmem:[%s4648_s28 + $0x5a] sm:$0xff] }
  0x30   : > { %2717 = vmatprep.subr.bf16.mxu0 %v4588_v1  ;;  %635 = vst.msk [vmem:[#allocation2 + $0x170] sm:$0xff] %vm256_vm0, %v589_v39  ;;  %1005 = vst.msk [vmem:[#allocation2 + $0x1c8] sm:$0xff] %vm256_vm0, %v959_v45  ;;  %v590_v52 = vld [vmem:[%s4648_s28 + $0x52] sm:$0xff]  ;;  %v1050_v56 = vld [vmem:[%s4648_s28 + $0x66] sm:$0xff] }
  0x31   : > { %2499 = vmatpush1.bf16.msra.mxu1 %v4551_v55  ;;  %1004 = vst.msk [vmem:[#allocation2 + $0x1a0] sm:$0xff] %vm256_vm0, %v958_v46  ;;  %637 = vst.msk [vmem:[#allocation2 + $0x1c0] sm:$0xff] %vm256_vm0, %v591_v51  ;;  %v1051_v55 = vld [vmem:[%s4648_s28 + $0x6e] sm:$0xff]  ;;  %v961_v59 = vld [vmem:[%s4648_s28 + $0x7d] sm:$0xff] }
  0x32   : > { %401 = vrot.lane.b32.xlu1 %v306_v32, %s4589_s5  ;;  %399 = vrot.lane.b32.xlu0 %v305_v33, %s4589_s5  ;;  %v587_v32 = vld [vmem:[%s4648_s28 + $0x3a] sm:$0xff]  ;;  %v586_v33 = vld [vmem:[%s4648_s28 + $0x32] sm:$0xff]  ;;  %636 = vst.msk [vmem:[#allocation2 + $0x198] sm:$0xff] %vm256_vm0, %v590_v52  ;;  %1007 = vst.msk [vmem:[#allocation2 + $0x218] sm:$0xff] %vm256_vm0, %v961_v59 }
  0x33   : > { %2718 = vmatpush1.bf16.msra.mxu0 %v4548_v47  ;;  %2500 = vmatprep.subr.bf16.mxu1 %v4588_v1  ;;  %633 = vst.msk [vmem:[#allocation2 + $0x120] sm:$0xff] %vm256_vm0, %v587_v32  ;;  %632 = vst.msk [vmem:[#allocation2 + $0xf8] sm:$0xff] %vm256_vm0, %v586_v33  ;;  %v4959_v47 = vld [vmem:[%s4648_s28 + $0x81] sm:$0xff]  ;;  %v683_v57 = vld [vmem:[%s4648_s28 + $0x6c] sm:$0xff] }
  0x34   : > { %2719 = vmatprep.subr.bf16.mxu0 %v4588_v1  ;;  %v960_v60 = vld [vmem:[%s4648_s28 + $0x75] sm:$0xff]  ;;  %v1053_v3 = vld [vmem:[%s4648_s28 + $0x7e] sm:$0xff]  ;;  %v1332_v15 = vld [vmem:[%s4648_s28 + $0xa8] sm:$0xff] }
  0x35   : > { %2501 = vmatpush1.bf16.msra.mxu1 %v4553_v63  ;;  %1006 = vst.msk [vmem:[#allocation2 + $0x1f0] sm:$0xff] %vm256_vm0, %v960_v60  ;;  %v592_v63 = vld [vmem:[%s4648_s28 + $0x62] sm:$0xff]  ;;  %v1330_v2 = vld [vmem:[%s4648_s28 + $0x98] sm:$0xff]  ;;  %v1333_v12 = vld [vmem:[%s4648_s28 + $0xb0] sm:$0xff] }
  0x36   : > { %1142 = vrot.lane.b32.xlu1 %v1045_v36, %s4589_s5  ;;  %1140 = vrot.lane.b32.xlu0 %v1044_v37, %s4589_s5  ;;  %v1048_v36 = vld [vmem:[%s4648_s28 + $0x56] sm:$0xff]  ;;  %v1324_v37 = vld [vmem:[%s4648_s28 + $0x68] sm:$0xff]  ;;  %638 = vst.msk [vmem:[#allocation2 + $0x1e8] sm:$0xff] %vm256_vm0, %v592_v63  ;;  %1376 = vst.msk [vmem:[#allocation2 + $0x248] sm:$0xff] %vm256_vm0, %v1330_v2 }
  0x37   : > { %2720 = vmatpush1.bf16.msra.mxu0 %v4550_v53  ;;  %2502 = vmatprep.subr.bf16.mxu1 %v4588_v1  ;;  %1370 = vst.msk [vmem:[#allocation2 + $0x158] sm:$0xff] %vm256_vm0, %v1324_v37  ;;  %270 = vst.msk [vmem:[#allocation2 + $0x208] sm:$0xff] %vm256_vm0, %v1324_v37  ;;  %v1329_v53 = vld [vmem:[%s4648_s28 + $0x90] sm:$0xff]  ;;  %v595_v10 = vld [vmem:[%s4648_s28 + $0x7a] sm:$0xff] }
  0x38   : > { %2721 = vmatprep.subr.bf16.mxu0 %v4588_v1  ;;  %1375 = vst.msk [vmem:[#allocation2 + $0x220] sm:$0xff] %vm256_vm0, %v1329_v53  ;;  %275 = vst.msk [vmem:[#allocation2 + $0x2d0] sm:$0xff] %vm256_vm0, %v1329_v53  ;;  %v594_v11 = vld [vmem:[%s4648_s28 + $0x72] sm:$0xff]  ;;  %v1054_v18 = vld [vmem:[%s4648_s28 + $0x86] sm:$0xff] }
  0x39   : > { %2503 = vmatpush1.bf16.msra.mxu1 %v4555_v7  ;;  %276 = vst.msk [vmem:[#allocation2 + $0x2f8] sm:$0xff] %vm256_vm0, %v1330_v2  ;;  %v963_v7 = vld [vmem:[%s4648_s28 + $0x8d] sm:$0xff]  ;;  %641 = vst.msk [vmem:[#allocation2 + $0x260] sm:$0xff] %vm256_vm0, %v595_v10  ;;  %v686_v22 = vld [vmem:[%s4648_s28 + $0x84] sm:$0xff] }
  0x3a   : > { %774 = vrot.lane.b32.xlu1 %v677_v42, %s4589_s5  ;;  %772 = vrot.lane.b32.xlu0 %v676_v43, %s4589_s5  ;;  %v1326_v42 = vld [vmem:[%s4648_s28 + $0x78] sm:$0xff]  ;;  %1009 = vst.msk [vmem:[#allocation2 + $0x268] sm:$0xff] %vm256_vm0, %v963_v7  ;;  %640 = vst.msk [vmem:[#allocation2 + $0x238] sm:$0xff] %vm256_vm0, %v594_v11  ;;  %v1055_v17 = vld [vmem:[%s4648_s28 + $0x8e] sm:$0xff] }
  0x3b   : > { %2722 = vmatpush1.bf16.msra.mxu0 %v4552_v58  ;;  %2504 = vmatprep.subr.bf16.mxu1 %v4588_v1  ;;  %v681_v43 = vld [vmem:[%s4648_s28 + $0x5c] sm:$0xff]  ;;  %1372 = vst.msk [vmem:[#allocation2 + $0x1a8] sm:$0xff] %vm256_vm0, %v1326_v42  ;;  %272 = vst.msk [vmem:[#allocation2 + $0x258] sm:$0xff] %vm256_vm0, %v1326_v42  ;;  %v682_v58 = vld [vmem:[%s4648_s28 + $0x64] sm:$0xff] }
  0x3c   : > { %2723 = vmatprep.subr.bf16.mxu0 %v4588_v1  ;;  %1379 = vst.msk [vmem:[#allocation2 + $0x2c0] sm:$0xff] %vm256_vm0, %v1333_v12  ;;  %1378 = vst.msk [vmem:[#allocation2 + $0x298] sm:$0xff] %vm256_vm0, %v1332_v15  ;;  %v964_v23 = vld [vmem:[%s4648_s28 + $0x95] sm:$0xff]  ;;  %v597_v30 = vld [vmem:[%s4648_s28 + $0x8a] sm:$0xff] }
  0x3d   : > { %2505 = vmatpush1.bf16.msra.mxu1 %v4557_v21  ;;  %278 = vst.msk [vmem:[#allocation2 + $0x348] sm:$0xff] %vm256_vm0, %v1332_v15  ;;  %279 = vst.msk [vmem:[#allocation2 + $0x370] sm:$0xff] %vm256_vm0, %v1333_v12  ;;  %v5074_v26 = vld [vmem:[%s4648_s28 + $0xb1] sm:$0xff]  ;;  %v596_v31 = vld [vmem:[%s4648_s28 + $0x82] sm:$0xff] }
  0x3e   : > { %1514 = vrot.lane.b32.xlu1 %v4789_v48, %s4589_s5  ;;  %1512 = vrot.lane.b32.xlu0 %v4792_v49, %s4589_s5  ;;  %1010 = vst.msk [vmem:[#allocation2 + $0x290] sm:$0xff] %vm256_vm0, %v964_v23  ;;  %643 = vst.msk [vmem:[#allocation2 + $0x2b0] sm:$0xff] %vm256_vm0, %v597_v30  ;;  %v1335_v35 = vld [vmem:[%s4648_s28 + $0xc0] sm:$0xff]  ;;  %v4562_v2 = vld [vmem:[%s6224_s1 + $0x110] sm:$0xff]  }
  0x3f   : > { %2724 = vmatpush1.bf16.msra.mxu0 %v4554_v0  ;;  %2506 = vmatprep.subr.bf16.mxu1 %v4588_v1  ;;  %v1331_v0 = vld [vmem:[%s4648_s28 + $0xa0] sm:$0xff]  ;;  %642 = vst.msk [vmem:[#allocation2 + $0x288] sm:$0xff] %vm256_vm0, %v596_v31  ;;  %1741 = vst.msk [vmem:[#allocation2 + $0x1d8] sm:$0xff] %vm256_vm0, %v596_v31  ;;  %v1337_v11 = vld [vmem:[%s4648_s28 + $0xd0] sm:$0xff] }
  0x40   : > { %2725 = vmatprep.subr.bf16.mxu0 %v4588_v1  ;;  %1377 = vst.msk [vmem:[#allocation2 + $0x270] sm:$0xff] %vm256_vm0, %v1331_v0  ;;  %277 = vst.msk [vmem:[#allocation2 + $0x320] sm:$0xff] %vm256_vm0, %v1331_v0  ;;  %v4560_v42 = vld [vmem:[%s6224_s1 + $0x100] sm:$0xff]   ;;  %v1336_v12 = vld [vmem:[%s4648_s28 + $0xc8] sm:$0xff] }
  0x41   : > { %2507 = vmatpush1.bf16.msra.mxu1 %v4558_v27  ;;  %v5077_v27 = vld [vmem:[%s4648_s28 + $0xa9] sm:$0xff]  ;;  %1381 = vst.msk [vmem:[#allocation2 + $0x310] sm:$0xff] %vm256_vm0, %v1335_v35  ;;  %281 = vst.msk [vmem:[#allocation2 + $0x3c0] sm:$0xff] %vm256_vm0, %v1335_v35  ;;  %v689_v53 = vld [vmem:[%s4648_s28 + $0x9c] sm:$0xff] }
  0x42   : > { %405 = vrot.lane.b32.xlu1 %v4654_v6, %s4589_s5  ;;  %403 = vrot.lane.b32.xlu0 %v307_v54, %s4589_s5  ;;  %v583_v6 = vld [vmem:[%s4648_s28 + $0x1a] sm:$0xff]  ;;  %v1328_v54 = vld [vmem:[%s4648_s28 + $0x88] sm:$0xff]  ;;  %1383 = vst.msk [vmem:[#allocation2 + $0x360] sm:$0xff] %vm256_vm0, %v1337_v11  ;;  %1382 = vst.msk [vmem:[#allocation2 + $0x338] sm:$0xff] %vm256_vm0, %v1336_v12 }
  0x43   : > { %629 = vst.msk [vmem:[#allocation2 + $0x80] sm:$0xff] %vm256_vm0, %v583_v6  ;;  %2726 = vmatpush1.bf16.msra.mxu0 %v4556_v9  ;;  %2508 = vmatprep.subr.bf16.mxu1 %v4588_v1  ;;  %1374 = vst.msk [vmem:[#allocation2 + $0x1f8] sm:$0xff] %vm256_vm0, %v1328_v54  ;;  %v684_v6 = vld [vmem:[%s4648_s28 + $0x74] sm:$0xff]  ;;  %v962_v9 = vld [vmem:[%s4648_s28 + $0x85] sm:$0xff] }
  0x44   : > { %274 = vst.msk [vmem:[#allocation2 + $0x2a8] sm:$0xff] %vm256_vm0, %v1328_v54  ;;  %1008 = vst.msk [vmem:[#allocation2 + $0x240] sm:$0xff] %vm256_vm0, %v962_v9  ;;  %v688_v54 = vld [vmem:[%s4648_s28 + $0x94] sm:$0xff]  ;;  %v5126_v63 = vld [vmem:[%s4648_s28 + $0xc1] sm:$0xff] }
  0x45   : > { %2509 = vmatpush1.bf16.msra.mxu1 %v4559_v38  ;;  %v5129_v0 = vld [vmem:[%s4648_s28 + $0xb9] sm:$0xff]  ;;  %282 = vst.msk [vmem:[#allocation2 + $0x3e8] sm:$0xff] %vm256_vm0, %v1336_v12  ;;  %283 = vst.msk [vmem:[#allocation2 + $0x410] sm:$0xff] %vm256_vm0, %v1337_v11  ;;  %v4565_v31 = vld [vmem:[%s6224_s1 + $0x88] sm:$0xff]  }
  0x46   : > { %1146 = vrot.lane.b32.xlu1 %v1047_v61, %s4589_s5  ;;  %1144 = vrot.lane.b32.xlu0 %v1046_v62, %s4589_s5  ;;  %v4590_v61 = vmov 0.0   ;;  %v593_v62 = vld [vmem:[%s4648_s28 + $0x6a] sm:$0xff] }
  0x47   : > { %4342 = vmatprep.subr.bf16.mxu1 %v4588_v1  ;;  %4242 = vmatprep.subr.bf16.mxu0 %v4590_v61  ;;  %639 = vst.msk [vmem:[#allocation2 + $0x210] sm:$0xff] %vm256_vm0, %v593_v62 }
  0x4a   : > { %778 = vrot.lane.b32.xlu1 %v679_v4, %s4589_s5  ;;  %776 = vrot.lane.b32.xlu0 %v678_v5, %s4589_s5  ;;  %v1052_v4 = vld [vmem:[%s4648_s28 + $0x76] sm:$0xff] }
  0x4b   : > { %v685_v5 = vld [vmem:[%s4648_s28 + $0x7c] sm:$0xff] }
  0x4e   : > { %1518 = vrot.lane.b32.xlu1 %v4868_v16, %s4589_s5  ;;  %1516 = vrot.lane.b32.xlu0 %v4883_v20, %s4589_s5 }
  0x52   : > { %409 = vrot.lane.b32.xlu1 %v4683_v14, %s4589_s5  ;;  %407 = vrot.lane.b32.xlu0 %v4663_v8, %s4589_s5  ;;  %v957_v14 = vld [vmem:[%s4648_s28 + $0x5d] sm:$0xff]  ;;  %v956_v8 = vld [vmem:[%s4648_s28 + $0x55] sm:$0xff] }
  0x53   : > { %1003 = vst.msk [vmem:[#allocation2 + $0x178] sm:$0xff] %vm256_vm0, %v957_v14  ;;  %1002 = vst.msk [vmem:[#allocation2 + $0x150] sm:$0xff] %vm256_vm0, %v956_v8 }
  0x56   : > { %1150 = vrot.lane.b32.xlu1 %v1049_v34, %s4589_s5  ;;  %1148 = vrot.lane.b32.xlu0 %v1048_v36, %s4589_s5  ;;  %v1334_v36 = vld [vmem:[%s4648_s28 + $0xb8] sm:$0xff] }
  0x57   : > { %1380 = vst.msk [vmem:[#allocation2 + $0x2e8] sm:$0xff] %vm256_vm0, %v1334_v36  ;;  %280 = vst.msk [vmem:[#allocation2 + $0x398] sm:$0xff] %vm256_vm0, %v1334_v36 }
  0x5a   : > { %782 = vrot.lane.b32.xlu1 %v681_v43, %s4589_s5  ;;  %780 = vrot.lane.b32.xlu0 %v680_v44, %s4589_s5  ;;  %v1057_v43 = vld [vmem:[%s4648_s28 + $0x9e] sm:$0xff]  ;;  %v1056_v44 = vld [vmem:[%s4648_s28 + $0x96] sm:$0xff] }
  0x5e   : > { %1522 = vrot.lane.b32.xlu1 %v4959_v47, %s4589_s5  ;;  %1520 = vrot.lane.b32.xlu0 %v4962_v50, %s4589_s5 }
  0x62   : > { %413 = vrot.lane.b32.xlu1 %v4731_v29, %s4589_s5  ;;  %411 = vrot.lane.b32.xlu0 %v4680_v13, %s4589_s5  ;;  %v4997_v13 = vld [vmem:[%s4648_s28 + $0x91] sm:$0xff]  ;;  %v5000_v29 = vld [vmem:[%s4648_s28 + $0x89] sm:$0xff] }
  0x66   : > { %1154 = vrot.lane.b32.xlu1 %v1051_v55, %s4589_s5  ;;  %1152 = vrot.lane.b32.xlu0 %v1050_v56, %s4589_s5  ;;  %v967_v55 = vld [vmem:[%s4648_s28 + $0xad] sm:$0xff]  ;;  %v966_v56 = vld [vmem:[%s4648_s28 + $0xa5] sm:$0xff] }
  0x67   : > { %1013 = vst.msk [vmem:[#allocation2 + $0x308] sm:$0xff] %vm256_vm0, %v967_v55  ;;  %1012 = vst.msk [vmem:[#allocation2 + $0x2e0] sm:$0xff] %vm256_vm0, %v966_v56 }
  0x6a   : > { %786 = vrot.lane.b32.xlu1 %v683_v57, %s4589_s5  ;;  %784 = vrot.lane.b32.xlu0 %v682_v58, %s4589_s5 }
  0x6e   : > { %1526 = vrot.lane.b32.xlu1 %v4997_v13, %s4589_s5  ;;  %1524 = vrot.lane.b32.xlu0 %v5000_v29, %s4589_s5 }
  0x72   : > { %417 = vrot.lane.b32.xlu1 %v4792_v49, %s4589_s5  ;;  %415 = vrot.lane.b32.xlu0 %v4725_v28, %s4589_s5  ;;  %v5034_v28 = vld [vmem:[%s4648_s28 + $0xa1] sm:$0xff]  ;;  %v5037_v49 = vld [vmem:[%s4648_s28 + $0x99] sm:$0xff] }
  0x76   : > { %1158 = vrot.lane.b32.xlu1 %v1053_v3, %s4589_s5  ;;  %1156 = vrot.lane.b32.xlu0 %v1052_v4, %s4589_s5  ;;  %v599_v3 = vld [vmem:[%s4648_s28 + $0x9a] sm:$0xff]  ;;  %v598_v4 = vld [vmem:[%s4648_s28 + $0x92] sm:$0xff] }
  0x77   : > { %645 = vst.msk [vmem:[#allocation2 + $0x300] sm:$0xff] %vm256_vm0, %v599_v3  ;;  %644 = vst.msk [vmem:[#allocation2 + $0x2d8] sm:$0xff] %vm256_vm0, %v598_v4 }
  0x78   : > { %1743 = vst.msk [vmem:[#allocation2 + $0x228] sm:$0xff] %vm256_vm0, %v598_v4  ;;  %1744 = vst.msk [vmem:[#allocation2 + $0x250] sm:$0xff] %vm256_vm0, %v599_v3 }
  0x7a   : > { %790 = vrot.lane.b32.xlu1 %v685_v5, %s4589_s5  ;;  %788 = vrot.lane.b32.xlu0 %v684_v6, %s4589_s5 }
  0x7e   : > { %1530 = vrot.lane.b32.xlu1 %v5034_v28, %s4589_s5  ;;  %1528 = vrot.lane.b32.xlu0 %v5037_v49, %s4589_s5 }
  0x82   : > { %421 = vrot.lane.b32.xlu1 %v4883_v20, %s4589_s5  ;;  %419 = vrot.lane.b32.xlu0 %v4789_v48, %s4589_s5  ;;  %v687_v20 = vld [vmem:[%s4648_s28 + $0x8c] sm:$0xff]  ;;  %v965_v48 = vld [vmem:[%s4648_s28 + $0x9d] sm:$0xff] }
  0x83   : > { %1011 = vst.msk [vmem:[#allocation2 + $0x2b8] sm:$0xff] %vm256_vm0, %v965_v48  ;;  %v1058_v48 = vld [vmem:[%s4648_s28 + $0xa6] sm:$0xff] }
  0x84   : > { %v1501_v19 = vpop.permute.xlu0 %1500  ;;  %v1133_v21 = vpop.permute.xlu1 %1132 }
  0x85   : > { %1638 = vst.msk [vmem:[#allocation2 + $0x18] sm:$0xff] %vm533_vm1, %v1501_v19  ;;  %1270 = vst.msk [vmem:[#allocation2 + $0x10] sm:$0xff] %vm533_vm1, %v1133_v21  ;;  %v4564_v21 = vld [vmem:[%s6224_s1 + $0x80] sm:$0xff]  }
  0x86   : > { %1162 = vrot.lane.b32.xlu1 %v1055_v17, %s4589_s5  ;;  %1160 = vrot.lane.b32.xlu0 %v1054_v18, %s4589_s5 }
  0x88   : > { %v1503_v24 = vpop.permute.xlu0 %1502  ;;  %v1135_v25 = vpop.permute.xlu1 %1134 }
  0x89   : > { %1639 = vst.msk [vmem:[#allocation2 + $0x40] sm:$0xff] %vm533_vm1, %v1503_v24  ;;  %1271 = vst.msk [vmem:[#allocation2 + $0x38] sm:$0xff] %vm533_vm1, %v1135_v25 }
  0x8a   : > { %794 = vrot.lane.b32.xlu1 %v687_v20, %s4589_s5  ;;  %792 = vrot.lane.b32.xlu0 %v686_v22, %s4589_s5  ;;  %v1059_v22 = vld [vmem:[%s4648_s28 + $0xae] sm:$0xff] }
  0x8c   : > { %v767_v32 = vpop.permute.xlu1 %766  ;;  %v765_v33 = vpop.permute.xlu0 %764  ;;  %v1779_v34 = vld [vmem:[#allocation2 + $0x18] sm:$0xff]  ;;  %v1778_v8 = vld [vmem:[#allocation2 + $0x10] sm:$0xff] }
  0x8d   : > { %903 = vst.msk [vmem:[#allocation2 + $0x30] sm:$0xff] %vm533_vm1, %v767_v32  ;;  %902 = vst.msk [vmem:[#allocation2 + $0x8] sm:$0xff] %vm533_vm1, %v765_v33  ;;  %v690_v32 = vld [vmem:[%s4648_s28 + $0xa4] sm:$0xff] }
  0x8e   : > { %1534 = vrot.lane.b32.xlu1 %v5074_v26, %s4589_s5  ;;  %1532 = vrot.lane.b32.xlu0 %v5077_v27, %s4589_s5  ;;  %v969_v33 = vld [vmem:[%s4648_s28 + $0xbd] sm:$0xff] }
  0x8f   : > { %1015 = vst.msk [vmem:[#allocation2 + $0x358] sm:$0xff] %vm256_vm0, %v969_v33 }
  0x90   : > { %v1507_v37 = vpop.permute.xlu1 %1506  ;;  %v1505_v38 = vpop.permute.xlu0 %1504  ;;  %v1784_v14 = vld [vmem:[#allocation2 + $0x40] sm:$0xff]  ;;  %v1783_v39 = vld [vmem:[#allocation2 + $0x38] sm:$0xff] }
  0x91   : > { %1641 = vst.msk [vmem:[#allocation2 + $0x90] sm:$0xff] %vm533_vm1, %v1507_v37  ;;  %1640 = vst.msk [vmem:[#allocation2 + $0x68] sm:$0xff] %vm533_vm1, %v1505_v38  ;;  %v2009_v40 = vpack.c.bf16 %v1784_v14, %v1779_v34  ;;  %v2008_v41 = vpack.c.bf16 %v1783_v39, %v1778_v8  ;;  %v968_v34 = vld [vmem:[%s4648_s28 + $0xb5] sm:$0xff] }
  0x92   : > { %425 = vrot.lane.b32.xlu1 %v4962_v50, %s4589_s5  ;;  %423 = vrot.lane.b32.xlu0 %v4868_v16, %s4589_s5  ;;  %v4561_v16 = vld [vmem:[%s6224_s1 + $0x108] sm:$0xff]   ;;  %v4566_v14 = vld [vmem:[%s6224_s1 + $0x90] sm:$0xff]   ;;  %1014 = vst.msk [vmem:[#allocation2 + $0x330] sm:$0xff] %vm256_vm0, %v968_v34 }
  0x93   : > { %2727 = vmatprep.mubr.bf16.mxu0 %v2009_v40  ;;  %v5189_v39 = vld [vmem:[%s4648_s28 + $0xd1] sm:$0xff]  ;;  %v5192_v40 = vld [vmem:[%s4648_s28 + $0xc9] sm:$0xff] }
  0x94   : > { %2728 = vmatmul.mubr.bf16.vlgmr.msra.gmra.mrb[0].mxu0 %v2008_v41  ;;  %v398_v45 = vpop.permute.xlu1 %397  ;;  %v396_v46 = vpop.permute.xlu0 %395  ;;  %v1777_v51 = vld [vmem:[#allocation2 + $0x8] sm:$0xff]  ;;  %v1782_v52 = vld [vmem:[#allocation2 + $0x30] sm:$0xff] }
  0x95   : > { %535 = vst.msk [vmem:[#allocation2 + $0x28] sm:$0xff] %vm533_vm1, %v398_v45  ;;  %534 = vst.msk [vmem:[#allocation2] sm:$0xff] %vm533_vm1, %v396_v46  ;;  %v2007_v50 = vpack.c.bf16 %v1782_v52, %v1777_v51  ;;  %4243 = vmatpush3.bf16.msra.mxu0 %v4560_v42  ;;  %v601_v41 = vld [vmem:[%s4648_s28 + $0xaa] sm:$0xff]  ;;  %v600_v42 = vld [vmem:[%s4648_s28 + $0xa2] sm:$0xff] }
  0x96   : > { %1166 = vrot.lane.b32.xlu1 %v1057_v43, %s4589_s5  ;;  %1164 = vrot.lane.b32.xlu0 %v1056_v44, %s4589_s5  ;;  %v4567_v51 = vld [vmem:[%s6224_s1 + $0x98] sm:$0xff]   ;;  %647 = vst.msk [vmem:[#allocation2 + $0x350] sm:$0xff] %vm256_vm0, %v601_v41  ;;  %646 = vst.msk [vmem:[#allocation2 + $0x328] sm:$0xff] %vm256_vm0, %v600_v42 }
  0x97   : > { %2510 = vmatprep.mubr.bf16.mxu1 %v2007_v50  ;;  %4244 = vmatprep.subr.bf16.mxu0 %v4590_v61  ;;  %1745 = vst.msk [vmem:[#allocation2 + $0x278] sm:$0xff] %vm256_vm0, %v600_v42  ;;  %1746 = vst.msk [vmem:[#allocation2 + $0x2a0] sm:$0xff] %vm256_vm0, %v601_v41  ;;  %v1339_v50 = vld [vmem:[%s4648_s28 + $0xe0] sm:$0xff]  ;;  %v605_v41 = vld [vmem:[%s4648_s28 + $0xca] sm:$0xff] }
  0x98   : > { %v1139_v57 = vpop.permute.xlu1 %1138  ;;  %v1137_v58 = vpop.permute.xlu0 %1136  ;;  %v1789_v59 = vld [vmem:[#allocation2 + $0x68] sm:$0xff]  ;;  %v1794_v60 = vld [vmem:[#allocation2 + $0x90] sm:$0xff]  ;;  %1385 = vst.msk [vmem:[#allocation2 + $0x3b0] sm:$0xff] %vm256_vm0, %v1339_v50  ;;  %285 = vst.msk [vmem:[#allocation2 + $0x460] sm:$0xff] %vm256_vm0, %v1339_v50 }
  0x99   : > { %1273 = vst.msk [vmem:[#allocation2 + $0x88] sm:$0xff] %vm533_vm1, %v1139_v57  ;;  %1272 = vst.msk [vmem:[#allocation2 + $0x60] sm:$0xff] %vm533_vm1, %v1137_v58  ;;  %v2014_v62 = vpack.c.bf16 %v1794_v60, %v1789_v59  ;;  %4245 = vmatpush3.bf16.msra.mxu0 %v4561_v16  ;;  %v1338_v16 = vld [vmem:[%s4648_s28 + $0xd8] sm:$0xff]  ;;  %v4568_v57 = vld [vmem:[%s6224_s1 + $0xa0] sm:$0xff]  }
  0x9a   : > { %798 = vrot.lane.b32.xlu1 %v689_v53, %s4589_s5  ;;  %796 = vrot.lane.b32.xlu0 %v688_v54, %s4589_s5  ;;  %1384 = vst.msk [vmem:[#allocation2 + $0x388] sm:$0xff] %vm256_vm0, %v1338_v16  ;;  %284 = vst.msk [vmem:[#allocation2 + $0x438] sm:$0xff] %vm256_vm0, %v1338_v16  ;;  %v1061_v59 = vld [vmem:[%s4648_s28 + $0xbe] sm:$0xff]  ;;  %v1060_v60 = vld [vmem:[%s4648_s28 + $0xb6] sm:$0xff] }
  0x9b   : > { %2735 = vmatprep.mubr.bf16.mxu0 %v2014_v62  ;;  %4246 = vmatprep.subr.bf16.mxu0 %v4590_v61  ;;  %v4563_v62 = vld [vmem:[%s6224_s1 + $0x118] sm:$0xff]   ;;  %v604_v42 = vld [vmem:[%s4648_s28 + $0xc2] sm:$0xff]  ;;  %651 = vst.msk [vmem:[#allocation2 + $0x3f0] sm:$0xff] %vm256_vm0, %v605_v41  ;;  %1750 = vst.msk [vmem:[#allocation2 + $0x340] sm:$0xff] %vm256_vm0, %v605_v41 }
  0x9c   : > { %v771_v5 = vpop.permute.xlu1 %770  ;;  %v769_v6 = vpop.permute.xlu0 %768  ;;  %v1776_v7 = vld [vmem:[#allocation2] sm:$0xff]  ;;  %v1781_v9 = vld [vmem:[#allocation2 + $0x28] sm:$0xff]  ;;  %650 = vst.msk [vmem:[#allocation2 + $0x3c8] sm:$0xff] %vm256_vm0, %v604_v42  ;;  %1749 = vst.msk [vmem:[#allocation2 + $0x318] sm:$0xff] %vm256_vm0, %v604_v42 }
  0x9d   : > { %905 = vst.msk [vmem:[#allocation2 + $0x80] sm:$0xff] %vm533_vm1, %v771_v5  ;;  %904 = vst.msk [vmem:[#allocation2 + $0x58] sm:$0xff] %vm533_vm1, %v769_v6  ;;  %v2006_v10 = vpack.c.bf16 %v1781_v9, %v1776_v7  ;;  %4247 = vmatpush3.bf16.msra.mxu0 %v4562_v2  ;;  %v693_v6 = vld [vmem:[%s4648_s28 + $0xbc] sm:$0xff]  ;;  %v692_v7 = vld [vmem:[%s4648_s28 + $0xb4] sm:$0xff] }
  0x9e   : > { %1538 = vrot.lane.b32.xlu1 %v5126_v63, %s4589_s5  ;;  %1536 = vrot.lane.b32.xlu0 %v5129_v0, %s4589_s5  ;;  %v971_v9 = vld [vmem:[%s4648_s28 + $0xcd] sm:$0xff] }
  0x9f   : > { %2511 = vmatmul.mubr.bf16.vlgmr.msra.gmra.mrb[0].mxu1 %v2006_v10  ;;  %4248 = vmatprep.subr.bf16.mxu0 %v4590_v61  ;;  %v970_v10 = vld [vmem:[%s4648_s28 + $0xc5] sm:$0xff]  ;;  %1017 = vst.msk [vmem:[#allocation2 + $0x3a8] sm:$0xff] %vm256_vm0, %v971_v9 }
  0xa0   : > { %v1511_v15 = vpop.permute.xlu1 %1510  ;;  %v1509_v17 = vpop.permute.xlu0 %1508  ;;  %v1788_v18 = vld [vmem:[#allocation2 + $0x60] sm:$0xff]  ;;  %v1793_v19 = vld [vmem:[#allocation2 + $0x88] sm:$0xff]  ;;  %4358 = vmatpush1.bf16.msra.mxu1 %v4564_v21  ;;  %1016 = vst.msk [vmem:[#allocation2 + $0x380] sm:$0xff] %vm256_vm0, %v970_v10 }
  0xa1   : > { %1643 = vst.msk [vmem:[#allocation2 + $0xe0] sm:$0xff] %vm533_vm1, %v1511_v15  ;;  %1642 = vst.msk [vmem:[#allocation2 + $0xb8] sm:$0xff] %vm533_vm1, %v1509_v17  ;;  %v2013_v20 = vpack.c.bf16 %v1793_v19, %v1788_v18  ;;  %4343 = vmatprep.subr.bf16.mxu1 %v4588_v1  ;;  %4249 = vmatpush3.bf16.msra.mxu0 %v4563_v62  ;;  %v4570_v18 = vld [vmem:[%s6224_s1 + $0xb0] sm:$0xff]   ;;  %v5254_v21 = vld [vmem:[%s4648_s28 + $0xe1] sm:$0xff] }
  0xa2   : > { %429 = vrot.lane.b32.xlu1 %v5000_v29, %s4589_s5  ;;  %427 = vrot.lane.b32.xlu0 %v4959_v47, %s4589_s5  ;;  %v691_v29 = vld [vmem:[%s4648_s28 + $0xac] sm:$0xff] }
  0xa3   : > { %2736 = vmatmul.mubr.bf16.gmra.mrb[4].mxu0 %v2013_v20  ;;  %v5257_v20 = vld [vmem:[%s4648_s28 + $0xd9] sm:$0xff] }
  0xa4   : > { %v402_v23 = vpop.permute.xlu1 %401  ;;  %v400_v24 = vpop.permute.xlu0 %399  ;;  %v1787_v25 = vld [vmem:[#allocation2 + $0x58] sm:$0xff]  ;;  %v1792_v30 = vld [vmem:[#allocation2 + $0x80] sm:$0xff]  ;;  %4359 = vmatpush1.bf16.msra.mxu1 %v4565_v31 }
  0xa5   : > { %537 = vst.msk [vmem:[#allocation2 + $0x78] sm:$0xff] %vm533_vm1, %v402_v23  ;;  %536 = vst.msk [vmem:[#allocation2 + $0x50] sm:$0xff] %vm533_vm1, %v400_v24  ;;  %v2012_v47 = vpack.c.bf16 %v1792_v30, %v1787_v25  ;;  %4344 = vmatprep.subr.bf16.mxu1 %v4588_v1  ;;  %v4571_v31 = vld [vmem:[%s6224_s1 + $0xb8] sm:$0xff]  }
  0xa6   : > { %1170 = vrot.lane.b32.xlu1 %v1059_v22, %s4589_s5  ;;  %1168 = vrot.lane.b32.xlu0 %v1058_v48, %s4589_s5  ;;  %v603_v22 = vld [vmem:[%s4648_s28 + $0xba] sm:$0xff]  ;;  %v602_v48 = vld [vmem:[%s4648_s28 + $0xb2] sm:$0xff] }
  0xa7   : > { %2518 = vmatprep.mubr.bf16.mxu1 %v2012_v47  ;;  %649 = vst.msk [vmem:[#allocation2 + $0x3a0] sm:$0xff] %vm256_vm0, %v603_v22  ;;  %648 = vst.msk [vmem:[#allocation2 + $0x378] sm:$0xff] %vm256_vm0, %v602_v48 }
  0xa8   : > { %v1143_v35 = vpop.permute.xlu1 %1142  ;;  %v1141_v36 = vpop.permute.xlu0 %1140  ;;  %v1799_v37 = vld [vmem:[#allocation2 + $0xb8] sm:$0xff]  ;;  %v1804_v38 = vld [vmem:[#allocation2 + $0xe0] sm:$0xff]  ;;  %4360 = vmatpush1.bf16.msra.mxu1 %v4566_v14  ;;  %1747 = vst.msk [vmem:[#allocation2 + $0x2c8] sm:$0xff] %vm256_vm0, %v602_v48  ;;  %1748 = vst.msk [vmem:[#allocation2 + $0x2f0] sm:$0xff] %vm256_vm0, %v603_v22 }
  0xa9   : > { %1275 = vst.msk [vmem:[#allocation2 + $0xd8] sm:$0xff] %vm533_vm1, %v1143_v35  ;;  %1274 = vst.msk [vmem:[#allocation2 + $0xb0] sm:$0xff] %vm533_vm1, %v1141_v36  ;;  %v2019_v8 = vpack.c.bf16 %v1804_v38, %v1799_v37  ;;  %4345 = vmatprep.subr.bf16.mxu1 %v4588_v1  ;;  %v1684_v35 = vld [vmem:[%s4648_s28 + $0x2a] sm:$0xff]  ;;  %v4572_v36 = vld [vmem:[%s6224_s1 + $0xc0] sm:$0xff]  }
  0xaa   : > { %802 = vrot.lane.b32.xlu1 %v691_v29, %s4589_s5  ;;  %800 = vrot.lane.b32.xlu0 %v690_v32, %s4589_s5  ;;  %v1685_v38 = vld [vmem:[%s4648_s28 + $0x32] sm:$0xff]  ;;  %1730 = vst.msk [vmem:[#allocation2 + $0x20] sm:$0xff] %vm256_vm0, %v1684_v35  ;;  %v1690_v35 = vld [vmem:[%s4648_s28 + $0x5a] sm:$0xff] }
  0xab   : > { %2743 = vmatprep.mubr.bf16.mxu0 %v2019_v8  ;;  %v1063_v14 = vld [vmem:[%s4648_s28 + $0xce] sm:$0xff]  ;;  %1731 = vst.msk [vmem:[#allocation2 + $0x48] sm:$0xff] %vm256_vm0, %v1685_v38  ;;  %v1062_v8 = vld [vmem:[%s4648_s28 + $0xc6] sm:$0xff]  ;;  %1736 = vst.msk [vmem:[#allocation2 + $0x110] sm:$0xff] %vm256_vm0, %v1690_v35 }
  0xac   : > { %v775_v43 = vpop.permute.xlu1 %774  ;;  %v773_v44 = vpop.permute.xlu0 %772  ;;  %v1786_v45 = vld [vmem:[#allocation2 + $0x50] sm:$0xff]  ;;  %v1791_v46 = vld [vmem:[#allocation2 + $0x78] sm:$0xff]  ;;  %4361 = vmatpush1.bf16.msra.mxu1 %v4567_v51 }
  0xad   : > { %907 = vst.msk [vmem:[#allocation2 + $0xd0] sm:$0xff] %vm533_vm1, %v775_v43  ;;  %906 = vst.msk [vmem:[#allocation2 + $0xa8] sm:$0xff] %vm533_vm1, %v773_v44  ;;  %v2011_v52 = vpack.c.bf16 %v1791_v46, %v1786_v45  ;;  %4346 = vmatprep.subr.bf16.mxu1 %v4588_v1  ;;  %v695_v51 = vld [vmem:[%s4648_s28 + $0xcc] sm:$0xff] }
  0xae   : > { %1542 = vrot.lane.b32.xlu1 %v5189_v39, %s4589_s5  ;;  %1540 = vrot.lane.b32.xlu0 %v5192_v40, %s4589_s5  ;;  %v610_v38 = vld [vmem:[%s4648_s28 + $0xf2] sm:$0xff] }
  0xaf   : > { %2519 = vmatmul.mubr.bf16.gmra.mrb[4].mxu1 %v2011_v52  ;;  %v694_v52 = vld [vmem:[%s4648_s28 + $0xc4] sm:$0xff]  ;;  %656 = vst.msk [vmem:[#allocation2 + $0x4b8] sm:$0xff] %vm256_vm0, %v610_v38  ;;  %1755 = vst.msk [vmem:[#allocation2 + $0x408] sm:$0xff] %vm256_vm0, %v610_v38 }
  0xb0   : > { %v1515_v53 = vpop.permute.xlu1 %1514  ;;  %v1513_v54 = vpop.permute.xlu0 %1512  ;;  %v1798_v55 = vld [vmem:[#allocation2 + $0xb0] sm:$0xff]  ;;  %v1803_v56 = vld [vmem:[#allocation2 + $0xd8] sm:$0xff]  ;;  %4362 = vmatpush1.bf16.msra.mxu1 %v4568_v57 }
  0xb1   : > { %1645 = vst.msk [vmem:[#allocation2 + $0x130] sm:$0xff] %vm533_vm1, %v1515_v53  ;;  %1644 = vst.msk [vmem:[#allocation2 + $0x108] sm:$0xff] %vm533_vm1, %v1513_v54  ;;  %v2018_v58 = vpack.c.bf16 %v1803_v56, %v1798_v55  ;;  %4347 = vmatprep.subr.bf16.mxu1 %v4588_v1  ;;  %v4574_v55 = vld [vmem:[%s6224_s1 + $0xd0] sm:$0xff]   ;;  %v1686_v57 = vld [vmem:[%s4648_s28 + $0x3a] sm:$0xff] }
  0xb2   : > { %433 = vrot.lane.b32.xlu1 %v5037_v49, %s4589_s5  ;;  %431 = vrot.lane.b32.xlu0 %v4997_v13, %s4589_s5  ;;  %v4569_v49 = vld [vmem:[%s6224_s1 + $0xa8] sm:$0xff]   ;;  %1732 = vst.msk [vmem:[#allocation2 + $0x70] sm:$0xff] %vm256_vm0, %v1686_v57 }
  0xb3   : > { %2744 = vmatmul.mubr.bf16.gmra.mrb[8].mxu0 %v2018_v58  ;;  %v1687_v58 = vld [vmem:[%s4648_s28 + $0x42] sm:$0xff] }
  0xb4   : > { %v406_v2 = vpop.permute.xlu1 %405  ;;  %v404_v3 = vpop.permute.xlu0 %403  ;;  %v1797_v4 = vld [vmem:[#allocation2 + $0xa8] sm:$0xff]  ;;  %v1802_v5 = vld [vmem:[#allocation2 + $0xd0] sm:$0xff]  ;;  %4363 = vmatpush1.bf16.msra.mxu1 %v4569_v49  ;;  %1733 = vst.msk [vmem:[#allocation2 + $0x98] sm:$0xff] %vm256_vm0, %v1687_v58 }
  0xb5   : > { %539 = vst.msk [vmem:[#allocation2 + $0xc8] sm:$0xff] %vm533_vm1, %v406_v2  ;;  %538 = vst.msk [vmem:[#allocation2 + $0xa0] sm:$0xff] %vm533_vm1, %v404_v3  ;;  %v2017_v13 = vpack.c.bf16 %v1802_v5, %v1797_v4  ;;  %4348 = vmatprep.subr.bf16.mxu1 %v4588_v1  ;;  %v4575_v5 = vld [vmem:[%s6224_s1 + $0xd8] sm:$0xff]  }
  0xb6   : > { %1174 = vrot.lane.b32.xlu1 %v1061_v59, %s4589_s5  ;;  %1172 = vrot.lane.b32.xlu0 %v1060_v60, %s4589_s5  ;;  %v607_v59 = vld [vmem:[%s4648_s28 + $0xda] sm:$0xff]  ;;  %v606_v60 = vld [vmem:[%s4648_s28 + $0xd2] sm:$0xff] }
  0xb7   : > { %2526 = vmatprep.mubr.bf16.mxu1 %v2017_v13  ;;  %653 = vst.msk [vmem:[#allocation2 + $0x440] sm:$0xff] %vm256_vm0, %v607_v59  ;;  %652 = vst.msk [vmem:[#allocation2 + $0x418] sm:$0xff] %vm256_vm0, %v606_v60  ;;  %v697_v13 = vld [vmem:[%s4648_s28 + $0xdc] sm:$0xff] }
  0xb8   : > { %v1147_v11 = vpop.permute.xlu1 %1146  ;;  %v1145_v12 = vpop.permute.xlu0 %1144  ;;  %v1809_v15 = vld [vmem:[#allocation2 + $0x108] sm:$0xff]  ;;  %v1814_v17 = vld [vmem:[#allocation2 + $0x130] sm:$0xff]  ;;  %4364 = vmatpush1.bf16.msra.mxu1 %v4570_v18  ;;  %1751 = vst.msk [vmem:[#allocation2 + $0x368] sm:$0xff] %vm256_vm0, %v606_v60  ;;  %1752 = vst.msk [vmem:[#allocation2 + $0x390] sm:$0xff] %vm256_vm0, %v607_v59 }
  0xb9   : > { %1277 = vst.msk [vmem:[#allocation2 + $0x128] sm:$0xff] %vm533_vm1, %v1147_v11  ;;  %1276 = vst.msk [vmem:[#allocation2 + $0x100] sm:$0xff] %vm533_vm1, %v1145_v12  ;;  %v2024_v19 = vpack.c.bf16 %v1814_v17, %v1809_v15  ;;  %4349 = vmatprep.subr.bf16.mxu1 %v4588_v1  ;;  %v1688_v12 = vld [vmem:[%s4648_s28 + $0x4a] sm:$0xff]  ;;  %v4576_v15 = vld [vmem:[%s6224_s1 + $0xe0] sm:$0xff]  }
  0xba   : > { %806 = vrot.lane.b32.xlu1 %v693_v6, %s4589_s5  ;;  %804 = vrot.lane.b32.xlu0 %v692_v7, %s4589_s5  ;;  %v696_v6 = vld [vmem:[%s4648_s28 + $0xd4] sm:$0xff]  ;;  %1734 = vst.msk [vmem:[#allocation2 + $0xc0] sm:$0xff] %vm256_vm0, %v1688_v12  ;;  %v609_v17 = vld [vmem:[%s4648_s28 + $0xea] sm:$0xff] }
  0xbb   : > { %2751 = vmatprep.mubr.bf16.mxu0 %v2024_v19  ;;  %v608_v18 = vld [vmem:[%s4648_s28 + $0xe2] sm:$0xff]  ;;  %655 = vst.msk [vmem:[#allocation2 + $0x490] sm:$0xff] %vm256_vm0, %v609_v17  ;;  %1754 = vst.msk [vmem:[#allocation2 + $0x3e0] sm:$0xff] %vm256_vm0, %v609_v17  ;;  %v614_v12 = vld [vmem:[%s4648_s28 + $0x112] sm:$0xff] }
  0xbc   : > { %v779_v23 = vpop.permute.xlu1 %778  ;;  %v777_v24 = vpop.permute.xlu0 %776  ;;  %v1796_v25 = vld [vmem:[#allocation2 + $0xa0] sm:$0xff]  ;;  %v1801_v30 = vld [vmem:[#allocation2 + $0xc8] sm:$0xff]  ;;  %4365 = vmatpush1.bf16.msra.mxu1 %v4571_v31  ;;  %654 = vst.msk [vmem:[#allocation2 + $0x468] sm:$0xff] %vm256_vm0, %v608_v18  ;;  %1753 = vst.msk [vmem:[#allocation2 + $0x3b8] sm:$0xff] %vm256_vm0, %v608_v18 }
  0xbd   : > { %909 = vst.msk [vmem:[#allocation2 + $0x120] sm:$0xff] %vm533_vm1, %v779_v23  ;;  %908 = vst.msk [vmem:[#allocation2 + $0xf8] sm:$0xff] %vm533_vm1, %v777_v24  ;;  %v2016_v47 = vpack.c.bf16 %v1801_v30, %v1796_v25  ;;  %4350 = vmatprep.subr.bf16.mxu1 %v4588_v1  ;;  %v4577_v24 = vld [vmem:[%s6224_s1 + $0xe8] sm:$0xff]  }
  0xbe   : > { %1546 = vrot.lane.b32.xlu1 %v5254_v21, %s4589_s5  ;;  %1544 = vrot.lane.b32.xlu0 %v5257_v20, %s4589_s5  ;;  %v699_v30 = vld [vmem:[%s4648_s28 + $0xec] sm:$0xff]  ;;  %v698_v31 = vld [vmem:[%s4648_s28 + $0xe4] sm:$0xff]  ;;  %660 = vst.msk [vmem:[#allocation2 + $0x558] sm:$0xff] %vm256_vm0, %v614_v12  ;;  %1759 = vst.msk [vmem:[#allocation2 + $0x4a8] sm:$0xff] %vm256_vm0, %v614_v12 }
  0xbf   : > { %2527 = vmatmul.mubr.bf16.gmra.mrb[8].mxu1 %v2016_v47  ;;  %v239_v47 = vld [vmem:[%s4648_s28 + $0xe8] sm:$0xff] }
  0xc0   : > { %v1519_v29 = vpop.permute.xlu1 %1518  ;;  %v1517_v32 = vpop.permute.xlu0 %1516  ;;  %v1808_v33 = vld [vmem:[#allocation2 + $0x100] sm:$0xff]  ;;  %v1813_v34 = vld [vmem:[#allocation2 + $0x128] sm:$0xff]  ;;  %4366 = vmatpush1.bf16.msra.mxu1 %v4572_v36  ;;  %286 = vst.msk [vmem:[#allocation2 + $0x488] sm:$0xff] %vm256_vm0, %v239_v47  ;;  %1386 = vst.msk [vmem:[#allocation2 + $0x3d8] sm:$0xff] %vm256_vm0, %v239_v47 }
  0xc1   : > { %1647 = vst.msk [vmem:[#allocation2 + $0x180] sm:$0xff] %vm533_vm1, %v1519_v29  ;;  %1646 = vst.msk [vmem:[#allocation2 + $0x158] sm:$0xff] %vm533_vm1, %v1517_v32  ;;  %v2023_v37 = vpack.c.bf16 %v1813_v34, %v1808_v33  ;;  %4351 = vmatprep.subr.bf16.mxu1 %v4588_v1  ;;  %v1691_v36 = vld [vmem:[%s4648_s28 + $0x62] sm:$0xff] }
  0xc2   : > { %437 = vrot.lane.b32.xlu1 %v5077_v27, %s4589_s5  ;;  %435 = vrot.lane.b32.xlu0 %v5034_v28, %s4589_s5  ;;  %v4573_v28 = vld [vmem:[%s6224_s1 + $0xc8] sm:$0xff]   ;;  %1737 = vst.msk [vmem:[#allocation2 + $0x138] sm:$0xff] %vm256_vm0, %v1691_v36 }
  0xc3   : > { %2752 = vmatmul.mubr.bf16.gmra.mrb[12].mxu0 %v2023_v37  ;;  %v611_v37 = vld [vmem:[%s4648_s28 + $0xfa] sm:$0xff] }
  0xc4   : > { %v410_v43 = vpop.permute.xlu1 %409  ;;  %v408_v44 = vpop.permute.xlu0 %407  ;;  %v1807_v45 = vld [vmem:[#allocation2 + $0xf8] sm:$0xff]  ;;  %v1812_v46 = vld [vmem:[#allocation2 + $0x120] sm:$0xff]  ;;  %4367 = vmatpush1.bf16.msra.mxu1 %v4573_v28  ;;  %657 = vst.msk [vmem:[#allocation2 + $0x4e0] sm:$0xff] %vm256_vm0, %v611_v37  ;;  %1756 = vst.msk [vmem:[#allocation2 + $0x430] sm:$0xff] %vm256_vm0, %v611_v37 }
  0xc5   : > { %541 = vst.msk [vmem:[#allocation2 + $0x118] sm:$0xff] %vm533_vm1, %v410_v43  ;;  %540 = vst.msk [vmem:[#allocation2 + $0xf0] sm:$0xff] %vm533_vm1, %v408_v44  ;;  %v2022_v27 = vpack.c.bf16 %v1812_v46, %v1807_v45  ;;  %4352 = vmatprep.subr.bf16.mxu1 %v4588_v1  ;;  %v701_v44 = vld [vmem:[%s4648_s28 + $0xfc] sm:$0xff]  ;;  %v700_v45 = vld [vmem:[%s4648_s28 + $0xf4] sm:$0xff] }
  0xc6   : > { %1178 = vrot.lane.b32.xlu1 %v1063_v14, %s4589_s5  ;;  %1176 = vrot.lane.b32.xlu0 %v1062_v8, %s4589_s5  ;;  %v241_v46 = vld [vmem:[%s4648_s28 + $0xf8] sm:$0xff]  ;;  %v240_v28 = vld [vmem:[%s4648_s28 + $0xf0] sm:$0xff] }
  0xc7   : > { %2534 = vmatprep.mubr.bf16.mxu1 %v2022_v27  ;;  %288 = vst.msk [vmem:[#allocation2 + $0x4d8] sm:$0xff] %vm256_vm0, %v241_v46  ;;  %287 = vst.msk [vmem:[#allocation2 + $0x4b0] sm:$0xff] %vm256_vm0, %v240_v28 }
  0xc8   : > { %v1151_v50 = vpop.permute.xlu1 %1150  ;;  %v1149_v16 = vpop.permute.xlu0 %1148  ;;  %v1819_v53 = vld [vmem:[#allocation2 + $0x158] sm:$0xff]  ;;  %v1824_v54 = vld [vmem:[#allocation2 + $0x180] sm:$0xff]  ;;  %4368 = vmatpush1.bf16.msra.mxu1 %v4574_v55  ;;  %1387 = vst.msk [vmem:[#allocation2 + $0x400] sm:$0xff] %vm256_vm0, %v240_v28  ;;  %1388 = vst.msk [vmem:[#allocation2 + $0x428] sm:$0xff] %vm256_vm0, %v241_v46 }
  0xc9   : > { %1279 = vst.msk [vmem:[#allocation2 + $0x178] sm:$0xff] %vm533_vm1, %v1151_v50  ;;  %1278 = vst.msk [vmem:[#allocation2 + $0x150] sm:$0xff] %vm533_vm1, %v1149_v16  ;;  %v2029_v56 = vpack.c.bf16 %v1824_v54, %v1819_v53  ;;  %4353 = vmatprep.subr.bf16.mxu1 %v4588_v1  ;;  %v1693_v16 = vld [vmem:[%s4648_s28 + $0x72] sm:$0xff]  ;;  %v5414_v53 = vld [vmem:[%s4648_s28 + $0xe9] sm:$0xff] }
  0xca   : > { %810 = vrot.lane.b32.xlu1 %v695_v51, %s4589_s5  ;;  %808 = vrot.lane.b32.xlu0 %v694_v52, %s4589_s5  ;;  %1739 = vst.msk [vmem:[#allocation2 + $0x188] sm:$0xff] %vm256_vm0, %v1693_v16  ;;  %v613_v54 = vld [vmem:[%s4648_s28 + $0x10a] sm:$0xff]  ;;  %v612_v55 = vld [vmem:[%s4648_s28 + $0x102] sm:$0xff] }
  0xcb   : > { %2759 = vmatprep.mubr.bf16.mxu0 %v2029_v56  ;;  %659 = vst.msk [vmem:[#allocation2 + $0x530] sm:$0xff] %vm256_vm0, %v613_v54  ;;  %658 = vst.msk [vmem:[#allocation2 + $0x508] sm:$0xff] %vm256_vm0, %v612_v55  ;;  %v246_v46 = vld [vmem:[%s4648_s28 + $0x120] sm:$0xff]  ;;  %v618_v16 = vld [vmem:[%s4648_s28 + $0x132] sm:$0xff] }
  0xcc   : > { %v783_v62 = vpop.permute.xlu1 %782  ;;  %v781_v2 = vpop.permute.xlu0 %780  ;;  %v1806_v3 = vld [vmem:[#allocation2 + $0xf0] sm:$0xff]  ;;  %v1811_v4 = vld [vmem:[#allocation2 + $0x118] sm:$0xff]  ;;  %4369 = vmatpush1.bf16.msra.mxu1 %v4575_v5  ;;  %1757 = vst.msk [vmem:[#allocation2 + $0x458] sm:$0xff] %vm256_vm0, %v612_v55  ;;  %1758 = vst.msk [vmem:[#allocation2 + $0x480] sm:$0xff] %vm256_vm0, %v613_v54 }
  0xcd   : > { %911 = vst.msk [vmem:[#allocation2 + $0x170] sm:$0xff] %vm533_vm1, %v783_v62  ;;  %910 = vst.msk [vmem:[#allocation2 + $0x148] sm:$0xff] %vm533_vm1, %v781_v2  ;;  %v2021_v49 = vpack.c.bf16 %v1811_v4, %v1806_v3  ;;  %4354 = vmatprep.subr.bf16.mxu1 %v4588_v1  ;;  %v703_v62 = vld [vmem:[%s4648_s28 + $0x10c] sm:$0xff]  ;;  %v702_v2 = vld [vmem:[%s4648_s28 + $0x104] sm:$0xff] }
  0xce   : > { %441 = vrot.lane.b32.xlu1 %v5129_v0, %s4589_s5  ;;  %439 = vrot.lane.b32.xlu0 %v5074_v26, %s4589_s5  ;;  %v1689_v0 = vld [vmem:[%s4648_s28 + $0x52] sm:$0xff]  ;;  %v243_v3 = vld [vmem:[%s4648_s28 + $0x108] sm:$0xff]  ;;  %293 = vst.msk [vmem:[#allocation2 + $0x5a0] sm:$0xff] %vm256_vm0, %v246_v46  ;;  %1393 = vst.msk [vmem:[#allocation2 + $0x4f0] sm:$0xff] %vm256_vm0, %v246_v46 }
  0xcf   : > { %2535 = vmatmul.mubr.bf16.gmra.mrb[12].mxu1 %v2021_v49  ;;  %1735 = vst.msk [vmem:[#allocation2 + $0xe8] sm:$0xff] %vm256_vm0, %v1689_v0  ;;  %v242_v4 = vld [vmem:[%s4648_s28 + $0x100] sm:$0xff]  ;;  %290 = vst.msk [vmem:[#allocation2 + $0x528] sm:$0xff] %vm256_vm0, %v243_v3 }
  0xd0   : > { %v1523_v7 = vpop.permute.xlu1 %1522  ;;  %v1521_v9 = vpop.permute.xlu0 %1520  ;;  %v1818_v10 = vld [vmem:[#allocation2 + $0x150] sm:$0xff]  ;;  %v1823_v11 = vld [vmem:[#allocation2 + $0x178] sm:$0xff]  ;;  %4370 = vmatpush1.bf16.msra.mxu1 %v4576_v15  ;;  %289 = vst.msk [vmem:[#allocation2 + $0x500] sm:$0xff] %vm256_vm0, %v242_v4  ;;  %1389 = vst.msk [vmem:[#allocation2 + $0x450] sm:$0xff] %vm256_vm0, %v242_v4 }
  0xd1   : > { %1649 = vst.msk [vmem:[#allocation2 + $0x1d0] sm:$0xff] %vm533_vm1, %v1523_v7  ;;  %1648 = vst.msk [vmem:[#allocation2 + $0x1a8] sm:$0xff] %vm533_vm1, %v1521_v9  ;;  %v2028_v26 = vpack.c.bf16 %v1823_v11, %v1818_v10  ;;  %4355 = vmatprep.subr.bf16.mxu1 %v4588_v1  ;;  %v1694_v7 = vld [vmem:[%s4648_s28 + $0x7a] sm:$0xff]  ;;  %v5446_v10 = vld [vmem:[%s4648_s28 + $0xf1] sm:$0xff] }
  0xd2   : > { %814 = vrot.lane.b32.xlu1 %v697_v13, %s4589_s5  ;;  %812 = vrot.lane.b32.xlu0 %v696_v6, %s4589_s5  ;;  %1390 = vst.msk [vmem:[#allocation2 + $0x478] sm:$0xff] %vm256_vm0, %v243_v3  ;;  %v5442_v9 = vld [vmem:[%s4648_s28 + $0xf9] sm:$0xff]  ;;  %1740 = vst.msk [vmem:[#allocation2 + $0x1b0] sm:$0xff] %vm256_vm0, %v1694_v7  ;;  %v248_v3 = vld [vmem:[%s4648_s28 + $0x130] sm:$0xff] }
  0xd3   : > { %2760 = vmatmul.mubr.bf16.gmra.mrb[16].mxu0 %v2028_v26  ;;  %v615_v11 = vld [vmem:[%s4648_s28 + $0x11a] sm:$0xff]  ;;  %664 = vst.msk [vmem:[#allocation2 + $0x5f8] sm:$0xff] %vm256_vm0, %v618_v16  ;;  %1763 = vst.msk [vmem:[#allocation2 + $0x548] sm:$0xff] %vm256_vm0, %v618_v16  ;;  %v5535_v4 = vld [vmem:[%s4648_s28 + $0x129] sm:$0xff] }
  0xd4   : > { %v414_v19 = vpop.permute.xlu1 %413  ;;  %v412_v22 = vpop.permute.xlu0 %411  ;;  %v1817_v48 = vld [vmem:[#allocation2 + $0x148] sm:$0xff]  ;;  %v1822_v23 = vld [vmem:[#allocation2 + $0x170] sm:$0xff]  ;;  %4371 = vmatpush1.bf16.msra.mxu1 %v4577_v24  ;;  %661 = vst.msk [vmem:[#allocation2 + $0x580] sm:$0xff] %vm256_vm0, %v615_v11  ;;  %1760 = vst.msk [vmem:[#allocation2 + $0x4d0] sm:$0xff] %vm256_vm0, %v615_v11 }
  0xd5   : > { %543 = vst.msk [vmem:[#allocation2 + $0x168] sm:$0xff] %vm533_vm1, %v414_v19  ;;  %542 = vst.msk [vmem:[#allocation2 + $0x140] sm:$0xff] %vm533_vm1, %v412_v22  ;;  %v2027_v25 = vpack.c.bf16 %v1822_v23, %v1817_v48  ;;  %4356 = vmatprep.subr.bf16.mxu1 %v4588_v1  ;;  %v705_v19 = vld [vmem:[%s4648_s28 + $0x11c] sm:$0xff]  ;;  %v704_v22 = vld [vmem:[%s4648_s28 + $0x114] sm:$0xff] }
  0xd6   : > { %445 = vrot.lane.b32.xlu1 %v5192_v40, %s4589_s5  ;;  %443 = vrot.lane.b32.xlu0 %v5126_v63, %s4589_s5  ;;  %v4578_v40 = vld [vmem:[%s6224_s1 + $0xf0] sm:$0xff]   ;;  %v245_v48 = vld [vmem:[%s4648_s28 + $0x118] sm:$0xff]  ;;  %295 = vst.msk [vmem:[#allocation2 + $0x5f0] sm:$0xff] %vm256_vm0, %v248_v3  ;;  %1395 = vst.msk [vmem:[#allocation2 + $0x540] sm:$0xff] %vm256_vm0, %v248_v3 }
  0xd7   : > { %2542 = vmatprep.mubr.bf16.mxu1 %v2027_v25  ;;  %v244_v23 = vld [vmem:[%s4648_s28 + $0x110] sm:$0xff]  ;;  %292 = vst.msk [vmem:[#allocation2 + $0x578] sm:$0xff] %vm256_vm0, %v245_v48  ;;  %1392 = vst.msk [vmem:[#allocation2 + $0x4c8] sm:$0xff] %vm256_vm0, %v245_v48  ;;  %v5505_v28 = vld [vmem:[%s4648_s28 + $0x119] sm:$0xff] }
  0xd8   : > { %v1155_v29 = vpop.permute.xlu1 %1154  ;;  %v1153_v32 = vpop.permute.xlu0 %1152  ;;  %v1829_v33 = vld [vmem:[#allocation2 + $0x1a8] sm:$0xff]  ;;  %v1834_v34 = vld [vmem:[#allocation2 + $0x1d0] sm:$0xff]  ;;  %4372 = vmatpush1.bf16.msra.mxu1 %v4578_v40  ;;  %291 = vst.msk [vmem:[#allocation2 + $0x550] sm:$0xff] %vm256_vm0, %v244_v23  ;;  %1391 = vst.msk [vmem:[#allocation2 + $0x4a0] sm:$0xff] %vm256_vm0, %v244_v23 }
  0xd9   : > { %1281 = vst.msk [vmem:[#allocation2 + $0x1c8] sm:$0xff] %vm533_vm1, %v1155_v29  ;;  %1280 = vst.msk [vmem:[#allocation2 + $0x1a0] sm:$0xff] %vm533_vm1, %v1153_v32  ;;  %v2034_v63 = vpack.c.bf16 %v1834_v34, %v1829_v33  ;;  %4357 = vmatprep.subr.bf16.mxu1 %v4588_v1  ;;  %v4579_v1 = vld [vmem:[%s6224_s1 + $0xf8] sm:$0xff]   ;;  %v5473_v29 = vld [vmem:[%s4648_s28 + $0x109] sm:$0xff] }
  0xda   : > { %818 = vrot.lane.b32.xlu1 %v699_v30, %s4589_s5  ;;  %816 = vrot.lane.b32.xlu0 %v698_v31, %s4589_s5  ;;  %v1696_v32 = vld [vmem:[%s4648_s28 + $0x8a] sm:$0xff]  ;;  %v5477_v33 = vld [vmem:[%s4648_s28 + $0x101] sm:$0xff] }
  0xdb   : > { %2767 = vmatprep.mubr.bf16.mxu0 %v2034_v63  ;;  %v617_v34 = vld [vmem:[%s4648_s28 + $0x12a] sm:$0xff]  ;;  %v616_v40 = vld [vmem:[%s4648_s28 + $0x122] sm:$0xff]  ;;  %1742 = vst.msk [vmem:[#allocation2 + $0x200] sm:$0xff] %vm256_vm0, %v1696_v32 }
  0xdc   : > { %v787_v14 = vpop.permute.xlu1 %786  ;;  %v785_v8 = vpop.permute.xlu0 %784  ;;  %v1816_v41 = vld [vmem:[#allocation2 + $0x140] sm:$0xff]  ;;  %v1821_v42 = vld [vmem:[#allocation2 + $0x168] sm:$0xff]  ;;  %4373 = vmatpush1.bf16.msra.mxu1 %v4579_v1  ;;  %663 = vst.msk [vmem:[#allocation2 + $0x5d0] sm:$0xff] %vm256_vm0, %v617_v34  ;;  %662 = vst.msk [vmem:[#allocation2 + $0x5a8] sm:$0xff] %vm256_vm0, %v616_v40 }
  0xdd   : > { %913 = vst.msk [vmem:[#allocation2 + $0x1c0] sm:$0xff] %vm533_vm1, %v787_v14  ;;  %912 = vst.msk [vmem:[#allocation2 + $0x198] sm:$0xff] %vm533_vm1, %v785_v8  ;;  %v2026_v43 = vpack.c.bf16 %v1821_v42, %v1816_v41  ;;  %v707_v14 = vld [vmem:[%s4648_s28 + $0x12c] sm:$0xff]  ;;  %v706_v8 = vld [vmem:[%s4648_s28 + $0x124] sm:$0xff] }
  0xde   : > { %449 = vrot.lane.b32.xlu1 %v5257_v20, %s4589_s5  ;;  %447 = vrot.lane.b32.xlu0 %v5189_v39, %s4589_s5  ;;  %v1692_v20 = vld [vmem:[%s4648_s28 + $0x6a] sm:$0xff]  ;;  %1761 = vst.msk [vmem:[#allocation2 + $0x4f8] sm:$0xff] %vm256_vm0, %v616_v40  ;;  %1762 = vst.msk [vmem:[#allocation2 + $0x520] sm:$0xff] %vm256_vm0, %v617_v34  ;;  %v709_v55 = vld [vmem:[%s4648_s28 + $0x13c] sm:$0xff] }
  0xdf   : > { %2543 = vmatmul.mubr.bf16.gmra.mrb[16].mxu1 %v2026_v43  ;;  %1738 = vst.msk [vmem:[#allocation2 + $0x160] sm:$0xff] %vm256_vm0, %v1692_v20  ;;  %v620_v11 = vld [vmem:[%s4648_s28 + $0x142] sm:$0xff]  ;;  %v622_v40 = vld [vmem:[%s4648_s28 + $0x152] sm:$0xff] }
  0xe0   : > { %v1527_v27 = vpop.permute.xlu1 %1526  ;;  %v1525_v51 = vpop.permute.xlu0 %1524  ;;  %v1828_v52 = vld [vmem:[#allocation2 + $0x1a0] sm:$0xff]  ;;  %v1833_v50 = vld [vmem:[#allocation2 + $0x1c8] sm:$0xff]  ;;  %666 = vst.msk [vmem:[#allocation2 + $0x648] sm:$0xff] %vm256_vm0, %v620_v11  ;;  %1765 = vst.msk [vmem:[#allocation2 + $0x598] sm:$0xff] %vm256_vm0, %v620_v11 }
  0xe1   : > { %1651 = vst.msk [vmem:[#allocation2 + $0x220] sm:$0xff] %vm533_vm1, %v1527_v27  ;;  %1650 = vst.msk [vmem:[#allocation2 + $0x1f8] sm:$0xff] %vm533_vm1, %v1525_v51  ;;  %v2033_v39 = vpack.c.bf16 %v1833_v50, %v1828_v52  ;;  %v5508_v27 = vld [vmem:[%s4648_s28 + $0x111] sm:$0xff]  ;;  %v619_v51 = vld [vmem:[%s4648_s28 + $0x13a] sm:$0xff] }
  0xe2   : > { %822 = vrot.lane.b32.xlu1 %v701_v44, %s4589_s5  ;;  %820 = vrot.lane.b32.xlu0 %v700_v45, %s4589_s5  ;;  %v247_v44 = vld [vmem:[%s4648_s28 + $0x128] sm:$0xff]  ;;  %665 = vst.msk [vmem:[#allocation2 + $0x620] sm:$0xff] %vm256_vm0, %v619_v51  ;;  %1764 = vst.msk [vmem:[#allocation2 + $0x570] sm:$0xff] %vm256_vm0, %v619_v51  ;;  %v250_v23 = vld [vmem:[%s4648_s28 + $0x140] sm:$0xff] }
  0xe3   : > { %2768 = vmatmul.mubr.bf16.gmra.mrb[20].mxu0 %v2033_v39  ;;  %294 = vst.msk [vmem:[#allocation2 + $0x5c8] sm:$0xff] %vm256_vm0, %v247_v44  ;;  %1394 = vst.msk [vmem:[#allocation2 + $0x518] sm:$0xff] %vm256_vm0, %v247_v44  ;;  %v5598_v44 = vld [vmem:[%s4648_s28 + $0x141] sm:$0xff]  ;;  %v715_v16 = vld [vmem:[%s4648_s28 + $0x16c] sm:$0xff] }
  0xe4   : > { %v418_v56 = vpop.permute.xlu1 %417  ;;  %v416_v57 = vpop.permute.xlu0 %415  ;;  %v1827_v58 = vld [vmem:[#allocation2 + $0x198] sm:$0xff]  ;;  %v1832_v59 = vld [vmem:[#allocation2 + $0x1c0] sm:$0xff]  ;;  %297 = vst.msk [vmem:[#allocation2 + $0x640] sm:$0xff] %vm256_vm0, %v250_v23  ;;  %1397 = vst.msk [vmem:[#allocation2 + $0x590] sm:$0xff] %vm256_vm0, %v250_v23 }
  0xe5   : > { %545 = vst.msk [vmem:[#allocation2 + $0x1b8] sm:$0xff] %vm533_vm1, %v418_v56  ;;  %544 = vst.msk [vmem:[#allocation2 + $0x190] sm:$0xff] %vm533_vm1, %v416_v57  ;;  %v2032_v60 = vpack.c.bf16 %v1832_v59, %v1827_v58  ;;  %v708_v56 = vld [vmem:[%s4648_s28 + $0x134] sm:$0xff]  ;;  %v717_v11 = vld [vmem:[%s4648_s28 + $0x17c] sm:$0xff] }
  0xe6   : > { %453 = vrot.lane.b32.xlu1 %v5414_v53, %s4589_s5  ;;  %451 = vrot.lane.b32.xlu0 %v5254_v21, %s4589_s5  ;;  %668 = vst.msk [vmem:[#allocation2 + $0x698] sm:$0xff] %vm256_vm0, %v622_v40  ;;  %1767 = vst.msk [vmem:[#allocation2 + $0x5e8] sm:$0xff] %vm256_vm0, %v622_v40  ;;  %v5628_v3 = vld [vmem:[%s4648_s28 + $0x151] sm:$0xff]  ;;  %v5650_v23 = vld [vmem:[%s4648_s28 + $0x161] sm:$0xff] }
  0xe7   : > { %2550 = vmatprep.mubr.bf16.mxu1 %v2032_v60  ;;  %v975_v40 = vld [vmem:[%s4648_s28 + $0xed] sm:$0xff] }
  0xe8   : > { %v1159_v5 = vpop.permute.xlu1 %1158  ;;  %v1157_v49 = vpop.permute.xlu0 %1156  ;;  %v1839_v13 = vld [vmem:[#allocation2 + $0x1f8] sm:$0xff]  ;;  %v1844_v6 = vld [vmem:[#allocation2 + $0x220] sm:$0xff]  ;;  %1021 = vst.msk [vmem:[#allocation2 + $0x448] sm:$0xff] %vm256_vm0, %v975_v40 }
  0xe9   : > { %1283 = vst.msk [vmem:[#allocation2 + $0x218] sm:$0xff] %vm533_vm1, %v1159_v5  ;;  %1282 = vst.msk [vmem:[#allocation2 + $0x1f0] sm:$0xff] %vm533_vm1, %v1157_v49  ;;  %v2039_v21 = vpack.c.bf16 %v1844_v6, %v1839_v13  ;;  %v5538_v5 = vld [vmem:[%s4648_s28 + $0x121] sm:$0xff]  ;;  %v621_v49 = vld [vmem:[%s4648_s28 + $0x14a] sm:$0xff] }
  0xea   : > { %826 = vrot.lane.b32.xlu1 %v703_v62, %s4589_s5  ;;  %824 = vrot.lane.b32.xlu0 %v702_v2, %s4589_s5  ;;  %v249_v62 = vld [vmem:[%s4648_s28 + $0x138] sm:$0xff]  ;;  %667 = vst.msk [vmem:[#allocation2 + $0x670] sm:$0xff] %vm256_vm0, %v621_v49  ;;  %1766 = vst.msk [vmem:[#allocation2 + $0x5c0] sm:$0xff] %vm256_vm0, %v621_v49 }
  0xeb   : > { %2775 = vmatprep.mubr.bf16.mxu0 %v2039_v21  ;;  %296 = vst.msk [vmem:[#allocation2 + $0x618] sm:$0xff] %vm256_vm0, %v249_v62  ;;  %1396 = vst.msk [vmem:[#allocation2 + $0x568] sm:$0xff] %vm256_vm0, %v249_v62  ;;  %v254_v62 = vld [vmem:[%s4648_s28 + $0x160] sm:$0xff] }
  0xec   : > { %v791_v15 = vpop.permute.xlu1 %790  ;;  %v789_v26 = vpop.permute.xlu0 %788  ;;  %v1826_v0 = vld [vmem:[#allocation2 + $0x190] sm:$0xff]  ;;  %v1831_v17 = vld [vmem:[#allocation2 + $0x1b8] sm:$0xff]  ;;  %301 = vst.msk [vmem:[#allocation2 + $0x6e0] sm:$0xff] %vm256_vm0, %v254_v62  ;;  %1401 = vst.msk [vmem:[#allocation2 + $0x630] sm:$0xff] %vm256_vm0, %v254_v62 }
  0xed   : > { %915 = vst.msk [vmem:[#allocation2 + $0x210] sm:$0xff] %vm533_vm1, %v791_v15  ;;  %914 = vst.msk [vmem:[#allocation2 + $0x1e8] sm:$0xff] %vm533_vm1, %v789_v26  ;;  %v2031_v18 = vpack.c.bf16 %v1831_v17, %v1826_v0  ;;  %v711_v15 = vld [vmem:[%s4648_s28 + $0x14c] sm:$0xff]  ;;  %v710_v26 = vld [vmem:[%s4648_s28 + $0x144] sm:$0xff] }
  0xee   : > { %457 = vrot.lane.b32.xlu1 %v5442_v9, %s4589_s5  ;;  %455 = vrot.lane.b32.xlu0 %v5446_v10, %s4589_s5 }
  0xef   : > { %2551 = vmatmul.mubr.bf16.gmra.mrb[20].mxu1 %v2031_v18 }
  0xf0   : > { %v1531_v24 = vpop.permute.xlu1 %1530  ;;  %v1529_v25 = vpop.permute.xlu0 %1528  ;;  %v1838_v30 = vld [vmem:[#allocation2 + $0x1f0] sm:$0xff]  ;;  %v1843_v31 = vld [vmem:[#allocation2 + $0x218] sm:$0xff] }
  0xf1   : > { %1653 = vst.msk [vmem:[#allocation2 + $0x270] sm:$0xff] %vm533_vm1, %v1531_v24  ;;  %1652 = vst.msk [vmem:[#allocation2 + $0x248] sm:$0xff] %vm533_vm1, %v1529_v25  ;;  %v2038_v47 = vpack.c.bf16 %v1843_v31, %v1838_v30  ;;  %v5565_v24 = vld [vmem:[%s4648_s28 + $0x139] sm:$0xff]  ;;  %v5568_v25 = vld [vmem:[%s4648_s28 + $0x131] sm:$0xff] }
  0xf2   : > { %830 = vrot.lane.b32.xlu1 %v705_v19, %s4589_s5  ;;  %828 = vrot.lane.b32.xlu0 %v704_v22, %s4589_s5  ;;  %v251_v22 = vld [vmem:[%s4648_s28 + $0x148] sm:$0xff]  ;;  %v623_v30 = vld [vmem:[%s4648_s28 + $0x15a] sm:$0xff] }
  0xf3   : > { %2776 = vmatmul.mubr.bf16.gmra.mrb[24].mxu0 %v2038_v47  ;;  %298 = vst.msk [vmem:[#allocation2 + $0x668] sm:$0xff] %vm256_vm0, %v251_v22  ;;  %1398 = vst.msk [vmem:[#allocation2 + $0x5b8] sm:$0xff] %vm256_vm0, %v251_v22 }
  0xf4   : > { %v422_v63 = vpop.permute.xlu1 %421  ;;  %v420_v35 = vpop.permute.xlu0 %419  ;;  %v1837_v36 = vld [vmem:[#allocation2 + $0x1e8] sm:$0xff]  ;;  %v1842_v37 = vld [vmem:[#allocation2 + $0x210] sm:$0xff]  ;;  %669 = vst.msk [vmem:[#allocation2 + $0x6c0] sm:$0xff] %vm256_vm0, %v623_v30  ;;  %1768 = vst.msk [vmem:[#allocation2 + $0x610] sm:$0xff] %vm256_vm0, %v623_v30 }
  0xf5   : > { %547 = vst.msk [vmem:[#allocation2 + $0x208] sm:$0xff] %vm533_vm1, %v422_v63  ;;  %546 = vst.msk [vmem:[#allocation2 + $0x1e0] sm:$0xff] %vm533_vm1, %v420_v35  ;;  %v2037_v38 = vpack.c.bf16 %v1842_v37, %v1837_v36  ;;  %v713_v35 = vld [vmem:[%s4648_s28 + $0x15c] sm:$0xff]  ;;  %v712_v36 = vld [vmem:[%s4648_s28 + $0x154] sm:$0xff] }
  0xf6   : > { %461 = vrot.lane.b32.xlu1 %v5473_v29, %s4589_s5  ;;  %459 = vrot.lane.b32.xlu0 %v5477_v33, %s4589_s5 }
  0xf7   : > { %2558 = vmatprep.mubr.bf16.mxu1 %v2037_v38 }
  0xf8   : > { %v1163_v41 = vpop.permute.xlu1 %1162  ;;  %v1161_v42 = vpop.permute.xlu0 %1160  ;;  %v1849_v1 = vld [vmem:[#allocation2 + $0x248] sm:$0xff]  ;;  %v1854_v43 = vld [vmem:[#allocation2 + $0x270] sm:$0xff] }
  0xf9   : > { %1285 = vst.msk [vmem:[#allocation2 + $0x268] sm:$0xff] %vm533_vm1, %v1163_v41  ;;  %1284 = vst.msk [vmem:[#allocation2 + $0x240] sm:$0xff] %vm533_vm1, %v1161_v42  ;;  %v2044_v45 = vpack.c.bf16 %v1854_v43, %v1849_v1  ;;  %v253_v41 = vld [vmem:[%s4648_s28 + $0x158] sm:$0xff]  ;;  %v252_v1 = vld [vmem:[%s4648_s28 + $0x150] sm:$0xff] }
  0xfa   : > { %834 = vrot.lane.b32.xlu1 %v707_v14, %s4589_s5  ;;  %832 = vrot.lane.b32.xlu0 %v706_v8, %s4589_s5  ;;  %300 = vst.msk [vmem:[#allocation2 + $0x6b8] sm:$0xff] %vm256_vm0, %v253_v41  ;;  %1400 = vst.msk [vmem:[#allocation2 + $0x608] sm:$0xff] %vm256_vm0, %v253_v41  ;;  %v5595_v43 = vld [vmem:[%s4648_s28 + $0x149] sm:$0xff]  ;;  %v1064_v41 = vld [vmem:[%s4648_s28 + $0xd6] sm:$0xff] }
  0xfb   : > { %2783 = vmatprep.mubr.bf16.mxu0 %v2044_v45  ;;  %299 = vst.msk [vmem:[#allocation2 + $0x690] sm:$0xff] %vm256_vm0, %v252_v1  ;;  %1399 = vst.msk [vmem:[#allocation2 + $0x5e0] sm:$0xff] %vm256_vm0, %v252_v1  ;;  %v625_v45 = vld [vmem:[%s4648_s28 + $0x16a] sm:$0xff] }
  0xfc   : > { %v795_v52 = vpop.permute.xlu1 %794  ;;  %v793_v50 = vpop.permute.xlu0 %792  ;;  %v1836_v20 = vld [vmem:[#allocation2 + $0x1e0] sm:$0xff]  ;;  %v1841_v39 = vld [vmem:[#allocation2 + $0x208] sm:$0xff]  ;;  %671 = vst.msk [vmem:[#allocation2 + $0x710] sm:$0xff] %vm256_vm0, %v625_v45  ;;  %1770 = vst.msk [vmem:[#allocation2 + $0x660] sm:$0xff] %vm256_vm0, %v625_v45 }
  0xfd   : > { %917 = vst.msk [vmem:[#allocation2 + $0x260] sm:$0xff] %vm533_vm1, %v795_v52  ;;  %916 = vst.msk [vmem:[#allocation2 + $0x238] sm:$0xff] %vm533_vm1, %v793_v50  ;;  %v2036_v54 = vpack.c.bf16 %v1841_v39, %v1836_v20  ;;  %v624_v20 = vld [vmem:[%s4648_s28 + $0x162] sm:$0xff] }
  0xfe   : > { %465 = vrot.lane.b32.xlu1 %v5505_v28, %s4589_s5  ;;  %463 = vrot.lane.b32.xlu0 %v5508_v27, %s4589_s5  ;;  %670 = vst.msk [vmem:[#allocation2 + $0x6e8] sm:$0xff] %vm256_vm0, %v624_v20  ;;  %1769 = vst.msk [vmem:[#allocation2 + $0x638] sm:$0xff] %vm256_vm0, %v624_v20 }
  0xff   : > { %2559 = vmatmul.mubr.bf16.gmra.mrb[24].mxu1 %v2036_v54  ;;  %v714_v54 = vld [vmem:[%s4648_s28 + $0x164] sm:$0xff] }
 0x100   : > { %v1535_v57 = vpop.permute.xlu1 %1534  ;;  %v1533_v58 = vpop.permute.xlu0 %1532  ;;  %v1848_v59 = vld [vmem:[#allocation2 + $0x240] sm:$0xff]  ;;  %v1853_v60 = vld [vmem:[#allocation2 + $0x268] sm:$0xff] }
 0x101   : > { %1655 = vst.msk [vmem:[#allocation2 + $0x2c0] sm:$0xff] %vm533_vm1, %v1535_v57  ;;  %1654 = vst.msk [vmem:[#allocation2 + $0x298] sm:$0xff] %vm533_vm1, %v1533_v58  ;;  %v2043_v2 = vpack.c.bf16 %v1853_v60, %v1848_v59  ;;  %v255_v59 = vld [vmem:[%s4648_s28 + $0x168] sm:$0xff] }
 0x102   : > { %838 = vrot.lane.b32.xlu1 %v709_v55, %s4589_s5  ;;  %836 = vrot.lane.b32.xlu0 %v708_v56, %s4589_s5  ;;  %302 = vst.msk [vmem:[#allocation2 + $0x708] sm:$0xff] %vm256_vm0, %v255_v59  ;;  %1402 = vst.msk [vmem:[#allocation2 + $0x658] sm:$0xff] %vm256_vm0, %v255_v59 }
 0x103   : > { %2784 = vmatmul.mubr.bf16.gmra.mrb[28].mxu0 %v2043_v2  ;;  %v5625_v2 = vld [vmem:[%s4648_s28 + $0x159] sm:$0xff] }
 0x104   : > { %v426_v13 = vpop.permute.xlu1 %425  ;;  %v424_v6 = vpop.permute.xlu0 %423  ;;  %v1847_v21 = vld [vmem:[#allocation2 + $0x238] sm:$0xff]  ;;  %v1852_v7 = vld [vmem:[#allocation2 + $0x260] sm:$0xff] }
 0x105   : > { %549 = vst.msk [vmem:[#allocation2 + $0x258] sm:$0xff] %vm533_vm1, %v426_v13  ;;  %548 = vst.msk [vmem:[#allocation2 + $0x230] sm:$0xff] %vm533_vm1, %v424_v6  ;;  %v2042_v12 = vpack.c.bf16 %v1852_v7, %v1847_v21 }
 0x106   : > { %469 = vrot.lane.b32.xlu1 %v5535_v4, %s4589_s5  ;;  %467 = vrot.lane.b32.xlu0 %v5538_v5, %s4589_s5 }
 0x107   : > { %2566 = vmatprep.mubr.bf16.mxu1 %v2042_v12  ;;  %v716_v12 = vld [vmem:[%s4648_s28 + $0x174] sm:$0xff] }
 0x108   : > { %v1167_v0 = vpop.permute.xlu1 %1166  ;;  %v1165_v17 = vpop.permute.xlu0 %1164  ;;  %v1859_v18 = vld [vmem:[#allocation2 + $0x298] sm:$0xff]  ;;  %v1864_v19 = vld [vmem:[#allocation2 + $0x2c0] sm:$0xff] }
 0x109   : > { %1287 = vst.msk [vmem:[#allocation2 + $0x2b8] sm:$0xff] %vm533_vm1, %v1167_v0  ;;  %1286 = vst.msk [vmem:[#allocation2 + $0x290] sm:$0xff] %vm533_vm1, %v1165_v17  ;;  %v2049_v48 = vpack.c.bf16 %v1864_v19, %v1859_v18  ;;  %v972_v19 = vld [vmem:[%s4648_s28 + $0xd5] sm:$0xff] }
 0x10a   : > { %842 = vrot.lane.b32.xlu1 %v711_v15, %s4589_s5  ;;  %840 = vrot.lane.b32.xlu0 %v710_v26, %s4589_s5  ;;  %v973_v15 = vld [vmem:[%s4648_s28 + $0xdd] sm:$0xff]  ;;  %1018 = vst.msk [vmem:[#allocation2 + $0x3d0] sm:$0xff] %vm256_vm0, %v972_v19 }
 0x10b   : > { %2791 = vmatprep.mubr.bf16.mxu0 %v2049_v48  ;;  %1019 = vst.msk [vmem:[#allocation2 + $0x3f8] sm:$0xff] %vm256_vm0, %v973_v15  ;;  %v5647_v48 = vld [vmem:[%s4648_s28 + $0x169] sm:$0xff] }
 0x10c   : > { %v799_v31 = vpop.permute.xlu1 %798  ;;  %v797_v47 = vpop.permute.xlu0 %796  ;;  %v1846_v32 = vld [vmem:[#allocation2 + $0x230] sm:$0xff]  ;;  %v1851_v34 = vld [vmem:[#allocation2 + $0x258] sm:$0xff] }
 0x10d   : > { %919 = vst.msk [vmem:[#allocation2 + $0x2b0] sm:$0xff] %vm533_vm1, %v799_v31  ;;  %918 = vst.msk [vmem:[#allocation2 + $0x288] sm:$0xff] %vm533_vm1, %v797_v47  ;;  %v2041_v63 = vpack.c.bf16 %v1851_v34, %v1846_v32 }
 0x10e   : > { %473 = vrot.lane.b32.xlu1 %v5565_v24, %s4589_s5  ;;  %471 = vrot.lane.b32.xlu0 %v5568_v25, %s4589_s5 }
 0x10f   : > { %2567 = vmatmul.mubr.bf16.gmra.mrb[28].mxu1 %v2041_v63 }
 0x110   : > { %v1539_v37 = vpop.permute.xlu1 %1538  ;;  %v1537_v38 = vpop.permute.xlu0 %1536  ;;  %v1858_v14 = vld [vmem:[#allocation2 + $0x290] sm:$0xff]  ;;  %v1863_v8 = vld [vmem:[#allocation2 + $0x2b8] sm:$0xff] }
 0x111   : > { %1657 = vst.msk [vmem:[#allocation2 + $0x310] sm:$0xff] %vm533_vm1, %v1539_v37  ;;  %1656 = vst.msk [vmem:[#allocation2 + $0x2e8] sm:$0xff] %vm533_vm1, %v1537_v38  ;;  %v2048_v42 = vpack.c.bf16 %v1863_v8, %v1858_v14  ;;  %v974_v38 = vld [vmem:[%s4648_s28 + $0xe5] sm:$0xff] }
 0x112   : > { %846 = vrot.lane.b32.xlu1 %v713_v35, %s4589_s5  ;;  %844 = vrot.lane.b32.xlu0 %v712_v36, %s4589_s5  ;;  %1020 = vst.msk [vmem:[#allocation2 + $0x420] sm:$0xff] %vm256_vm0, %v974_v38  ;;  %v1065_v8 = vld [vmem:[%s4648_s28 + $0xde] sm:$0xff]  ;;  %v983_v38 = vld [vmem:[%s4648_s28 + $0x12d] sm:$0xff] }
 0x113   : > { %2792 = vmatmul.mubr.bf16.gmra.mrb[32].mxu0 %v2048_v42  ;;  %1029 = vst.msk [vmem:[#allocation2 + $0x588] sm:$0xff] %vm256_vm0, %v983_v38  ;;  %v1078_v38 = vld [vmem:[%s4648_s28 + $0x146] sm:$0xff] }
 0x114   : > { %v430_v46 = vpop.permute.xlu1 %429  ;;  %v428_v51 = vpop.permute.xlu0 %427  ;;  %v1857_v52 = vld [vmem:[#allocation2 + $0x288] sm:$0xff]  ;;  %v1862_v50 = vld [vmem:[#allocation2 + $0x2b0] sm:$0xff] }
 0x115   : > { %551 = vst.msk [vmem:[#allocation2 + $0x2a8] sm:$0xff] %vm533_vm1, %v430_v46  ;;  %550 = vst.msk [vmem:[#allocation2 + $0x280] sm:$0xff] %vm533_vm1, %v428_v51  ;;  %v2047_v39 = vpack.c.bf16 %v1862_v50, %v1857_v52 }
 0x116   : > { %477 = vrot.lane.b32.xlu1 %v5595_v43, %s4589_s5  ;;  %475 = vrot.lane.b32.xlu0 %v5598_v44, %s4589_s5 }
 0x117   : > { %2574 = vmatprep.mubr.bf16.mxu1 %v2047_v39  ;;  %v976_v39 = vld [vmem:[%s4648_s28 + $0xf5] sm:$0xff] }
 0x118   : > { %v1171_v55 = vpop.permute.xlu1 %1170  ;;  %v1169_v56 = vpop.permute.xlu0 %1168  ;;  %v1869_v57 = vld [vmem:[#allocation2 + $0x2e8] sm:$0xff]  ;;  %v1874_v58 = vld [vmem:[#allocation2 + $0x310] sm:$0xff]  ;;  %1022 = vst.msk [vmem:[#allocation2 + $0x470] sm:$0xff] %vm256_vm0, %v976_v39  ;;  %v1795_v39 = vld [vmem:[#allocation2 + $0x98] sm:$0xff] }
 0x119   : > { %1289 = vst.msk [vmem:[#allocation2 + $0x308] sm:$0xff] %vm533_vm1, %v1171_v55  ;;  %1288 = vst.msk [vmem:[#allocation2 + $0x2e0] sm:$0xff] %vm533_vm1, %v1169_v56  ;;  %v2054_v60 = vpack.c.bf16 %v1874_v58, %v1869_v57  ;;  %v1066_v55 = vld [vmem:[%s4648_s28 + $0xe6] sm:$0xff] }
 0x11a   : > { %850 = vrot.lane.b32.xlu1 %v715_v16, %s4589_s5  ;;  %848 = vrot.lane.b32.xlu0 %v714_v54, %s4589_s5  ;;  %v1067_v54 = vld [vmem:[%s4648_s28 + $0xee] sm:$0xff] }
 0x11b   : > { %2799 = vmatprep.mubr.bf16.mxu0 %v2054_v60 }
 0x11c   : > { %v803_v49 = vpop.permute.xlu1 %802  ;;  %v801_v13 = vpop.permute.xlu0 %800  ;;  %v1856_v6 = vld [vmem:[#allocation2 + $0x280] sm:$0xff]  ;;  %v1861_v21 = vld [vmem:[#allocation2 + $0x2a8] sm:$0xff] }
 0x11d   : > { %921 = vst.msk [vmem:[#allocation2 + $0x300] sm:$0xff] %vm533_vm1, %v803_v49  ;;  %920 = vst.msk [vmem:[#allocation2 + $0x2d8] sm:$0xff] %vm533_vm1, %v801_v13  ;;  %v2046_v7 = vpack.c.bf16 %v1861_v21, %v1856_v6  ;;  %v978_v6 = vld [vmem:[%s4648_s28 + $0x105] sm:$0xff] }
 0x11e   : > { %481 = vrot.lane.b32.xlu1 %v5625_v2, %s4589_s5  ;;  %479 = vrot.lane.b32.xlu0 %v5628_v3, %s4589_s5  ;;  %1024 = vst.msk [vmem:[#allocation2 + $0x4c0] sm:$0xff] %vm256_vm0, %v978_v6 }
 0x11f   : > { %2575 = vmatmul.mubr.bf16.gmra.mrb[32].mxu1 %v2046_v7  ;;  %v1069_v7 = vld [vmem:[%s4648_s28 + $0xfe] sm:$0xff] }
 0x120   : > { %v1543_v26 = vpop.permute.xlu1 %1542  ;;  %v1541_v0 = vpop.permute.xlu0 %1540  ;;  %v1868_v17 = vld [vmem:[#allocation2 + $0x2e0] sm:$0xff]  ;;  %v1873_v18 = vld [vmem:[#allocation2 + $0x308] sm:$0xff] }
 0x121   : > { %1659 = vst.msk [vmem:[#allocation2 + $0x360] sm:$0xff] %vm533_vm1, %v1543_v26  ;;  %1658 = vst.msk [vmem:[#allocation2 + $0x338] sm:$0xff] %vm533_vm1, %v1541_v0  ;;  %v2053_v22 = vpack.c.bf16 %v1873_v18, %v1868_v17 }
 0x122   : > { %854 = vrot.lane.b32.xlu1 %v717_v11, %s4589_s5  ;;  %852 = vrot.lane.b32.xlu0 %v716_v12, %s4589_s5  ;;  %v1068_v11 = vld [vmem:[%s4648_s28 + $0xf6] sm:$0xff] }
 0x123   : > { %2800 = vmatmul.mubr.bf16.gmra.mrb[36].mxu0 %v2053_v22 }
 0x124   : > { %v434_v30 = vpop.permute.xlu1 %433  ;;  %v432_v31 = vpop.permute.xlu0 %431  ;;  %v1867_v47 = vld [vmem:[#allocation2 + $0x2d8] sm:$0xff]  ;;  %v1872_v32 = vld [vmem:[#allocation2 + $0x300] sm:$0xff] }
 0x125   : > { %553 = vst.msk [vmem:[#allocation2 + $0x2f8] sm:$0xff] %vm533_vm1, %v434_v30  ;;  %552 = vst.msk [vmem:[#allocation2 + $0x2d0] sm:$0xff] %vm533_vm1, %v432_v31  ;;  %v2052_v34 = vpack.c.bf16 %v1872_v32, %v1867_v47  ;;  %v980_v30 = vld [vmem:[%s4648_s28 + $0x115] sm:$0xff]  ;;  %v1070_v32 = vld [vmem:[%s4648_s28 + $0x106] sm:$0xff] }
 0x126   : > { %485 = vrot.lane.b32.xlu1 %v5647_v48, %s4589_s5  ;;  %483 = vrot.lane.b32.xlu0 %v5650_v23, %s4589_s5  ;;  %1026 = vst.msk [vmem:[#allocation2 + $0x510] sm:$0xff] %vm256_vm0, %v980_v30  ;;  %v1071_v47 = vld [vmem:[%s4648_s28 + $0x10e] sm:$0xff] }
 0x127   : > { %2582 = vmatprep.mubr.bf16.mxu1 %v2052_v34  ;;  %v1780_v34 = vld [vmem:[#allocation2 + $0x20] sm:$0xff] }
 0x128   : > { %v1175_v63 = vpop.permute.xlu1 %1174  ;;  %v1173_v35 = vpop.permute.xlu0 %1172  ;;  %v1879_v36 = vld [vmem:[#allocation2 + $0x338] sm:$0xff]  ;;  %v1884_v37 = vld [vmem:[#allocation2 + $0x360] sm:$0xff] }
 0x129   : > { %1291 = vst.msk [vmem:[#allocation2 + $0x358] sm:$0xff] %vm533_vm1, %v1175_v63  ;;  %1290 = vst.msk [vmem:[#allocation2 + $0x330] sm:$0xff] %vm533_vm1, %v1173_v35  ;;  %v2059_v14 = vpack.c.bf16 %v1884_v37, %v1879_v36  ;;  %v1785_v37 = vld [vmem:[#allocation2 + $0x48] sm:$0xff] }
 0x12a   : > { %1550 = vrot.lane.b32.xlu1 %v5446_v10, %s4589_s5  ;;  %1548 = vrot.lane.b32.xlu0 %v5414_v53, %s4589_s5  ;;  %v977_v53 = vld [vmem:[%s4648_s28 + $0xfd] sm:$0xff] }
 0x12b   : > { %2807 = vmatprep.mubr.bf16.mxu0 %v2059_v14  ;;  %1023 = vst.msk [vmem:[#allocation2 + $0x498] sm:$0xff] %vm256_vm0, %v977_v53  ;;  %v1790_v53 = vld [vmem:[#allocation2 + $0x70] sm:$0xff] }
 0x12c   : > { %v807_v42 = vpop.permute.xlu1 %806  ;;  %v805_v1 = vpop.permute.xlu0 %804  ;;  %v1866_v45 = vld [vmem:[#allocation2 + $0x2d0] sm:$0xff]  ;;  %v1871_v46 = vld [vmem:[#allocation2 + $0x2f8] sm:$0xff] }
 0x12d   : > { %923 = vst.msk [vmem:[#allocation2 + $0x350] sm:$0xff] %vm533_vm1, %v807_v42  ;;  %922 = vst.msk [vmem:[#allocation2 + $0x328] sm:$0xff] %vm533_vm1, %v805_v1  ;;  %v2051_v51 = vpack.c.bf16 %v1871_v46, %v1866_v45  ;;  %v982_v1 = vld [vmem:[%s4648_s28 + $0x125] sm:$0xff] }
 0x12e   : > { %1182 = vrot.lane.b32.xlu1 %v1065_v8, %s4589_s5  ;;  %1180 = vrot.lane.b32.xlu0 %v1064_v41, %s4589_s5  ;;  %1028 = vst.msk [vmem:[#allocation2 + $0x560] sm:$0xff] %vm256_vm0, %v982_v1  ;;  %v1073_v46 = vld [vmem:[%s4648_s28 + $0x11e] sm:$0xff] }
 0x12f   : > { %2583 = vmatmul.mubr.bf16.gmra.mrb[36].mxu1 %v2051_v51  ;;  %v1072_v51 = vld [vmem:[%s4648_s28 + $0x116] sm:$0xff] }
 0x130   : > { %v1547_v10 = vpop.permute.xlu1 %1546  ;;  %v1545_v52 = vpop.permute.xlu0 %1544  ;;  %v1878_v50 = vld [vmem:[#allocation2 + $0x330] sm:$0xff]  ;;  %v1883_v20 = vld [vmem:[#allocation2 + $0x358] sm:$0xff] }
 0x131   : > { %1661 = vst.msk [vmem:[#allocation2 + $0x3b0] sm:$0xff] %vm533_vm1, %v1547_v10  ;;  %1660 = vst.msk [vmem:[#allocation2 + $0x388] sm:$0xff] %vm533_vm1, %v1545_v52  ;;  %v2058_v16 = vpack.c.bf16 %v1883_v20, %v1878_v50 }
 0x132   : > { %1554 = vrot.lane.b32.xlu1 %v5477_v33, %s4589_s5  ;;  %1552 = vrot.lane.b32.xlu0 %v5442_v9, %s4589_s5  ;;  %v979_v9 = vld [vmem:[%s4648_s28 + $0x10d] sm:$0xff] }
 0x133   : > { %2808 = vmatmul.mubr.bf16.gmra.mrb[40].mxu0 %v2058_v16  ;;  %1025 = vst.msk [vmem:[#allocation2 + $0x4e8] sm:$0xff] %vm256_vm0, %v979_v9  ;;  %v985_v16 = vld [vmem:[%s4648_s28 + $0x13d] sm:$0xff]  ;;  %v1074_v9 = vld [vmem:[%s4648_s28 + $0x126] sm:$0xff] }
 0x134   : > { %v438_v56 = vpop.permute.xlu1 %437  ;;  %v436_v57 = vpop.permute.xlu0 %435  ;;  %v1877_v58 = vld [vmem:[#allocation2 + $0x328] sm:$0xff]  ;;  %v1882_v59 = vld [vmem:[#allocation2 + $0x350] sm:$0xff]  ;;  %1031 = vst.msk [vmem:[#allocation2 + $0x5d8] sm:$0xff] %vm256_vm0, %v985_v16 }
 0x135   : > { %555 = vst.msk [vmem:[#allocation2 + $0x348] sm:$0xff] %vm533_vm1, %v438_v56  ;;  %554 = vst.msk [vmem:[#allocation2 + $0x320] sm:$0xff] %vm533_vm1, %v436_v57  ;;  %v2057_v60 = vpack.c.bf16 %v1882_v59, %v1877_v58  ;;  %v984_v58 = vld [vmem:[%s4648_s28 + $0x135] sm:$0xff] }
 0x136   : > { %1186 = vrot.lane.b32.xlu1 %v1067_v54, %s4589_s5  ;;  %1184 = vrot.lane.b32.xlu0 %v1066_v55, %s4589_s5  ;;  %1030 = vst.msk [vmem:[#allocation2 + $0x5b0] sm:$0xff] %vm256_vm0, %v984_v58  ;;  %v1830_v58 = vld [vmem:[#allocation2 + $0x1b0] sm:$0xff] }
 0x137   : > { %2590 = vmatprep.mubr.bf16.mxu1 %v2057_v60  ;;  %v1075_v60 = vld [vmem:[%s4648_s28 + $0x12e] sm:$0xff] }
 0x138   : > { %v1179_v33 = vpop.permute.xlu1 %1178  ;;  %v1177_v62 = vpop.permute.xlu0 %1176  ;;  %v1889_v49 = vld [vmem:[#allocation2 + $0x388] sm:$0xff]  ;;  %v1894_v13 = vld [vmem:[#allocation2 + $0x3b0] sm:$0xff] }
 0x139   : > { %1293 = vst.msk [vmem:[#allocation2 + $0x3a8] sm:$0xff] %vm533_vm1, %v1179_v33  ;;  %1292 = vst.msk [vmem:[#allocation2 + $0x380] sm:$0xff] %vm533_vm1, %v1177_v62  ;;  %v2064_v21 = vpack.c.bf16 %v1894_v13, %v1889_v49  ;;  %v1800_v33 = vld [vmem:[#allocation2 + $0xc0] sm:$0xff] }
 0x13a   : > { %1558 = vrot.lane.b32.xlu1 %v5508_v27, %s4589_s5  ;;  %1556 = vrot.lane.b32.xlu0 %v5473_v29, %s4589_s5  ;;  %v981_v29 = vld [vmem:[%s4648_s28 + $0x11d] sm:$0xff] }
 0x13b   : > { %2815 = vmatprep.mubr.bf16.mxu0 %v2064_v21  ;;  %1027 = vst.msk [vmem:[#allocation2 + $0x538] sm:$0xff] %vm256_vm0, %v981_v29  ;;  %v1805_v21 = vld [vmem:[#allocation2 + $0xe8] sm:$0xff]  ;;  %v1077_v29 = vld [vmem:[%s4648_s28 + $0x13e] sm:$0xff] }
 0x13c   : > { %v811_v12 = vpop.permute.xlu1 %810  ;;  %v809_v15 = vpop.permute.xlu0 %808  ;;  %v1876_v26 = vld [vmem:[#allocation2 + $0x320] sm:$0xff]  ;;  %v1881_v0 = vld [vmem:[#allocation2 + $0x348] sm:$0xff] }
 0x13d   : > { %925 = vst.msk [vmem:[#allocation2 + $0x3a0] sm:$0xff] %vm533_vm1, %v811_v12  ;;  %924 = vst.msk [vmem:[#allocation2 + $0x378] sm:$0xff] %vm533_vm1, %v809_v15  ;;  %v2056_v17 = vpack.c.bf16 %v1881_v0, %v1876_v26  ;;  %v986_v0 = vld [vmem:[%s4648_s28 + $0x145] sm:$0xff] }
 0x13e   : > { %1190 = vrot.lane.b32.xlu1 %v1069_v7, %s4589_s5  ;;  %1188 = vrot.lane.b32.xlu0 %v1068_v11, %s4589_s5  ;;  %v987_v7 = vld [vmem:[%s4648_s28 + $0x14d] sm:$0xff]  ;;  %1032 = vst.msk [vmem:[#allocation2 + $0x600] sm:$0xff] %vm256_vm0, %v986_v0 }
 0x13f   : > { %2591 = vmatmul.mubr.bf16.gmra.mrb[40].mxu1 %v2056_v17  ;;  %1033 = vst.msk [vmem:[#allocation2 + $0x628] sm:$0xff] %vm256_vm0, %v987_v7 }
 0x140   : > { %v442_v27 = vpop.permute.xlu1 %441  ;;  %v440_v18 = vpop.permute.xlu0 %439  ;;  %v1888_v19 = vld [vmem:[#allocation2 + $0x380] sm:$0xff]  ;;  %v1893_v22 = vld [vmem:[#allocation2 + $0x3a8] sm:$0xff] }
 0x141   : > { %557 = vst.msk [vmem:[#allocation2 + $0x398] sm:$0xff] %vm533_vm1, %v442_v27  ;;  %556 = vst.msk [vmem:[#allocation2 + $0x370] sm:$0xff] %vm533_vm1, %v440_v18  ;;  %v2063_v31 = vpack.c.bf16 %v1893_v22, %v1888_v19  ;;  %v1076_v27 = vld [vmem:[%s4648_s28 + $0x136] sm:$0xff] }
 0x142   : > { %1562 = vrot.lane.b32.xlu1 %v5538_v5, %s4589_s5  ;;  %1560 = vrot.lane.b32.xlu0 %v5505_v28, %s4589_s5  ;;  %v2010_v5 = vpack.c.bf16 %v1785_v37, %v1780_v34  ;;  %v1810_v18 = vld [vmem:[#allocation2 + $0x110] sm:$0xff]  ;;  %v989_v34 = vld [vmem:[%s4648_s28 + $0x15d] sm:$0xff] }
 0x143   : > { %2816 = vmatmul.mubr.bf16.gmra.mrb[44].mxu0 %v2063_v31  ;;  %v1357_v19 = vld [vmem:[%s4648_s28 + $0x170] sm:$0xff]  ;;  %1035 = vst.msk [vmem:[#allocation2 + $0x678] sm:$0xff] %vm256_vm0, %v989_v34 }
 0x144   : > { %v815_v40 = vpop.permute.xlu1 %814  ;;  %v813_v63 = vpop.permute.xlu0 %812  ;;  %v1887_v35 = vld [vmem:[#allocation2 + $0x378] sm:$0xff]  ;;  %v1892_v36 = vld [vmem:[#allocation2 + $0x3a0] sm:$0xff]  ;;  %4250 = vmatprep.mubr.msk.bf16.mxu0 %vm4591_vm2, %v4590_v61  ;;  %1403 = vst.msk [vmem:[#allocation2 + $0x680] sm:$0xff] %vm256_vm0, %v1357_v19  ;;  %v1083_v19 = vld [vmem:[%s4648_s28 + $0x16e] sm:$0xff] }
 0x145   : > { %927 = vst.msk [vmem:[#allocation2 + $0x3f0] sm:$0xff] %vm533_vm1, %v815_v40  ;;  %926 = vst.msk [vmem:[#allocation2 + $0x3c8] sm:$0xff] %vm533_vm1, %v813_v63  ;;  %v2062_v28 = vpack.c.bf16 %v1892_v36, %v1887_v35  ;;  %v988_v37 = vld [vmem:[%s4648_s28 + $0x155] sm:$0xff] }
 0x146   : > { %1194 = vrot.lane.b32.xlu1 %v1071_v47, %s4589_s5  ;;  %1192 = vrot.lane.b32.xlu0 %v1070_v32, %s4589_s5  ;;  %1034 = vst.msk [vmem:[#allocation2 + $0x650] sm:$0xff] %vm256_vm0, %v988_v37 }
 0x147   : > { %2598 = vmatprep.mubr.bf16.mxu1 %v2062_v28 }
 0x148   : > { %v446_v14 = vpop.permute.xlu1 %445  ;;  %v444_v8 = vpop.permute.xlu0 %443  ;;  %v1886_v41 = vld [vmem:[#allocation2 + $0x370] sm:$0xff]  ;;  %v1891_v42 = vld [vmem:[#allocation2 + $0x398] sm:$0xff] }
 0x149   : > { %559 = vst.msk [vmem:[#allocation2 + $0x3e8] sm:$0xff] %vm533_vm1, %v446_v14  ;;  %558 = vst.msk [vmem:[#allocation2 + $0x3c0] sm:$0xff] %vm533_vm1, %v444_v8  ;;  %v2061_v45 = vpack.c.bf16 %v1891_v42, %v1886_v41  ;;  %v1725_v14 = vld [vmem:[%s4648_s28 + $0x172] sm:$0xff]  ;;  %v1820_v8 = vld [vmem:[#allocation2 + $0x160] sm:$0xff] }
 0x14a   : > { %1566 = vrot.lane.b32.xlu1 %v5568_v25, %s4589_s5  ;;  %1564 = vrot.lane.b32.xlu0 %v5535_v4, %s4589_s5  ;;  %v2015_v25 = vpack.c.bf16 %v1795_v39, %v1790_v53  ;;  %v1825_v41 = vld [vmem:[#allocation2 + $0x188] sm:$0xff]  ;;  %v1359_v42 = vld [vmem:[%s4648_s28 + $0x180] sm:$0xff]  ;;  %1771 = vst.msk [vmem:[#allocation2 + $0x688] sm:$0xff] %vm256_vm0, %v1725_v14  ;;  %v1449_v53 = vld [vmem:[%s4648_s28 + $0x171] sm:$0xff] }
 0x14b   : > { %2599 = vmatmul.mubr.bf16.gmra.mrb[44].mxu1 %v2061_v45  ;;  %4251 = vmatmul.mubr.msk.bf16.vlgmr.msra.gmra.mrb[0].mxu0 %vm256_vm0, %v2010_v5  ;;  %v1079_v5 = vld [vmem:[%s4648_s28 + $0x14e] sm:$0xff]  ;;  %1405 = vst.msk [vmem:[#allocation2 + $0x6d0] sm:$0xff] %vm256_vm0, %v1359_v42  ;;  %v1084_v42 = vld [vmem:[%s4648_s28 + $0x176] sm:$0xff] }
 0x14c   : > { %v819_v10 = vpop.permute.xlu1 %818  ;;  %v817_v52 = vpop.permute.xlu0 %816  ;;  %v1897_v50 = vld [vmem:[#allocation2 + $0x3c8] sm:$0xff]  ;;  %v1902_v20 = vld [vmem:[#allocation2 + $0x3f0] sm:$0xff]  ;;  %4254 = vmatprep.mubr.msk.bf16.mxu0 %vm4591_vm2, %v4590_v61 }
 0x14d   : > { %929 = vst.msk [vmem:[#allocation2 + $0x440] sm:$0xff] %vm533_vm1, %v819_v10  ;;  %928 = vst.msk [vmem:[#allocation2 + $0x418] sm:$0xff] %vm533_vm1, %v817_v52  ;;  %v2067_v4 = vpack.c.bf16 %v1902_v20, %v1897_v50  ;;  %v2030_v10 = vpack.c.bf16 %v1825_v41, %v1820_v8  ;;  %v991_v52 = vld [vmem:[%s4648_s28 + $0x16d] sm:$0xff]  ;;  %v1085_v41 = vld [vmem:[%s4648_s28 + $0x17e] sm:$0xff] }
 0x14e   : > { %1198 = vrot.lane.b32.xlu1 %v1073_v46, %s4589_s5  ;;  %1196 = vrot.lane.b32.xlu0 %v1072_v51, %s4589_s5  ;;  %1037 = vst.msk [vmem:[#allocation2 + $0x6c8] sm:$0xff] %vm256_vm0, %v991_v52  ;;  %v3360_v52 = vld [vmem:[%s6225_s2 + $0x8] sm:$0xff] }
 0x14f   : > { %2606 = vmatprep.mubr.bf16.mxu1 %v2067_v4 }
 0x150   : > { %v450_v54 = vpop.permute.xlu1 %449  ;;  %v448_v55 = vpop.permute.xlu0 %447  ;;  %v1896_v56 = vld [vmem:[#allocation2 + $0x3c0] sm:$0xff]  ;;  %v1901_v57 = vld [vmem:[#allocation2 + $0x3e8] sm:$0xff] }
 0x151   : > { %561 = vst.msk [vmem:[#allocation2 + $0x438] sm:$0xff] %vm533_vm1, %v450_v54  ;;  %560 = vst.msk [vmem:[#allocation2 + $0x410] sm:$0xff] %vm533_vm1, %v448_v55  ;;  %v2066_v59 = vpack.c.bf16 %v1901_v57, %v1896_v56  ;;  %v1081_v54 = vld [vmem:[%s4648_s28 + $0x15e] sm:$0xff]  ;;  %v1080_v56 = vld [vmem:[%s4648_s28 + $0x156] sm:$0xff] }
 0x152   : > { %1570 = vrot.lane.b32.xlu1 %v5598_v44, %s4589_s5  ;;  %1568 = vrot.lane.b32.xlu0 %v5565_v24, %s4589_s5  ;;  %v2020_v44 = vpack.c.bf16 %v1805_v21, %v1800_v33  ;;  %v1726_v55 = vld [vmem:[%s4648_s28 + $0x17a] sm:$0xff]  ;;  %v1727_v57 = vld [vmem:[%s4648_s28 + $0x182] sm:$0xff] }
 0x153   : > { %2607 = vmatmul.mubr.bf16.gmra.mrb[48].mxu1 %v2066_v59  ;;  %4255 = vmatmul.mubr.msk.bf16.gmra.mrb[4].mxu0 %vm256_vm0, %v2015_v25  ;;  %v990_v25 = vld [vmem:[%s4648_s28 + $0x165] sm:$0xff]  ;;  %1772 = vst.msk [vmem:[#allocation2 + $0x6b0] sm:$0xff] %vm256_vm0, %v1726_v55  ;;  %v1835_v59 = vld [vmem:[#allocation2 + $0x1d8] sm:$0xff]  ;;  %1773 = vst.msk [vmem:[#allocation2 + $0x6d8] sm:$0xff] %vm256_vm0, %v1727_v57 }
 0x154   : > { %v823_v62 = vpop.permute.xlu1 %822  ;;  %v821_v49 = vpop.permute.xlu0 %820  ;;  %v1907_v13 = vld [vmem:[#allocation2 + $0x418] sm:$0xff]  ;;  %v1912_v6 = vld [vmem:[#allocation2 + $0x440] sm:$0xff]  ;;  %4258 = vmatprep.mubr.msk.bf16.mxu0 %vm4591_vm2, %v4590_v61  ;;  %1036 = vst.msk [vmem:[#allocation2 + $0x6a0] sm:$0xff] %vm256_vm0, %v990_v25  ;;  %v3361_v57 = vld [vmem:[%s6225_s2 + $0x10] sm:$0xff] }
 0x155   : > { %931 = vst.msk [vmem:[#allocation2 + $0x490] sm:$0xff] %vm533_vm1, %v823_v62  ;;  %930 = vst.msk [vmem:[#allocation2 + $0x468] sm:$0xff] %vm533_vm1, %v821_v49  ;;  %v2072_v24 = vpack.c.bf16 %v1912_v6, %v1907_v13  ;;  %v1360_v49 = vld [vmem:[%s4648_s28 + $0x188] sm:$0xff]  ;;  %v1450_v21 = vld [vmem:[%s4648_s28 + $0x179] sm:$0xff] }
 0x156   : > { %1202 = vrot.lane.b32.xlu1 %v1075_v60, %s4589_s5  ;;  %1200 = vrot.lane.b32.xlu0 %v1074_v9, %s4589_s5  ;;  %v1361_v60 = vld [vmem:[%s4648_s28 + $0x190] sm:$0xff]  ;;  %1406 = vst.msk [vmem:[#allocation2 + $0x6f8] sm:$0xff] %vm256_vm0, %v1360_v49  ;;  %v1451_v6 = vld [vmem:[%s4648_s28 + $0x181] sm:$0xff] }
 0x157   : > { %2614 = vmatprep.mubr.bf16.mxu1 %v2072_v24  ;;  %1407 = vst.msk [vmem:[#allocation2 + $0x720] sm:$0xff] %vm256_vm0, %v1361_v60  ;;  %v2035_v24 = vpack.c.bf16 %v1835_v59, %v1830_v58  ;;  %v3362_v58 = vld [vmem:[%s6225_s2 + $0x18] sm:$0xff] }
 0x158   : > { %v454_v11 = vpop.permute.xlu1 %453  ;;  %v452_v12 = vpop.permute.xlu0 %451  ;;  %v1906_v15 = vld [vmem:[#allocation2 + $0x410] sm:$0xff]  ;;  %v1911_v26 = vld [vmem:[#allocation2 + $0x438] sm:$0xff] }
 0x159   : > { %563 = vst.msk [vmem:[#allocation2 + $0x488] sm:$0xff] %vm533_vm1, %v454_v11  ;;  %562 = vst.msk [vmem:[#allocation2 + $0x460] sm:$0xff] %vm533_vm1, %v452_v12  ;;  %v2071_v17 = vpack.c.bf16 %v1911_v26, %v1906_v15  ;;  %v992_v26 = vld [vmem:[%s4648_s28 + $0x175] sm:$0xff] }
 0x15a   : > { %1574 = vrot.lane.b32.xlu1 %v5628_v3, %s4589_s5  ;;  %1572 = vrot.lane.b32.xlu0 %v5595_v43, %s4589_s5  ;;  %v1815_v3 = vld [vmem:[#allocation2 + $0x138] sm:$0xff]  ;;  %1038 = vst.msk [vmem:[#allocation2 + $0x6f0] sm:$0xff] %vm256_vm0, %v992_v26  ;;  %v1870_v26 = vld [vmem:[#allocation2 + $0x2f0] sm:$0xff] }
 0x15b   : > { %2615 = vmatmul.mubr.bf16.gmra.mrb[52].mxu1 %v2071_v17  ;;  %4259 = vmatmul.mubr.msk.bf16.gmra.mrb[8].mxu0 %vm256_vm0, %v2020_v44  ;;  %v2025_v32 = vpack.c.bf16 %v1815_v3, %v1810_v18  ;;  %v993_v44 = vld [vmem:[%s4648_s28 + $0x17d] sm:$0xff]  ;;  %v1728_v17 = vld [vmem:[%s4648_s28 + $0x18a] sm:$0xff] }
 0x15c   : > { %v827_v22 = vpop.permute.xlu1 %826  ;;  %v825_v30 = vpop.permute.xlu0 %824  ;;  %v1917_v31 = vld [vmem:[#allocation2 + $0x468] sm:$0xff]  ;;  %v1922_v47 = vld [vmem:[#allocation2 + $0x490] sm:$0xff]  ;;  %4262 = vmatprep.mubr.msk.bf16.mxu0 %vm4591_vm2, %v4590_v61  ;;  %1039 = vst.msk [vmem:[#allocation2 + $0x718] sm:$0xff] %vm256_vm0, %v993_v44  ;;  %1774 = vst.msk [vmem:[#allocation2 + $0x700] sm:$0xff] %vm256_vm0, %v1728_v17 }
 0x15d   : > { %933 = vst.msk [vmem:[#allocation2 + $0x4e0] sm:$0xff] %vm533_vm1, %v827_v22  ;;  %932 = vst.msk [vmem:[#allocation2 + $0x4b8] sm:$0xff] %vm533_vm1, %v825_v30  ;;  %v2077_v43 = vpack.c.bf16 %v1922_v47, %v1917_v31  ;;  %v1082_v22 = vld [vmem:[%s4648_s28 + $0x166] sm:$0xff]  ;;  %v3366_v17 = vld [vmem:[%s6225_s2 + $0x38] sm:$0xff] }
 0x15e   : > { %1206 = vrot.lane.b32.xlu1 %v1077_v29, %s4589_s5  ;;  %1204 = vrot.lane.b32.xlu0 %v1076_v27, %s4589_s5  ;;  %v1729_v27 = vld [vmem:[%s4648_s28 + $0x192] sm:$0xff]  ;;  %v1845_v30 = vld [vmem:[#allocation2 + $0x228] sm:$0xff] }
 0x15f   : > { %2622 = vmatprep.mubr.bf16.mxu1 %v2077_v43  ;;  %1775 = vst.msk [vmem:[#allocation2 + $0x728] sm:$0xff] %vm256_vm0, %v1729_v27 }
 0x160   : > { %v458_v40 = vpop.permute.xlu1 %457  ;;  %v456_v63 = vpop.permute.xlu0 %455  ;;  %v1916_v35 = vld [vmem:[#allocation2 + $0x460] sm:$0xff]  ;;  %v1921_v36 = vld [vmem:[#allocation2 + $0x488] sm:$0xff] }
 0x161   : > { %565 = vst.msk [vmem:[#allocation2 + $0x4d8] sm:$0xff] %vm533_vm1, %v458_v40  ;;  %564 = vst.msk [vmem:[#allocation2 + $0x4b0] sm:$0xff] %vm533_vm1, %v456_v63  ;;  %v2076_v28 = vpack.c.bf16 %v1921_v36, %v1916_v35  ;;  %v1453_v35 = vld [vmem:[%s4648_s28 + $0x191] sm:$0xff]  ;;  %v1452_v36 = vld [vmem:[%s4648_s28 + $0x189] sm:$0xff] }
 0x162   : > { %1578 = vrot.lane.b32.xlu1 %v5650_v23, %s4589_s5  ;;  %1576 = vrot.lane.b32.xlu0 %v5625_v2, %s4589_s5  ;;  %v1358_v2 = vld [vmem:[%s4648_s28 + $0x178] sm:$0xff]  ;;  %s3924_s28 = sshll.u32 %s6229_s16, 1 }
 0x163   : > { %2623 = vmatmul.mubr.bf16.gmra.mrb[56].mxu1 %v2076_v28  ;;  %4263 = vmatmul.mubr.msk.bf16.gmra.mrb[12].mxu0 %vm256_vm0, %v2025_v32  ;;  %1404 = vst.msk [vmem:[#allocation2 + $0x6a8] sm:$0xff] %vm256_vm0, %v1358_v2  ;;  %v1840_v32 = vld [vmem:[#allocation2 + $0x200] sm:$0xff]  ;;  %s208_s14 = scalar_lea.vmem %s6227_s4, %s3924_s28 }
 0x164   : > { %v831_v1 = vpop.permute.xlu1 %830  ;;  %v829_v45 = vpop.permute.xlu0 %828  ;;  %v1927_v46 = vld [vmem:[#allocation2 + $0x4b8] sm:$0xff]  ;;  %v1932_v23 = vld [vmem:[#allocation2 + $0x4e0] sm:$0xff]  ;;  %4266 = vmatprep.mubr.msk.bf16.mxu0 %vm4591_vm2, %v4590_v61  ;;  %v2040_v37 = vpack.c.bf16 %v1845_v30, %v1840_v32 }
 0x165   : > { %935 = vst.msk [vmem:[#allocation2 + $0x530] sm:$0xff] %vm533_vm1, %v831_v1  ;;  %934 = vst.msk [vmem:[#allocation2 + $0x508] sm:$0xff] %vm533_vm1, %v829_v45  ;;  %v2082_v51 = vpack.c.bf16 %v1932_v23, %v1927_v46  ;;  %v1850_v1 = vld [vmem:[#allocation2 + $0x250] sm:$0xff]  ;;  %v1875_v30 = vld [vmem:[#allocation2 + $0x318] sm:$0xff] }
 0x166   : > { %1210 = vrot.lane.b32.xlu1 %v1079_v5, %s4589_s5  ;;  %1208 = vrot.lane.b32.xlu0 %v1078_v38, %s4589_s5 }
 0x167   : > { %2630 = vmatprep.mubr.bf16.mxu1 %v2082_v51  ;;  %v1855_v51 = vld [vmem:[#allocation2 + $0x278] sm:$0xff] }
 0x168   : > { %v462_v50 = vpop.permute.xlu1 %461  ;;  %v460_v20 = vpop.permute.xlu0 %459  ;;  %v1926_v39 = vld [vmem:[#allocation2 + $0x4b0] sm:$0xff]  ;;  %v1931_v4 = vld [vmem:[#allocation2 + $0x4d8] sm:$0xff] }
 0x169   : > { %567 = vst.msk [vmem:[#allocation2 + $0x528] sm:$0xff] %vm533_vm1, %v462_v50  ;;  %566 = vst.msk [vmem:[#allocation2 + $0x500] sm:$0xff] %vm533_vm1, %v460_v20  ;;  %v2081_v16 = vpack.c.bf16 %v1931_v4, %v1926_v39  ;;  %v3359_v50 = vld [vmem:[%s6225_s2] sm:$0xff] }
 0x16a   : > { %1582 = vrot.lane.b32.xlu1 %v1449_v53, %s4589_s5  ;;  %1580 = vrot.lane.b32.xlu0 %v5647_v48, %s4589_s5 }
 0x16b   : > { %2631 = vmatmul.mubr.bf16.gmra.mrb[60].mxu1 %v2081_v16  ;;  %4267 = vmatmul.mubr.msk.bf16.gmra.mrb[16].mxu0 %vm256_vm0, %v2030_v10  ;;  %v2045_v10 = vpack.c.bf16 %v1855_v51, %v1850_v1 }
 0x16c   : > { %v835_v9 = vpop.permute.xlu1 %834  ;;  %v833_v33 = vpop.permute.xlu0 %832  ;;  %v1937_v62 = vld [vmem:[#allocation2 + $0x508] sm:$0xff]  ;;  %v1942_v48 = vld [vmem:[#allocation2 + $0x530] sm:$0xff]  ;;  %4270 = vmatprep.mubr.msk.bf16.mxu0 %vm4591_vm2, %v4590_v61 }
 0x16d   : > { %937 = vst.msk [vmem:[#allocation2 + $0x580] sm:$0xff] %vm533_vm1, %v835_v9  ;;  %936 = vst.msk [vmem:[#allocation2 + $0x558] sm:$0xff] %vm533_vm1, %v833_v33  ;;  %v2087_v13 = vpack.c.bf16 %v1942_v48, %v1937_v62  ;;  %v1865_v62 = vld [vmem:[#allocation2 + $0x2c8] sm:$0xff] }
 0x16e   : > { %1214 = vrot.lane.b32.xlu1 %v1081_v54, %s4589_s5  ;;  %1212 = vrot.lane.b32.xlu0 %v1080_v56, %s4589_s5  ;;  %v1860_v56 = vld [vmem:[#allocation2 + $0x2a0] sm:$0xff] }
 0x16f   : > { %2638 = vmatprep.mubr.bf16.mxu1 %v2087_v13 }
 0x170   : > { %v466_v7 = vpop.permute.xlu1 %465  ;;  %v464_v11 = vpop.permute.xlu0 %463  ;;  %v1936_v12 = vld [vmem:[#allocation2 + $0x500] sm:$0xff]  ;;  %v1941_v15 = vld [vmem:[#allocation2 + $0x528] sm:$0xff] }
 0x171   : > { %569 = vst.msk [vmem:[#allocation2 + $0x578] sm:$0xff] %vm533_vm1, %v466_v7  ;;  %568 = vst.msk [vmem:[#allocation2 + $0x550] sm:$0xff] %vm533_vm1, %v464_v11  ;;  %v2086_v0 = vpack.c.bf16 %v1941_v15, %v1936_v12 }
 0x172   : > { %1586 = vrot.lane.b32.xlu1 %v1451_v6, %s4589_s5  ;;  %1584 = vrot.lane.b32.xlu0 %v1450_v21, %s4589_s5  ;;  %v5846_v29 = vpop.f32.mrb[0].mxu1  ;;  %v2050_v6 = vpack.c.bf16 %v1865_v62, %v1860_v56  ;;  %v3363_v21 = vld [vmem:[%s6225_s2 + $0x20] sm:$0xff] }
 0x173   : > { %v2514_v18 = vpop.f32.mrb[1].mxu1  ;;  %2639 = vmatmul.mubr.bf16.gmra.mrb[64].mxu1 %v2086_v0  ;;  %4271 = vmatmul.mubr.msk.bf16.gmra.mrb[20].mxu0 %vm256_vm0, %v2035_v24  ;;  %v3364_v24 = vld [vmem:[%s6225_s2 + $0x28] sm:$0xff]  ;;  %v3365_v0 = vld [vmem:[%s6225_s2 + $0x30] sm:$0xff]  ;;  %v3375_v62 = vld [vmem:[%s6225_s2 + $0x80] sm:$0xff] }
 0x174   : > { %v839_v31 = vpop.permute.xlu1 %838  ;;  %v837_v47 = vpop.permute.xlu0 %836  ;;  %v1947_v3 = vld [vmem:[#allocation2 + $0x558] sm:$0xff]  ;;  %v1952_v43 = vld [vmem:[#allocation2 + $0x580] sm:$0xff]  ;;  %4274 = vmatprep.mubr.msk.bf16.mxu0 %vm4591_vm2, %v4590_v61 }
 0x175   : > { %939 = vst.msk [vmem:[#allocation2 + $0x5d0] sm:$0xff] %vm533_vm1, %v839_v31  ;;  %938 = vst.msk [vmem:[#allocation2 + $0x5a8] sm:$0xff] %vm533_vm1, %v837_v47  ;;  %v5858_v34 = vpop.f32.mrb[2].mxu1  ;;  %v2092_v40 = vpack.c.bf16 %v1952_v43, %v1947_v3  ;;  %v2055_v47 = vpack.c.bf16 %v1875_v30, %v1870_v26  ;;  %v3367_v3 = vld [vmem:[%s6225_s2 + $0x40] sm:$0xff]  ;;  %v3368_v43 = vld [vmem:[%s6225_s2 + $0x48] sm:$0xff] }
 0x176   : > { %v2517_v63 = vpop.f32.mrb[3].mxu1  ;;  %1218 = vrot.lane.b32.xlu1 %v1083_v19, %s4589_s5  ;;  %1216 = vrot.lane.b32.xlu0 %v1082_v22, %s4589_s5  ;;  %v3378_v26 = vld [vmem:[%s6225_s2 + $0x98] sm:$0xff] }
 0x177   : > { %2646 = vmatprep.mubr.bf16.mxu1 %v2092_v40 }
 0x178   : > { %v470_v28 = vpop.permute.xlu1 %469  ;;  %v468_v5 = vpop.permute.xlu0 %467  ;;  %v1946_v38 = vld [vmem:[#allocation2 + $0x550] sm:$0xff]  ;;  %v1951_v14 = vld [vmem:[#allocation2 + $0x578] sm:$0xff] }
 0x179   : > { %571 = vst.msk [vmem:[#allocation2 + $0x5c8] sm:$0xff] %vm533_vm1, %v470_v28  ;;  %570 = vst.msk [vmem:[#allocation2 + $0x5a0] sm:$0xff] %vm533_vm1, %v468_v5  ;;  %v2091_v8 = vpack.c.bf16 %v1951_v14, %v1946_v38  ;;  %v1880_v5 = vld [vmem:[#allocation2 + $0x340] sm:$0xff]  ;;  %v3369_v38 = vld [vmem:[%s6225_s2 + $0x50] sm:$0xff] }
 0x17a   : > { %1590 = vrot.lane.b32.xlu1 %v1453_v35, %s4589_s5  ;;  %1588 = vrot.lane.b32.xlu0 %v1452_v36, %s4589_s5  ;;  %v3370_v14 = vld [vmem:[%s6225_s2 + $0x58] sm:$0xff] }
 0x17b   : > { %2647 = vmatmul.mubr.bf16.gmra.mrb[68].mxu1 %v2091_v8  ;;  %4275 = vmatmul.mubr.msk.bf16.gmra.mrb[24].mxu0 %vm256_vm0, %v2040_v37 }
 0x17c   : > { %v843_v45 = vpop.permute.xlu1 %842  ;;  %v841_v46 = vpop.permute.xlu0 %840  ;;  %v1957_v23 = vld [vmem:[#allocation2 + $0x5a8] sm:$0xff]  ;;  %v1962_v2 = vld [vmem:[#allocation2 + $0x5d0] sm:$0xff]  ;;  %4278 = vmatprep.mubr.msk.bf16.mxu0 %vm4591_vm2, %v4590_v61 }
 0x17d   : > { %941 = vst.msk [vmem:[#allocation2 + $0x620] sm:$0xff] %vm533_vm1, %v843_v45  ;;  %940 = vst.msk [vmem:[#allocation2 + $0x5f8] sm:$0xff] %vm533_vm1, %v841_v46  ;;  %v2097_v53 = vpack.c.bf16 %v1962_v2, %v1957_v23  ;;  %v1885_v45 = vld [vmem:[#allocation2 + $0x368] sm:$0xff] }
 0x17e   : > { %1222 = vrot.lane.b32.xlu1 %v1085_v41, %s4589_s5  ;;  %1220 = vrot.lane.b32.xlu0 %v1084_v42, %s4589_s5  ;;  %v2060_v51 = vpack.c.bf16 %v1885_v45, %v1880_v5  ;;  %v3381_v5 = vld [vmem:[%s6225_s2 + $0xb0] sm:$0xff] }
 0x17f   : > { %2654 = vmatprep.mubr.bf16.mxu1 %v2097_v53  ;;  %v3371_v53 = vld [vmem:[%s6225_s2 + $0x60] sm:$0xff] }
 0x180   : > { %v474_v20 = vpop.permute.xlu1 %473  ;;  %v472_v39 = vpop.permute.xlu0 %471  ;;  %v1956_v4 = vld [vmem:[#allocation2 + $0x5a0] sm:$0xff]  ;;  %v1961_v25 = vld [vmem:[#allocation2 + $0x5c8] sm:$0xff] }
 0x181   : > { %573 = vst.msk [vmem:[#allocation2 + $0x618] sm:$0xff] %vm533_vm1, %v474_v20  ;;  %572 = vst.msk [vmem:[#allocation2 + $0x5f0] sm:$0xff] %vm533_vm1, %v472_v39  ;;  %v2096_v16 = vpack.c.bf16 %v1961_v25, %v1956_v4  ;;  %v1890_v25 = vld [vmem:[#allocation2 + $0x390] sm:$0xff] }
 0x182   : > { %v5885_v54 = vpop.f32.mrb[4].mxu1  ;;  %3412 = vperm.xlu1 %4527, %v3360_v52   ;;  %3407 = vperm.xlu0 %4526, %v3359_v50  }
 0x183   : > { %v2522_v55 = vpop.f32.mrb[5].mxu1  ;;  %2655 = vmatmul.mubr.bf16.gmra.mrb[72].mxu1 %v2096_v16  ;;  %4279 = vmatmul.mubr.msk.bf16.gmra.mrb[28].mxu0 %vm256_vm0, %v2045_v10  ;;  %v3372_v10 = vld [vmem:[%s6225_s2 + $0x68] sm:$0xff]  ;;  %v3373_v16 = vld [vmem:[%s6225_s2 + $0x70] sm:$0xff] }
 0x184   : > { %v847_v59 = vpop.permute.xlu1 %846  ;;  %v845_v60 = vpop.permute.xlu0 %844  ;;  %v1967_v9 = vld [vmem:[#allocation2 + $0x5f8] sm:$0xff]  ;;  %v1972_v33 = vld [vmem:[#allocation2 + $0x620] sm:$0xff]  ;;  %4282 = vmatprep.mubr.msk.bf16.mxu0 %vm4591_vm2, %v4590_v61 }
 0x185   : > { %943 = vst.msk [vmem:[#allocation2 + $0x670] sm:$0xff] %vm533_vm1, %v847_v59  ;;  %942 = vst.msk [vmem:[#allocation2 + $0x648] sm:$0xff] %vm533_vm1, %v845_v60  ;;  %v5898_v48 = vpop.f32.mrb[6].mxu1  ;;  %v2102_v49 = vpack.c.bf16 %v1972_v33, %v1967_v9  ;;  %v3374_v55 = vld [vmem:[%s6225_s2 + $0x78] sm:$0xff] }
 0x186   : > { %v2525_v13 = vpop.f32.mrb[7].mxu1  ;;  %3417 = vperm.xlu1 %4527, %v3361_v57   ;;  %3422 = vperm.xlu0 %4526, %v3362_v58   ;;  %v1895_v60 = vld [vmem:[#allocation2 + $0x3b8] sm:$0xff] }
 0x187   : > { %2662 = vmatprep.mubr.bf16.mxu1 %v2102_v49  ;;  %v2065_v33 = vpack.c.bf16 %v1895_v60, %v1890_v25  ;;  %v3376_v49 = vld [vmem:[%s6225_s2 + $0x88] sm:$0xff]  ;;  %v1920_v25 = vld [vmem:[#allocation2 + $0x480] sm:$0xff] }
 0x188   : > { %v478_v44 = vpop.permute.xlu1 %477  ;;  %v476_v7 = vpop.permute.xlu0 %475  ;;  %v1966_v11 = vld [vmem:[#allocation2 + $0x5f0] sm:$0xff]  ;;  %v1971_v12 = vld [vmem:[#allocation2 + $0x618] sm:$0xff]  ;;  %v1925_v60 = vld [vmem:[#allocation2 + $0x4a8] sm:$0xff] }
 0x189   : > { %575 = vst.msk [vmem:[#allocation2 + $0x668] sm:$0xff] %vm533_vm1, %v478_v44  ;;  %574 = vst.msk [vmem:[#allocation2 + $0x640] sm:$0xff] %vm533_vm1, %v476_v7  ;;  %v2101_v15 = vpack.c.bf16 %v1971_v12, %v1966_v11  ;;  %v1900_v12 = vld [vmem:[#allocation2 + $0x3e0] sm:$0xff] }
 0x18a   : > { %3427 = vperm.xlu1 %4527, %v3363_v21   ;;  %3432 = vperm.xlu0 %4526, %v3364_v24  }
 0x18b   : > { %2663 = vmatmul.mubr.bf16.gmra.mrb[76].mxu1 %v2101_v15  ;;  %4283 = vmatmul.mubr.msk.bf16.gmra.mrb[32].mxu0 %vm256_vm0, %v2050_v6  ;;  %v3377_v15 = vld [vmem:[%s6225_s2 + $0x90] sm:$0xff] }
 0x18c   : > { %v851_v27 = vpop.permute.xlu1 %850  ;;  %v849_v18 = vpop.permute.xlu0 %848  ;;  %v1977_v19 = vld [vmem:[#allocation2 + $0x648] sm:$0xff]  ;;  %v1982_v22 = vld [vmem:[#allocation2 + $0x670] sm:$0xff]  ;;  %4286 = vmatprep.mubr.msk.bf16.mxu0 %vm4591_vm2, %v4590_v61 }
 0x18d   : > { %945 = vst.msk [vmem:[#allocation2 + $0x6c0] sm:$0xff] %vm533_vm1, %v851_v27  ;;  %944 = vst.msk [vmem:[#allocation2 + $0x698] sm:$0xff] %vm533_vm1, %v849_v18  ;;  %v2107_v31 = vpack.c.bf16 %v1982_v22, %v1977_v19  ;;  %v1905_v19 = vld [vmem:[#allocation2 + $0x408] sm:$0xff] }
 0x18e   : > { %3437 = vperm.xlu1 %4527, %v3365_v0   ;;  %3442 = vperm.xlu0 %4526, %v3366_v17  }
 0x18f   : > { %2670 = vmatprep.mubr.bf16.mxu1 %v2107_v31 }
 0x190   : > { %v482_v32 = vpop.permute.xlu1 %481  ;;  %v480_v40 = vpop.permute.xlu0 %479  ;;  %v1976_v63 = vld [vmem:[#allocation2 + $0x640] sm:$0xff]  ;;  %v1981_v35 = vld [vmem:[#allocation2 + $0x668] sm:$0xff] }
 0x191   : > { %577 = vst.msk [vmem:[#allocation2 + $0x6b8] sm:$0xff] %vm533_vm1, %v482_v32  ;;  %576 = vst.msk [vmem:[#allocation2 + $0x690] sm:$0xff] %vm533_vm1, %v480_v40  ;;  %v2106_v36 = vpack.c.bf16 %v1981_v35, %v1976_v63 }
 0x192   : > { %v5927_v37 = vpop.f32.mrb[8].mxu1  ;;  %3447 = vperm.xlu1 %4527, %v3367_v3   ;;  %3452 = vperm.xlu0 %4526, %v3368_v43   ;;  %v3379_v3 = vld [vmem:[%s6225_s2 + $0xa0] sm:$0xff]  ;;  %v3380_v43 = vld [vmem:[%s6225_s2 + $0xa8] sm:$0xff] }
 0x193   : > { %v2530_v28 = vpop.f32.mrb[9].mxu1  ;;  %2671 = vmatmul.mubr.bf16.gmra.mrb[80].mxu1 %v2106_v36  ;;  %4287 = vmatmul.mubr.msk.bf16.gmra.mrb[36].mxu0 %vm256_vm0, %v2055_v47  ;;  %v2070_v47 = vpack.c.bf16 %v1905_v19, %v1900_v12 }
 0x194   : > { %v855_v8 = vpop.permute.xlu1 %854  ;;  %v853_v41 = vpop.permute.xlu0 %852  ;;  %v1987_v42 = vld [vmem:[#allocation2 + $0x698] sm:$0xff]  ;;  %v1992_v1 = vld [vmem:[#allocation2 + $0x6c0] sm:$0xff]  ;;  %4290 = vmatprep.mubr.msk.bf16.mxu0 %vm4591_vm2, %v4590_v61  ;;  %v1910_v28 = vld [vmem:[#allocation2 + $0x430] sm:$0xff] }
 0x195   : > { %947 = vst.msk [vmem:[#allocation2 + $0x710] sm:$0xff] %vm533_vm1, %v855_v8  ;;  %946 = vst.msk [vmem:[#allocation2 + $0x6e8] sm:$0xff] %vm533_vm1, %v853_v41  ;;  %v5940_v46 = vpop.f32.mrb[10].mxu1  ;;  %v2112_v23 = vpack.c.bf16 %v1992_v1, %v1987_v42  ;;  %v1915_v1 = vld [vmem:[#allocation2 + $0x458] sm:$0xff] }
 0x196   : > { %v2533_v2 = vpop.f32.mrb[11].mxu1  ;;  %3457 = vperm.xlu1 %4527, %v3369_v38   ;;  %3462 = vperm.xlu0 %4526, %v3370_v14   ;;  %v3382_v38 = vld [vmem:[%s6225_s2 + $0xb8] sm:$0xff] }
 0x197   : > { %2678 = vmatprep.mubr.bf16.mxu1 %v2112_v23  ;;  %v2075_v23 = vpack.c.bf16 %v1915_v1, %v1910_v28  ;;  %v3383_v2 = vld [vmem:[%s6225_s2 + $0xc0] sm:$0xff] }
 0x198   : > { %v486_v52 = vpop.permute.xlu1 %485  ;;  %v484_v50 = vpop.permute.xlu0 %483  ;;  %v1986_v20 = vld [vmem:[#allocation2 + $0x690] sm:$0xff]  ;;  %v1991_v39 = vld [vmem:[#allocation2 + $0x6b8] sm:$0xff] }
 0x199   : > { %579 = vst.msk [vmem:[#allocation2 + $0x708] sm:$0xff] %vm533_vm1, %v486_v52  ;;  %578 = vst.msk [vmem:[#allocation2 + $0x6e0] sm:$0xff] %vm533_vm1, %v484_v50  ;;  %v2111_v4 = vpack.c.bf16 %v1991_v39, %v1986_v20 }
 0x19a   : > { %3467 = vperm.xlu1 %4527, %v3371_v53   ;;  %3472 = vperm.xlu0 %4526, %v3372_v10  }
 0x19b   : > { %2679 = vmatmul.mubr.bf16.gmra.mrb[84].mxu1 %v2111_v4  ;;  %4291 = vmatmul.mubr.msk.bf16.gmra.mrb[40].mxu0 %vm256_vm0, %v2060_v51  ;;  %v3384_v51 = vld [vmem:[%s6225_s2 + $0xc8] sm:$0xff] }
 0x19c   : > { %v1551_v56 = vpop.permute.xlu1 %1550  ;;  %v1549_v57 = vpop.permute.xlu0 %1548  ;;  %v1997_v58 = vld [vmem:[#allocation2 + $0x6e8] sm:$0xff]  ;;  %v2002_v59 = vld [vmem:[#allocation2 + $0x710] sm:$0xff]  ;;  %4294 = vmatprep.mubr.msk.bf16.mxu0 %vm4591_vm2, %v4590_v61 }
 0x19d   : > { %1663 = vst.msk [vmem:[#allocation2 + $0x400] sm:$0xff] %vm533_vm1, %v1551_v56  ;;  %1662 = vst.msk [vmem:[#allocation2 + $0x3d8] sm:$0xff] %vm533_vm1, %v1549_v57  ;;  %v2117_v9 = vpack.c.bf16 %v2002_v59, %v1997_v58 }
 0x19e   : > { %3477 = vperm.xlu1 %4527, %v3373_v16   ;;  %3482 = vperm.xlu0 %4526, %v3374_v55   ;;  %v3385_v16 = vld [vmem:[%s6225_s2 + $0xd0] sm:$0xff]  ;;  %v3386_v55 = vld [vmem:[%s6225_s2 + $0xd8] sm:$0xff] }
 0x19f   : > { %2686 = vmatprep.mubr.bf16.mxu1 %v2117_v9 }
 0x1a0   : > { %v1183_v13 = vpop.permute.xlu1 %1182  ;;  %v1181_v6 = vpop.permute.xlu0 %1180  ;;  %v1996_v21 = vld [vmem:[#allocation2 + $0x6e0] sm:$0xff]  ;;  %v2001_v24 = vld [vmem:[#allocation2 + $0x708] sm:$0xff] }
 0x1a1   : > { %1295 = vst.msk [vmem:[#allocation2 + $0x3f8] sm:$0xff] %vm533_vm1, %v1183_v13  ;;  %1294 = vst.msk [vmem:[#allocation2 + $0x3d0] sm:$0xff] %vm533_vm1, %v1181_v6  ;;  %v2116_v44 = vpack.c.bf16 %v2001_v24, %v1996_v21  ;;  %v3387_v13 = vld [vmem:[%s6225_s2 + $0xe0] sm:$0xff]  ;;  %v3388_v6 = vld [vmem:[%s6225_s2 + $0xe8] sm:$0xff] }
 0x1a2   : > { %v5969_v7 = vpop.f32.mrb[12].mxu1  ;;  %3487 = vperm.xlu1 %4527, %v3375_v62   ;;  %3492 = vperm.xlu0 %4526, %v3376_v49   ;;  %v2080_v49 = vpack.c.bf16 %v1925_v60, %v1920_v25 }
 0x1a3   : > { %v2538_v11 = vpop.f32.mrb[13].mxu1  ;;  %2687 = vmatmul.mubr.bf16.gmra.mrb[88].mxu1 %v2116_v44  ;;  %4295 = vmatmul.mubr.msk.bf16.gmra.mrb[44].mxu0 %vm256_vm0, %v2065_v33 }
 0x1a4   : > { %v1555_v0 = vpop.permute.xlu1 %1554  ;;  %v1553_v17 = vpop.permute.xlu0 %1552  ;;  %v1899_v27 = vld [vmem:[#allocation2 + $0x3d8] sm:$0xff]  ;;  %v1904_v18 = vld [vmem:[#allocation2 + $0x400] sm:$0xff]  ;;  %4298 = vmatprep.mubr.msk.bf16.mxu0 %vm4591_vm2, %v4590_v61 }
 0x1a5   : > { %1665 = vst.msk [vmem:[#allocation2 + $0x450] sm:$0xff] %vm533_vm1, %v1555_v0  ;;  %1664 = vst.msk [vmem:[#allocation2 + $0x428] sm:$0xff] %vm533_vm1, %v1553_v17  ;;  %v5982_v22 = vpop.f32.mrb[14].mxu1  ;;  %v2069_v30 = vpack.c.bf16 %v1904_v18, %v1899_v27  ;;  %v3390_v0 = vld [vmem:[%s6225_s2 + $0xf8] sm:$0xff] }
 0x1a6   : > { %v2541_v31 = vpop.f32.mrb[15].mxu1  ;;  %3497 = vperm.xlu1 %4527, %v3377_v15   ;;  %3502 = vperm.xlu0 %4526, %v3378_v26   ;;  %v1930_v15 = vld [vmem:[#allocation2 + $0x4d0] sm:$0xff] }
 0x1a7   : > { %2823 = vmatprep.mubr.bf16.mxu1 %v2069_v30  ;;  %v3389_v26 = vld [vmem:[%s6225_s2 + $0xf0] sm:$0xff]  ;;  %v1935_v30 = vld [vmem:[#allocation2 + $0x4f8] sm:$0xff] }
 0x1a8   : > { %v1187_v32 = vpop.permute.xlu1 %1186  ;;  %v1185_v40 = vpop.permute.xlu0 %1184  ;;  %v1898_v63 = vld [vmem:[#allocation2 + $0x3d0] sm:$0xff]  ;;  %v1903_v35 = vld [vmem:[#allocation2 + $0x3f8] sm:$0xff] }
 0x1a9   : > { %1297 = vst.msk [vmem:[#allocation2 + $0x448] sm:$0xff] %vm533_vm1, %v1187_v32  ;;  %1296 = vst.msk [vmem:[#allocation2 + $0x420] sm:$0xff] %vm533_vm1, %v1185_v40  ;;  %v2068_v36 = vpack.c.bf16 %v1903_v35, %v1898_v63 }
 0x1aa   : > { %3507 = vperm.xlu1 %4527, %v3379_v3   ;;  %3512 = vperm.xlu0 %4526, %v3380_v43   ;;  %v3391_v3 = vld [vmem:[%s6225_s2 + $0x100] sm:$0xff]  ;;  %v3392_v43 = vld [vmem:[%s6225_s2 + $0x108] sm:$0xff] }
 0x1ab   : > { %4299 = vmatmul.mubr.msk.bf16.gmra.mrb[48].mxu0 %vm256_vm0, %v2070_v47  ;;  %2824 = vmatmul.mubr.bf16.vlgmr.msra.gmra.mrb[48].mxu1 %v2068_v36  ;;  %v2085_v47 = vpack.c.bf16 %v1935_v30, %v1930_v15 }
 0x1ac   : > { %v1559_v14 = vpop.permute.xlu1 %1558  ;;  %v1557_v8 = vpop.permute.xlu0 %1556  ;;  %v1909_v41 = vld [vmem:[#allocation2 + $0x428] sm:$0xff]  ;;  %v1914_v42 = vld [vmem:[#allocation2 + $0x450] sm:$0xff]  ;;  %4302 = vmatprep.mubr.msk.bf16.mxu0 %vm4591_vm2, %v4590_v61 }
 0x1ad   : > { %1667 = vst.msk [vmem:[#allocation2 + $0x4a0] sm:$0xff] %vm533_vm1, %v1559_v14  ;;  %1666 = vst.msk [vmem:[#allocation2 + $0x478] sm:$0xff] %vm533_vm1, %v1557_v8  ;;  %v2074_v45 = vpack.c.bf16 %v1914_v42, %v1909_v41  ;;  %v3393_v14 = vld [vmem:[%s6225_s2 + $0x110] sm:$0xff]  ;;  %v3394_v8 = vld [vmem:[%s6225_s2 + $0x118] sm:$0xff] }
 0x1ae   : > { %3517 = vperm.xlu1 %4527, %v3381_v5   ;;  %3522 = vperm.xlu0 %4526, %v3382_v38   ;;  %v1940_v38 = vld [vmem:[#allocation2 + $0x520] sm:$0xff] }
 0x1af   : > { %2831 = vmatprep.mubr.bf16.mxu1 %v2074_v45 }
 0x1b0   : > { %v1191_v53 = vpop.permute.xlu1 %1190  ;;  %v1189_v10 = vpop.permute.xlu0 %1188  ;;  %v1908_v52 = vld [vmem:[#allocation2 + $0x420] sm:$0xff]  ;;  %v1913_v50 = vld [vmem:[#allocation2 + $0x448] sm:$0xff] }
 0x1b1   : > { %1299 = vst.msk [vmem:[#allocation2 + $0x498] sm:$0xff] %vm533_vm1, %v1191_v53  ;;  %1298 = vst.msk [vmem:[#allocation2 + $0x470] sm:$0xff] %vm533_vm1, %v1189_v10  ;;  %v2073_v20 = vpack.c.bf16 %v1913_v50, %v1908_v52  ;;  %v3395_v52 = vld [vmem:[%s6225_s2 + $0x120] sm:$0xff]  ;;  %v3396_v50 = vld [vmem:[%s6225_s2 + $0x128] sm:$0xff] }
 0x1b2   : > { %v6011_v39 = vpop.f32.mrb[16].mxu1  ;;  %3527 = vperm.xlu1 %4527, %v3383_v2   ;;  %3532 = vperm.xlu0 %4526, %v3384_v51  }
 0x1b3   : > { %4303 = vmatmul.mubr.msk.bf16.gmra.mrb[52].mxu0 %vm256_vm0, %v2075_v23  ;;  %v2546_v4 = vpop.f32.mrb[17].mxu1  ;;  %2832 = vmatmul.mubr.bf16.gmra.mrb[52].mxu1 %v2073_v20  ;;  %v1945_v23 = vld [vmem:[#allocation2 + $0x548] sm:$0xff] }
 0x1b4   : > { %v1563_v56 = vpop.permute.xlu1 %1562  ;;  %v1561_v57 = vpop.permute.xlu0 %1560  ;;  %v1919_v58 = vld [vmem:[#allocation2 + $0x478] sm:$0xff]  ;;  %v1924_v59 = vld [vmem:[#allocation2 + $0x4a0] sm:$0xff]  ;;  %4306 = vmatprep.mubr.msk.bf16.mxu0 %vm4591_vm2, %v4590_v61  ;;  %v2090_v10 = vpack.c.bf16 %v1945_v23, %v1940_v38 }
 0x1b5   : > { %1669 = vst.msk [vmem:[#allocation2 + $0x4f0] sm:$0xff] %vm533_vm1, %v1563_v56  ;;  %1668 = vst.msk [vmem:[#allocation2 + $0x4c8] sm:$0xff] %vm533_vm1, %v1561_v57  ;;  %v6024_v9 = vpop.f32.mrb[18].mxu1  ;;  %v2079_v33 = vpack.c.bf16 %v1924_v59, %v1919_v58  ;;  %v1950_v56 = vld [vmem:[#allocation2 + $0x570] sm:$0xff]  ;;  %v3398_v58 = vld [vmem:[%s6225_s2 + $0x138] sm:$0xff] }
 0x1b6   : > { %v2549_v62 = vpop.f32.mrb[19].mxu1  ;;  %3537 = vperm.xlu1 %4527, %v3385_v16   ;;  %3542 = vperm.xlu0 %4526, %v3386_v55   ;;  %v3397_v57 = vld [vmem:[%s6225_s2 + $0x130] sm:$0xff] }
 0x1b7   : > { %2839 = vmatprep.mubr.bf16.mxu1 %v2079_v33 }
 0x1b8   : > { %v1195_v21 = vpop.permute.xlu1 %1194  ;;  %v1193_v24 = vpop.permute.xlu0 %1192  ;;  %v1918_v44 = vld [vmem:[#allocation2 + $0x470] sm:$0xff]  ;;  %v1923_v11 = vld [vmem:[#allocation2 + $0x498] sm:$0xff] }
 0x1b9   : > { %1301 = vst.msk [vmem:[#allocation2 + $0x4e8] sm:$0xff] %vm533_vm1, %v1195_v21  ;;  %1300 = vst.msk [vmem:[#allocation2 + $0x4c0] sm:$0xff] %vm533_vm1, %v1193_v24  ;;  %v2078_v12 = vpack.c.bf16 %v1923_v11, %v1918_v44  ;;  %v3399_v21 = vld [vmem:[%s6225_s2 + $0x140] sm:$0xff]  ;;  %v3400_v24 = vld [vmem:[%s6225_s2 + $0x148] sm:$0xff] }
 0x1ba   : > { %3547 = vperm.xlu1 %4527, %v3387_v13   ;;  %3552 = vperm.xlu0 %4526, %v3388_v6  }
 0x1bb   : > { %4307 = vmatmul.mubr.msk.bf16.gmra.mrb[56].mxu0 %vm256_vm0, %v2080_v49  ;;  %2840 = vmatmul.mubr.bf16.gmra.mrb[56].mxu1 %v2078_v12  ;;  %v1955_v49 = vld [vmem:[#allocation2 + $0x598] sm:$0xff] }
 0x1bc   : > { %v1567_v17 = vpop.permute.xlu1 %1566  ;;  %v1565_v27 = vpop.permute.xlu0 %1564  ;;  %v1929_v18 = vld [vmem:[#allocation2 + $0x4c8] sm:$0xff]  ;;  %v1934_v19 = vld [vmem:[#allocation2 + $0x4f0] sm:$0xff]  ;;  %4310 = vmatprep.mubr.msk.bf16.mxu0 %vm4591_vm2, %v4590_v61  ;;  %v2095_v6 = vpack.c.bf16 %v1955_v49, %v1950_v56 }
 0x1bd   : > { %1671 = vst.msk [vmem:[#allocation2 + $0x540] sm:$0xff] %vm533_vm1, %v1567_v17  ;;  %1670 = vst.msk [vmem:[#allocation2 + $0x518] sm:$0xff] %vm533_vm1, %v1565_v27  ;;  %v2084_v31 = vpack.c.bf16 %v1934_v19, %v1929_v18  ;;  %v1960_v27 = vld [vmem:[#allocation2 + $0x5c0] sm:$0xff]  ;;  %v3401_v18 = vld [vmem:[%s6225_s2 + $0x150] sm:$0xff] }
 0x1be   : > { %3557 = vperm.xlu1 %4527, %v3389_v26   ;;  %3562 = vperm.xlu0 %4526, %v3390_v0   ;;  %v3402_v19 = vld [vmem:[%s6225_s2 + $0x158] sm:$0xff]  ;;  %v1985_v49 = vld [vmem:[#allocation2 + $0x688] sm:$0xff] }
 0x1bf   : > { %2847 = vmatprep.mubr.bf16.mxu1 %v2084_v31 }
 0x1c0   : > { %v1199_v32 = vpop.permute.xlu1 %1198  ;;  %v1197_v40 = vpop.permute.xlu0 %1196  ;;  %v1928_v63 = vld [vmem:[#allocation2 + $0x4c0] sm:$0xff]  ;;  %v1933_v35 = vld [vmem:[#allocation2 + $0x4e8] sm:$0xff] }
 0x1c1   : > { %1303 = vst.msk [vmem:[#allocation2 + $0x538] sm:$0xff] %vm533_vm1, %v1199_v32  ;;  %1302 = vst.msk [vmem:[#allocation2 + $0x510] sm:$0xff] %vm533_vm1, %v1197_v40  ;;  %v2083_v36 = vpack.c.bf16 %v1933_v35, %v1928_v63 }
 0x1c2   : > { %v6053_v28 = vpop.f32.mrb[20].mxu1  ;;  %3567 = vperm.xlu1 %4527, %v3391_v3   ;;  %3572 = vperm.xlu0 %4526, %v3392_v43   ;;  %v1965_v43 = vld [vmem:[#allocation2 + $0x5e8] sm:$0xff] }
 0x1c3   : > { %4311 = vmatmul.mubr.msk.bf16.gmra.mrb[60].mxu0 %vm256_vm0, %v2085_v47  ;;  %v2554_v5 = vpop.f32.mrb[21].mxu1  ;;  %2848 = vmatmul.mubr.bf16.gmra.mrb[60].mxu1 %v2083_v36  ;;  %v2100_v35 = vpack.c.bf16 %v1965_v43, %v1960_v27  ;;  %v3403_v36 = vld [vmem:[%s6225_s2 + $0x160] sm:$0xff] }
 0x1c4   : > { %v1571_v41 = vpop.permute.xlu1 %1570  ;;  %v1569_v42 = vpop.permute.xlu0 %1568  ;;  %v1939_v1 = vld [vmem:[#allocation2 + $0x518] sm:$0xff]  ;;  %v1944_v45 = vld [vmem:[#allocation2 + $0x540] sm:$0xff]  ;;  %4314 = vmatprep.mubr.msk.bf16.mxu0 %vm4591_vm2, %v4590_v61  ;;  %v3404_v5 = vld [vmem:[%s6225_s2 + $0x168] sm:$0xff] }
 0x1c5   : > { %1673 = vst.msk [vmem:[#allocation2 + $0x590] sm:$0xff] %vm533_vm1, %v1571_v41  ;;  %1672 = vst.msk [vmem:[#allocation2 + $0x568] sm:$0xff] %vm533_vm1, %v1569_v42  ;;  %v6066_v2 = vpop.f32.mrb[22].mxu1  ;;  %v2089_v51 = vpack.c.bf16 %v1944_v45, %v1939_v1  ;;  %v1970_v1 = vld [vmem:[#allocation2 + $0x610] sm:$0xff] }
 0x1c6   : > { %v2557_v53 = vpop.f32.mrb[23].mxu1  ;;  %3577 = vperm.xlu1 %4527, %v3393_v14   ;;  %3582 = vperm.xlu0 %4526, %v3394_v8  }
 0x1c7   : > { %2855 = vmatprep.mubr.bf16.mxu1 %v2089_v51 }
 0x1c8   : > { %v1203_v20 = vpop.permute.xlu1 %1202  ;;  %v1201_v4 = vpop.permute.xlu0 %1200  ;;  %v1938_v25 = vld [vmem:[#allocation2 + $0x510] sm:$0xff]  ;;  %v1943_v16 = vld [vmem:[#allocation2 + $0x538] sm:$0xff] }
 0x1c9   : > { %1305 = vst.msk [vmem:[#allocation2 + $0x588] sm:$0xff] %vm533_vm1, %v1203_v20  ;;  %1304 = vst.msk [vmem:[#allocation2 + $0x560] sm:$0xff] %vm533_vm1, %v1201_v4  ;;  %v2088_v55 = vpack.c.bf16 %v1943_v16, %v1938_v25 }
 0x1ca   : > { %3587 = vperm.xlu1 %4527, %v3395_v52   ;;  %3592 = vperm.xlu0 %4526, %v3396_v50  }
 0x1cb   : > { %4315 = vmatmul.mubr.msk.bf16.gmra.mrb[64].mxu0 %vm256_vm0, %v2090_v10  ;;  %2856 = vmatmul.mubr.bf16.gmra.mrb[64].mxu1 %v2088_v55  ;;  %v1975_v10 = vld [vmem:[#allocation2 + $0x638] sm:$0xff] }
 0x1cc   : > { %v1575_v59 = vpop.permute.xlu1 %1574  ;;  %v1573_v60 = vpop.permute.xlu0 %1572  ;;  %v1949_v33 = vld [vmem:[#allocation2 + $0x568] sm:$0xff]  ;;  %v1954_v62 = vld [vmem:[#allocation2 + $0x590] sm:$0xff]  ;;  %4318 = vmatprep.mubr.msk.bf16.mxu0 %vm4591_vm2, %v4590_v61  ;;  %v2105_v50 = vpack.c.bf16 %v1975_v10, %v1970_v1 }
 0x1cd   : > { %1675 = vst.msk [vmem:[#allocation2 + $0x5e0] sm:$0xff] %vm533_vm1, %v1575_v59  ;;  %1674 = vst.msk [vmem:[#allocation2 + $0x5b8] sm:$0xff] %vm533_vm1, %v1573_v60  ;;  %v2094_v13 = vpack.c.bf16 %v1954_v62, %v1949_v33  ;;  %v2005_v1 = vld [vmem:[#allocation2 + $0x728] sm:$0xff] }
 0x1ce   : > { %3597 = vperm.xlu1 %4527, %v3397_v57   ;;  %3602 = vperm.xlu0 %4526, %v3398_v58   ;;  %v1980_v58 = vld [vmem:[#allocation2 + $0x660] sm:$0xff] }
 0x1cf   : > { %2863 = vmatprep.mubr.bf16.mxu1 %v2094_v13 }
 0x1d0   : > { %v1207_v44 = vpop.permute.xlu1 %1206  ;;  %v1205_v11 = vpop.permute.xlu0 %1204  ;;  %v1948_v12 = vld [vmem:[#allocation2 + $0x560] sm:$0xff]  ;;  %v1953_v15 = vld [vmem:[#allocation2 + $0x588] sm:$0xff] }
 0x1d1   : > { %1307 = vst.msk [vmem:[#allocation2 + $0x5d8] sm:$0xff] %vm533_vm1, %v1207_v44  ;;  %1306 = vst.msk [vmem:[#allocation2 + $0x5b0] sm:$0xff] %vm533_vm1, %v1205_v11  ;;  %v2093_v26 = vpack.c.bf16 %v1953_v15, %v1948_v12 }
 0x1d2   : > { %v6095_v0 = vpop.f32.mrb[24].mxu1  ;;  %3607 = vperm.xlu1 %4527, %v3399_v21   ;;  %3612 = vperm.xlu0 %4526, %v3400_v24   ;;  %v2110_v24 = vpack.c.bf16 %v1985_v49, %v1980_v58 }
 0x1d3   : > { %4319 = vmatmul.mubr.msk.bf16.gmra.mrb[68].mxu0 %vm256_vm0, %v2095_v6  ;;  %v2562_v17 = vpop.f32.mrb[25].mxu1  ;;  %2864 = vmatmul.mubr.bf16.gmra.mrb[68].mxu1 %v2093_v26 }
 0x1d4   : > { %v1579_v30 = vpop.permute.xlu1 %1578  ;;  %v1577_v31 = vpop.permute.xlu0 %1576  ;;  %v1959_v47 = vld [vmem:[#allocation2 + $0x5b8] sm:$0xff]  ;;  %v1964_v3 = vld [vmem:[#allocation2 + $0x5e0] sm:$0xff]  ;;  %4322 = vmatprep.mubr.msk.bf16.mxu0 %vm4591_vm2, %v4590_v61  ;;  %v1990_v17 = vld [vmem:[#allocation2 + $0x6b0] sm:$0xff] }
 0x1d5   : > { %1677 = vst.msk [vmem:[#allocation2 + $0x630] sm:$0xff] %vm533_vm1, %v1579_v30  ;;  %1676 = vst.msk [vmem:[#allocation2 + $0x608] sm:$0xff] %vm533_vm1, %v1577_v31  ;;  %v6108_v32 = vpop.f32.mrb[26].mxu1  ;;  %v2099_v40 = vpack.c.bf16 %v1964_v3, %v1959_v47  ;;  %v1995_v31 = vld [vmem:[#allocation2 + $0x6d8] sm:$0xff] }
 0x1d6   : > { %v2565_v63 = vpop.f32.mrb[27].mxu1  ;;  %3617 = vperm.xlu1 %4527, %v3401_v18   ;;  %3622 = vperm.xlu0 %4526, %v3402_v19   ;;  %v2115_v3 = vpack.c.bf16 %v1995_v31, %v1990_v17 }
 0x1d7   : > { %2871 = vmatprep.mubr.bf16.mxu1 %v2099_v40 }
 0x1d8   : > { %v1211_v38 = vpop.permute.xlu1 %1210  ;;  %v1209_v14 = vpop.permute.xlu0 %1208  ;;  %v1958_v8 = vld [vmem:[#allocation2 + $0x5b0] sm:$0xff]  ;;  %v1963_v41 = vld [vmem:[#allocation2 + $0x5d8] sm:$0xff] }
 0x1d9   : > { %1309 = vst.msk [vmem:[#allocation2 + $0x628] sm:$0xff] %vm533_vm1, %v1211_v38  ;;  %1308 = vst.msk [vmem:[#allocation2 + $0x600] sm:$0xff] %vm533_vm1, %v1209_v14  ;;  %v2098_v42 = vpack.c.bf16 %v1963_v41, %v1958_v8  ;;  %v2000_v14 = vld [vmem:[#allocation2 + $0x700] sm:$0xff] }
 0x1da   : > { %3627 = vperm.xlu1 %4527, %v3403_v36   ;;  %3632 = vperm.xlu0 %4526, %v3404_v5  }
 0x1db   : > { %4323 = vmatmul.mubr.msk.bf16.gmra.mrb[72].mxu0 %vm256_vm0, %v2100_v35  ;;  %2872 = vmatmul.mubr.bf16.gmra.mrb[72].mxu1 %v2098_v42 }
 0x1dc   : > { %v1583_v45 = vpop.permute.xlu1 %1582  ;;  %v1581_v23 = vpop.permute.xlu0 %1580  ;;  %v1969_v51 = vld [vmem:[#allocation2 + $0x608] sm:$0xff]  ;;  %v1974_v53 = vld [vmem:[#allocation2 + $0x630] sm:$0xff]  ;;  %4326 = vmatprep.mubr.msk.bf16.mxu0 %vm4591_vm2, %v4590_v61 }
 0x1dd   : > { %1679 = vst.msk [vmem:[#allocation2 + $0x680] sm:$0xff] %vm533_vm1, %v1583_v45  ;;  %1678 = vst.msk [vmem:[#allocation2 + $0x658] sm:$0xff] %vm533_vm1, %v1581_v23  ;;  %v2104_v52 = vpack.c.bf16 %v1974_v53, %v1969_v51  ;;  %v2120_v51 = vpack.c.bf16 %v2005_v1, %v2000_v14 }
 0x1df   : > { %2879 = vmatprep.mubr.bf16.mxu1 %v2104_v52 }
 0x1e0   : > { %v1215_v20 = vpop.permute.xlu1 %1214  ;;  %v1213_v4 = vpop.permute.xlu0 %1212  ;;  %v1968_v25 = vld [vmem:[#allocation2 + $0x600] sm:$0xff]  ;;  %v1973_v16 = vld [vmem:[#allocation2 + $0x628] sm:$0xff] }
 0x1e1   : > { %1311 = vst.msk [vmem:[#allocation2 + $0x678] sm:$0xff] %vm533_vm1, %v1215_v20  ;;  %1310 = vst.msk [vmem:[#allocation2 + $0x650] sm:$0xff] %vm533_vm1, %v1213_v4  ;;  %v2103_v55 = vpack.c.bf16 %v1973_v16, %v1968_v25 }
 0x1e2   : > { %v6125_v56 = vpop.f32.mrb[28].mxu1 }
 0x1e3   : > { %4327 = vmatmul.mubr.msk.bf16.gmra.mrb[76].mxu0 %vm256_vm0, %v2105_v50  ;;  %v2570_v57 = vpop.f32.mrb[29].mxu1  ;;  %2880 = vmatmul.mubr.bf16.gmra.mrb[76].mxu1 %v2103_v55 }
 0x1e4   : > { %v1587_v59 = vpop.permute.xlu1 %1586  ;;  %v1585_v60 = vpop.permute.xlu0 %1584  ;;  %v1979_v33 = vld [vmem:[#allocation2 + $0x658] sm:$0xff]  ;;  %v1984_v62 = vld [vmem:[#allocation2 + $0x680] sm:$0xff]  ;;  %4330 = vmatprep.mubr.msk.bf16.mxu0 %vm4591_vm2, %v4590_v61 }
 0x1e5   : > { %1681 = vst.msk [vmem:[#allocation2 + $0x6d0] sm:$0xff] %vm533_vm1, %v1587_v59  ;;  %1680 = vst.msk [vmem:[#allocation2 + $0x6a8] sm:$0xff] %vm533_vm1, %v1585_v60  ;;  %v6132_v13 = vpop.f32.mrb[30].mxu1  ;;  %v2109_v6 = vpack.c.bf16 %v1984_v62, %v1979_v33 }
 0x1e6   : > { %v2573_v21 = vpop.f32.mrb[31].mxu1 }
 0x1e7   : > { %2887 = vmatprep.mubr.bf16.mxu1 %v2109_v6 }
 0x1e8   : > { %v1219_v44 = vpop.permute.xlu1 %1218  ;;  %v1217_v11 = vpop.permute.xlu0 %1216  ;;  %v1978_v12 = vld [vmem:[#allocation2 + $0x650] sm:$0xff]  ;;  %v1983_v15 = vld [vmem:[#allocation2 + $0x678] sm:$0xff] }
 0x1e9   : > { %1313 = vst.msk [vmem:[#allocation2 + $0x6c8] sm:$0xff] %vm533_vm1, %v1219_v44  ;;  %1312 = vst.msk [vmem:[#allocation2 + $0x6a0] sm:$0xff] %vm533_vm1, %v1217_v11  ;;  %v2108_v26 = vpack.c.bf16 %v1983_v15, %v1978_v12 }
 0x1eb   : > { %4331 = vmatmul.mubr.msk.bf16.gmra.mrb[80].mxu0 %vm256_vm0, %v2110_v24  ;;  %2888 = vmatmul.mubr.bf16.gmra.mrb[80].mxu1 %v2108_v26 }
 0x1ec   : > { %v1591_v27 = vpop.permute.xlu1 %1590  ;;  %v1589_v18 = vpop.permute.xlu0 %1588  ;;  %v1989_v19 = vld [vmem:[#allocation2 + $0x6a8] sm:$0xff]  ;;  %v1994_v30 = vld [vmem:[#allocation2 + $0x6d0] sm:$0xff]  ;;  %4334 = vmatprep.mubr.msk.bf16.mxu0 %vm4591_vm2, %v4590_v61 }
 0x1ed   : > { %1683 = vst.msk [vmem:[#allocation2 + $0x720] sm:$0xff] %vm533_vm1, %v1591_v27  ;;  %1682 = vst.msk [vmem:[#allocation2 + $0x6f8] sm:$0xff] %vm533_vm1, %v1589_v18  ;;  %v2114_v47 = vpack.c.bf16 %v1994_v30, %v1989_v19 }
 0x1ef   : > { %2895 = vmatprep.mubr.bf16.mxu1 %v2114_v47 }
 0x1f0   : > { %v1223_v43 = vpop.permute.xlu1 %1222  ;;  %v1221_v40 = vpop.permute.xlu0 %1220  ;;  %v1988_v63 = vld [vmem:[#allocation2 + $0x6a0] sm:$0xff]  ;;  %v1993_v35 = vld [vmem:[#allocation2 + $0x6c8] sm:$0xff] }
 0x1f1   : > { %1315 = vst.msk [vmem:[#allocation2 + $0x718] sm:$0xff] %vm533_vm1, %v1223_v43  ;;  %1314 = vst.msk [vmem:[#allocation2 + $0x6f0] sm:$0xff] %vm533_vm1, %v1221_v40  ;;  %v2113_v36 = vpack.c.bf16 %v1993_v35, %v1988_v63 }
 0x1f2   : > { %v6143_v5 = vpop.f32.mrb[32].mxu1 }
 0x1f3   : > { %4335 = vmatmul.mubr.msk.bf16.gmra.mrb[84].mxu0 %vm256_vm0, %v2115_v3  ;;  %v2578_v38 = vpop.f32.mrb[33].mxu1  ;;  %2896 = vmatmul.mubr.bf16.gmra.mrb[84].mxu1 %v2113_v36 }
 0x1f4   : > { %v6146_v8 = vpop.f32.mrb[34].mxu1  ;;  %v1999_v41 = vld [vmem:[#allocation2 + $0x6f8] sm:$0xff]  ;;  %v2004_v42 = vld [vmem:[#allocation2 + $0x720] sm:$0xff]  ;;  %4338 = vmatprep.mubr.msk.bf16.mxu0 %vm4591_vm2, %v4590_v61 }
 0x1f5   : > { %v2581_v45 = vpop.f32.mrb[35].mxu1  ;;  %v2119_v23 = vpack.c.bf16 %v2004_v42, %v1999_v41 }
 0x1f7   : > { %2903 = vmatprep.mubr.bf16.mxu1 %v2119_v23 }
 0x1f8   : > { %v1998_v53 = vld [vmem:[#allocation2 + $0x6f0] sm:$0xff]  ;;  %v2003_v10 = vld [vmem:[#allocation2 + $0x718] sm:$0xff] }
 0x1f9   : > { %v2118_v52 = vpack.c.bf16 %v2003_v10, %v1998_v53 }
 0x1fb   : > { %4339 = vmatmul.mubr.msk.bf16.gmra.mrb[88].mxu0 %vm256_vm0, %v2120_v51  ;;  %2904 = vmatmul.mubr.bf16.gmra.mrb[88].mxu1 %v2118_v52 }
 0x201   : > { %v3408_v58 = vpop.permute.xlu0 %3407  ;;  %v3413_v15 = vpop.permute.xlu1 %3412 }
 0x202   : > { %v6151_v50 = vpop.f32.mrb[36].mxu1 }
 0x203   : > { %v2586_v20 = vpop.f32.mrb[37].mxu1 }
 0x204   : > { %v6153_v4 = vpop.f32.mrb[38].mxu1 }
 0x205   : > { %v2589_v25 = vpop.f32.mrb[39].mxu1  ;;  %v3418_v47 = vpop.permute.xlu1 %3417 }
 0x206   : > { %v3423_v35 = vpop.permute.xlu0 %3422 }
 0x209   : > { %v3428_v10 = vpop.permute.xlu1 %3427 }
 0x212   : > { %v6155_v16 = vpop.f32.mrb[40].mxu1 }
 0x213   : > { %v2594_v61 = vpop.f32.mrb[41].mxu1 }
 0x214   : > { %v6157_v55 = vpop.f32.mrb[42].mxu1  ;;  %v3433_v61 = vpop.permute.xlu0 %3432 }
 0x215   : > { %v2597_v57 = vpop.f32.mrb[43].mxu1 }
 0x21e   : > { %v6159_v59 = vpop.f32.mrb[44].mxu1  ;;  %v2946_v60 = vpop.f32.mrb[0].mxu0 }
 0x21f   : > { %v4374_v33 = vadd.f32 %v2946_v60, %v5846_v29  ;;  %v2602_v62 = vpop.f32.mrb[45].mxu1  ;;  %v4252_v49 = vpop.f32.mrb[1].mxu0 }
 0x220   : > { %v2949_v6 = vpop.f32.mrb[2].mxu0  ;;  %v6163_v21 = vpop.f32.mrb[46].mxu1 }
 0x221   : > { %v4375_v24 = vadd.f32 %v2949_v6, %v5858_v34  ;;  %v3635_v44 = vmul.f32 %v4374_v33, %v3408_v58  ;;  %v2605_v11 = vpop.f32.mrb[47].mxu1  ;;  %v4253_v12 = vpop.f32.mrb[3].mxu0 }
 0x222   : > { %v3438_v12 = vpop.permute.xlu1 %3437 }
 0x223   : > { %v4081_v26 = vpack.c.bf16 %v4375_v24, %v4374_v33  ;;  %v3636_v17 = vmul.f32 %v4375_v24, %v3413_v15  ;;  %v3733_v27 = vmul.f32 %v4374_v33, %v3635_v44 }
 0x225   : > { %4082 = vst [vmem:[%s6169_s11] sm:$0xff] %v4081_v26   ;;  %v3681_v29 = vadd.f32 %v3636_v17, %v3635_v44  ;;  %v3734_v18 = vmul.f32 %v4375_v24, %v3636_v17 }
 0x226   : > { %v2954_v19 = vpop.f32.mrb[4].mxu0 }
 0x227   : > { %v3779_v30 = vadd.f32 %v3734_v18, %v3733_v27  ;;  %v4376_v34 = vadd.f32 %v2954_v19, %v5885_v54  ;;  %v4256_v31 = vpop.f32.mrb[5].mxu0 }
 0x228   : > { %v2957_v3 = vpop.f32.mrb[6].mxu0 }
 0x229   : > { %v3637_v43 = vmul.f32 %v4376_v34, %v3418_v47  ;;  %v4377_v40 = vadd.f32 %v2957_v3, %v5898_v48  ;;  %v4257_v63 = vpop.f32.mrb[7].mxu0 }
 0x22a   : > { %v3448_v63 = vpop.permute.xlu1 %3447 }
 0x22b   : > { %v3682_v36 = vadd.f32 %v3681_v29, %v3637_v43  ;;  %v3735_v38 = vmul.f32 %v4376_v34, %v3637_v43  ;;  %v4086_v14 = vpack.c.bf16 %v4377_v40, %v4376_v34  ;;  %v3638_v41 = vmul.f32 %v4377_v40, %v3423_v35  ;;  %v3443_v29 = vpop.permute.xlu0 %3442 }
 0x22d   : > { %v3780_v42 = vadd.f32 %v3779_v30, %v3735_v38  ;;  %4193 = vst [vmem:[%s6169_s11 + $0x8] sm:$0xff] %v4086_v14   ;;  %v3683_v1 = vadd.f32 %v3682_v36, %v3638_v41  ;;  %v3736_v45 = vmul.f32 %v4377_v40, %v3638_v41 }
 0x22e   : > { %v2962_v23 = vpop.f32.mrb[8].mxu0 }
 0x22f   : > { %v3781_v51 = vadd.f32 %v3780_v42, %v3736_v45  ;;  %v4378_v54 = vadd.f32 %v2962_v23, %v5927_v37  ;;  %v4260_v53 = vpop.f32.mrb[9].mxu0  ;;  %v3453_v14 = vpop.permute.xlu0 %3452 }
 0x230   : > { %v2965_v52 = vpop.f32.mrb[10].mxu0 }
 0x231   : > { %v3639_v20 = vmul.f32 %v4378_v54, %v3428_v10  ;;  %v4379_v48 = vadd.f32 %v2965_v52, %v5940_v46  ;;  %v4261_v25 = vpop.f32.mrb[11].mxu0 }
 0x233   : > { %v3684_v57 = vadd.f32 %v3683_v1, %v3639_v20  ;;  %v3737_v58 = vmul.f32 %v4378_v54, %v3639_v20  ;;  %v4091_v60 = vpack.c.bf16 %v4379_v48, %v4378_v54  ;;  %v3640_v33 = vmul.f32 %v4379_v48, %v3433_v61  ;;  %v3458_v20 = vpop.permute.xlu1 %3457 }
 0x235   : > { %v3782_v62 = vadd.f32 %v3781_v51, %v3737_v58  ;;  %4194 = vst [vmem:[%s6169_s11 + $0x10] sm:$0xff] %v4091_v60   ;;  %v3685_v49 = vadd.f32 %v3684_v57, %v3640_v33  ;;  %v3738_v6 = vmul.f32 %v4379_v48, %v3640_v33  ;;  %v3463_v57 = vpop.permute.xlu0 %3462 }
 0x236   : > { %v2970_v24 = vpop.f32.mrb[12].mxu0 }
 0x237   : > { %v3783_v44 = vadd.f32 %v3782_v62, %v3738_v6  ;;  %v4380_v37 = vadd.f32 %v2970_v24, %v5969_v7  ;;  %v4264_v11 = vpop.f32.mrb[13].mxu0 }
 0x238   : > { %v2973_v15 = vpop.f32.mrb[14].mxu0 }
 0x239   : > { %v3641_v26 = vmul.f32 %v4380_v37, %v3438_v12  ;;  %v4381_v46 = vadd.f32 %v2973_v15, %v5982_v22  ;;  %v4265_v17 = vpop.f32.mrb[15].mxu0  ;;  %v3468_v12 = vpop.permute.xlu1 %3467 }
 0x23a   : > { %v3473_v17 = vpop.permute.xlu0 %3472 }
 0x23b   : > { %v3686_v27 = vadd.f32 %v3685_v49, %v3641_v26  ;;  %v3739_v18 = vmul.f32 %v4380_v37, %v3641_v26  ;;  %v4096_v19 = vpack.c.bf16 %v4381_v46, %v4380_v37  ;;  %v3642_v30 = vmul.f32 %v4381_v46, %v3443_v29 }
 0x23d   : > { %v3784_v34 = vadd.f32 %v3783_v44, %v3739_v18  ;;  %4195 = vst [vmem:[%s6169_s11 + $0x18] sm:$0xff] %v4096_v19   ;;  %v3687_v31 = vadd.f32 %v3686_v27, %v3642_v30  ;;  %v3740_v47 = vmul.f32 %v4381_v46, %v3642_v30 }
 0x23e   : > { %v2978_v3 = vpop.f32.mrb[16].mxu0 }
 0x23f   : > { %v3785_v43 = vadd.f32 %v3784_v34, %v3740_v47  ;;  %v4382_v7 = vadd.f32 %v2978_v3, %v6011_v39  ;;  %v4268_v40 = vpop.f32.mrb[17].mxu0 }
 0x240   : > { %v2981_v35 = vpop.f32.mrb[18].mxu0 }
 0x241   : > { %v3643_v36 = vmul.f32 %v4382_v7, %v3448_v63  ;;  %v4383_v22 = vadd.f32 %v2981_v35, %v6024_v9  ;;  %v4269_v38 = vpop.f32.mrb[19].mxu0 }
 0x243   : > { %v3688_v41 = vadd.f32 %v3687_v31, %v3643_v36  ;;  %v3741_v42 = vmul.f32 %v4382_v7, %v3643_v36  ;;  %v4101_v1 = vpack.c.bf16 %v4383_v22, %v4382_v7  ;;  %v3644_v45 = vmul.f32 %v4383_v22, %v3453_v14  ;;  %v3478_v7 = vpop.permute.xlu1 %3477  ;;  %v3483_v36 = vpop.permute.xlu0 %3482 }
 0x245   : > { %v3786_v23 = vadd.f32 %v3785_v43, %v3741_v42  ;;  %4196 = vst [vmem:[%s6169_s11 + $0x20] sm:$0xff] %v4101_v1   ;;  %v3689_v51 = vadd.f32 %v3688_v41, %v3644_v45  ;;  %v3742_v54 = vmul.f32 %v4383_v22, %v3644_v45 }
 0x246   : > { %v2986_v53 = vpop.f32.mrb[20].mxu0 }
 0x247   : > { %v3787_v10 = vadd.f32 %v3786_v23, %v3742_v54  ;;  %v4384_v39 = vadd.f32 %v2986_v53, %v6053_v28  ;;  %v4272_v52 = vpop.f32.mrb[21].mxu0  ;;  %v3488_v53 = vpop.permute.xlu1 %3487 }
 0x248   : > { %v2989_v48 = vpop.f32.mrb[22].mxu0 }
 0x249   : > { %v3645_v25 = vmul.f32 %v4384_v39, %v3458_v20  ;;  %v4385_v9 = vadd.f32 %v2989_v48, %v6066_v2  ;;  %v4273_v61 = vpop.f32.mrb[23].mxu0  ;;  %v3493_v20 = vpop.permute.xlu0 %3492 }
 0x24b   : > { %v3690_v58 = vadd.f32 %v3689_v51, %v3645_v25  ;;  %v3743_v60 = vmul.f32 %v4384_v39, %v3645_v25  ;;  %v4106_v33 = vpack.c.bf16 %v4385_v9, %v4384_v39  ;;  %v3646_v62 = vmul.f32 %v4385_v9, %v3463_v57 }
 0x24d   : > { %v3788_v49 = vadd.f32 %v3787_v10, %v3743_v60  ;;  %4197 = vst [vmem:[%s6169_s11 + $0x28] sm:$0xff] %v4106_v33   ;;  %v3691_v6 = vadd.f32 %v3690_v58, %v3646_v62  ;;  %v3744_v24 = vmul.f32 %v4385_v9, %v3646_v62 }
 0x24e   : > { %v2994_v44 = vpop.f32.mrb[24].mxu0 }
 0x24f   : > { %v3789_v37 = vadd.f32 %v3788_v49, %v3744_v24  ;;  %v4386_v28 = vadd.f32 %v2994_v44, %v6095_v0  ;;  %v4276_v11 = vpop.f32.mrb[25].mxu0 }
 0x250   : > { %v2997_v15 = vpop.f32.mrb[26].mxu0 }
 0x251   : > { %v3647_v26 = vmul.f32 %v4386_v28, %v3468_v12  ;;  %v4387_v2 = vadd.f32 %v2997_v15, %v6108_v32  ;;  %v4277_v46 = vpop.f32.mrb[27].mxu0 }
 0x253   : > { %v3692_v29 = vadd.f32 %v3691_v6, %v3647_v26  ;;  %v3745_v27 = vmul.f32 %v4386_v28, %v3647_v26  ;;  %v4111_v18 = vpack.c.bf16 %v4387_v2, %v4386_v28  ;;  %v3648_v19 = vmul.f32 %v4387_v2, %v3473_v17  ;;  %v3498_v6 = vpop.permute.xlu1 %3497  ;;  %v3503_v28 = vpop.permute.xlu0 %3502 }
 0x255   : > { %v3790_v30 = vadd.f32 %v3789_v37, %v3745_v27  ;;  %4198 = vst [vmem:[%s6169_s11 + $0x30] sm:$0xff] %v4111_v18   ;;  %v3693_v34 = vadd.f32 %v3692_v29, %v3648_v19  ;;  %v3746_v31 = vmul.f32 %v4387_v2, %v3648_v19 }
 0x256   : > { %v3002_v47 = vpop.f32.mrb[28].mxu0 }
 0x257   : > { %v3791_v3 = vadd.f32 %v3790_v30, %v3746_v31  ;;  %v4388_v0 = vadd.f32 %v3002_v47, %v6125_v56  ;;  %v4280_v43 = vpop.f32.mrb[29].mxu0  ;;  %v3508_v19 = vpop.permute.xlu1 %3507 }
 0x258   : > { %v3005_v40 = vpop.f32.mrb[30].mxu0  ;;  %v3513_v47 = vpop.permute.xlu0 %3512 }
 0x259   : > { %v3649_v63 = vmul.f32 %v4388_v0, %v3478_v7  ;;  %v4389_v32 = vadd.f32 %v3005_v40, %v6132_v13  ;;  %v4281_v35 = vpop.f32.mrb[31].mxu0 }
 0x25b   : > { %v3694_v22 = vadd.f32 %v3693_v34, %v3649_v63  ;;  %v3747_v38 = vmul.f32 %v4388_v0, %v3649_v63  ;;  %v4116_v14 = vpack.c.bf16 %v4389_v32, %v4388_v0  ;;  %v3650_v41 = vmul.f32 %v4389_v32, %v3483_v36  ;;  %v3518_v36 = vpop.permute.xlu1 %3517 }
 0x25d   : > { %v3792_v42 = vadd.f32 %v3791_v3, %v3747_v38  ;;  %4199 = vst [vmem:[%s6169_s11 + $0x38] sm:$0xff] %v4116_v14   ;;  %v3695_v1 = vadd.f32 %v3694_v22, %v3650_v41  ;;  %v3748_v45 = vmul.f32 %v4389_v32, %v3650_v41 }
 0x25e   : > { %v3010_v23 = vpop.f32.mrb[32].mxu0 }
 0x25f   : > { %v3793_v51 = vadd.f32 %v3792_v42, %v3748_v45  ;;  %v4390_v56 = vadd.f32 %v3010_v23, %v6143_v5  ;;  %v4284_v54 = vpop.f32.mrb[33].mxu0 }
 0x260   : > { %v3013_v10 = vpop.f32.mrb[34].mxu0  ;;  %v3528_v54 = vpop.permute.xlu1 %3527 }
 0x261   : > { %v3651_v39 = vmul.f32 %v4390_v56, %v3488_v53  ;;  %v4391_v13 = vadd.f32 %v3013_v10, %v6146_v8  ;;  %v4285_v52 = vpop.f32.mrb[35].mxu0 }
 0x263   : > { %v3696_v48 = vadd.f32 %v3695_v1, %v3651_v39  ;;  %v3749_v25 = vmul.f32 %v4390_v56, %v3651_v39  ;;  %v4121_v9 = vpack.c.bf16 %v4391_v13, %v4390_v56  ;;  %v3652_v61 = vmul.f32 %v4391_v13, %v3493_v20  ;;  %v3523_v1 = vpop.permute.xlu0 %3522 }
 0x265   : > { %v3794_v57 = vadd.f32 %v3793_v51, %v3749_v25  ;;  %4200 = vst [vmem:[%s6169_s11 + $0x40] sm:$0xff] %v4121_v9   ;;  %v3697_v58 = vadd.f32 %v3696_v48, %v3652_v61  ;;  %v3750_v60 = vmul.f32 %v4391_v13, %v3652_v61 }
 0x266   : > { %v3018_v33 = vpop.f32.mrb[36].mxu0 }
 0x267   : > { %v3795_v62 = vadd.f32 %v3794_v57, %v3750_v60  ;;  %v4392_v5 = vadd.f32 %v3018_v33, %v6151_v50  ;;  %v4288_v49 = vpop.f32.mrb[37].mxu0  ;;  %v3533_v33 = vpop.permute.xlu0 %3532 }
 0x268   : > { %v3021_v24 = vpop.f32.mrb[38].mxu0 }
 0x269   : > { %v3653_v44 = vmul.f32 %v4392_v5, %v3498_v6  ;;  %v4393_v8 = vadd.f32 %v3021_v24, %v6153_v4  ;;  %v4289_v37 = vpop.f32.mrb[39].mxu0  ;;  %v3538_v24 = vpop.permute.xlu1 %3537 }
 0x26b   : > { %v3698_v11 = vadd.f32 %v3697_v58, %v3653_v44  ;;  %v3751_v12 = vmul.f32 %v4392_v5, %v3653_v44  ;;  %v4126_v15 = vpack.c.bf16 %v4393_v8, %v4392_v5  ;;  %v3654_v26 = vmul.f32 %v4393_v8, %v3503_v28 }
 0x26d   : > { %v3796_v2 = vadd.f32 %v3795_v62, %v3751_v12  ;;  %4201 = vst [vmem:[%s6169_s11 + $0x48] sm:$0xff] %v4126_v15   ;;  %v3699_v46 = vadd.f32 %v3698_v11, %v3654_v26  ;;  %v3752_v17 = vmul.f32 %v4393_v8, %v3654_v26 }
 0x26e   : > { %v3026_v29 = vpop.f32.mrb[40].mxu0 }
 0x26f   : > { %v3797_v27 = vadd.f32 %v3796_v2, %v3752_v17  ;;  %v4394_v50 = vadd.f32 %v3026_v29, %v6155_v16  ;;  %v4292_v18 = vpop.f32.mrb[41].mxu0 }
 0x270   : > { %v3029_v30 = vpop.f32.mrb[42].mxu0 }
 0x271   : > { %v3655_v34 = vmul.f32 %v4394_v50, %v3508_v19  ;;  %v4395_v4 = vadd.f32 %v3029_v30, %v6157_v55  ;;  %v4293_v31 = vpop.f32.mrb[43].mxu0  ;;  %v3543_v19 = vpop.permute.xlu0 %3542 }
 0x273   : > { %v3700_v3 = vadd.f32 %v3699_v46, %v3655_v34  ;;  %v3753_v0 = vmul.f32 %v4394_v50, %v3655_v34  ;;  %v4131_v43 = vpack.c.bf16 %v4395_v4, %v4394_v50  ;;  %v3656_v7 = vmul.f32 %v4395_v4, %v3513_v47  ;;  %v3548_v47 = vpop.permute.xlu1 %3547 }
 0x275   : > { %v3798_v40 = vadd.f32 %v3797_v27, %v3753_v0  ;;  %4202 = vst [vmem:[%s6169_s11 + $0x50] sm:$0xff] %v4131_v43   ;;  %v3701_v63 = vadd.f32 %v3700_v3, %v3656_v7  ;;  %v3754_v32 = vmul.f32 %v4395_v4, %v3656_v7 }
 0x276   : > { %v3034_v35 = vpop.f32.mrb[44].mxu0 }
 0x277   : > { %v3799_v16 = vadd.f32 %v3798_v40, %v3754_v32  ;;  %v4396_v22 = vadd.f32 %v3034_v35, %v6159_v59  ;;  %v4296_v38 = vpop.f32.mrb[45].mxu0 }
 0x278   : > { %v3037_v14 = vpop.f32.mrb[46].mxu0 }
 0x279   : > { %v3657_v41 = vmul.f32 %v4396_v22, %v3518_v36  ;;  %v4397_v55 = vadd.f32 %v3037_v14, %v6163_v21  ;;  %v4297_v42 = vpop.f32.mrb[47].mxu0 }
 0x27a   : > { %v3553_v42 = vpop.permute.xlu0 %3552 }
 0x27b   : > { %v3702_v45 = vadd.f32 %v3701_v63, %v3657_v41  ;;  %v3755_v23 = vmul.f32 %v4396_v22, %v3657_v41  ;;  %v4136_v51 = vpack.c.bf16 %v4397_v55, %v4396_v22  ;;  %v3658_v56 = vmul.f32 %v4397_v55, %v3523_v1 }
 0x27d   : > { %v3800_v53 = vadd.f32 %v3799_v16, %v3755_v23  ;;  %4203 = vst [vmem:[%s6169_s11 + $0x58] sm:$0xff] %v4136_v51   ;;  %v3703_v10 = vadd.f32 %v3702_v45, %v3658_v56  ;;  %v3756_v39 = vmul.f32 %v4397_v55, %v3658_v56  ;;  %v3558_v56 = vpop.permute.xlu1 %3557 }
 0x27e   : > { %v2825_v13 = vpop.f32.mrb[48].mxu1  ;;  %v3042_v52 = vpop.f32.mrb[48].mxu0 }
 0x27f   : > { %v3801_v20 = vadd.f32 %v3800_v53, %v3756_v39  ;;  %v4398_v59 = vadd.f32 %v3042_v52, %v2825_v13  ;;  %v2827_v48 = vpop.f32.mrb[49].mxu1  ;;  %v4300_v25 = vpop.f32.mrb[49].mxu0 }
 0x280   : > { %v2828_v9 = vpop.f32.mrb[50].mxu1  ;;  %v3045_v21 = vpop.f32.mrb[50].mxu0 }
 0x281   : > { %v3659_v61 = vmul.f32 %v4398_v59, %v3528_v54  ;;  %v4399_v57 = vadd.f32 %v3045_v21, %v2828_v9  ;;  %v2830_v58 = vpop.f32.mrb[51].mxu1  ;;  %v4301_v60 = vpop.f32.mrb[51].mxu0 }
 0x282   : > { %v3563_v60 = vpop.permute.xlu0 %3562 }
 0x283   : > { %v3704_v62 = vadd.f32 %v3703_v10, %v3659_v61  ;;  %v3757_v5 = vmul.f32 %v4398_v59, %v3659_v61  ;;  %v4141_v49 = vpack.c.bf16 %v4399_v57, %v4398_v59  ;;  %v3660_v6 = vmul.f32 %v4399_v57, %v3533_v33 }
 0x285   : > { %v3802_v44 = vadd.f32 %v3801_v20, %v3757_v5  ;;  %4204 = vst [vmem:[%s6169_s11 + $0x60] sm:$0xff] %v4141_v49   ;;  %v3705_v8 = vadd.f32 %v3704_v62, %v3660_v6  ;;  %v3758_v37 = vmul.f32 %v4399_v57, %v3660_v6  ;;  %v3568_v6 = vpop.permute.xlu1 %3567 }
 0x286   : > { %v2833_v28 = vpop.f32.mrb[52].mxu1  ;;  %v3050_v11 = vpop.f32.mrb[52].mxu0 }
 0x287   : > { %v3803_v12 = vadd.f32 %v3802_v44, %v3758_v37  ;;  %v4400_v15 = vadd.f32 %v3050_v11, %v2833_v28  ;;  %v2835_v26 = vpop.f32.mrb[53].mxu1  ;;  %v4304_v2 = vpop.f32.mrb[53].mxu0 }
 0x288   : > { %v2836_v46 = vpop.f32.mrb[54].mxu1  ;;  %v3053_v17 = vpop.f32.mrb[54].mxu0 }
 0x289   : > { %v3661_v29 = vmul.f32 %v4400_v15, %v3538_v24  ;;  %v4401_v27 = vadd.f32 %v3053_v17, %v2836_v46  ;;  %v2838_v50 = vpop.f32.mrb[55].mxu1  ;;  %v4305_v18 = vpop.f32.mrb[55].mxu0 }
 0x28a   : > { %v3573_v18 = vpop.permute.xlu0 %3572 }
 0x28b   : > { %v3706_v30 = vadd.f32 %v3705_v8, %v3661_v29  ;;  %v3759_v34 = vmul.f32 %v4400_v15, %v3661_v29  ;;  %v4146_v4 = vpack.c.bf16 %v4401_v27, %v4400_v15  ;;  %v3662_v31 = vmul.f32 %v4401_v27, %v3543_v19 }
 0x28d   : > { %v3804_v3 = vadd.f32 %v3803_v12, %v3759_v34  ;;  %4205 = vst [vmem:[%s6169_s11 + $0x68] sm:$0xff] %v4146_v4   ;;  %v3707_v0 = vadd.f32 %v3706_v30, %v3662_v31  ;;  %v3760_v43 = vmul.f32 %v4401_v27, %v3662_v31  ;;  %v3578_v31 = vpop.permute.xlu1 %3577 }
 0x28e   : > { %v2841_v7 = vpop.f32.mrb[56].mxu1  ;;  %v3058_v40 = vpop.f32.mrb[56].mxu0 }
 0x28f   : > { %v3805_v63 = vadd.f32 %v3804_v3, %v3760_v43  ;;  %v4402_v32 = vadd.f32 %v3058_v40, %v2841_v7  ;;  %v2843_v35 = vpop.f32.mrb[57].mxu1  ;;  %v4308_v36 = vpop.f32.mrb[57].mxu0 }
 0x290   : > { %v2844_v16 = vpop.f32.mrb[58].mxu1  ;;  %v3061_v22 = vpop.f32.mrb[58].mxu0 }
 0x291   : > { %v3663_v38 = vmul.f32 %v4402_v32, %v3548_v47  ;;  %v4403_v14 = vadd.f32 %v3061_v22, %v2844_v16  ;;  %v2846_v41 = vpop.f32.mrb[59].mxu1  ;;  %v4309_v55 = vpop.f32.mrb[59].mxu0 }
 0x292   : > { %v3583_v55 = vpop.permute.xlu0 %3582 }
 0x293   : > { %v3708_v1 = vadd.f32 %v3707_v0, %v3663_v38  ;;  %v3761_v45 = vmul.f32 %v4402_v32, %v3663_v38  ;;  %v4151_v23 = vpack.c.bf16 %v4403_v14, %v4402_v32  ;;  %v3664_v51 = vmul.f32 %v4403_v14, %v3553_v42 }
 0x295   : > { %v3806_v54 = vadd.f32 %v3805_v63, %v3761_v45  ;;  %4206 = vst [vmem:[%s6169_s11 + $0x70] sm:$0xff] %v4151_v23   ;;  %v3709_v53 = vadd.f32 %v3708_v1, %v3664_v51  ;;  %v3762_v10 = vmul.f32 %v4403_v14, %v3664_v51  ;;  %v3588_v51 = vpop.permute.xlu1 %3587 }
 0x296   : > { %v2849_v39 = vpop.f32.mrb[60].mxu1  ;;  %v3066_v13 = vpop.f32.mrb[60].mxu0 }
 0x297   : > { %v3807_v52 = vadd.f32 %v3806_v54, %v3762_v10  ;;  %v4404_v20 = vadd.f32 %v3066_v13, %v2849_v39  ;;  %v2851_v59 = vpop.f32.mrb[61].mxu1  ;;  %v4312_v48 = vpop.f32.mrb[61].mxu0 }
 0x298   : > { %v2852_v25 = vpop.f32.mrb[62].mxu1  ;;  %v3069_v9 = vpop.f32.mrb[62].mxu0 }
 0x299   : > { %v3665_v21 = vmul.f32 %v4404_v20, %v3558_v56  ;;  %v4405_v61 = vadd.f32 %v3069_v9, %v2852_v25  ;;  %v2854_v57 = vpop.f32.mrb[63].mxu1  ;;  %v4313_v58 = vpop.f32.mrb[63].mxu0 }
 0x29a   : > { %v3593_v58 = vpop.permute.xlu0 %3592 }
 0x29b   : > { %v3710_v33 = vadd.f32 %v3709_v53, %v3665_v21  ;;  %v3763_v62 = vmul.f32 %v4404_v20, %v3665_v21  ;;  %v4156_v5 = vpack.c.bf16 %v4405_v61, %v4404_v20  ;;  %v3666_v49 = vmul.f32 %v4405_v61, %v3563_v60 }
 0x29d   : > { %v3808_v24 = vadd.f32 %v3807_v52, %v3763_v62  ;;  %4207 = vst [vmem:[%s6169_s11 + $0x78] sm:$0xff] %v4156_v5   ;;  %v3711_v44 = vadd.f32 %v3710_v33, %v3666_v49  ;;  %v3764_v8 = vmul.f32 %v4405_v61, %v3666_v49  ;;  %v3598_v49 = vpop.permute.xlu1 %3597 }
 0x29e   : > { %v2857_v37 = vpop.f32.mrb[64].mxu1  ;;  %v3074_v28 = vpop.f32.mrb[64].mxu0 }
 0x29f   : > { %v3809_v11 = vadd.f32 %v3808_v24, %v3764_v8  ;;  %v4406_v12 = vadd.f32 %v3074_v28, %v2857_v37  ;;  %v2859_v15 = vpop.f32.mrb[65].mxu1  ;;  %v4316_v26 = vpop.f32.mrb[65].mxu0 }
 0x2a0   : > { %v2860_v2 = vpop.f32.mrb[66].mxu1  ;;  %v3077_v46 = vpop.f32.mrb[66].mxu0 }
 0x2a1   : > { %v3667_v17 = vmul.f32 %v4406_v12, %v3568_v6  ;;  %v4407_v29 = vadd.f32 %v3077_v46, %v2860_v2  ;;  %v2862_v27 = vpop.f32.mrb[67].mxu1  ;;  %v4317_v50 = vpop.f32.mrb[67].mxu0 }
 0x2a2   : > { %v3603_v50 = vpop.permute.xlu0 %3602 }
 0x2a3   : > { %v3712_v19 = vadd.f32 %v3711_v44, %v3667_v17  ;;  %v3765_v30 = vmul.f32 %v4406_v12, %v3667_v17  ;;  %v4161_v34 = vpack.c.bf16 %v4407_v29, %v4406_v12  ;;  %v3668_v4 = vmul.f32 %v4407_v29, %v3573_v18 }
 0x2a5   : > { %v3810_v47 = vadd.f32 %v3809_v11, %v3765_v30  ;;  %4208 = vst [vmem:[%s6169_s11 + $0x80] sm:$0xff] %v4161_v34   ;;  %v3713_v3 = vadd.f32 %v3712_v19, %v3668_v4  ;;  %v3766_v0 = vmul.f32 %v4407_v29, %v3668_v4  ;;  %v3608_v4 = vpop.permute.xlu1 %3607 }
 0x2a6   : > { %v2865_v43 = vpop.f32.mrb[68].mxu1  ;;  %v3082_v7 = vpop.f32.mrb[68].mxu0 }
 0x2a7   : > { %v3811_v40 = vadd.f32 %v3810_v47, %v3766_v0  ;;  %v4408_v63 = vadd.f32 %v3082_v7, %v2865_v43  ;;  %v2867_v32 = vpop.f32.mrb[69].mxu1  ;;  %v4320_v35 = vpop.f32.mrb[69].mxu0 }
 0x2a8   : > { %v2868_v36 = vpop.f32.mrb[70].mxu1  ;;  %v3085_v16 = vpop.f32.mrb[70].mxu0 }
 0x2a9   : > { %v3669_v22 = vmul.f32 %v4408_v63, %v3578_v31  ;;  %v4409_v38 = vadd.f32 %v3085_v16, %v2868_v36  ;;  %v2870_v14 = vpop.f32.mrb[71].mxu1  ;;  %v4321_v41 = vpop.f32.mrb[71].mxu0 }
 0x2aa   : > { %v3613_v41 = vpop.permute.xlu0 %3612 }
 0x2ab   : > { %v3714_v42 = vadd.f32 %v3713_v3, %v3669_v22  ;;  %v3767_v1 = vmul.f32 %v4408_v63, %v3669_v22  ;;  %v4166_v45 = vpack.c.bf16 %v4409_v38, %v4408_v63  ;;  %v3670_v23 = vmul.f32 %v4409_v38, %v3583_v55 }
 0x2ad   : > { %v3812_v56 = vadd.f32 %v3811_v40, %v3767_v1  ;;  %4209 = vst [vmem:[%s6169_s11 + $0x88] sm:$0xff] %v4166_v45   ;;  %v3715_v54 = vadd.f32 %v3714_v42, %v3670_v23  ;;  %v3768_v53 = vmul.f32 %v4409_v38, %v3670_v23  ;;  %v3618_v23 = vpop.permute.xlu1 %3617 }
 0x2ae   : > { %v2873_v10 = vpop.f32.mrb[72].mxu1  ;;  %v3090_v39 = vpop.f32.mrb[72].mxu0 }
 0x2af   : > { %v3813_v13 = vadd.f32 %v3812_v56, %v3768_v53  ;;  %v4410_v52 = vadd.f32 %v3090_v39, %v2873_v10  ;;  %v2875_v20 = vpop.f32.mrb[73].mxu1  ;;  %v4324_v59 = vpop.f32.mrb[73].mxu0 }
 0x2b0   : > { %v2876_v48 = vpop.f32.mrb[74].mxu1  ;;  %v3093_v25 = vpop.f32.mrb[74].mxu0 }
 0x2b1   : > { %v3671_v9 = vmul.f32 %v4410_v52, %v3588_v51  ;;  %v4411_v21 = vadd.f32 %v3093_v25, %v2876_v48  ;;  %v2878_v61 = vpop.f32.mrb[75].mxu1  ;;  %v4325_v57 = vpop.f32.mrb[75].mxu0 }
 0x2b2   : > { %v3623_v57 = vpop.permute.xlu0 %3622 }
 0x2b3   : > { %v3716_v60 = vadd.f32 %v3715_v54, %v3671_v9  ;;  %v3769_v33 = vmul.f32 %v4410_v52, %v3671_v9  ;;  %v4171_v62 = vpack.c.bf16 %v4411_v21, %v4410_v52  ;;  %v3672_v5 = vmul.f32 %v4411_v21, %v3593_v58 }
 0x2b5   : > { %v3814_v6 = vadd.f32 %v3813_v13, %v3769_v33  ;;  %4210 = vst [vmem:[%s6169_s11 + $0x90] sm:$0xff] %v4171_v62   ;;  %v3717_v24 = vadd.f32 %v3716_v60, %v3672_v5  ;;  %v3770_v44 = vmul.f32 %v4411_v21, %v3672_v5  ;;  %v3628_v5 = vpop.permute.xlu1 %3627 }
 0x2b6   : > { %v2881_v8 = vpop.f32.mrb[76].mxu1  ;;  %v3098_v37 = vpop.f32.mrb[76].mxu0 }
 0x2b7   : > { %v3815_v28 = vadd.f32 %v3814_v6, %v3770_v44  ;;  %v4412_v11 = vadd.f32 %v3098_v37, %v2881_v8  ;;  %v2883_v12 = vpop.f32.mrb[77].mxu1  ;;  %v4328_v15 = vpop.f32.mrb[77].mxu0 }
 0x2b8   : > { %v2884_v26 = vpop.f32.mrb[78].mxu1  ;;  %v3101_v2 = vpop.f32.mrb[78].mxu0 }
 0x2b9   : > { %v3673_v46 = vmul.f32 %v4412_v11, %v3598_v49  ;;  %v4413_v17 = vadd.f32 %v3101_v2, %v2884_v26  ;;  %v2886_v29 = vpop.f32.mrb[79].mxu1  ;;  %v4329_v27 = vpop.f32.mrb[79].mxu0 }
 0x2ba   : > { %v3633_v27 = vpop.permute.xlu0 %3632 }
 0x2bb   : > { %v3718_v18 = vadd.f32 %v3717_v24, %v3673_v46  ;;  %v3771_v19 = vmul.f32 %v4412_v11, %v3673_v46  ;;  %v4176_v30 = vpack.c.bf16 %v4413_v17, %v4412_v11  ;;  %v3674_v34 = vmul.f32 %v4413_v17, %v3603_v50 }
 0x2bd   : > { %v3816_v31 = vadd.f32 %v3815_v28, %v3771_v19  ;;  %4211 = vst [vmem:[%s6169_s11 + $0x98] sm:$0xff] %v4176_v30   ;;  %v3719_v47 = vadd.f32 %v3718_v18, %v3674_v34  ;;  %v3772_v3 = vmul.f32 %v4413_v17, %v3674_v34 }
 0x2be   : > { %v2889_v0 = vpop.f32.mrb[80].mxu1  ;;  %v3106_v43 = vpop.f32.mrb[80].mxu0 }
 0x2bf   : > { %v3817_v7 = vadd.f32 %v3816_v31, %v3772_v3  ;;  %v4414_v40 = vadd.f32 %v3106_v43, %v2889_v0  ;;  %v2891_v63 = vpop.f32.mrb[81].mxu1  ;;  %v4332_v32 = vpop.f32.mrb[81].mxu0 }
 0x2c0   : > { %v2892_v35 = vpop.f32.mrb[82].mxu1  ;;  %v3109_v36 = vpop.f32.mrb[82].mxu0 }
 0x2c1   : > { %v3675_v16 = vmul.f32 %v4414_v40, %v3608_v4  ;;  %v4415_v22 = vadd.f32 %v3109_v36, %v2892_v35  ;;  %v2894_v38 = vpop.f32.mrb[83].mxu1  ;;  %v4333_v14 = vpop.f32.mrb[83].mxu0 }
 0x2c3   : > { %v3720_v55 = vadd.f32 %v3719_v47, %v3675_v16  ;;  %v3773_v42 = vmul.f32 %v4414_v40, %v3675_v16  ;;  %v4181_v1 = vpack.c.bf16 %v4415_v22, %v4414_v40  ;;  %v3676_v45 = vmul.f32 %v4415_v22, %v3613_v41 }
 0x2c5   : > { %v3818_v51 = vadd.f32 %v3817_v7, %v3773_v42  ;;  %4212 = vst [vmem:[%s6169_s11 + $0xa0] sm:$0xff] %v4181_v1   ;;  %v3721_v56 = vadd.f32 %v3720_v55, %v3676_v45  ;;  %v3774_v54 = vmul.f32 %v4415_v22, %v3676_v45 }
 0x2c6   : > { %v2897_v53 = vpop.f32.mrb[84].mxu1  ;;  %v3114_v10 = vpop.f32.mrb[84].mxu0 }
 0x2c7   : > { %v3819_v39 = vadd.f32 %v3818_v51, %v3774_v54  ;;  %v4416_v13 = vadd.f32 %v3114_v10, %v2897_v53  ;;  %v2899_v52 = vpop.f32.mrb[85].mxu1  ;;  %v4336_v20 = vpop.f32.mrb[85].mxu0 }
 0x2c8   : > { %v2900_v59 = vpop.f32.mrb[86].mxu1  ;;  %v3117_v48 = vpop.f32.mrb[86].mxu0 }
 0x2c9   : > { %v3677_v25 = vmul.f32 %v4416_v13, %v3618_v23  ;;  %v4417_v9 = vadd.f32 %v3117_v48, %v2900_v59  ;;  %v2902_v21 = vpop.f32.mrb[87].mxu1  ;;  %v4337_v61 = vpop.f32.mrb[87].mxu0 }
 0x2cb   : > { %v3722_v58 = vadd.f32 %v3721_v56, %v3677_v25  ;;  %v3775_v60 = vmul.f32 %v4416_v13, %v3677_v25  ;;  %v4186_v33 = vpack.c.bf16 %v4417_v9, %v4416_v13  ;;  %v3678_v62 = vmul.f32 %v4417_v9, %v3623_v57 }
 0x2cd   : > { %v3820_v49 = vadd.f32 %v3819_v39, %v3775_v60  ;;  %4213 = vst [vmem:[%s6169_s11 + $0xa8] sm:$0xff] %v4186_v33   ;;  %v3723_v6 = vadd.f32 %v3722_v58, %v3678_v62  ;;  %v3776_v24 = vmul.f32 %v4417_v9, %v3678_v62 }
 0x2ce   : > { %v2905_v44 = vpop.f32.mrb[88].mxu1  ;;  %v3122_v8 = vpop.f32.mrb[88].mxu0 }
 0x2cf   : > { %v3821_v37 = vadd.f32 %v3820_v49, %v3776_v24  ;;  %v4418_v28 = vadd.f32 %v3122_v8, %v2905_v44  ;;  %v2907_v11 = vpop.f32.mrb[89].mxu1  ;;  %v4340_v12 = vpop.f32.mrb[89].mxu0 }
 0x2d0   : > { %v2908_v15 = vpop.f32.mrb[90].mxu1  ;;  %v3125_v26 = vpop.f32.mrb[90].mxu0 }
 0x2d1   : > { %v3679_v2 = vmul.f32 %v4418_v28, %v3628_v5  ;;  %v4419_v46 = vadd.f32 %v3125_v26, %v2908_v15  ;;  %v2910_v17 = vpop.f32.mrb[91].mxu1  ;;  %v4341_v29 = vpop.f32.mrb[91].mxu0 }
 0x2d3   : > { %v3724_v50 = vadd.f32 %v3723_v6, %v3679_v2  ;;  %v3777_v18 = vmul.f32 %v4418_v28, %v3679_v2  ;;  %v4191_v19 = vpack.c.bf16 %v4419_v46, %v4418_v28  ;;  %v3680_v30 = vmul.f32 %v4419_v46, %v3633_v27 }
 0x2d5   : > { %v3822_v34 = vadd.f32 %v3821_v37, %v3777_v18  ;;  %4214 = vst [vmem:[%s6169_s11 + $0xb0] sm:$0xff] %v4191_v19   ;;  %v3725_v4 = vadd.f32 %v3724_v50, %v3680_v30  ;;  %v3778_v31 = vmul.f32 %v4419_v46, %v3680_v30 }
 0x2d7   : > { %v3726_v47 = vrot.slane %v3725_v4, 4  ;;  %v3823_v3 = vadd.f32 %v3822_v34, %v3778_v31 }
 0x2d9   : > { %v3727_v0 = vadd.f32 %v3726_v47, %v3725_v4  ;;  %v3824_v43 = vrot.slane %v3823_v3, 4 }
 0x2db   : > { %v3728_v7 = vrot.slane %v3727_v0, 2  ;;  %v3825_v40 = vadd.f32 %v3824_v43, %v3823_v3 }
 0x2dd   : > { %v3729_v63 = vadd.f32 %v3728_v7, %v3727_v0  ;;  %v3826_v32 = vrot.slane %v3825_v40, 2 }
 0x2df   : > { %v3730_v35 = vrot.slane %v3729_v63, 1  ;;  %v3827_v36 = vadd.f32 %v3826_v32, %v3825_v40 }
 0x2e1   : > { %v3731_v16 = vadd.f32 %v3730_v35, %v3729_v63  ;;  %v3828_v22 = vrot.slane %v3827_v36, 1 }
 0x2e3   : > { %3732 = vst [vmem:[%s208_s14] sm:$0x1] %v3731_v16  ;;  %v3829_v38 = vadd.f32 %v3828_v22, %v3827_v36 }
 0x2e5   : > { %3830 = vst [vmem:[%s208_s14 + $0x1] sm:$0x1] %v3829_v38 }
 0x2e6 PF: > { %s15_s15 = sadd.s32 1, %s4586_s15  }
 0x2e7   : > { %p12_p4 = scmp.ge.s32.totalorder %s15_s15, 4  }
 0x2e9   :  { %14 = sbr.rel (!%p12_p4) target bundleno = 1 (0x1), region = 74 }

// kernel: inception_b_forward.12
= control target key start
LH: loop header
LB: loop body
LE: loop exit
PB: predicated region body
PF: predicated region fallthrough
CT: control target
= control target key end

     0   :  { %v223_v5 = vlaneseq  ;;  %vm2538_vm0 = vmmov 0   ;;  %s3476_s4 = inlined_call_operand.vmem [shape: bf16[1152,128], index: 4, kind: input, shape index: {}]   ;;  %s3477_s0 = inlined_call_operand.vmem [shape: bf16[112,1152], index: 0, kind: input, shape index: {}]   ;;  %s3478_s1 = inlined_call_operand.vmem [shape: f32[1,1152], index: 1, kind: input, shape index: {}]   ;;  %s3479_s2 = inlined_call_operand.vmem [shape: f32[1,1152], index: 2, kind: input, shape index: {}]   ;;  %s3480_s3 = inlined_call_operand.vmem [shape: f32[112,1], index: 3, kind: input, shape index: {}]   ;;  %s3481_s5 = inlined_call_operand.vmem [shape: bf16[112,128], index: 5, kind: output, shape index: {0}]   ;;  %s3482_s6 = inlined_call_operand.vmem [shape: f32[1,2,128], index: 6, kind: output, shape index: {1}]  }
   0x1   :  { %v2464_v0 = vld [vmem:[%s3476_s4 + $0x40] sm:$0xff]   ;;  %v2466_v2 = vld [vmem:[%s3476_s4 + $0x48] sm:$0xff]   ;;  %v2468_v4 = vld [vmem:[%s3476_s4 + $0x50] sm:$0xff]  }
   0x2   :  { %v2465_v1 = vld [vmem:[%s3476_s4] sm:$0xff]   ;;  %2443 = vmatprep.subr.bf16.mxu1 %v2464_v0  ;;  %2152 = vmatprep.subr.bf16.mxu0 %v2464_v0  ;;  %v2467_v3 = vld [vmem:[%s3476_s4 + $0x8] sm:$0xff]   ;;  %v2469_v6 = vld [vmem:[%s3476_s4 + $0x10] sm:$0xff]   ;;  %v2595_v8 = vshrl.u32 %v223_v5, 7 }
   0x3   :  { %2451 = vmatpush3.bf16.msra.mxu1 %v2465_v1  ;;  %2153 = vmatpush3.bf16.msra.mxu0 %v2465_v1  ;;  %v2470_v7 = vld [vmem:[%s3476_s4 + $0x58] sm:$0xff]   ;;  %v2472_v10 = vld [vmem:[%s3476_s4 + $0x60] sm:$0xff]   ;;  %v2474_v14 = vld [vmem:[%s3476_s4 + $0x68] sm:$0xff]  }
   0x4   :  { %2444 = vmatprep.subr.bf16.mxu1 %v2466_v2  ;;  %2154 = vmatprep.subr.bf16.mxu0 %v2466_v2  ;;  %v2471_v9 = vld [vmem:[%s3476_s4 + $0x18] sm:$0xff]   ;;  %v229_v11 = vsub.s32 1, %v2595_v8  ;;  %v2473_v12 = vld [vmem:[%s3476_s4 + $0x20] sm:$0xff]   ;;  %v225_v13 = vsub.s32 0, %v2595_v8  ;;  %v2475_v29 = vld [vmem:[%s3476_s4 + $0x28] sm:$0xff]   ;;  %v233_v50 = vsub.s32 2, %v2595_v8 }
   0x5   :  { %v63_v15 = vld [vmem:[%s3477_s0 + $0x120] sm:$0xff]  ;;  %v2476_v34 = vld [vmem:[%s3476_s4 + $0x70] sm:$0xff]   ;;  %v2478_v51 = vld [vmem:[%s3476_s4 + $0x78] sm:$0xff]   ;;  %v249_v55 = vsub.s32 6, %v2595_v8 }
   0x6   :  { %v68_v16 = vld [vmem:[%s3477_s0 + $0x144] sm:$0xff]  ;;  %v165_v18 = vunpack.c.l.bf16 %v63_v15  ;;  %v166_v19 = vunpack.c.h.bf16 %v63_v15  ;;  %v2477_v46 = vld [vmem:[%s3476_s4 + $0x30] sm:$0xff]   ;;  %v2479_v56 = vld [vmem:[%s3476_s4 + $0x38] sm:$0xff]  }
   0x7   :  { %2452 = vmatpush3.bf16.msra.mxu1 %v2467_v3  ;;  %2155 = vmatpush3.bf16.msra.mxu0 %v2467_v3  ;;  %v2620_v17 = vld [vmem:[%s3478_s1] sm:$0xff]  ;;  %v174_v20 = vunpack.c.l.bf16 %v68_v16  ;;  %v175_v21 = vunpack.c.h.bf16 %v68_v16  ;;  %v38_v5 = vld [vmem:[%s3477_s0 + $0x6c] sm:$0xff] }
   0x8   :  { %2445 = vmatprep.subr.bf16.mxu1 %v2468_v4  ;;  %2156 = vmatprep.subr.bf16.mxu0 %v2468_v4  ;;  %v2625_v22 = vld [vmem:[%s3479_s2] sm:$0xff]  ;;  %v2628_v23 = vrot.slane %v2620_v17, %v229_v11  ;;  %v2634_v25 = vrot.slane %v2620_v17, %v225_v13  ;;  %v33_v4 = vld [vmem:[%s3477_s0 + $0x48] sm:$0xff] }
   0x9   :  { %v2631_v24 = vrot.slane %v2625_v22, %v229_v11  ;;  %v2637_v26 = vrot.slane %v2625_v22, %v225_v13  ;;  %v23_v27 = vld [vmem:[%s3477_s0] sm:$0xff]  ;;  %v121_v11 = vunpack.c.h.bf16 %v38_v5  ;;  %v2697_v13 = vrot.slane %v2620_v17, %v233_v50 }
   0xa   :  { %v28_v28 = vld [vmem:[%s3477_s0 + $0x24] sm:$0xff]  ;;  %v93_v30 = vunpack.c.l.bf16 %v23_v27  ;;  %v94_v31 = vunpack.c.h.bf16 %v23_v27  ;;  %v341_v35 = vmul.f32 %v2628_v23, %v166_v19  ;;  %v350_v36 = vmul.f32 %v2628_v23, %v175_v21 }
   0xb   :  { %2453 = vmatpush3.bf16.msra.mxu1 %v2469_v6  ;;  %2157 = vmatpush3.bf16.msra.mxu0 %v2469_v6  ;;  %v102_v32 = vunpack.c.l.bf16 %v28_v28  ;;  %v103_v33 = vunpack.c.h.bf16 %v28_v28  ;;  %v340_v37 = vmul.f32 %v2634_v25, %v165_v18  ;;  %v349_v38 = vmul.f32 %v2634_v25, %v174_v20  ;;  %v2480_v63 = vld [vmem:[%s3476_s4 + $0xc0] sm:$0xff]   ;;  %v2484_v20 = vld [vmem:[%s3476_s4 + $0xc8] sm:$0xff]  }
   0xc   :  { %2446 = vmatprep.subr.bf16.mxu1 %v2470_v7  ;;  %2158 = vmatprep.subr.bf16.mxu0 %v2470_v7  ;;  %v269_v39 = vmul.f32 %v2628_v23, %v94_v31  ;;  %v268_v41 = vmul.f32 %v2634_v25, %v93_v30  ;;  %v516_v42 = vadd.f32 %v2631_v24, %v341_v35  ;;  %v2482_v1 = vld [vmem:[%s3476_s4 + $0x140] sm:$0xff]   ;;  %v112_v6 = vunpack.c.h.bf16 %v33_v4  ;;  %v2486_v30 = vld [vmem:[%s3476_s4 + $0x148] sm:$0xff]  }
   0xd   :  { %v278_v40 = vmul.f32 %v2628_v23, %v103_v33  ;;  %v525_v43 = vadd.f32 %v2631_v24, %v350_v36  ;;  %v515_v44 = vadd.f32 %v2637_v26, %v340_v37  ;;  %v277_v45 = vmul.f32 %v2634_v25, %v102_v32  ;;  %v2483_v16 = vld [vmem:[%s3476_s4 + $0x100] sm:$0xff]   ;;  %v73_v33 = vld [vmem:[%s3477_s0 + $0x168] sm:$0xff] }
   0xe   :  { %v524_v47 = vadd.f32 %v2637_v26, %v349_v38  ;;  %v444_v48 = vadd.f32 %v2631_v24, %v269_v39  ;;  %v642_v52 = vmax.f32 %v516_v42, 0.0  ;;  %v443_v54 = vadd.f32 %v2637_v26, %v268_v41  ;;  %v2485_v37 = vld [vmem:[%s3476_s4 + $0x88] sm:$0xff]  }
   0xf   :  { %2454 = vmatpush3.bf16.msra.mxu1 %v2471_v9  ;;  %2159 = vmatpush3.bf16.msra.mxu0 %v2471_v9  ;;  %v453_v49 = vadd.f32 %v2631_v24, %v278_v40  ;;  %v651_v53 = vmax.f32 %v525_v43, 0.0  ;;  %v641_v57 = vmax.f32 %v515_v44, 0.0  ;;  %v452_v60 = vadd.f32 %v2637_v26, %v277_v45 }
  0x10   :  { %2447 = vmatprep.subr.bf16.mxu1 %v2472_v10  ;;  %2160 = vmatprep.subr.bf16.mxu0 %v2472_v10  ;;  %v570_v58 = vmax.f32 %v444_v48, 0.0  ;;  %v650_v62 = vmax.f32 %v524_v47, 0.0  ;;  %v569_v0 = vmax.f32 %v443_v54, 0.0  ;;  %v111_v7 = vunpack.c.l.bf16 %v33_v4  ;;  %v2481_v10 = vld [vmem:[%s3476_s4 + $0x80] sm:$0xff]   ;;  %v2488_v47 = vld [vmem:[%s3476_s4 + $0xd0] sm:$0xff]  }
  0x11   :  { %v579_v59 = vmax.f32 %v453_v49, 0.0  ;;  %v732_v61 = vpack.c.bf16 %v651_v53, %v642_v52  ;;  %v578_v3 = vmax.f32 %v452_v60, 0.0  ;;  %v253_v9 = vsub.s32 7, %v2595_v8  ;;  %v2490_v60 = vld [vmem:[%s3476_s4 + $0x150] sm:$0xff]  }
  0x12   :  { %v287_v18 = vmul.f32 %v2628_v23, %v112_v6  ;;  %v286_v19 = vmul.f32 %v2634_v25, %v111_v7  ;;  %v296_v21 = vmul.f32 %v2628_v23, %v121_v11  ;;  %v237_v28 = vsub.s32 3, %v2595_v8  ;;  %v2492_v11 = vld [vmem:[%s3476_s4 + $0xd8] sm:$0xff]  }
  0x13   :  { %2455 = vmatpush3.bf16.msra.mxu1 %v2473_v12  ;;  %2161 = vmatpush3.bf16.msra.mxu0 %v2473_v12  ;;  %v696_v2 = vpack.c.bf16 %v579_v59, %v570_v58  ;;  %v120_v12 = vunpack.c.l.bf16 %v38_v5  ;;  %v695_v15 = vpack.c.bf16 %v578_v3, %v569_v0  ;;  %v241_v35 = vsub.s32 4, %v2595_v8  ;;  %v2489_v58 = vld [vmem:[%s3476_s4 + $0x90] sm:$0xff]  }
  0x14   :  { %2448 = vmatprep.subr.bf16.mxu1 %v2474_v14  ;;  %2162 = vmatprep.subr.bf16.mxu0 %v2474_v14  ;;  %v731_v14 = vpack.c.bf16 %v650_v62, %v641_v57  ;;  %v462_v31 = vadd.f32 %v2631_v24, %v287_v18  ;;  %v461_v32 = vadd.f32 %v2637_v26, %v286_v19  ;;  %v184_v40 = vunpack.c.h.bf16 %v73_v33  ;;  %v48_v0 = vld [vmem:[%s3477_s0 + $0xb4] sm:$0xff] }
  0x15   :  { %1398 = vmatprep.mubr.bf16.mxu1 %v732_v61  ;;  %1366 = vmatprep.mubr.bf16.mxu0 %v696_v2  ;;  %v295_v27 = vmul.f32 %v2634_v25, %v120_v12  ;;  %v2728_v36 = vrot.slane %v2620_v17, %v253_v9  ;;  %v471_v38 = vadd.f32 %v2631_v24, %v296_v21  ;;  %v183_v44 = vunpack.c.l.bf16 %v73_v33 }
  0x16   :  { %v588_v42 = vmax.f32 %v462_v31, 0.0  ;;  %v587_v43 = vmax.f32 %v461_v32, 0.0  ;;  %v139_v5 = vunpack.c.h.bf16 %v48_v0  ;;  %v2495_v32 = vld [vmem:[%s3476_s4 + $0x118] sm:$0xff]  }
  0x17   :  { %2456 = vmatpush3.bf16.msra.mxu1 %v2475_v29  ;;  %2163 = vmatpush3.bf16.msra.mxu0 %v2475_v29  ;;  %v2713_v29 = vrot.slane %v2620_v17, %v249_v55  ;;  %v470_v39 = vadd.f32 %v2637_v26, %v295_v27  ;;  %v597_v48 = vmax.f32 %v471_v38, 0.0  ;;  %v358_v53 = vmul.f32 %v2634_v25, %v183_v44  ;;  %v88_v38 = vld [vmem:[%s3477_s0 + $0x1d4] sm:$0xff] }
  0x18   :  { %2449 = vmatprep.subr.bf16.mxu1 %v2476_v34  ;;  %2164 = vmatprep.subr.bf16.mxu0 %v2476_v34  ;;  %v78_v34 = vld [vmem:[%s3477_s0 + $0x18c] sm:$0xff]  ;;  %v314_v18 = vmul.f32 %v2628_v23, %v139_v5 }
  0x19   :  { %v193_v41 = vunpack.c.h.bf16 %v78_v34  ;;  %v192_v45 = vunpack.c.l.bf16 %v78_v34  ;;  %v596_v49 = vmax.f32 %v470_v39, 0.0  ;;  %v705_v57 = vpack.c.bf16 %v597_v48, %v588_v42  ;;  %v2496_v39 = vld [vmem:[%s3476_s4 + $0xe0] sm:$0xff]  }
  0x1a   :  { %v533_v2 = vadd.f32 %v2637_v26, %v358_v53  ;;  %v489_v34 = vadd.f32 %v2631_v24, %v314_v18  ;;  %v2497_v48 = vld [vmem:[%s3476_s4 + $0xa0] sm:$0xff]  }
  0x1b   :  { %2457 = vmatpush3.bf16.msra.mxu1 %v2477_v46  ;;  %2165 = vmatpush3.bf16.msra.mxu0 %v2477_v46  ;;  %v2487_v46 = vld [vmem:[%s3476_s4 + $0x108] sm:$0xff]   ;;  %v368_v52 = vmul.f32 %v2628_v23, %v193_v41  ;;  %v367_v54 = vmul.f32 %v2634_v25, %v192_v45  ;;  %v704_v59 = vpack.c.bf16 %v596_v49, %v587_v43  ;;  %v211_v43 = vunpack.c.h.bf16 %v88_v38  ;;  %v2499_v53 = vld [vmem:[%s3476_s4 + $0x120] sm:$0xff]  }
  0x1c   :  { %2450 = vmatprep.subr.bf16.mxu1 %v2478_v51  ;;  %2166 = vmatprep.subr.bf16.mxu0 %v2478_v51  ;;  %v359_v51 = vmul.f32 %v2628_v23, %v184_v40  ;;  %v659_v12 = vmax.f32 %v533_v2, 0.0  ;;  %v615_v45 = vmax.f32 %v489_v34, 0.0  ;;  %v53_v2 = vld [vmem:[%s3477_s0 + $0xd8] sm:$0xff] }
  0x1d   :  { %v543_v62 = vadd.f32 %v2631_v24, %v368_v52  ;;  %v542_v3 = vadd.f32 %v2637_v26, %v367_v54  ;;  %v2498_v52 = vld [vmem:[%s3476_s4 + $0x160] sm:$0xff]  }
  0x1e   :  { %v534_v61 = vadd.f32 %v2631_v24, %v359_v51 }
  0x1f   :  { %2458 = vmatpush3.bf16.msra.mxu1 %v2479_v56  ;;  %2167 = vmatpush3.bf16.msra.mxu0 %v2479_v56  ;;  %v2746_v56 = vrot.slane %v2625_v22, %v253_v9  ;;  %v669_v7 = vmax.f32 %v543_v62, 0.0 }
  0x20   :  { %2210 = vmatprep.subr.bf16.mxu1 %v2480_v63  ;;  %2268 = vmatprep.subr.bf16.mxu0 %v2482_v1  ;;  %v43_v63 = vld [vmem:[%s3477_s0 + $0x90] sm:$0xff]  ;;  %v660_v6 = vmax.f32 %v534_v61, 0.0  ;;  %v2822_v61 = vrot.slane %v2625_v22, %v237_v28 }
  0x21   :  { %v2491_v1 = vld [vmem:[%s3476_s4 + $0x110] sm:$0xff]   ;;  %v130_v4 = vunpack.c.h.bf16 %v43_v63  ;;  %v129_v9 = vunpack.c.l.bf16 %v43_v63  ;;  %v2500_v63 = vld [vmem:[%s3476_s4 + $0xe8] sm:$0xff]  }
  0x22   :  { %1399 = vmatmul.mubr.bf16.vlgmr.msra.gmra.mrb[0].mxu1 %v731_v14  ;;  %1367 = vmatmul.mubr.bf16.vlgmr.msra.gmra.mrb[0].mxu0 %v695_v15  ;;  %v668_v14 = vmax.f32 %v542_v3, 0.0  ;;  %v2494_v15 = vld [vmem:[%s3476_s4 + $0x158] sm:$0xff]   ;;  %v741_v19 = vpack.c.bf16 %v669_v7, %v660_v6  ;;  %v245_v3 = vsub.s32 5, %v2595_v8  ;;  %v2502_v6 = vld [vmem:[%s3476_s4 + $0x168] sm:$0xff]   ;;  %v148_v7 = vunpack.c.h.bf16 %v53_v2 }
  0x23   :  { %2211 = vmatpush3.bf16.msra.mxu1 %v2481_v10  ;;  %2269 = vmatpush3.bf16.msra.mxu0 %v2483_v16  ;;  %v138_v10 = vunpack.c.l.bf16 %v48_v0  ;;  %v305_v16 = vmul.f32 %v2628_v23, %v130_v4  ;;  %v304_v21 = vmul.f32 %v2634_v25, %v129_v9 }
  0x24   :  { %2212 = vmatprep.subr.bf16.mxu1 %v2484_v20  ;;  %2270 = vmatprep.subr.bf16.mxu0 %v2486_v30  ;;  %v2493_v20 = vld [vmem:[%s3476_s4 + $0x98] sm:$0xff]   ;;  %v2783_v30 = vrot.slane %v2625_v22, %v249_v55  ;;  %v740_v31 = vpack.c.bf16 %v668_v14, %v659_v12  ;;  %v2799_v55 = vrot.slane %v2620_v17, %v237_v28  ;;  %v2501_v12 = vld [vmem:[%s3476_s4 + $0xa8] sm:$0xff]   ;;  %v147_v14 = vunpack.c.l.bf16 %v53_v2 }
  0x25   :  { %1374 = vmatprep.mubr.bf16.mxu0 %v705_v57  ;;  %v313_v27 = vmul.f32 %v2634_v25, %v138_v10  ;;  %v480_v33 = vadd.f32 %v2631_v24, %v305_v16  ;;  %v479_v40 = vadd.f32 %v2637_v26, %v304_v21  ;;  %1406 = vmatprep.mubr.bf16.mxu1 %v741_v19  ;;  %v58_v28 = vld [vmem:[%s3477_s0 + $0xfc] sm:$0xff]  ;;  %v2503_v19 = vld [vmem:[%s3476_s4 + $0x128] sm:$0xff]  }
  0x26   :  { %v386_v57 = vmul.f32 %v2628_v23, %v211_v43  ;;  %v157_v9 = vunpack.c.h.bf16 %v58_v28  ;;  %v323_v21 = vmul.f32 %v2628_v23, %v148_v7  ;;  %v2507_v43 = vld [vmem:[%s3476_s4 + $0x130] sm:$0xff]   ;;  %v2909_v2 = vrot.slane %v2625_v22, %v241_v35 }
  0x27   :  { %2213 = vmatpush3.bf16.msra.mxu1 %v2485_v37  ;;  %2271 = vmatpush3.bf16.msra.mxu0 %v2487_v46  ;;  %v83_v37 = vld [vmem:[%s3477_s0 + $0x1b0] sm:$0xff]  ;;  %v488_v41 = vadd.f32 %v2637_v26, %v313_v27  ;;  %v606_v44 = vmax.f32 %v480_v33, 0.0  ;;  %v605_v49 = vmax.f32 %v479_v40, 0.0 }
  0x28   :  { %2214 = vmatprep.subr.bf16.mxu1 %v2488_v47  ;;  %2272 = vmatprep.subr.bf16.mxu0 %v2490_v60  ;;  %v202_v42 = vunpack.c.h.bf16 %v83_v37  ;;  %v201_v46 = vunpack.c.l.bf16 %v83_v37  ;;  %v210_v47 = vunpack.c.l.bf16 %v88_v38  ;;  %v332_v27 = vmul.f32 %v2628_v23, %v157_v9 }
  0x29   :  { %v614_v51 = vmax.f32 %v488_v41, 0.0  ;;  %v498_v37 = vadd.f32 %v2631_v24, %v323_v21  ;;  %v2867_v41 = vrot.slane %v2625_v22, %v233_v50  ;;  %v2881_v50 = vrot.slane %v2620_v17, %v241_v35 }
  0x2a   :  { %1375 = vmatmul.mubr.bf16.gmra.mrb[4].mxu0 %v704_v59  ;;  %1407 = vmatmul.mubr.bf16.gmra.mrb[4].mxu1 %v740_v31  ;;  %v377_v54 = vmul.f32 %v2628_v23, %v202_v42  ;;  %v376_v59 = vmul.f32 %v2634_v25, %v201_v46  ;;  %v385_v60 = vmul.f32 %v2634_v25, %v210_v47  ;;  %v2505_v23 = vld [vmem:[%s3476_s4 + $0xb0] sm:$0xff]   ;;  %v2536_v46 = vmov 0  }
  0x2b   :  { %2215 = vmatpush3.bf16.msra.mxu1 %v2489_v58  ;;  %2273 = vmatpush3.bf16.msra.mxu0 %v2491_v1  ;;  %v714_v58 = vpack.c.bf16 %v615_v45, %v606_v44  ;;  %v713_v62 = vpack.c.bf16 %v614_v51, %v605_v49  ;;  %v561_v1 = vadd.f32 %v2631_v24, %v386_v57  ;;  %v24_v44 = vld [vmem:[%s3477_s0 + $0x8] sm:$0xff] }
  0x2c   :  { %2216 = vmatprep.subr.bf16.mxu1 %v2492_v11  ;;  %2274 = vmatprep.subr.bf16.mxu0 %v2494_v15  ;;  %v552_v0 = vadd.f32 %v2631_v24, %v377_v54  ;;  %v551_v4 = vadd.f32 %v2637_v26, %v376_v59  ;;  %v560_v5 = vadd.f32 %v2637_v26, %v385_v60  ;;  %v156_v15 = vunpack.c.l.bf16 %v58_v28  ;;  %v2509_v59 = vld [vmem:[%s3476_s4 + $0xb8] sm:$0xff]  }
  0x2d   :  { %1382 = vmatprep.mubr.bf16.mxu0 %v714_v58  ;;  %v687_v11 = vmax.f32 %v561_v1, 0.0  ;;  %v507_v38 = vadd.f32 %v2631_v24, %v332_v27  ;;  %v624_v24 = vmax.f32 %v498_v37, 0.0  ;;  %v2884_v45 = vrot.slane %v2620_v17, %v245_v3  ;;  %2462 = vset.pattern.permute.xlu0 %v2536_v46  ;;  %v2510_v60 = vld [vmem:[%s3476_s4 + $0x178] sm:$0xff]  }
  0x2e   :  { %v678_v10 = vmax.f32 %v552_v0, 0.0  ;;  %v677_v16 = vmax.f32 %v551_v4, 0.0  ;;  %v686_v18 = vmax.f32 %v560_v5, 0.0  ;;  %v331_v33 = vmul.f32 %v2634_v25, %v156_v15  ;;  %v25_v0 = vld [vmem:[%s3477_s0 + $0x10] sm:$0xff]  ;;  %2463 = vset.pattern.permute.xlu1 %v2536_v46  ;;  %v2511_v4 = vld [vmem:[%s3476_s4 + $0x138] sm:$0xff]  }
  0x2f   :  { %2217 = vmatpush3.bf16.msra.mxu1 %v2493_v20  ;;  %2275 = vmatpush3.bf16.msra.mxu0 %v2495_v32  ;;  %v2504_v20 = vld [vmem:[%s3476_s4 + $0xf0] sm:$0xff]   ;;  %v322_v32 = vmul.f32 %v2634_v25, %v147_v14  ;;  %v633_v42 = vmax.f32 %v507_v38, 0.0  ;;  %v95_v49 = vunpack.c.l.bf16 %v24_v44  ;;  %v96_v51 = vunpack.c.h.bf16 %v24_v44 }
  0x30   :  { %2218 = vmatprep.subr.bf16.mxu1 %v2496_v39  ;;  %2276 = vmatprep.subr.bf16.mxu0 %v2498_v52  ;;  %v750_v31 = vpack.c.bf16 %v687_v11, %v678_v10  ;;  %v749_v34 = vpack.c.bf16 %v686_v18, %v677_v16  ;;  %v2506_v39 = vld [vmem:[%s3476_s4 + $0x170] sm:$0xff]   ;;  %v506_v25 = vadd.f32 %v2637_v26, %v331_v33  ;;  %v97_v5 = vunpack.c.l.bf16 %v25_v0 }
  0x31   :  { %v497_v40 = vadd.f32 %v2637_v26, %v322_v32  ;;  %v29_v26 = vld [vmem:[%s3477_s0 + $0x2c] sm:$0xff]  ;;  %v723_v52 = vpack.c.bf16 %v633_v42, %v624_v24  ;;  %v2890_v17 = vrot.slane %v2625_v22, %v245_v3  ;;  %v30_v1 = vld [vmem:[%s3477_s0 + $0x34] sm:$0xff]  ;;  %v2512_v22 = vld [vmem:[%s3476_s4 + $0x1c0] sm:$0xff]   ;;  %v2537_v46 = vmov 0.0  }
  0x32   :  { %1383 = vmatmul.mubr.bf16.gmra.mrb[8].mxu0 %v713_v62  ;;  %1414 = vmatprep.mubr.bf16.mxu1 %v750_v31  ;;  %v104_v54 = vunpack.c.l.bf16 %v29_v26  ;;  %v105_v57 = vunpack.c.h.bf16 %v29_v26  ;;  %v270_v62 = vmul.f32 %v2697_v13, %v95_v49  ;;  %v106_v35 = vunpack.c.l.bf16 %v30_v1  ;;  %v34_v14 = vld [vmem:[%s3477_s0 + $0x50] sm:$0xff]  ;;  %v2515_v49 = vld [vmem:[%s3476_s4 + $0x1c8] sm:$0xff]  }
  0x33   :  { %2219 = vmatpush3.bf16.msra.mxu1 %v2497_v48  ;;  %2277 = vmatpush3.bf16.msra.mxu0 %v2499_v53  ;;  %v623_v47 = vmax.f32 %v497_v40, 0.0  ;;  %v632_v48 = vmax.f32 %v506_v25, 0.0  ;;  %v2508_v53 = vld [vmem:[%s3476_s4 + $0xf8] sm:$0xff]   ;;  %v107_v9 = vunpack.c.h.bf16 %v30_v1  ;;  %v114_v38 = vunpack.c.h.bf16 %v34_v14 }
  0x34   :  { %2220 = vmatprep.subr.bf16.mxu1 %v2500_v63  ;;  %2278 = vmatprep.subr.bf16.mxu0 %v2502_v6  ;;  %v271_v63 = vmul.f32 %v2799_v55, %v96_v51  ;;  %v279_v28 = vmul.f32 %v2697_v13, %v104_v54  ;;  %v280_v3 = vmul.f32 %v2799_v55, %v105_v57  ;;  %v98_v6 = vunpack.c.h.bf16 %v25_v0  ;;  %v39_v15 = vld [vmem:[%s3477_s0 + $0x74] sm:$0xff] }
  0x35   :  { %1415 = vmatmul.mubr.bf16.gmra.mrb[8].mxu1 %v749_v34  ;;  %v722_v58 = vpack.c.bf16 %v632_v48, %v623_v47  ;;  %1390 = vmatprep.mubr.bf16.mxu0 %v723_v52  ;;  %v445_v8 = vadd.f32 %v2867_v41, %v270_v62  ;;  %v282_v31 = vmul.f32 %v2884_v45, %v107_v9  ;;  %v2513_v34 = vld [vmem:[%s3476_s4 + $0x180] sm:$0xff]   ;;  %v113_v52 = vunpack.c.l.bf16 %v34_v14  ;;  %v2516_v62 = vld [vmem:[%s3476_s4 + $0x188] sm:$0xff]  }
  0x36   :  { %v446_v7 = vadd.f32 %v2822_v61, %v271_v63  ;;  %v455_v10 = vadd.f32 %v2822_v61, %v280_v3  ;;  %v454_v11 = vadd.f32 %v2867_v41, %v279_v28  ;;  %v289_v47 = vmul.f32 %v2799_v55, %v114_v38 }
  0x37   :  { %2221 = vmatpush3.bf16.msra.mxu1 %v2501_v12  ;;  %2279 = vmatpush3.bf16.msra.mxu0 %v2503_v19  ;;  %v272_v12 = vmul.f32 %v2881_v50, %v97_v5  ;;  %v571_v18 = vmax.f32 %v445_v8, 0.0  ;;  %v273_v19 = vmul.f32 %v2884_v45, %v98_v6  ;;  %v457_v24 = vadd.f32 %v2890_v17, %v282_v31  ;;  %v44_v5 = vld [vmem:[%s3477_s0 + $0x98] sm:$0xff]  ;;  %v2517_v31 = vld [vmem:[%s3476_s4 + $0x208] sm:$0xff]  }
  0x38   :  { %2222 = vmatprep.subr.bf16.mxu1 %v2504_v20  ;;  %2280 = vmatprep.subr.bf16.mxu0 %v2506_v39  ;;  %v572_v16 = vmax.f32 %v446_v7, 0.0  ;;  %v281_v20 = vmul.f32 %v2881_v50, %v106_v35  ;;  %v581_v21 = vmax.f32 %v455_v10, 0.0  ;;  %v580_v27 = vmax.f32 %v454_v11, 0.0 }
  0x39   :  { %v447_v32 = vadd.f32 %v2909_v2, %v272_v12  ;;  %v448_v33 = vadd.f32 %v2890_v17, %v273_v19  ;;  %v123_v39 = vunpack.c.h.bf16 %v39_v15  ;;  %v583_v51 = vmax.f32 %v457_v24, 0.0  ;;  %v49_v12 = vld [vmem:[%s3477_s0 + $0xbc] sm:$0xff] }
  0x3a   :  { %1391 = vmatmul.mubr.bf16.gmra.mrb[12].mxu0 %v722_v58  ;;  %v456_v37 = vadd.f32 %v2909_v2, %v281_v20  ;;  %v698_v40 = vpack.c.bf16 %v581_v21, %v572_v16  ;;  %v697_v25 = vpack.c.bf16 %v580_v27, %v571_v18  ;;  %v2514_v58 = vld [vmem:[%s3476_s4 + $0x200] sm:$0xff]   ;;  %v288_v1 = vmul.f32 %v2697_v13, %v113_v52 }
  0x3b   :  { %2223 = vmatpush3.bf16.msra.mxu1 %v2505_v23  ;;  %2281 = vmatpush3.bf16.msra.mxu0 %v2507_v43  ;;  %v35_v23 = vld [vmem:[%s3477_s0 + $0x58] sm:$0xff]  ;;  %v573_v42 = vmax.f32 %v447_v32, 0.0  ;;  %v574_v44 = vmax.f32 %v448_v33, 0.0  ;;  %v298_v48 = vmul.f32 %v2799_v55, %v123_v39  ;;  %v132_v18 = vunpack.c.h.bf16 %v44_v5  ;;  %v2519_v32 = vld [vmem:[%s3476_s4 + $0x190] sm:$0xff]   ;;  %v45_v33 = vld [vmem:[%s3477_s0 + $0xa0] sm:$0xff] }
  0x3c   :  { %2224 = vmatprep.subr.bf16.mxu1 %v2508_v53  ;;  %2282 = vmatprep.subr.bf16.mxu0 %v2510_v60  ;;  %v40_v43 = vld [vmem:[%s3477_s0 + $0x7c] sm:$0xff]  ;;  %v582_v26 = vmax.f32 %v456_v37, 0.0  ;;  %v122_v53 = vunpack.c.l.bf16 %v39_v15  ;;  %v116_v54 = vunpack.c.h.bf16 %v35_v23  ;;  %v463_v35 = vadd.f32 %v2867_v41, %v288_v1 }
  0x3d   :  { %1455 = vmatprep.mubr.bf16.mxu1 %v698_v40  ;;  %v473_v60 = vadd.f32 %v2822_v61, %v298_v48  ;;  %v125_v63 = vunpack.c.h.bf16 %v40_v43  ;;  %v700_v0 = vpack.c.bf16 %v583_v51, %v574_v44  ;;  %v124_v11 = vunpack.c.l.bf16 %v40_v43  ;;  %v2521_v48 = vld [vmem:[%s3476_s4 + $0x1d8] sm:$0xff]  }
  0x3e   :  { %v699_v57 = vpack.c.bf16 %v582_v26, %v573_v42  ;;  %v297_v28 = vmul.f32 %v2697_v13, %v122_v53  ;;  %v291_v3 = vmul.f32 %v2884_v45, %v116_v54  ;;  %v589_v19 = vmax.f32 %v463_v35, 0.0  ;;  %v2520_v54 = vld [vmem:[%s3476_s4 + $0x210] sm:$0xff]  }
  0x3f   :  { %2225 = vmatpush3.bf16.msra.mxu1 %v2509_v59  ;;  %2283 = vmatpush3.bf16.msra.mxu0 %v2511_v4  ;;  %v464_v59 = vadd.f32 %v2822_v61, %v289_v47  ;;  %v2518_v4 = vld [vmem:[%s3476_s4 + $0x1d0] sm:$0xff]   ;;  %v599_v7 = vmax.f32 %v473_v60, 0.0  ;;  %v300_v8 = vmul.f32 %v2884_v45, %v125_v63  ;;  %v299_v27 = vmul.f32 %v2881_v50, %v124_v11  ;;  %v54_v63 = vld [vmem:[%s3477_s0 + $0xe0] sm:$0xff] }
  0x40   :  { %2326 = vmatprep.subr.bf16.mxu1 %v2512_v22  ;;  %2399 = vmatprep.subr.bf16.mxu0 %v2537_v46  ;;  %v115_v22 = vunpack.c.l.bf16 %v35_v23  ;;  %v472_v9 = vadd.f32 %v2867_v41, %v297_v28  ;;  %v466_v10 = vadd.f32 %v2890_v17, %v291_v3  ;;  %v141_v38 = vunpack.c.h.bf16 %v49_v12  ;;  %v50_v23 = vld [vmem:[%s3477_s0 + $0xc4] sm:$0xff] }
  0x41   :  { %v590_v6 = vmax.f32 %v464_v59, 0.0  ;;  %1544 = vmatprep.mubr.bf16.mxu0 %v700_v0  ;;  %v475_v15 = vadd.f32 %v2890_v17, %v300_v8  ;;  %v307_v39 = vmul.f32 %v2799_v55, %v132_v18  ;;  %v131_v24 = vunpack.c.l.bf16 %v44_v5 }
  0x42   :  { %1456 = vmatmul.mubr.bf16.vlgmr.msra.gmra.mrb[12].mxu1 %v697_v25  ;;  %1545 = vmatmul.mubr.bf16.vlgmr.msra.gmra.mrb[16].mxu0 %v699_v57  ;;  %v290_v16 = vmul.f32 %v2881_v50, %v115_v22  ;;  %v598_v20 = vmax.f32 %v472_v9, 0.0  ;;  %v592_v21 = vmax.f32 %v466_v10, 0.0  ;;  %v474_v25 = vadd.f32 %v2909_v2, %v299_v27  ;;  %v2522_v57 = vld [vmem:[%s3476_s4 + $0x198] sm:$0xff]   ;;  %v2524_v22 = vld [vmem:[%s3476_s4 + $0x1e0] sm:$0xff]  }
  0x43   :  { %2327 = vmatpush3.bf16.msra.mxu1 %v2513_v34  ;;  %v707_v14 = vpack.c.bf16 %v599_v7, %v590_v6  ;;  %2400 = vmatpush3.bf16.msra.mxu0 %v2514_v58  ;;  %v601_v34 = vmax.f32 %v475_v15, 0.0  ;;  %v140_v42 = vunpack.c.l.bf16 %v49_v12  ;;  %v316_v26 = vmul.f32 %v2799_v55, %v141_v38  ;;  %v55_v12 = vld [vmem:[%s3477_s0 + $0xe8] sm:$0xff] }
  0x44   :  { %2328 = vmatprep.subr.bf16.mxu1 %v2515_v49  ;;  %v465_v37 = vadd.f32 %v2909_v2, %v290_v16  ;;  %2401 = vmatprep.subr.bf16.mxu0 %v2537_v46  ;;  %v706_v40 = vpack.c.bf16 %v598_v20, %v589_v19  ;;  %v482_v47 = vadd.f32 %v2822_v61, %v307_v39  ;;  %v600_v49 = vmax.f32 %v474_v25, 0.0  ;;  %v2523_v20 = vld [vmem:[%s3476_s4 + $0x218] sm:$0xff]  }
  0x45   :  { %1463 = vmatprep.mubr.bf16.mxu1 %v707_v14  ;;  %v709_v43 = vpack.c.bf16 %v601_v34, %v592_v21  ;;  %v306_v51 = vmul.f32 %v2697_v13, %v131_v24  ;;  %v315_v52 = vmul.f32 %v2697_v13, %v140_v42  ;;  %v134_v53 = vunpack.c.h.bf16 %v45_v33  ;;  %v60_v14 = vld [vmem:[%s3477_s0 + $0x10c] sm:$0xff] }
  0x46   :  { %v591_v44 = vmax.f32 %v465_v37, 0.0  ;;  %v491_v58 = vadd.f32 %v2822_v61, %v316_v26  ;;  %v608_v59 = vmax.f32 %v482_v47, 0.0  ;;  %v143_v60 = vunpack.c.h.bf16 %v50_v23 }
  0x47   :  { %2329 = vmatpush3.bf16.msra.mxu1 %v2516_v62  ;;  %2402 = vmatpush3.bf16.msra.mxu0 %v2517_v31  ;;  %v133_v62 = vunpack.c.l.bf16 %v45_v33  ;;  %v481_v1 = vadd.f32 %v2867_v41, %v306_v51  ;;  %v490_v28 = vadd.f32 %v2867_v41, %v315_v52  ;;  %v309_v3 = vmul.f32 %v2884_v45, %v134_v53  ;;  %v2525_v33 = vld [vmem:[%s3476_s4 + $0x1a0] sm:$0xff]  }
  0x48   :  { %2330 = vmatprep.subr.bf16.mxu1 %v2518_v4  ;;  %1552 = vmatprep.mubr.bf16.mxu0 %v709_v43  ;;  %v708_v0 = vpack.c.bf16 %v600_v49, %v591_v44  ;;  %v59_v4 = vld [vmem:[%s3477_s0 + $0x104] sm:$0xff]  ;;  %v617_v5 = vmax.f32 %v491_v58, 0.0  ;;  %v318_v6 = vmul.f32 %v2884_v45, %v143_v60  ;;  %v142_v7 = vunpack.c.l.bf16 %v50_v23 }
  0x49   :  { %2403 = vmatprep.subr.bf16.mxu0 %v2537_v46  ;;  %v308_v8 = vmul.f32 %v2881_v50, %v133_v62  ;;  %v607_v35 = vmax.f32 %v481_v1, 0.0  ;;  %v616_v9 = vmax.f32 %v490_v28, 0.0  ;;  %v484_v10 = vadd.f32 %v2890_v17, %v309_v3  ;;  %v2527_v23 = vld [vmem:[%s3476_s4 + $0x1e8] sm:$0xff]  }
  0x4a   :  { %1464 = vmatmul.mubr.bf16.gmra.mrb[16].mxu1 %v706_v40  ;;  %1553 = vmatmul.mubr.bf16.gmra.mrb[20].mxu0 %v708_v0  ;;  %v150_v11 = vunpack.c.h.bf16 %v54_v63  ;;  %v716_v15 = vpack.c.bf16 %v617_v5, %v608_v59  ;;  %v493_v16 = vadd.f32 %v2890_v17, %v318_v6  ;;  %v317_v18 = vmul.f32 %v2881_v50, %v142_v7 }
  0x4b   :  { %2331 = vmatpush3.bf16.msra.mxu1 %v2519_v32  ;;  %v483_v19 = vadd.f32 %v2909_v2, %v308_v8  ;;  %2404 = vmatpush3.bf16.msra.mxu0 %v2520_v54  ;;  %v715_v21 = vpack.c.bf16 %v616_v9, %v607_v35  ;;  %v610_v27 = vmax.f32 %v484_v10, 0.0  ;;  %v159_v31 = vunpack.c.h.bf16 %v59_v4  ;;  %v2526_v54 = vld [vmem:[%s3476_s4 + $0x220] sm:$0xff]  }
  0x4c   :  { %2332 = vmatprep.subr.bf16.mxu1 %v2521_v48  ;;  %v325_v32 = vmul.f32 %v2799_v55, %v150_v11  ;;  %2405 = vmatprep.subr.bf16.mxu0 %v2537_v46  ;;  %v619_v34 = vmax.f32 %v493_v16, 0.0  ;;  %v492_v37 = vadd.f32 %v2909_v2, %v317_v18  ;;  %v149_v39 = vunpack.c.l.bf16 %v54_v63  ;;  %v64_v48 = vld [vmem:[%s3477_s0 + $0x128] sm:$0xff]  ;;  %v2530_v63 = vld [vmem:[%s3476_s4 + $0x1f0] sm:$0xff]  }
  0x4d   :  { %1471 = vmatprep.mubr.bf16.mxu1 %v716_v15  ;;  %v609_v38 = vmax.f32 %v483_v19, 0.0  ;;  %v334_v40 = vmul.f32 %v2799_v55, %v159_v31  ;;  %v158_v24 = vunpack.c.l.bf16 %v59_v4  ;;  %v152_v42 = vunpack.c.h.bf16 %v55_v12  ;;  %v69_v4 = vld [vmem:[%s3477_s0 + $0x14c] sm:$0xff] }
  0x4e   :  { %v500_v25 = vadd.f32 %v2822_v61, %v325_v32  ;;  %v718_v43 = vpack.c.bf16 %v619_v34, %v610_v27  ;;  %v618_v44 = vmax.f32 %v492_v37, 0.0  ;;  %v324_v26 = vmul.f32 %v2697_v13, %v149_v39  ;;  %v2529_v11 = vld [vmem:[%s3476_s4 + $0x228] sm:$0xff]   ;;  %v65_v18 = vld [vmem:[%s3477_s0 + $0x130] sm:$0xff]  ;;  %v2533_v39 = vld [vmem:[%s3476_s4 + $0x1f8] sm:$0xff]  }
  0x4f   :  { %2333 = vmatpush3.bf16.msra.mxu1 %v2522_v57  ;;  %v161_v47 = vunpack.c.h.bf16 %v60_v14  ;;  %2406 = vmatpush3.bf16.msra.mxu0 %v2523_v20  ;;  %v509_v49 = vadd.f32 %v2822_v61, %v334_v40  ;;  %v333_v52 = vmul.f32 %v2697_v13, %v158_v24  ;;  %v327_v53 = vmul.f32 %v2884_v45, %v152_v42  ;;  %v2528_v57 = vld [vmem:[%s3476_s4 + $0x1a8] sm:$0xff]   ;;  %v2531_v19 = vld [vmem:[%s3476_s4 + $0x1b0] sm:$0xff]  }
  0x50   :  { %2334 = vmatprep.subr.bf16.mxu1 %v2524_v22  ;;  %v626_v51 = vmax.f32 %v500_v25, 0.0  ;;  %2407 = vmatprep.subr.bf16.mxu0 %v2537_v46  ;;  %v717_v58 = vpack.c.bf16 %v618_v44, %v609_v38  ;;  %v499_v59 = vadd.f32 %v2867_v41, %v324_v26  ;;  %v151_v62 = vunpack.c.l.bf16 %v55_v12  ;;  %v70_v32 = vld [vmem:[%s3477_s0 + $0x154] sm:$0xff] }
  0x51   :  { %1560 = vmatprep.mubr.bf16.mxu0 %v718_v43  ;;  %v336_v60 = vmul.f32 %v2884_v45, %v161_v47  ;;  %v635_v0 = vmax.f32 %v509_v49, 0.0  ;;  %v508_v1 = vadd.f32 %v2867_v41, %v333_v52  ;;  %v502_v28 = vadd.f32 %v2890_v17, %v327_v53  ;;  %v74_v47 = vld [vmem:[%s3477_s0 + $0x170] sm:$0xff] }
  0x52   :  { %1472 = vmatmul.mubr.bf16.gmra.mrb[20].mxu1 %v715_v21  ;;  %v160_v3 = vunpack.c.l.bf16 %v60_v14  ;;  %1561 = vmatmul.mubr.bf16.gmra.mrb[24].mxu0 %v717_v58  ;;  %v625_v5 = vmax.f32 %v499_v59, 0.0  ;;  %v326_v7 = vmul.f32 %v2881_v50, %v151_v62  ;;  %v168_v8 = vunpack.c.h.bf16 %v64_v48  ;;  %v79_v62 = vld [vmem:[%s3477_s0 + $0x194] sm:$0xff] }
  0x53   :  { %2335 = vmatpush3.bf16.msra.mxu1 %v2525_v33  ;;  %v511_v6 = vadd.f32 %v2890_v17, %v336_v60  ;;  %v725_v22 = vpack.c.bf16 %v635_v0, %v626_v51  ;;  %v634_v35 = vmax.f32 %v508_v1, 0.0  ;;  %v628_v9 = vmax.f32 %v502_v28, 0.0  ;;  %2408 = vmatpush3.bf16.msra.mxu0 %v2526_v54  ;;  %v2534_v54 = vld [vmem:[%s3476_s4 + $0x1b8] sm:$0xff]  }
  0x54   :  { %2336 = vmatprep.subr.bf16.mxu1 %v2527_v23  ;;  %v335_v10 = vmul.f32 %v2881_v50, %v160_v3  ;;  %v501_v14 = vadd.f32 %v2909_v2, %v326_v7  ;;  %v177_v15 = vunpack.c.h.bf16 %v69_v4  ;;  %v343_v16 = vmul.f32 %v2799_v55, %v168_v8  ;;  %2409 = vmatprep.subr.bf16.mxu0 %v2537_v46 }
  0x55   :  { %v637_v12 = vmax.f32 %v511_v6, 0.0  ;;  %1479 = vmatprep.mubr.bf16.mxu1 %v725_v22  ;;  %v724_v20 = vpack.c.bf16 %v634_v35, %v625_v5  ;;  %v167_v27 = vunpack.c.l.bf16 %v64_v48  ;;  %v176_v31 = vunpack.c.l.bf16 %v69_v4  ;;  %v2532_v48 = vld [vmem:[%s3476_s4 + $0x230] sm:$0xff]   ;;  %v75_v22 = vld [vmem:[%s3477_s0 + $0x178] sm:$0xff] }
  0x56   :  { %v510_v21 = vadd.f32 %v2909_v2, %v335_v10  ;;  %v627_v34 = vmax.f32 %v501_v14, 0.0  ;;  %v352_v37 = vmul.f32 %v2799_v55, %v177_v15  ;;  %v518_v38 = vadd.f32 %v2822_v61, %v343_v16  ;;  %v1851_v4 = vld [vmem:[%s3480_s3 + $0x10] sm:$0xff]  ;;  %v2535_v35 = vld [vmem:[%s3476_s4 + $0x238] sm:$0xff]  }
  0x57   :  { %2337 = vmatpush3.bf16.msra.mxu1 %v2528_v57  ;;  %v727_v33 = vpack.c.bf16 %v637_v12, %v628_v9  ;;  %v342_v40 = vmul.f32 %v2697_v13, %v167_v27  ;;  %v351_v25 = vmul.f32 %v2697_v13, %v176_v31  ;;  %v170_v24 = vunpack.c.h.bf16 %v65_v18  ;;  %2410 = vmatpush3.bf16.msra.mxu0 %v2529_v11  ;;  %v1850_v9 = vld [vmem:[%s3480_s3 + $0x8] sm:$0xff]  ;;  %v80_v15 = vld [vmem:[%s3477_s0 + $0x19c] sm:$0xff] }
  0x58   :  { %2338 = vmatprep.subr.bf16.mxu1 %v2530_v63  ;;  %v636_v23 = vmax.f32 %v510_v21, 0.0  ;;  %v527_v42 = vadd.f32 %v2822_v61, %v352_v37  ;;  %v644_v43 = vmax.f32 %v518_v38, 0.0  ;;  %v179_v44 = vunpack.c.h.bf16 %v70_v32  ;;  %2411 = vmatprep.subr.bf16.mxu0 %v2537_v46  ;;  %v1849_v63 = vld [vmem:[%s3480_s3] sm:$0xff] }
  0x59   :  { %1568 = vmatprep.mubr.bf16.mxu0 %v727_v33  ;;  %v169_v26 = vunpack.c.l.bf16 %v65_v18  ;;  %v517_v51 = vadd.f32 %v2867_v41, %v342_v40  ;;  %v526_v52 = vadd.f32 %v2867_v41, %v351_v25  ;;  %v345_v53 = vmul.f32 %v2884_v45, %v170_v24  ;;  %1865 = vperm.xlu0 %2462, %v1849_v63   ;;  %v1852_v33 = vld [vmem:[%s3480_s3 + $0x18] sm:$0xff]  ;;  %v1855_v63 = vld [vmem:[%s3480_s3 + $0x30] sm:$0xff] }
  0x5a   :  { %1480 = vmatmul.mubr.bf16.gmra.mrb[24].mxu1 %v724_v20  ;;  %v726_v49 = vpack.c.bf16 %v636_v23, %v627_v34  ;;  %v653_v57 = vmax.f32 %v527_v42, 0.0  ;;  %v354_v58 = vmul.f32 %v2884_v45, %v179_v44  ;;  %v178_v59 = vunpack.c.l.bf16 %v70_v32  ;;  %1875 = vperm.xlu1 %2463, %v1851_v4   ;;  %v1853_v23 = vld [vmem:[%s3480_s3 + $0x20] sm:$0xff] }
  0x5b   :  { %2339 = vmatpush3.bf16.msra.mxu1 %v2531_v19  ;;  %v344_v60 = vmul.f32 %v2881_v50, %v169_v26  ;;  %v643_v0 = vmax.f32 %v517_v51, 0.0  ;;  %v652_v1 = vmax.f32 %v526_v52, 0.0  ;;  %v520_v28 = vadd.f32 %v2890_v17, %v345_v53  ;;  %2412 = vmatpush3.bf16.msra.mxu0 %v2532_v48 }
  0x5c   :  { %2340 = vmatprep.subr.bf16.mxu1 %v2533_v39  ;;  %1569 = vmatmul.mubr.bf16.gmra.mrb[28].mxu0 %v726_v49  ;;  %v186_v3 = vunpack.c.h.bf16 %v74_v47  ;;  %v734_v5 = vpack.c.bf16 %v653_v57, %v644_v43  ;;  %v529_v6 = vadd.f32 %v2890_v17, %v354_v58  ;;  %v353_v7 = vmul.f32 %v2881_v50, %v178_v59  ;;  %v84_v43 = vld [vmem:[%s3477_s0 + $0x1b8] sm:$0xff]  ;;  %v1854_v57 = vld [vmem:[%s3480_s3 + $0x28] sm:$0xff] }
  0x5d   :  { %v519_v8 = vadd.f32 %v2909_v2, %v344_v60  ;;  %v733_v10 = vpack.c.bf16 %v652_v1, %v643_v0  ;;  %v646_v11 = vmax.f32 %v520_v28, 0.0  ;;  %v195_v12 = vunpack.c.h.bf16 %v79_v62  ;;  %2413 = vmatprep.subr.bf16.mxu0 %v2537_v46  ;;  %1870 = vperm.xlu0 %2462, %v1850_v9  }
  0x5e   :  { %v361_v14 = vmul.f32 %v2799_v55, %v186_v3  ;;  %1487 = vmatprep.mubr.bf16.mxu1 %v734_v5  ;;  %v655_v16 = vmax.f32 %v529_v6, 0.0  ;;  %v528_v18 = vadd.f32 %v2909_v2, %v353_v7  ;;  %v185_v20 = vunpack.c.l.bf16 %v74_v47  ;;  %1880 = vperm.xlu1 %2463, %v1852_v33  }
  0x5f   :  { %2341 = vmatpush3.bf16.msra.mxu1 %v2534_v54  ;;  %v645_v19 = vmax.f32 %v519_v8, 0.0  ;;  %v370_v21 = vmul.f32 %v2799_v55, %v195_v12  ;;  %v194_v31 = vunpack.c.l.bf16 %v79_v62  ;;  %v188_v32 = vunpack.c.h.bf16 %v75_v22  ;;  %2414 = vmatpush3.bf16.msra.mxu0 %v2535_v35  ;;  %v89_v54 = vld [vmem:[%s3477_s0 + $0x1dc] sm:$0xff] }
  0x60   :  { %v536_v27 = vadd.f32 %v2822_v61, %v361_v14  ;;  %v736_v34 = vpack.c.bf16 %v655_v16, %v646_v11  ;;  %v654_v37 = vmax.f32 %v528_v18, 0.0  ;;  %v360_v38 = vmul.f32 %v2697_v13, %v185_v20  ;;  %v85_v8 = vld [vmem:[%s3477_s0 + $0x1c0] sm:$0xff]  ;;  %v1856_v12 = vld [vmem:[%s3480_s3 + $0x38] sm:$0xff] }
  0x61   :  { %v197_v39 = vunpack.c.h.bf16 %v80_v15  ;;  %v545_v40 = vadd.f32 %v2822_v61, %v370_v21  ;;  %v369_v24 = vmul.f32 %v2697_v13, %v194_v31  ;;  %v363_v42 = vmul.f32 %v2884_v45, %v188_v32  ;;  %1885 = vperm.xlu0 %2462, %v1853_v23   ;;  %v90_v11 = vld [vmem:[%s3477_s0 + $0x1e4] sm:$0xff] }
  0x62   :  { %1488 = vmatmul.mubr.bf16.gmra.mrb[28].mxu1 %v733_v10  ;;  %v662_v25 = vmax.f32 %v536_v27, 0.0  ;;  %1576 = vmatprep.mubr.bf16.mxu0 %v736_v34  ;;  %v735_v44 = vpack.c.bf16 %v654_v37, %v645_v19  ;;  %v535_v26 = vadd.f32 %v2867_v41, %v360_v38  ;;  %v187_v48 = vunpack.c.l.bf16 %v75_v22  ;;  %v1857_v19 = vld [vmem:[%s3480_s3 + $0x40] sm:$0xff] }
  0x63   :  { %v372_v47 = vmul.f32 %v2884_v45, %v197_v39  ;;  %v671_v49 = vmax.f32 %v545_v40, 0.0  ;;  %v544_v51 = vadd.f32 %v2867_v41, %v369_v24  ;;  %v538_v52 = vadd.f32 %v2890_v17, %v363_v42  ;;  %1890 = vperm.xlu1 %2463, %v1854_v57  }
  0x64   :  { %v196_v53 = vunpack.c.l.bf16 %v80_v15  ;;  %1577 = vmatmul.mubr.bf16.gmra.mrb[32].mxu0 %v735_v44  ;;  %v661_v58 = vmax.f32 %v535_v26, 0.0  ;;  %v362_v60 = vmul.f32 %v2881_v50, %v187_v48  ;;  %v204_v62 = vunpack.c.h.bf16 %v84_v43 }
  0x65   :  { %v547_v59 = vadd.f32 %v2890_v17, %v372_v47  ;;  %v743_v0 = vpack.c.bf16 %v671_v49, %v662_v25  ;;  %v670_v1 = vmax.f32 %v544_v51, 0.0  ;;  %v664_v28 = vmax.f32 %v538_v52, 0.0  ;;  %1895 = vperm.xlu0 %2462, %v1855_v63  }
  0x66   :  { %v371_v3 = vmul.f32 %v2881_v50, %v196_v53  ;;  %v537_v5 = vadd.f32 %v2909_v2, %v362_v60  ;;  %v213_v6 = vunpack.c.h.bf16 %v89_v54  ;;  %v379_v7 = vmul.f32 %v2799_v55, %v204_v62  ;;  %v27_v53 = vld [vmem:[%s3477_s0 + $0x20] ss:$36 sps:$4 sm:$0xff]   ;;  %v1860_v60 = vld [vmem:[%s3480_s3 + $0x58] sm:$0xff] }
  0x67   :  { %v673_v4 = vmax.f32 %v547_v59, 0.0  ;;  %1495 = vmatprep.mubr.bf16.mxu1 %v743_v0  ;;  %v742_v22 = vpack.c.bf16 %v670_v1, %v661_v58  ;;  %v203_v9 = vunpack.c.l.bf16 %v84_v43  ;;  %v212_v10 = vunpack.c.l.bf16 %v89_v54  ;;  %1900 = vperm.xlu1 %2463, %v1856_v12   ;;  %v31_v43 = vld [vmem:[%s3477_s0 + $0x3c] sm:$0xff]  ;;  %v3224_v0 = vld [vmem:[%s3478_s1 + $0x8] ss:$0 sm:$0xff] }
  0x68   :  { %v546_v35 = vadd.f32 %v2909_v2, %v371_v3  ;;  %v663_v15 = vmax.f32 %v537_v5, 0.0  ;;  %v388_v16 = vmul.f32 %v2799_v55, %v213_v6  ;;  %v554_v18 = vadd.f32 %v2822_v61, %v379_v7  ;;  %v26_v55 = vld [vmem:[%s3477_s0 + $0x18] sm:$0xff]  ;;  %v1861_v1 = vld [vmem:[%s3480_s3 + $0x60] sm:$0xff] }
  0x69   :  { %v745_v14 = vpack.c.bf16 %v673_v4, %v664_v28  ;;  %v378_v21 = vmul.f32 %v2697_v13, %v203_v9  ;;  %v387_v27 = vmul.f32 %v2697_v13, %v212_v10  ;;  %v206_v31 = vunpack.c.h.bf16 %v85_v8  ;;  %1905 = vperm.xlu0 %2462, %v1857_v19   ;;  %v1858_v13 = vld [vmem:[%s3480_s3 + $0x48] sm:$0xff] }
  0x6a   :  { %1496 = vmatmul.mubr.bf16.gmra.mrb[32].mxu1 %v742_v22  ;;  %v672_v20 = vmax.f32 %v546_v35, 0.0  ;;  %v563_v32 = vadd.f32 %v2822_v61, %v388_v16  ;;  %v680_v33 = vmax.f32 %v554_v18, 0.0  ;;  %v215_v34 = vunpack.c.h.bf16 %v90_v11  ;;  %v3239_v35 = vld [vmem:[%s3479_s2 + $0x8] ss:$0 sm:$0xff] }
  0x6b   :  { %1584 = vmatprep.mubr.bf16.mxu0 %v745_v14  ;;  %v205_v37 = vunpack.c.l.bf16 %v85_v8  ;;  %v553_v39 = vadd.f32 %v2867_v41, %v378_v21  ;;  %v562_v23 = vadd.f32 %v2867_v41, %v387_v27  ;;  %v381_v40 = vmul.f32 %v2884_v45, %v206_v31  ;;  %v1859_v41 = vld [vmem:[%s3480_s3 + $0x50] sm:$0xff]  ;;  %1910 = vperm.xlu1 %2463, %v1858_v13   ;;  %v41_v14 = vld [vmem:[%s3477_s0 + $0x84] sm:$0xff] }
  0x6c   :  { %v744_v38 = vpack.c.bf16 %v672_v20, %v663_v15  ;;  %v689_v61 = vmax.f32 %v563_v32, 0.0  ;;  %v390_v25 = vmul.f32 %v2884_v45, %v215_v34  ;;  %v214_v24 = vunpack.c.l.bf16 %v90_v11  ;;  %v1862_v15 = vld [vmem:[%s3480_s3 + $0x68] sm:$0xff] }
  0x6d   :  { %v380_v42 = vmul.f32 %v2881_v50, %v205_v37  ;;  %v679_v44 = vmax.f32 %v553_v39, 0.0  ;;  %v688_v26 = vmax.f32 %v562_v23, 0.0  ;;  %v556_v47 = vadd.f32 %v2890_v17, %v381_v40  ;;  %1915 = vperm.xlu0 %2462, %v1859_v41  }
  0x6e   :  { %1585 = vmatmul.mubr.bf16.gmra.mrb[36].mxu0 %v744_v38  ;;  %v99_v48 = vunpack.c.l.bf16 %v26_v55  ;;  %v752_v49 = vpack.c.bf16 %v689_v61, %v680_v33  ;;  %v565_v45 = vadd.f32 %v2890_v17, %v390_v25  ;;  %v389_v51 = vmul.f32 %v2881_v50, %v214_v24  ;;  %v37_v38 = vld [vmem:[%s3477_s0 + $0x68] ss:$36 sps:$4 sm:$0xff]  }
  0x6f   :  { %v555_v52 = vadd.f32 %v2909_v2, %v380_v42  ;;  %v751_v54 = vpack.c.bf16 %v688_v26, %v679_v44  ;;  %v682_v57 = vmax.f32 %v556_v47, 0.0  ;;  %v100_v58 = vunpack.c.h.bf16 %v26_v55  ;;  %1920 = vperm.xlu1 %2463, %v1860_v60   ;;  %v46_v61 = vld [vmem:[%s3477_s0 + $0xa8] sm:$0xff] }
  0x70   :  { %v108_v59 = vunpack.c.l.bf16 %v31_v43  ;;  %1503 = vmatprep.mubr.bf16.mxu1 %v752_v49  ;;  %v691_v17 = vmax.f32 %v565_v45, 0.0  ;;  %v564_v50 = vadd.f32 %v2909_v2, %v389_v51  ;;  %v109_v63 = vunpack.c.h.bf16 %v31_v43  ;;  %v36_v2 = vld [vmem:[%s3477_s0 + $0x60] sm:$0xff] }
  0x71   :  { %v681_v62 = vmax.f32 %v555_v52, 0.0  ;;  %v274_v28 = vmul.f32 %v2713_v29, %v99_v48  ;;  %v275_v3 = vmul.f32 %v2728_v36, %v100_v58  ;;  %v101_v5 = vunpack.c.l.bf16 %v27_v53  ;;  %1925 = vperm.xlu0 %2462, %v1861_v1   ;;  %v51_v48 = vld [vmem:[%s3477_s0 + $0xcc] sm:$0xff] }
  0x72   :  { %1504 = vmatmul.mubr.bf16.gmra.mrb[36].mxu1 %v751_v54  ;;  %v283_v4 = vmul.f32 %v2713_v29, %v108_v59  ;;  %v754_v6 = vpack.c.bf16 %v691_v17, %v682_v57  ;;  %v690_v7 = vmax.f32 %v564_v50, 0.0  ;;  %v284_v8 = vmul.f32 %v2728_v36, %v109_v63 }
  0x73   :  { %v110_v22 = vunpack.c.h.bf16 %v27_v53  ;;  %v450_v9 = vadd.f32 %v2746_v56, %v275_v3  ;;  %v449_v10 = vadd.f32 %v2783_v30, %v274_v28  ;;  %v276_v12 = vmul.f32 %v3224_v0, %v101_v5  ;;  %1930 = vperm.xlu1 %2463, %v1862_v15   ;;  %v47_v3 = vld [vmem:[%s3477_s0 + $0xb0] ss:$36 sps:$4 sm:$0xff]  }
  0x74   :  { %v458_v11 = vadd.f32 %v2783_v30, %v283_v4  ;;  %1592 = vmatprep.mubr.bf16.mxu0 %v754_v6  ;;  %v753_v16 = vpack.c.bf16 %v690_v7, %v681_v62  ;;  %v459_v18 = vadd.f32 %v2746_v56, %v284_v8  ;;  %v118_v20 = vunpack.c.h.bf16 %v36_v2  ;;  %v56_v7 = vld [vmem:[%s3477_s0 + $0xf0] sm:$0xff] }
  0x75   :  { %v285_v19 = vmul.f32 %v3224_v0, %v110_v22  ;;  %v576_v21 = vmax.f32 %v450_v9, 0.0  ;;  %v575_v27 = vmax.f32 %v449_v10, 0.0  ;;  %v451_v32 = vadd.f32 %v3239_v35, %v276_v12 }
  0x76   :  { %v584_v31 = vmax.f32 %v458_v11, 0.0  ;;  %1593 = vmatmul.mubr.bf16.gmra.mrb[40].mxu0 %v753_v16  ;;  %v585_v33 = vmax.f32 %v459_v18, 0.0  ;;  %v127_v37 = vunpack.c.h.bf16 %v41_v14  ;;  %v293_v55 = vmul.f32 %v2728_v36, %v118_v20  ;;  %v61_v11 = vld [vmem:[%s3477_s0 + $0x114] sm:$0xff] }
  0x77   :  { %v460_v34 = vadd.f32 %v3239_v35, %v285_v19  ;;  %2415 = vmatprep.mubr.msk.bf16.mxu0 %vm2538_vm0, %v2537_v46  ;;  %v577_v23 = vmax.f32 %v451_v32, 0.0  ;;  %v117_v40 = vunpack.c.l.bf16 %v36_v2  ;;  %v126_v13 = vunpack.c.l.bf16 %v41_v14 }
  0x78   :  { %v701_v39 = vpack.c.bf16 %v584_v31, %v575_v27  ;;  %v702_v25 = vpack.c.bf16 %v585_v33, %v576_v21  ;;  %v302_v42 = vmul.f32 %v2728_v36, %v127_v37  ;;  %v468_v43 = vadd.f32 %v2746_v56, %v293_v55 }
  0x79   :  { %v586_v24 = vmax.f32 %v460_v34, 0.0  ;;  %v292_v41 = vmul.f32 %v2713_v29, %v117_v40  ;;  %v301_v44 = vmul.f32 %v2713_v29, %v126_v13  ;;  %v119_v26 = vunpack.c.l.bf16 %v37_v38 }
  0x7a   :  { %v128_v47 = vunpack.c.h.bf16 %v37_v38  ;;  %1633 = vmatprep.mubr.bf16.mxu1 %v702_v25  ;;  %v477_v45 = vadd.f32 %v2746_v56, %v302_v42  ;;  %v594_v51 = vmax.f32 %v468_v43, 0.0  ;;  %v136_v52 = vunpack.c.h.bf16 %v46_v61 }
  0x7b   :  { %v703_v49 = vpack.c.bf16 %v586_v24, %v577_v23  ;;  %1634 = vmatmul.mubr.bf16.vlgmr.msra.gmra.mrb[40].mxu1 %v701_v39  ;;  %v467_v53 = vadd.f32 %v2783_v30, %v292_v41  ;;  %v476_v54 = vadd.f32 %v2783_v30, %v301_v44  ;;  %v294_v57 = vmul.f32 %v3224_v0, %v119_v26  ;;  %v57_v39 = vld [vmem:[%s3477_s0 + $0xf8] ss:$36 sps:$4 sm:$0xff]  }
  0x7c   :  { %v303_v58 = vmul.f32 %v3224_v0, %v128_v47  ;;  %v603_v59 = vmax.f32 %v477_v45, 0.0  ;;  %v145_v60 = vunpack.c.h.bf16 %v51_v48  ;;  %v311_v17 = vmul.f32 %v2728_v36, %v136_v52  ;;  %v66_v41 = vld [vmem:[%s3477_s0 + $0x138] sm:$0xff] }
  0x7d   :  { %v135_v50 = vunpack.c.l.bf16 %v46_v61  ;;  %v593_v62 = vmax.f32 %v467_v53, 0.0  ;;  %v602_v63 = vmax.f32 %v476_v54, 0.0  ;;  %v469_v1 = vadd.f32 %v3239_v35, %v294_v57 }
  0x7e   :  { %v478_v28 = vadd.f32 %v3239_v35, %v303_v58  ;;  %2416 = vmatmul.mubr.bf16.vlgmr.msra.gmra.mrb[44].mxu0 %v703_v49  ;;  %v711_v4 = vpack.c.bf16 %v603_v59, %v594_v51  ;;  %v320_v5 = vmul.f32 %v2728_v36, %v145_v60  ;;  %v486_v2 = vadd.f32 %v2746_v56, %v311_v17  ;;  %v71_v49 = vld [vmem:[%s3477_s0 + $0x15c] sm:$0xff] }
  0x7f   :  { %v144_v6 = vunpack.c.l.bf16 %v51_v48  ;;  %v710_v8 = vpack.c.bf16 %v602_v63, %v593_v62  ;;  %2419 = vmatprep.mubr.msk.bf16.mxu0 %vm2538_vm0, %v2537_v46  ;;  %v595_v22 = vmax.f32 %v469_v1, 0.0  ;;  %v310_v10 = vmul.f32 %v2713_v29, %v135_v50  ;;  %v67_v63 = vld [vmem:[%s3477_s0 + $0x140] ss:$36 sps:$4 sm:$0xff]  }
  0x80   :  { %v604_v9 = vmax.f32 %v478_v28, 0.0  ;;  %1641 = vmatprep.mubr.bf16.mxu1 %v711_v4  ;;  %v495_v12 = vadd.f32 %v2746_v56, %v320_v5  ;;  %v612_v14 = vmax.f32 %v486_v2, 0.0  ;;  %v137_v16 = vunpack.c.l.bf16 %v47_v3 }
  0x81   :  { %v319_v15 = vmul.f32 %v2713_v29, %v144_v6  ;;  %v485_v19 = vadd.f32 %v2783_v30, %v310_v10  ;;  %v146_v20 = vunpack.c.h.bf16 %v47_v3  ;;  %v154_v21 = vunpack.c.h.bf16 %v56_v7 }
  0x82   :  { %v712_v18 = vpack.c.bf16 %v604_v9, %v595_v22  ;;  %v621_v27 = vmax.f32 %v495_v12, 0.0  ;;  %v312_v32 = vmul.f32 %v3224_v0, %v137_v16  ;;  %v163_v33 = vunpack.c.h.bf16 %v61_v11 }
  0x83   :  { %v494_v31 = vadd.f32 %v2783_v30, %v319_v15  ;;  %1642 = vmatmul.mubr.bf16.gmra.mrb[44].mxu1 %v710_v8  ;;  %v611_v34 = vmax.f32 %v485_v19, 0.0  ;;  %v321_v37 = vmul.f32 %v3224_v0, %v146_v20  ;;  %v329_v55 = vmul.f32 %v2728_v36, %v154_v21 }
  0x84   :  { %v153_v38 = vunpack.c.l.bf16 %v56_v7  ;;  %v720_v23 = vpack.c.bf16 %v621_v27, %v612_v14  ;;  %v487_v13 = vadd.f32 %v3239_v35, %v312_v32  ;;  %v338_v61 = vmul.f32 %v2728_v36, %v163_v33 }
  0x85   :  { %v620_v40 = vmax.f32 %v494_v31, 0.0  ;;  %v496_v25 = vadd.f32 %v3239_v35, %v321_v37  ;;  %v504_v24 = vadd.f32 %v2746_v56, %v329_v55  ;;  %v162_v42 = vunpack.c.l.bf16 %v61_v11  ;;  %v76_v11 = vld [vmem:[%s3477_s0 + $0x180] sm:$0xff] }
  0x86   :  { %v328_v43 = vmul.f32 %v2713_v29, %v153_v38  ;;  %2420 = vmatmul.mubr.bf16.gmra.mrb[48].mxu0 %v712_v18  ;;  %1649 = vmatprep.mubr.bf16.mxu1 %v720_v23  ;;  %v613_v26 = vmax.f32 %v487_v13, 0.0  ;;  %v513_v47 = vadd.f32 %v2746_v56, %v338_v61  ;;  %v155_v48 = vunpack.c.l.bf16 %v57_v39  ;;  %v81_v18 = vld [vmem:[%s3477_s0 + $0x1a4] sm:$0xff] }
  0x87   :  { %v719_v44 = vpack.c.bf16 %v620_v40, %v611_v34  ;;  %2423 = vmatprep.mubr.msk.bf16.mxu0 %vm2538_vm0, %v2537_v46  ;;  %v622_v45 = vmax.f32 %v496_v25, 0.0  ;;  %v630_v51 = vmax.f32 %v504_v24, 0.0  ;;  %v337_v52 = vmul.f32 %v2713_v29, %v162_v42 }
  0x88   :  { %v503_v53 = vadd.f32 %v2783_v30, %v328_v43  ;;  %v639_v54 = vmax.f32 %v513_v47, 0.0  ;;  %v164_v57 = vunpack.c.h.bf16 %v57_v39  ;;  %v330_v58 = vmul.f32 %v3224_v0, %v155_v48  ;;  %v77_v39 = vld [vmem:[%s3477_s0 + $0x188] ss:$36 sps:$4 sm:$0xff]  }
  0x89   :  { %v172_v59 = vunpack.c.h.bf16 %v66_v41  ;;  %v721_v60 = vpack.c.bf16 %v622_v45, %v613_v26  ;;  %v512_v17 = vadd.f32 %v2783_v30, %v337_v52  ;;  %v181_v62 = vunpack.c.h.bf16 %v71_v49 }
  0x8a   :  { %v629_v50 = vmax.f32 %v503_v53, 0.0  ;;  %v729_v1 = vpack.c.bf16 %v639_v54, %v630_v51  ;;  %v339_v28 = vmul.f32 %v3224_v0, %v164_v57  ;;  %v505_v3 = vadd.f32 %v3239_v35, %v330_v58  ;;  %v91_v53 = vld [vmem:[%s3477_s0 + $0x1ec] sm:$0xff] }
  0x8b   :  { %v347_v4 = vmul.f32 %v2728_v36, %v172_v59  ;;  %1650 = vmatmul.mubr.bf16.gmra.mrb[48].mxu1 %v719_v44  ;;  %v638_v5 = vmax.f32 %v512_v17, 0.0  ;;  %v356_v2 = vmul.f32 %v2728_v36, %v181_v62  ;;  %v171_v6 = vunpack.c.l.bf16 %v66_v41  ;;  %v86_v41 = vld [vmem:[%s3477_s0 + $0x1c8] sm:$0xff] }
  0x8c   :  { %v180_v7 = vunpack.c.l.bf16 %v71_v49  ;;  %1657 = vmatprep.mubr.bf16.mxu1 %v729_v1  ;;  %v514_v8 = vadd.f32 %v3239_v35, %v339_v28  ;;  %v631_v22 = vmax.f32 %v505_v3, 0.0  ;;  %v173_v10 = vunpack.c.l.bf16 %v67_v63  ;;  %v87_v3 = vld [vmem:[%s3477_s0 + $0x1d0] ss:$36 sps:$4 sm:$0xff]  }
  0x8d   :  { %v522_v9 = vadd.f32 %v2746_v56, %v347_v4  ;;  %v728_v12 = vpack.c.bf16 %v638_v5, %v629_v50  ;;  %v531_v14 = vadd.f32 %v2746_v56, %v356_v2  ;;  %v346_v15 = vmul.f32 %v2713_v29, %v171_v6 }
  0x8e   :  { %v355_v16 = vmul.f32 %v2713_v29, %v180_v7  ;;  %2424 = vmatmul.mubr.bf16.gmra.mrb[52].mxu0 %v721_v60  ;;  %v640_v19 = vmax.f32 %v514_v8, 0.0  ;;  %v182_v21 = vunpack.c.h.bf16 %v67_v63  ;;  %v348_v27 = vmul.f32 %v3224_v0, %v173_v10 }
  0x8f   :  { %v648_v20 = vmax.f32 %v522_v9, 0.0  ;;  %2427 = vmatprep.mubr.msk.bf16.mxu0 %vm2538_vm0, %v2537_v46  ;;  %v657_v31 = vmax.f32 %v531_v14, 0.0  ;;  %v521_v32 = vadd.f32 %v2783_v30, %v346_v15  ;;  %v190_v34 = vunpack.c.h.bf16 %v76_v11 }
  0x90   :  { %v530_v33 = vadd.f32 %v2783_v30, %v355_v16  ;;  %v357_v37 = vmul.f32 %v3224_v0, %v182_v21  ;;  %v523_v55 = vadd.f32 %v3239_v35, %v348_v27  ;;  %v199_v38 = vunpack.c.h.bf16 %v81_v18 }
  0x91   :  { %v738_v23 = vpack.c.bf16 %v657_v31, %v648_v20  ;;  %v647_v40 = vmax.f32 %v521_v32, 0.0  ;;  %v365_v61 = vmul.f32 %v2728_v36, %v190_v34  ;;  %v730_v25 = vpack.c.bf16 %v640_v19, %v631_v22 }
  0x92   :  { %v656_v13 = vmax.f32 %v530_v33, 0.0  ;;  %v532_v24 = vadd.f32 %v3239_v35, %v357_v37  ;;  %v374_v42 = vmul.f32 %v2728_v36, %v199_v38  ;;  %v189_v43 = vunpack.c.l.bf16 %v76_v11 }
  0x93   :  { %1658 = vmatmul.mubr.bf16.gmra.mrb[52].mxu1 %v728_v12  ;;  %v540_v26 = vadd.f32 %v2746_v56, %v365_v61  ;;  %v198_v47 = vunpack.c.l.bf16 %v81_v18  ;;  %v191_v48 = vunpack.c.l.bf16 %v77_v39  ;;  %v649_v49 = vmax.f32 %v523_v55, 0.0 }
  0x94   :  { %v737_v44 = vpack.c.bf16 %v656_v13, %v647_v40  ;;  %1665 = vmatprep.mubr.bf16.mxu1 %v738_v23  ;;  %v549_v45 = vadd.f32 %v2746_v56, %v374_v42  ;;  %v364_v51 = vmul.f32 %v2713_v29, %v189_v43  ;;  %v200_v52 = vunpack.c.h.bf16 %v77_v39 }
  0x95   :  { %v666_v54 = vmax.f32 %v540_v26, 0.0  ;;  %v373_v57 = vmul.f32 %v2713_v29, %v198_v47  ;;  %v366_v58 = vmul.f32 %v3224_v0, %v191_v48  ;;  %v208_v59 = vunpack.c.h.bf16 %v86_v41 }
  0x96   :  { %2428 = vmatmul.mubr.bf16.gmra.mrb[56].mxu0 %v730_v25  ;;  %v658_v60 = vmax.f32 %v532_v24, 0.0  ;;  %v675_v17 = vmax.f32 %v549_v45, 0.0  ;;  %v539_v50 = vadd.f32 %v2783_v30, %v364_v51  ;;  %v375_v62 = vmul.f32 %v3224_v0, %v200_v52 }
  0x97   :  { %2431 = vmatprep.mubr.msk.bf16.mxu0 %vm2538_vm0, %v2537_v46  ;;  %v548_v63 = vadd.f32 %v2783_v30, %v373_v57  ;;  %v217_v1 = vunpack.c.h.bf16 %v91_v53  ;;  %v383_v28 = vmul.f32 %v2728_v36, %v208_v59  ;;  %v541_v2 = vadd.f32 %v3239_v35, %v366_v58 }
  0x98   :  { %v747_v4 = vpack.c.bf16 %v675_v17, %v666_v54  ;;  %v665_v5 = vmax.f32 %v539_v50, 0.0  ;;  %v207_v6 = vunpack.c.l.bf16 %v86_v41  ;;  %v550_v8 = vadd.f32 %v3239_v35, %v375_v62 }
  0x99   :  { %v674_v7 = vmax.f32 %v548_v63, 0.0  ;;  %v392_v22 = vmul.f32 %v2728_v36, %v217_v1  ;;  %v558_v9 = vadd.f32 %v2746_v56, %v383_v28  ;;  %v739_v10 = vpack.c.bf16 %v658_v60, %v649_v49 }
  0x9a   :  { %v216_v11 = vunpack.c.l.bf16 %v91_v53  ;;  %v382_v12 = vmul.f32 %v2713_v29, %v207_v6  ;;  %v209_v14 = vunpack.c.l.bf16 %v87_v3  ;;  %v218_v19 = vunpack.c.h.bf16 %v87_v3 }
  0x9b   :  { %1666 = vmatmul.mubr.bf16.gmra.mrb[56].mxu1 %v737_v44  ;;  %v746_v15 = vpack.c.bf16 %v674_v7, %v665_v5  ;;  %v567_v16 = vadd.f32 %v2746_v56, %v392_v22  ;;  %v684_v18 = vmax.f32 %v558_v9, 0.0  ;;  %v667_v27 = vmax.f32 %v541_v2, 0.0 }
  0x9c   :  { %1673 = vmatprep.mubr.bf16.mxu1 %v747_v4  ;;  %v391_v20 = vmul.f32 %v2713_v29, %v216_v11  ;;  %v557_v21 = vadd.f32 %v2783_v30, %v382_v12  ;;  %v676_v36 = vmax.f32 %v550_v8, 0.0  ;;  %v384_v34 = vmul.f32 %v3224_v0, %v209_v14 }
  0x9d   :  { %v693_v31 = vmax.f32 %v567_v16, 0.0  ;;  %v393_v37 = vmul.f32 %v3224_v0, %v218_v19 }
  0x9e   :  { %2432 = vmatmul.mubr.bf16.gmra.mrb[60].mxu0 %v739_v10  ;;  %v566_v32 = vadd.f32 %v2783_v30, %v391_v20  ;;  %v683_v33 = vmax.f32 %v557_v21, 0.0  ;;  %v748_v38 = vpack.c.bf16 %v676_v36, %v667_v27  ;;  %v559_v39 = vadd.f32 %v3239_v35, %v384_v34 }
  0x9f   :  { %2435 = vmatprep.mubr.msk.bf16.mxu0 %vm2538_vm0, %v2537_v46  ;;  %v756_v56 = vpack.c.bf16 %v693_v31, %v684_v18  ;;  %v568_v23 = vadd.f32 %v3239_v35, %v393_v37 }
  0xa0   :  { %v692_v55 = vmax.f32 %v566_v32, 0.0  ;;  %v685_v30 = vmax.f32 %v559_v39, 0.0 }
  0xa1   :  { %v694_v40 = vmax.f32 %v568_v23, 0.0 }
  0xa2   :  { %v755_v29 = vpack.c.bf16 %v692_v55, %v683_v33 }
  0xa3   :  { %1674 = vmatmul.mubr.bf16.gmra.mrb[60].mxu1 %v746_v15  ;;  %v757_v0 = vpack.c.bf16 %v694_v40, %v685_v30 }
  0xa4   :  { %1681 = vmatprep.mubr.bf16.mxu1 %v756_v56 }
  0xa6   :  { %2436 = vmatmul.mubr.bf16.gmra.mrb[64].mxu0 %v748_v38 }
  0xa7   :  { %2439 = vmatprep.mubr.msk.bf16.mxu0 %vm2538_vm0, %v2537_v46 }
  0xab   :  { %1682 = vmatmul.mubr.bf16.gmra.mrb[64].mxu1 %v755_v29 }
  0xae   :  { %2440 = vmatmul.mubr.bf16.gmra.mrb[68].mxu0 %v757_v0 }
  0xf5   :  { %v2192_v13 = vpop.f32.mrb[0].mxu1  ;;  %v2168_v61 = vpop.f32.mrb[0].mxu0 }
  0xf6   :  { %v2193_v25 = vpop.f32.mrb[1].mxu1  ;;  %v2169_v24 = vpop.f32.mrb[1].mxu0 }
  0xf7   :  { %v3389_v42 = vadd.f32 %v2193_v25, %v2192_v13  ;;  %v2195_v43 = vpop.f32.mrb[2].mxu1  ;;  %v2170_v41 = vadd.f32 %v2169_v24, %v2168_v61  ;;  %v2171_v35 = vpop.f32.mrb[2].mxu0 }
  0xf8   :  { %v2196_v44 = vpop.f32.mrb[3].mxu1  ;;  %v2172_v26 = vpop.f32.mrb[3].mxu0 }
  0xf9   :  { %v3391_v47 = vadd.f32 %v2196_v44, %v2195_v43  ;;  %v2173_v48 = vadd.f32 %v2172_v26, %v2171_v35 }
  0xfd   :  { %v2174_v49 = vpop.f32.mrb[4].mxu0  ;;  %v2198_v53 = vpop.f32.mrb[4].mxu1 }
  0xfe   :  { %v2175_v45 = vpop.f32.mrb[5].mxu0  ;;  %v2199_v57 = vpop.f32.mrb[5].mxu1 }
  0xff   :  { %v2176_v46 = vadd.f32 %v2175_v45, %v2174_v49  ;;  %v2177_v51 = vpop.f32.mrb[6].mxu0  ;;  %v3393_v58 = vadd.f32 %v2199_v57, %v2198_v53  ;;  %v2201_v59 = vpop.f32.mrb[6].mxu1 }
 0x100   :  { %v2178_v52 = vpop.f32.mrb[7].mxu0  ;;  %v2202_v60 = vpop.f32.mrb[7].mxu1 }
 0x101   :  { %v2179_v54 = vadd.f32 %v2178_v52, %v2177_v51  ;;  %v3395_v17 = vadd.f32 %v2202_v60, %v2201_v59 }
 0x105   :  { %v2180_v50 = vpop.f32.mrb[8].mxu0 }
 0x106   :  { %v2181_v62 = vpop.f32.mrb[9].mxu0 }
 0x107   :  { %v2182_v63 = vadd.f32 %v2181_v62, %v2180_v50  ;;  %v2183_v1 = vpop.f32.mrb[10].mxu0 }
 0x108   :  { %v2184_v28 = vpop.f32.mrb[11].mxu0  ;;  %v2204_v4 = vpop.f32.mrb[8].mxu1 }
 0x109   :  { %v2185_v3 = vadd.f32 %v2184_v28, %v2183_v1  ;;  %v2205_v5 = vpop.f32.mrb[9].mxu1 }
 0x10a   :  { %v3397_v2 = vadd.f32 %v2205_v5, %v2204_v4  ;;  %v2207_v6 = vpop.f32.mrb[10].mxu1 }
 0x10b   :  { %v2208_v7 = vpop.f32.mrb[11].mxu1 }
 0x10c   :  { %v3399_v8 = vadd.f32 %v2208_v7, %v2207_v6 }
 0x10d   :  { %v2186_v22 = vpop.f32.mrb[12].mxu0 }
 0x10e   :  { %v2187_v9 = vpop.f32.mrb[13].mxu0 }
 0x10f   :  { %v2188_v10 = vadd.f32 %v2187_v9, %v2186_v22  ;;  %v2189_v11 = vpop.f32.mrb[14].mxu0 }
 0x110   :  { %v2190_v12 = vpop.f32.mrb[15].mxu0 }
 0x111   :  { %v2191_v14 = vadd.f32 %v2190_v12, %v2189_v11 }
 0x115   :  { %v2226_v15 = vpop.f32.mrb[12].mxu1  ;;  %v2284_v27 = vpop.f32.mrb[16].mxu0 }
 0x116   :  { %v2227_v16 = vpop.f32.mrb[13].mxu1  ;;  %v2285_v31 = vpop.f32.mrb[17].mxu0 }
 0x117   :  { %v2228_v18 = vadd.f32 %v2227_v16, %v2226_v15  ;;  %v2229_v19 = vpop.f32.mrb[14].mxu1  ;;  %v2286_v33 = vadd.f32 %v2285_v31, %v2284_v27  ;;  %v2287_v34 = vpop.f32.mrb[18].mxu0 }
 0x118   :  { %v2230_v20 = vpop.f32.mrb[15].mxu1  ;;  %v2288_v37 = vpop.f32.mrb[19].mxu0 }
 0x119   :  { %v1458_v21 = vadd.f32 %v2228_v18, %v2170_v41  ;;  %v2231_v36 = vadd.f32 %v2230_v20, %v2229_v19  ;;  %v2289_v55 = vadd.f32 %v2288_v37, %v2287_v34 }
 0x11b   :  { %v1461_v32 = vadd.f32 %v2231_v36, %v2173_v48  ;;  %v3401_v56 = vadd.f32 %v2286_v33, %v1458_v21 }
 0x11d   :  { %v2232_v38 = vpop.f32.mrb[16].mxu1  ;;  %v3403_v29 = vadd.f32 %v2289_v55, %v1461_v32  ;;  %v2290_v13 = vpop.f32.mrb[20].mxu0 }
 0x11e   :  { %v2233_v39 = vpop.f32.mrb[17].mxu1  ;;  %v2291_v25 = vpop.f32.mrb[21].mxu0 }
 0x11f   :  { %v2234_v23 = vadd.f32 %v2233_v39, %v2232_v38  ;;  %v2235_v30 = vpop.f32.mrb[18].mxu1  ;;  %v2292_v43 = vadd.f32 %v2291_v25, %v2290_v13  ;;  %v2293_v41 = vpop.f32.mrb[22].mxu0 }
 0x120   :  { %v2236_v40 = vpop.f32.mrb[19].mxu1  ;;  %v2294_v35 = vpop.f32.mrb[23].mxu0 }
 0x121   :  { %v1466_v0 = vadd.f32 %v2234_v23, %v2176_v46  ;;  %v2237_v61 = vadd.f32 %v2236_v40, %v2235_v30  ;;  %v2295_v26 = vadd.f32 %v2294_v35, %v2293_v41 }
 0x123   :  { %v1469_v24 = vadd.f32 %v2237_v61, %v2179_v54  ;;  %v3405_v44 = vadd.f32 %v2292_v43, %v1466_v0 }
 0x125   :  { %v2238_v48 = vpop.f32.mrb[20].mxu1  ;;  %v3407_v45 = vadd.f32 %v2295_v26, %v1469_v24  ;;  %v2296_v46 = vpop.f32.mrb[24].mxu0 }
 0x126   :  { %v2239_v49 = vpop.f32.mrb[21].mxu1  ;;  %v2297_v50 = vpop.f32.mrb[25].mxu0 }
 0x127   :  { %v2240_v51 = vadd.f32 %v2239_v49, %v2238_v48  ;;  %v2241_v52 = vpop.f32.mrb[22].mxu1  ;;  %v2298_v62 = vadd.f32 %v2297_v50, %v2296_v46  ;;  %v2299_v54 = vpop.f32.mrb[26].mxu0 }
 0x128   :  { %v2242_v53 = vpop.f32.mrb[23].mxu1  ;;  %v2300_v1 = vpop.f32.mrb[27].mxu0 }
 0x129   :  { %v1474_v57 = vadd.f32 %v2240_v51, %v2182_v63  ;;  %v2243_v59 = vadd.f32 %v2242_v53, %v2241_v52  ;;  %v2301_v4 = vadd.f32 %v2300_v1, %v2299_v54 }
 0x12b   :  { %v1477_v60 = vadd.f32 %v2243_v59, %v2185_v3  ;;  %v3409_v28 = vadd.f32 %v2298_v62, %v1474_v57 }
 0x12d   :  { %v2244_v5 = vpop.f32.mrb[24].mxu1  ;;  %v3411_v6 = vadd.f32 %v2301_v4, %v1477_v60 }
 0x12e   :  { %v2245_v7 = vpop.f32.mrb[25].mxu1 }
 0x12f   :  { %v2246_v22 = vadd.f32 %v2245_v7, %v2244_v5  ;;  %v2247_v9 = vpop.f32.mrb[26].mxu1  ;;  %v2302_v15 = vpop.f32.mrb[28].mxu0 }
 0x130   :  { %v2248_v11 = vpop.f32.mrb[27].mxu1  ;;  %v2303_v16 = vpop.f32.mrb[29].mxu0 }
 0x131   :  { %v1482_v12 = vadd.f32 %v2246_v22, %v2188_v10  ;;  %v2249_v63 = vadd.f32 %v2248_v11, %v2247_v9  ;;  %v2304_v3 = vadd.f32 %v2303_v16, %v2302_v15  ;;  %v2305_v19 = vpop.f32.mrb[30].mxu0 }
 0x132   :  { %v2306_v20 = vpop.f32.mrb[31].mxu0 }
 0x133   :  { %v1485_v18 = vadd.f32 %v2249_v63, %v2191_v14  ;;  %v3413_v21 = vadd.f32 %v2304_v3, %v1482_v12  ;;  %v2307_v27 = vadd.f32 %v2306_v20, %v2305_v19  ;;  %v1866_v3 = vpop.permute.xlu0 %1865 }
 0x135   :  { %v2250_v36 = vpop.f32.mrb[28].mxu1  ;;  %v3415_v32 = vadd.f32 %v2307_v27, %v1485_v18 }
 0x136   :  { %v2251_v31 = vpop.f32.mrb[29].mxu1 }
 0x137   :  { %v2252_v33 = vadd.f32 %v2251_v31, %v2250_v36  ;;  %v2253_v34 = vpop.f32.mrb[30].mxu1  ;;  %v2308_v38 = vpop.f32.mrb[32].mxu0 }
 0x138   :  { %v2254_v37 = vpop.f32.mrb[31].mxu1  ;;  %v2309_v14 = vpop.f32.mrb[33].mxu0 }
 0x139   :  { %v1490_v55 = vadd.f32 %v2252_v33, %v3389_v42  ;;  %v2255_v10 = vadd.f32 %v2254_v37, %v2253_v34  ;;  %v2310_v23 = vadd.f32 %v2309_v14, %v2308_v38  ;;  %v2311_v30 = vpop.f32.mrb[34].mxu0 }
 0x13a   :  { %v2312_v40 = vpop.f32.mrb[35].mxu0 }
 0x13b   :  { %v1493_v39 = vadd.f32 %v2255_v10, %v3391_v47  ;;  %v3419_v0 = vadd.f32 %v2310_v23, %v1490_v55  ;;  %v2313_v13 = vadd.f32 %v2312_v40, %v2311_v30  ;;  %v1871_v10 = vpop.permute.xlu0 %1870 }
 0x13d   :  { %v2256_v61 = vpop.f32.mrb[32].mxu1  ;;  %v3421_v25 = vadd.f32 %v2313_v13, %v1493_v39 }
 0x13e   :  { %v2257_v24 = vpop.f32.mrb[33].mxu1 }
 0x13f   :  { %v2258_v43 = vadd.f32 %v2257_v24, %v2256_v61  ;;  %v2259_v41 = vpop.f32.mrb[34].mxu1  ;;  %v1876_v61 = vpop.permute.xlu1 %1875 }
 0x140   :  { %v2260_v35 = vpop.f32.mrb[35].mxu1 }
 0x141   :  { %v1498_v42 = vadd.f32 %v2258_v43, %v3393_v58  ;;  %v2314_v26 = vpop.f32.mrb[36].mxu0  ;;  %v2261_v48 = vadd.f32 %v2260_v35, %v2259_v41 }
 0x142   :  { %v2315_v49 = vpop.f32.mrb[37].mxu0 }
 0x143   :  { %v1501_v47 = vadd.f32 %v2261_v48, %v3395_v17  ;;  %v2316_v51 = vadd.f32 %v2315_v49, %v2314_v26  ;;  %v2317_v52 = vpop.f32.mrb[38].mxu0 }
 0x144   :  { %v2318_v53 = vpop.f32.mrb[39].mxu0 }
 0x145   :  { %v3425_v57 = vadd.f32 %v2316_v51, %v1498_v42  ;;  %v2319_v59 = vadd.f32 %v2318_v53, %v2317_v52  ;;  %v2262_v46 = vpop.f32.mrb[36].mxu1 }
 0x146   :  { %v2263_v60 = vpop.f32.mrb[37].mxu1 }
 0x147   :  { %v3427_v50 = vadd.f32 %v2319_v59, %v1501_v47  ;;  %v2264_v62 = vadd.f32 %v2263_v60, %v2262_v46  ;;  %v2265_v54 = vpop.f32.mrb[38].mxu1 }
 0x148   :  { %v2266_v1 = vpop.f32.mrb[39].mxu1 }
 0x149   :  { %v1506_v58 = vadd.f32 %v2264_v62, %v3397_v2  ;;  %v2267_v4 = vadd.f32 %v2266_v1, %v2265_v54  ;;  %v2320_v5 = vpop.f32.mrb[40].mxu0  ;;  %v1881_v62 = vpop.permute.xlu1 %1880 }
 0x14a   :  { %v2321_v17 = vpop.f32.mrb[41].mxu0 }
 0x14b   :  { %v1509_v7 = vadd.f32 %v2267_v4, %v3399_v8  ;;  %v2322_v22 = vadd.f32 %v2321_v17, %v2320_v5  ;;  %v2323_v9 = vpop.f32.mrb[42].mxu0 }
 0x14c   :  { %v2324_v11 = vpop.f32.mrb[43].mxu0 }
 0x14d   :  { %v3431_v12 = vadd.f32 %v2322_v22, %v1506_v58  ;;  %v2325_v15 = vadd.f32 %v2324_v11, %v2323_v9 }
 0x14e   :  { %v2342_v63 = vpop.f32.mrb[40].mxu1 }
 0x14f   :  { %v3433_v16 = vadd.f32 %v2325_v15, %v1509_v7  ;;  %v2343_v18 = vpop.f32.mrb[41].mxu1 }
 0x150   :  { %v2344_v19 = vadd.f32 %v2343_v18, %v2342_v63  ;;  %v2345_v20 = vpop.f32.mrb[42].mxu1 }
 0x151   :  { %v2346_v27 = vpop.f32.mrb[43].mxu1  ;;  %v1724_v2 = vpop.f32.mrb[44].mxu0 }
 0x152   :  { %v2347_v36 = vadd.f32 %v2346_v27, %v2345_v20  ;;  %v1636_v31 = vadd.f32 %v2344_v19, %v3401_v56  ;;  %v2417_v8 = vpop.f32.mrb[45].mxu0 }
 0x153   :  { %v1727_v33 = vpop.f32.mrb[46].mxu0 }
 0x154   :  { %v1725_v34 = vadd.f32 %v1724_v2, %v1636_v31  ;;  %v1639_v37 = vadd.f32 %v2347_v36, %v3403_v29  ;;  %v2418_v55 = vpop.f32.mrb[47].mxu0  ;;  %v1886_v36 = vpop.permute.xlu0 %1885 }
 0x156   :  { %v1933_v38 = vmul.f32 %v1866_v3, %v1725_v34  ;;  %v1728_v39 = vadd.f32 %v1727_v33, %v1639_v37  ;;  %v2348_v14 = vpop.f32.mrb[44].mxu1  ;;  %v1891_v33 = vpop.permute.xlu1 %1890 }
 0x157   :  { %v2349_v23 = vpop.f32.mrb[45].mxu1 }
 0x158   :  { %v2114_v30 = vpack.c.bf16 %v1728_v39, %v1725_v34  ;;  %v1934_v40 = vmul.f32 %v1871_v10, %v1728_v39  ;;  %v2350_v13 = vadd.f32 %v2349_v23, %v2348_v14  ;;  %v2351_v24 = vpop.f32.mrb[46].mxu1  ;;  %v1967_v43 = vmul.f32 %v1933_v38, %v1725_v34 }
 0x159   :  { %v2352_v41 = vpop.f32.mrb[47].mxu1  ;;  %v1732_v35 = vpop.f32.mrb[48].mxu0 }
 0x15a   :  { %2115 = vst [vmem:[%s3481_s5] sm:$0xff] %v2114_v30   ;;  %v1947_v56 = vadd.f32 %v1934_v40, %v1933_v38  ;;  %v1968_v29 = vmul.f32 %v1934_v40, %v1728_v39  ;;  %v2353_v42 = vadd.f32 %v2352_v41, %v2351_v24  ;;  %v1644_v26 = vadd.f32 %v2350_v13, %v3405_v44  ;;  %v2421_v48 = vpop.f32.mrb[49].mxu0 }
 0x15b   :  { %v1735_v49 = vpop.f32.mrb[50].mxu0 }
 0x15c   :  { %v1981_v47 = vadd.f32 %v1968_v29, %v1967_v43  ;;  %v1733_v51 = vadd.f32 %v1732_v35, %v1644_v26  ;;  %v1647_v52 = vadd.f32 %v2353_v42, %v3407_v45  ;;  %v2422_v53 = vpop.f32.mrb[51].mxu0  ;;  %v1896_v42 = vpop.permute.xlu0 %1895 }
 0x15e   :  { %v1935_v59 = vmul.f32 %v1876_v61, %v1733_v51  ;;  %v1736_v46 = vadd.f32 %v1735_v49, %v1647_v52  ;;  %v2354_v60 = vpop.f32.mrb[48].mxu1 }
 0x15f   :  { %v2355_v54 = vpop.f32.mrb[49].mxu1 }
 0x160   :  { %v1969_v1 = vmul.f32 %v1935_v59, %v1733_v51  ;;  %v2119_v58 = vpack.c.bf16 %v1736_v46, %v1733_v51  ;;  %v1936_v4 = vmul.f32 %v1881_v62, %v1736_v46  ;;  %v1948_v5 = vadd.f32 %v1947_v56, %v1935_v59  ;;  %v2357_v7 = vpop.f32.mrb[50].mxu1  ;;  %v1901_v51 = vpop.permute.xlu1 %1900 }
 0x161   :  { %v2356_v17 = vadd.f32 %v2355_v54, %v2354_v60  ;;  %v2358_v22 = vpop.f32.mrb[51].mxu1  ;;  %v1740_v44 = vpop.f32.mrb[52].mxu0 }
 0x162   :  { %2146 = vst [vmem:[%s3481_s5 + $0x8] sm:$0xff] %v2119_v58   ;;  %v1949_v9 = vadd.f32 %v1948_v5, %v1936_v4  ;;  %v1970_v45 = vmul.f32 %v1936_v4, %v1736_v46  ;;  %v1982_v11 = vadd.f32 %v1981_v47, %v1969_v1  ;;  %v2359_v15 = vadd.f32 %v2358_v22, %v2357_v7  ;;  %v2425_v63 = vpop.f32.mrb[53].mxu0 }
 0x163   :  { %v1652_v18 = vadd.f32 %v2356_v17, %v3409_v28  ;;  %v1743_v3 = vpop.f32.mrb[54].mxu0 }
 0x164   :  { %v1983_v19 = vadd.f32 %v1982_v11, %v1970_v45  ;;  %v1655_v20 = vadd.f32 %v2359_v15, %v3411_v6  ;;  %v2426_v27 = vpop.f32.mrb[55].mxu0  ;;  %v1906_v15 = vpop.permute.xlu0 %1905 }
 0x165   :  { %v1741_v2 = vadd.f32 %v1740_v44, %v1652_v18 }
 0x166   :  { %v1744_v31 = vadd.f32 %v1743_v3, %v1655_v20  ;;  %v2360_v8 = vpop.f32.mrb[52].mxu1  ;;  %v1911_v3 = vpop.permute.xlu1 %1910 }
 0x167   :  { %v1937_v34 = vmul.f32 %v1886_v36, %v1741_v2  ;;  %v2361_v37 = vpop.f32.mrb[53].mxu1 }
 0x168   :  { %v2124_v55 = vpack.c.bf16 %v1744_v31, %v1741_v2  ;;  %v1938_v10 = vmul.f32 %v1891_v33, %v1744_v31  ;;  %v2362_v38 = vadd.f32 %v2361_v37, %v2360_v8  ;;  %v2363_v39 = vpop.f32.mrb[54].mxu1 }
 0x169   :  { %v1950_v14 = vadd.f32 %v1949_v9, %v1937_v34  ;;  %v1971_v23 = vmul.f32 %v1937_v34, %v1741_v2  ;;  %v2364_v30 = vpop.f32.mrb[55].mxu1  ;;  %v1748_v28 = vpop.f32.mrb[56].mxu0 }
 0x16a   :  { %2147 = vst [vmem:[%s3481_s5 + $0x10] sm:$0xff] %v2124_v55   ;;  %v1972_v6 = vmul.f32 %v1938_v10, %v1744_v31  ;;  %v2365_v40 = vadd.f32 %v2364_v30, %v2363_v39  ;;  %v1660_v13 = vadd.f32 %v2362_v38, %v3413_v21  ;;  %v2429_v61 = vpop.f32.mrb[57].mxu0 }
 0x16b   :  { %v1984_v24 = vadd.f32 %v1983_v19, %v1971_v23  ;;  %v1951_v43 = vadd.f32 %v1950_v14, %v1938_v10  ;;  %v1751_v41 = vpop.f32.mrb[58].mxu0 }
 0x16c   :  { %v1749_v35 = vadd.f32 %v1748_v28, %v1660_v13  ;;  %v1663_v56 = vadd.f32 %v2365_v40, %v3415_v32  ;;  %v2430_v29 = vpop.f32.mrb[59].mxu0 }
 0x16d   :  { %v1985_v26 = vadd.f32 %v1984_v24, %v1972_v6  ;;  %v1916_v6 = vpop.permute.xlu0 %1915 }
 0x16e   :  { %v1939_v48 = vmul.f32 %v1896_v42, %v1749_v35  ;;  %v1752_v49 = vadd.f32 %v1751_v41, %v1663_v56  ;;  %v2366_v47 = vpop.f32.mrb[56].mxu1 }
 0x16f   :  { %v2367_v52 = vpop.f32.mrb[57].mxu1 }
 0x170   :  { %v1952_v53 = vadd.f32 %v1951_v43, %v1939_v48  ;;  %v1973_v59 = vmul.f32 %v1939_v48, %v1749_v35  ;;  %v2129_v46 = vpack.c.bf16 %v1752_v49, %v1749_v35  ;;  %v1940_v60 = vmul.f32 %v1901_v51, %v1752_v49  ;;  %v2369_v21 = vpop.f32.mrb[58].mxu1  ;;  %v1921_v43 = vpop.permute.xlu1 %1920 }
 0x171   :  { %v2368_v62 = vadd.f32 %v2367_v52, %v2366_v47  ;;  %v2370_v54 = vpop.f32.mrb[59].mxu1  ;;  %v1756_v1 = vpop.f32.mrb[60].mxu0 }
 0x172   :  { %v1986_v58 = vadd.f32 %v1985_v26, %v1973_v59  ;;  %2148 = vst [vmem:[%s3481_s5 + $0x18] sm:$0xff] %v2129_v46   ;;  %v1953_v32 = vadd.f32 %v1952_v53, %v1940_v60  ;;  %v1974_v4 = vmul.f32 %v1940_v60, %v1752_v49  ;;  %v2371_v5 = vadd.f32 %v2370_v54, %v2369_v21  ;;  %v2433_v7 = vpop.f32.mrb[61].mxu0 }
 0x173   :  { %v1668_v17 = vadd.f32 %v2368_v62, %v3419_v0  ;;  %v1759_v22 = vpop.f32.mrb[62].mxu0 }
 0x174   :  { %v1987_v44 = vadd.f32 %v1986_v58, %v1974_v4  ;;  %v1671_v9 = vadd.f32 %v2371_v5, %v3421_v25  ;;  %v2434_v45 = vpop.f32.mrb[63].mxu0 }
 0x175   :  { %v1757_v11 = vadd.f32 %v1756_v1, %v1668_v17  ;;  %v1926_v1 = vpop.permute.xlu0 %1925 }
 0x176   :  { %v1760_v63 = vadd.f32 %v1759_v22, %v1671_v9  ;;  %v2372_v18 = vpop.f32.mrb[60].mxu1 }
 0x177   :  { %v1941_v19 = vmul.f32 %v1906_v15, %v1757_v11  ;;  %v2373_v20 = vpop.f32.mrb[61].mxu1 }
 0x178   :  { %v2134_v27 = vpack.c.bf16 %v1760_v63, %v1757_v11  ;;  %v1942_v2 = vmul.f32 %v1911_v3, %v1760_v63  ;;  %v2374_v36 = vadd.f32 %v2373_v20, %v2372_v18  ;;  %v2375_v31 = vpop.f32.mrb[62].mxu1 }
 0x179   :  { %v1954_v8 = vadd.f32 %v1953_v32, %v1941_v19  ;;  %v1975_v33 = vmul.f32 %v1941_v19, %v1757_v11  ;;  %v2376_v34 = vpop.f32.mrb[63].mxu1  ;;  %v1764_v0 = vpop.f32.mrb[64].mxu0 }
 0x17a   :  { %2149 = vst [vmem:[%s3481_s5 + $0x20] sm:$0xff] %v2134_v27   ;;  %v1976_v25 = vmul.f32 %v1942_v2, %v1760_v63  ;;  %v2377_v37 = vadd.f32 %v2376_v34, %v2375_v31  ;;  %v1676_v55 = vadd.f32 %v2374_v36, %v3425_v57  ;;  %v2437_v10 = vpop.f32.mrb[65].mxu0  ;;  %v1931_v32 = vpop.permute.xlu1 %1930 }
 0x17b   :  { %v1988_v38 = vadd.f32 %v1987_v44, %v1975_v33  ;;  %v1955_v39 = vadd.f32 %v1954_v8, %v1942_v2  ;;  %v1767_v14 = vpop.f32.mrb[66].mxu0 }
 0x17c   :  { %v1765_v23 = vadd.f32 %v1764_v0, %v1676_v55  ;;  %v1679_v30 = vadd.f32 %v2377_v37, %v3427_v50  ;;  %v2438_v28 = vpop.f32.mrb[67].mxu0 }
 0x17d   :  { %v1989_v40 = vadd.f32 %v1988_v38, %v1976_v25 }
 0x17e   :  { %v1943_v13 = vmul.f32 %v1916_v6, %v1765_v23  ;;  %v1768_v61 = vadd.f32 %v1767_v14, %v1679_v30  ;;  %v2378_v24 = vpop.f32.mrb[64].mxu1 }
 0x17f   :  { %v2379_v41 = vpop.f32.mrb[65].mxu1 }
 0x180   :  { %v1956_v35 = vadd.f32 %v1955_v39, %v1943_v13  ;;  %v1977_v56 = vmul.f32 %v1943_v13, %v1765_v23  ;;  %v2139_v29 = vpack.c.bf16 %v1768_v61, %v1765_v23  ;;  %v1944_v42 = vmul.f32 %v1921_v43, %v1768_v61  ;;  %v2381_v57 = vpop.f32.mrb[66].mxu1 }
 0x181   :  { %v2380_v26 = vadd.f32 %v2379_v41, %v2378_v24  ;;  %v2382_v48 = vpop.f32.mrb[67].mxu1  ;;  %v1772_v49 = vpop.f32.mrb[68].mxu0 }
 0x182   :  { %v1990_v47 = vadd.f32 %v1989_v40, %v1977_v56  ;;  %2150 = vst [vmem:[%s3481_s5 + $0x28] sm:$0xff] %v2139_v29   ;;  %v1957_v50 = vadd.f32 %v1956_v35, %v1944_v42  ;;  %v1978_v51 = vmul.f32 %v1944_v42, %v1768_v61  ;;  %v2383_v52 = vadd.f32 %v2382_v48, %v2381_v57  ;;  %v2441_v53 = vpop.f32.mrb[69].mxu0 }
 0x183   :  { %v1684_v59 = vadd.f32 %v2380_v26, %v3431_v12  ;;  %v1775_v46 = vpop.f32.mrb[70].mxu0 }
 0x184   :  { %v1991_v60 = vadd.f32 %v1990_v47, %v1978_v51  ;;  %v1687_v21 = vadd.f32 %v2383_v52, %v3433_v16  ;;  %v2442_v62 = vpop.f32.mrb[71].mxu0 }
 0x185   :  { %v1773_v54 = vadd.f32 %v1772_v49, %v1684_v59 }
 0x186   :  { %v1776_v58 = vadd.f32 %v1775_v46, %v1687_v21 }
 0x187   :  { %v1945_v4 = vmul.f32 %v1926_v1, %v1773_v54 }
 0x188   :  { %v2144_v5 = vpack.c.bf16 %v1776_v58, %v1773_v54  ;;  %v1946_v7 = vmul.f32 %v1931_v32, %v1776_v58 }
 0x189   :  { %v1958_v17 = vadd.f32 %v1957_v50, %v1945_v4  ;;  %v1979_v22 = vmul.f32 %v1945_v4, %v1773_v54 }
 0x18a   :  { %2151 = vst [vmem:[%s3481_s5 + $0x30] sm:$0xff] %v2144_v5   ;;  %v1980_v44 = vmul.f32 %v1946_v7, %v1776_v58 }
 0x18b   :  { %v1992_v12 = vadd.f32 %v1991_v60, %v1979_v22  ;;  %v1959_v9 = vadd.f32 %v1958_v17, %v1946_v7 }
 0x18d   :  { %v1960_v45 = vrot.slane %v1959_v9, 4  ;;  %v1993_v11 = vadd.f32 %v1992_v12, %v1980_v44 }
 0x18f   :  { %v1961_v16 = vadd.f32 %v1960_v45, %v1959_v9  ;;  %v1994_v15 = vrot.slane %v1993_v11, 4 }
 0x191   :  { %v1962_v63 = vrot.slane %v1961_v16, 2  ;;  %v1995_v18 = vadd.f32 %v1994_v15, %v1993_v11 }
 0x193   :  { %v1963_v3 = vadd.f32 %v1962_v63, %v1961_v16  ;;  %v1996_v19 = vrot.slane %v1995_v18, 2 }
 0x195   :  { %v1964_v20 = vrot.slane %v1963_v3, 1  ;;  %v1997_v27 = vadd.f32 %v1996_v19, %v1995_v18 }
 0x197   :  { %v1965_v2 = vadd.f32 %v1964_v20, %v1963_v3  ;;  %v1998_v36 = vrot.slane %v1997_v27, 1 }
 0x199   :  { %1966 = vst [vmem:[%s3482_s6] sm:$0x1] %v1965_v2  ;;  %v1999_v31 = vadd.f32 %v1998_v36, %v1997_v27 }
 0x19b   :  { %2000 = vst [vmem:[%s3482_s6 + $0x1] sm:$0x1] %v1999_v31 }

// kernel: inception_b_forward.7
= control target key start
LH: loop header
LB: loop body
LE: loop exit
PB: predicated region body
PF: predicated region fallthrough
CT: control target
= control target key end

     0   :  { %v1388_v2 = vmov 0.0   ;;  %v1389_v3 = vmov 0   ;;  %s1390_s19 = smov 124   ;;  %vm1391_vm0 = vmmov 0   ;;  %vm136_vm1 = vcmask 1041408   ;;  %s1394_s8 = smov 112   ;;  %s2173_s0 = inlined_call_operand.vmem [shape: bf16[112,36], index: 0, kind: input, shape index: {}]   ;;  %s2174_s1 = inlined_call_operand.vmem [shape: bf16[36,384], index: 1, kind: input, shape index: {}]   ;;  %s2175_s2 = inlined_call_operand.vmem [shape: bf16[112,384], index: 2, kind: output, shape index: {0}]   ;;  %s2176_s3 = inlined_call_operand.vmem [shape: f32[1,2,384], index: 3, kind: output, shape index: {1}]   ;;  %s2177_s4 = inlined_call_operand.vmem [shape: f32[112,128], index: 4, kind: output, shape index: {2}]  }
   0x1   :  { %v1428_v0 = vld [vmem:[%s2173_s0 + $0x8] sm:$0xf]  ;;  %v1433_v1 = vld [vmem:[%s2173_s0] sm:$0xf]  ;;  %1324 = vmatprep.subr.bf16.mxu1 %v1388_v2  ;;  %178 = vmatprep.mubr.bf16.mxu0 %v1389_v3  ;;  %v1444_v4 = vld [vmem:[%s2173_s0 + $0xc] sm:$0xf] }
   0x2   :  { %727 = vrot.lane.b32.xlu1 %v1428_v0, %s1390_s19  ;;  %723 = vrot.lane.b32.xlu0 %v1433_v1, %s1390_s19  ;;  %v1449_v5 = vld [vmem:[%s2173_s0 + $0x4] sm:$0xf]  ;;  %v1372_v7 = vld [vmem:[%s2174_s1] ss:$12 sps:$4 sm:$0xff]   ;;  %vm114_vm2 = vcmask 293888   ;;  %v1227_v29 = vcombine.low %v1428_v0, %v1444_v4  ;;  %s1395_s9 = smov 108  }
   0x3   :  { %v1370_v6 = vld [vmem:[%s2174_s1 + $0x4] ss:$12 sps:$4 sm:$0xff]   ;;  %1330 = vmatprep.mubr.msk.bf16.mxu1 %vm1391_vm0, %v1388_v2  ;;  %v1373_v8 = vld [vmem:[%s2174_s1 + $0x1c] ss:$12 sps:$4 sm:$0xff]   ;;  %v1472_v10 = vld [vmem:[%s2173_s0 + $0x14] sm:$0xf]  ;;  %v1226_v24 = vcombine.low %v1433_v1, %v1449_v5 }
   0x4   :  { %146 = vmatprep.subr.bf16.mxu0 %v1370_v6  ;;  %v1375_v9 = vld [vmem:[%s2174_s1 + $0x8] ss:$12 sps:$4 sm:$0xff]   ;;  %v1477_v11 = vld [vmem:[%s2173_s0 + $0x10] sm:$0xf]  ;;  %v1376_v12 = vld [vmem:[%s2174_s1 + $0x18] ss:$12 sps:$4 sm:$0xff]  }
   0x5   :  { %147 = vmatpush1.bf16.msra.mxu0 %v1372_v7  ;;  %1325 = vmatpush3.bf16.msra.mxu1 %v1375_v9  ;;  %v37_v13 = vld [vmem:[%s2174_s1 + $0x30] sm:$0x33]  ;;  %v1378_v15 = vld [vmem:[%s2174_s1 + $0x20] ss:$12 sps:$4 sm:$0xff]   ;;  %v1499_v18 = vld [vmem:[%s2173_s0 + $0x1c] sm:$0xf]  ;;  %v1228_v30 = vcombine.low %v1477_v11, %v1472_v10 }
   0x6   :  { %729 = vrot.lane.b32.xlu1 %v1444_v4, %s1390_s19  ;;  %725 = vrot.lane.b32.xlu0 %v1449_v5, %s1390_s19  ;;  %v1240_v14 = vcombine.high %v37_v13, %v37_v13  ;;  %v1239_v16 = vcombine.low %v37_v13, %v37_v13  ;;  %v1380_v17 = vld [vmem:[%s2174_s1 + $0x38] ss:$0 sps:$4 sm:$0x33]   ;;  %v1514_v22 = vld [vmem:[%s2173_s0 + $0x24] sm:$0xf]  ;;  %s1396_s10 = smov 104  }
   0x7   :  { %148 = vmatprep.subr.bf16.mxu0 %v1373_v8  ;;  %1326 = vmatprep.subr.bf16.mxu1 %v1388_v2  ;;  %v1504_v19 = vld [vmem:[%s2173_s0 + $0x18] sm:$0xf]  ;;  %v144_v21 = vsel %vm136_vm1, %v1380_v17, 0  ;;  %v1519_v23 = vld [vmem:[%s2173_s0 + $0x20] sm:$0xf]  ;;  %s1397_s11 = smov 100  }
   0x8   :  { %v138_v20 = vsel %vm136_vm1, %v1239_v16, 0  ;;  %v1530_v25 = vld [vmem:[%s2173_s0 + $0x2c] sm:$0xf]  ;;  %v1535_v26 = vld [vmem:[%s2173_s0 + $0x28] sm:$0xf]  ;;  %v1229_v31 = vcombine.low %v1504_v19, %v1499_v18  ;;  %v1230_v32 = vcombine.low %v1519_v23, %v1514_v22  ;;  %s1398_s12 = smov 96  }
   0x9   :  { %149 = vmatpush1.bf16.msra.mxu0 %v1376_v12  ;;  %1327 = vmatpush3.bf16.msra.mxu1 %v1378_v15  ;;  %v1549_v27 = vld [vmem:[%s2173_s0 + $0x34] sm:$0xf]  ;;  %v1554_v28 = vld [vmem:[%s2173_s0 + $0x30] sm:$0xf]  ;;  %s1392_s0 = smov 120   ;;  %v1231_v33 = vcombine.low %v1535_v26, %v1530_v25  ;;  %vm1185_vm4 = vcmask 31744  }
   0xa   :  { %733 = vrot.lane.b32.xlu1 %v1472_v10, %s1390_s19  ;;  %731 = vrot.lane.b32.xlu0 %v1477_v11, %s1390_s19  ;;  %v1232_v34 = vcombine.low %v1554_v28, %v1549_v27 }
   0xb   :  { %1242 = vmatprep.subr.msk.bf16.mxu0 %vm136_vm1, %v1240_v14  ;;  %1328 = vmatprep.subr.bf16.mxu1 %v1388_v2 }
   0xd   :  { %151 = vmatpush1.bf16.msra.mxu0 %v138_v20  ;;  %1329 = vmatpush3.bf16.msra.mxu1 %v144_v21 }
   0xe   :  { %737 = vrot.lane.b32.xlu1 %v1499_v18, %s1390_s19  ;;  %735 = vrot.lane.b32.xlu0 %v1504_v19, %s1390_s19 }
  0x10   :  { %1243 = vmatmul.mubr.msk.bf16.vlgmr.msra.gmra.mrb[0].mxu0 %vm114_vm2, %v1226_v24  ;;  %1331 = vmatmul.mubr.msk.bf16.vlgmr.msra.gmra.mrb[0].mxu1 %vm114_vm2, %v1226_v24 }
  0x11   :  { %188 = vmatprep.mubr.bf16.mxu0 %v1389_v3  ;;  %1334 = vmatprep.mubr.msk.bf16.mxu1 %vm1391_vm0, %v1388_v2 }
  0x12   :  { %741 = vrot.lane.b32.xlu1 %v1514_v22, %s1390_s19  ;;  %739 = vrot.lane.b32.xlu0 %v1519_v23, %s1390_s19 }
  0x16   :  { %745 = vrot.lane.b32.xlu1 %v1530_v25, %s1390_s19  ;;  %743 = vrot.lane.b32.xlu0 %v1535_v26, %s1390_s19 }
  0x18   :  { %1244 = vmatmul.mubr.msk.bf16.gmra.mrb[4].mxu0 %vm114_vm2, %v1227_v29  ;;  %1335 = vmatmul.mubr.msk.bf16.gmra.mrb[4].mxu1 %vm114_vm2, %v1227_v29 }
  0x19   :  { %198 = vmatprep.mubr.bf16.mxu0 %v1389_v3  ;;  %1338 = vmatprep.mubr.msk.bf16.mxu1 %vm1391_vm0, %v1388_v2 }
  0x1a   :  { %749 = vrot.lane.b32.xlu1 %v1549_v27, %s1390_s19  ;;  %747 = vrot.lane.b32.xlu0 %v1554_v28, %s1390_s19  ;;  %s1393_s19 = smov 116  }
  0x1e   :  { %781 = vrot.lane.b32.xlu1 %v1449_v5, %s1392_s0  ;;  %779 = vrot.lane.b32.xlu0 %v1433_v1, %s1392_s0 }
  0x20   :  { %1245 = vmatmul.mubr.msk.bf16.gmra.mrb[8].mxu0 %vm114_vm2, %v1228_v30  ;;  %1339 = vmatmul.mubr.msk.bf16.gmra.mrb[8].mxu1 %vm114_vm2, %v1228_v30 }
  0x21   :  { %208 = vmatprep.mubr.bf16.mxu0 %v1389_v3  ;;  %1342 = vmatprep.mubr.msk.bf16.mxu1 %vm1391_vm0, %v1388_v2 }
  0x22   :  { %785 = vrot.lane.b32.xlu1 %v1444_v4, %s1392_s0  ;;  %783 = vrot.lane.b32.xlu0 %v1428_v0, %s1392_s0 }
  0x26   :  { %789 = vrot.lane.b32.xlu1 %v1472_v10, %s1392_s0  ;;  %787 = vrot.lane.b32.xlu0 %v1477_v11, %s1392_s0 }
  0x28   :  { %1246 = vmatmul.mubr.msk.bf16.gmra.mrb[12].mxu0 %vm114_vm2, %v1229_v31  ;;  %1343 = vmatmul.mubr.msk.bf16.gmra.mrb[12].mxu1 %vm114_vm2, %v1229_v31 }
  0x29   :  { %218 = vmatprep.mubr.bf16.mxu0 %v1389_v3  ;;  %1346 = vmatprep.mubr.msk.bf16.mxu1 %vm1391_vm0, %v1388_v2 }
  0x2a   :  { %793 = vrot.lane.b32.xlu1 %v1499_v18, %s1392_s0  ;;  %791 = vrot.lane.b32.xlu0 %v1504_v19, %s1392_s0 }
  0x2e   :  { %797 = vrot.lane.b32.xlu1 %v1514_v22, %s1392_s0  ;;  %795 = vrot.lane.b32.xlu0 %v1519_v23, %s1392_s0 }
  0x30   :  { %1247 = vmatmul.mubr.msk.bf16.gmra.mrb[16].mxu0 %vm114_vm2, %v1230_v32  ;;  %1347 = vmatmul.mubr.msk.bf16.gmra.mrb[16].mxu1 %vm114_vm2, %v1230_v32 }
  0x31   :  { %228 = vmatprep.mubr.bf16.mxu0 %v1389_v3  ;;  %1350 = vmatprep.mubr.msk.bf16.mxu1 %vm1391_vm0, %v1388_v2 }
  0x32   :  { %801 = vrot.lane.b32.xlu1 %v1530_v25, %s1392_s0  ;;  %799 = vrot.lane.b32.xlu0 %v1535_v26, %s1392_s0 }
  0x36   :  { %805 = vrot.lane.b32.xlu1 %v1549_v27, %s1392_s0  ;;  %803 = vrot.lane.b32.xlu0 %v1554_v28, %s1392_s0 }
  0x38   :  { %1248 = vmatmul.mubr.msk.bf16.gmra.mrb[20].mxu0 %vm114_vm2, %v1231_v33  ;;  %1351 = vmatmul.mubr.msk.bf16.gmra.mrb[20].mxu1 %vm114_vm2, %v1231_v33 }
  0x39   :  { %238 = vmatprep.mubr.bf16.mxu0 %v1389_v3  ;;  %1354 = vmatprep.mubr.msk.bf16.mxu1 %vm1391_vm0, %v1388_v2 }
  0x3a   :  { %837 = vrot.lane.b32.xlu1 %v1449_v5, %s1393_s19  ;;  %835 = vrot.lane.b32.xlu0 %v1433_v1, %s1393_s19 }
  0x3e   :  { %841 = vrot.lane.b32.xlu1 %v1444_v4, %s1393_s19  ;;  %839 = vrot.lane.b32.xlu0 %v1428_v0, %s1393_s19 }
  0x40   :  { %1249 = vmatmul.mubr.msk.bf16.gmra.mrb[24].mxu0 %vm114_vm2, %v1232_v34  ;;  %1355 = vmatmul.mubr.msk.bf16.gmra.mrb[24].mxu1 %vm114_vm2, %v1232_v34 }
  0x42   :  { %845 = vrot.lane.b32.xlu1 %v1472_v10, %s1393_s19  ;;  %843 = vrot.lane.b32.xlu0 %v1477_v11, %s1393_s19 }
  0x46   :  { %849 = vrot.lane.b32.xlu1 %v1499_v18, %s1393_s19  ;;  %847 = vrot.lane.b32.xlu0 %v1504_v19, %s1393_s19 }
  0x4a   :  { %853 = vrot.lane.b32.xlu1 %v1514_v22, %s1393_s19  ;;  %851 = vrot.lane.b32.xlu0 %v1519_v23, %s1393_s19 }
  0x4e   :  { %857 = vrot.lane.b32.xlu1 %v1530_v25, %s1393_s19  ;;  %855 = vrot.lane.b32.xlu0 %v1535_v26, %s1393_s19 }
  0x52   :  { %861 = vrot.lane.b32.xlu1 %v1549_v27, %s1393_s19  ;;  %859 = vrot.lane.b32.xlu0 %v1554_v28, %s1393_s19 }
  0x56   :  { %893 = vrot.lane.b32.xlu1 %v1449_v5, %s1394_s8  ;;  %891 = vrot.lane.b32.xlu0 %v1433_v1, %s1394_s8 }
  0x5a   :  { %897 = vrot.lane.b32.xlu1 %v1444_v4, %s1394_s8  ;;  %895 = vrot.lane.b32.xlu0 %v1428_v0, %s1394_s8 }
  0x5e   :  { %901 = vrot.lane.b32.xlu1 %v1472_v10, %s1394_s8  ;;  %899 = vrot.lane.b32.xlu0 %v1477_v11, %s1394_s8 }
  0x62   :  { %905 = vrot.lane.b32.xlu1 %v1499_v18, %s1394_s8  ;;  %903 = vrot.lane.b32.xlu0 %v1504_v19, %s1394_s8 }
  0x66   :  { %909 = vrot.lane.b32.xlu1 %v1514_v22, %s1394_s8  ;;  %907 = vrot.lane.b32.xlu0 %v1519_v23, %s1394_s8 }
  0x6a   :  { %913 = vrot.lane.b32.xlu1 %v1530_v25, %s1394_s8  ;;  %911 = vrot.lane.b32.xlu0 %v1535_v26, %s1394_s8 }
  0x6e   :  { %917 = vrot.lane.b32.xlu1 %v1549_v27, %s1394_s8  ;;  %915 = vrot.lane.b32.xlu0 %v1554_v28, %s1394_s8 }
  0x72   :  { %949 = vrot.lane.b32.xlu1 %v1449_v5, %s1395_s9  ;;  %947 = vrot.lane.b32.xlu0 %v1433_v1, %s1395_s9 }
  0x74   :  { %v1643_v35 = vpop.permute.xlu1 %727  ;;  %v724_v36 = vpop.permute.xlu0 %723 }
  0x75   :  { %v765_v63 = vmax.bf16 %v724_v36, %v1433_v1  ;;  %v767_v9 = vmax.bf16 %v1643_v35, %v1428_v0 }
  0x76   :  { %953 = vrot.lane.b32.xlu1 %v1444_v4, %s1395_s9  ;;  %951 = vrot.lane.b32.xlu0 %v1428_v0, %s1395_s9 }
  0x78   :  { %v1647_v37 = vpop.permute.xlu1 %729  ;;  %v726_v38 = vpop.permute.xlu0 %725 }
  0x79   :  { %v766_v2 = vmax.bf16 %v726_v38, %v1449_v5  ;;  %v768_v12 = vmax.bf16 %v1647_v37, %v1444_v4 }
  0x7a   :  { %957 = vrot.lane.b32.xlu1 %v1472_v10, %s1395_s9  ;;  %955 = vrot.lane.b32.xlu0 %v1477_v11, %s1395_s9 }
  0x7c   :  { %v1651_v39 = vpop.permute.xlu1 %733  ;;  %v1653_v40 = vpop.permute.xlu0 %731 }
  0x7d   :  { %v770_v21 = vmax.bf16 %v1651_v39, %v1472_v10  ;;  %v769_v24 = vmax.bf16 %v1653_v40, %v1477_v11 }
  0x7e   :  { %961 = vrot.lane.b32.xlu1 %v1499_v18, %s1395_s9  ;;  %959 = vrot.lane.b32.xlu0 %v1504_v19, %s1395_s9 }
  0x80   :  { %v1657_v41 = vpop.permute.xlu1 %737  ;;  %v1659_v42 = vpop.permute.xlu0 %735 }
  0x81   :  { %v772_v35 = vmax.bf16 %v1657_v41, %v1499_v18  ;;  %v771_v36 = vmax.bf16 %v1659_v42, %v1504_v19 }
  0x82   :  { %965 = vrot.lane.b32.xlu1 %v1514_v22, %s1395_s9  ;;  %963 = vrot.lane.b32.xlu0 %v1519_v23, %s1395_s9 }
  0x84   :  { %v1663_v43 = vpop.permute.xlu1 %741  ;;  %v1665_v44 = vpop.permute.xlu0 %739 }
  0x85   :  { %v774_v41 = vmax.bf16 %v1663_v43, %v1514_v22  ;;  %v773_v42 = vmax.bf16 %v1665_v44, %v1519_v23 }
  0x86   :  { %969 = vrot.lane.b32.xlu1 %v1530_v25, %s1395_s9  ;;  %967 = vrot.lane.b32.xlu0 %v1535_v26, %s1395_s9 }
  0x88   :  { %v1669_v45 = vpop.permute.xlu1 %745  ;;  %v1671_v46 = vpop.permute.xlu0 %743 }
  0x89   :  { %v775_v43 = vmax.bf16 %v1671_v46, %v1535_v26 }
  0x8a   :  { %973 = vrot.lane.b32.xlu1 %v1549_v27, %s1395_s9  ;;  %971 = vrot.lane.b32.xlu0 %v1554_v28, %s1395_s9 }
  0x8c   :  { %v1675_v47 = vpop.permute.xlu1 %749  ;;  %v1677_v48 = vpop.permute.xlu0 %747 }
  0x8e   :  { %1005 = vrot.lane.b32.xlu1 %v1449_v5, %s1396_s10  ;;  %1003 = vrot.lane.b32.xlu0 %v1433_v1, %s1396_s10 }
  0x90   :  { %v782_v49 = vpop.permute.xlu1 %781  ;;  %v780_v50 = vpop.permute.xlu0 %779 }
  0x91   :  { %v1703_v3 = vmax.bf16 %v782_v49, %v766_v2  ;;  %v1705_v6 = vmax.bf16 %v780_v50, %v765_v63  ;;  %v776_v63 = vmax.bf16 %v1669_v45, %v1530_v25  ;;  %v777_v45 = vmax.bf16 %v1677_v48, %v1554_v28 }
  0x92   :  { %1009 = vrot.lane.b32.xlu1 %v1444_v4, %s1396_s10  ;;  %1007 = vrot.lane.b32.xlu0 %v1428_v0, %s1396_s10 }
  0x94   :  { %v786_v51 = vpop.permute.xlu1 %785  ;;  %v784_v52 = vpop.permute.xlu0 %783 }
  0x95   :  { %v1723_v15 = vmax.bf16 %v786_v51, %v768_v12  ;;  %v1725_v16 = vmax.bf16 %v784_v52, %v767_v9 }
  0x96   :  { %1013 = vrot.lane.b32.xlu1 %v1472_v10, %s1396_s10  ;;  %1011 = vrot.lane.b32.xlu0 %v1477_v11, %s1396_s10 }
  0x98   :  { %v790_v53 = vpop.permute.xlu1 %789  ;;  %v788_v54 = vpop.permute.xlu0 %787 }
  0x99   :  { %v1743_v31 = vmax.bf16 %v790_v53, %v770_v21  ;;  %v1745_v32 = vmax.bf16 %v788_v54, %v769_v24 }
  0x9a   :  { %1017 = vrot.lane.b32.xlu1 %v1499_v18, %s1396_s10  ;;  %1015 = vrot.lane.b32.xlu0 %v1504_v19, %s1396_s10 }
  0x9c   :  { %v794_v55 = vpop.permute.xlu1 %793  ;;  %v792_v56 = vpop.permute.xlu0 %791 }
  0x9d   :  { %v828_v39 = vmax.bf16 %v794_v55, %v772_v35  ;;  %v827_v40 = vmax.bf16 %v792_v56, %v771_v36 }
  0x9e   :  { %1021 = vrot.lane.b32.xlu1 %v1514_v22, %s1396_s10  ;;  %1019 = vrot.lane.b32.xlu0 %v1519_v23, %s1396_s10 }
  0xa0   :  { %v798_v57 = vpop.permute.xlu1 %797  ;;  %v796_v58 = vpop.permute.xlu0 %795 }
  0xa1   :  { %v830_v53 = vmax.bf16 %v798_v57, %v774_v41  ;;  %v829_v54 = vmax.bf16 %v796_v58, %v773_v42 }
  0xa2   :  { %1025 = vrot.lane.b32.xlu1 %v1530_v25, %s1396_s10  ;;  %1023 = vrot.lane.b32.xlu0 %v1535_v26, %s1396_s10 }
  0xa4   :  { %v802_v59 = vpop.permute.xlu1 %801  ;;  %v800_v60 = vpop.permute.xlu0 %799 }
  0xa5   :  { %v832_v9 = vmax.bf16 %v802_v59, %v776_v63  ;;  %v831_v12 = vmax.bf16 %v800_v60, %v775_v43 }
  0xa6   :  { %1029 = vrot.lane.b32.xlu1 %v1549_v27, %s1396_s10  ;;  %1027 = vrot.lane.b32.xlu0 %v1554_v28, %s1396_s10 }
  0xa8   :  { %v1693_v61 = vpop.permute.xlu1 %805  ;;  %v1695_v62 = vpop.permute.xlu0 %803 }
  0xa9   :  { %v833_v59 = vmax.bf16 %v1695_v62, %v777_v45 }
  0xaa   :  { %1061 = vrot.lane.b32.xlu1 %v1449_v5, %s1397_s11  ;;  %1059 = vrot.lane.b32.xlu0 %v1433_v1, %s1397_s11 }
  0xac   :  { %v1707_v7 = vpop.permute.xlu1 %837  ;;  %v1709_v8 = vpop.permute.xlu0 %835 }
  0xad   :  { %v878_v13 = vmax.bf16 %v1707_v7, %v1703_v3  ;;  %v877_v14 = vmax.bf16 %v1709_v8, %v1705_v6 }
  0xae   :  { %1065 = vrot.lane.b32.xlu1 %v1444_v4, %s1397_s11  ;;  %1063 = vrot.lane.b32.xlu0 %v1428_v0, %s1397_s11 }
  0xb0   :  { %v1727_v17 = vpop.permute.xlu1 %841  ;;  %v1729_v20 = vpop.permute.xlu0 %839 }
  0xb1   :  { %v880_v29 = vmax.bf16 %v1727_v17, %v1723_v15  ;;  %v879_v30 = vmax.bf16 %v1729_v20, %v1725_v16  ;;  %v778_v15 = vmax.bf16 %v1675_v47, %v1549_v27 }
  0xb2   :  { %1069 = vrot.lane.b32.xlu1 %v1472_v10, %s1397_s11  ;;  %1067 = vrot.lane.b32.xlu0 %v1477_v11, %s1397_s11 }
  0xb3   :  { %v834_v17 = vmax.bf16 %v1693_v61, %v778_v15 }
  0xb4   :  { %v846_v33 = vpop.permute.xlu1 %845  ;;  %v844_v34 = vpop.permute.xlu0 %843 }
  0xb5   :  { %v882_v37 = vmax.bf16 %v846_v33, %v1743_v31  ;;  %v881_v38 = vmax.bf16 %v844_v34, %v1745_v32 }
  0xb6   :  { %1073 = vrot.lane.b32.xlu1 %v1499_v18, %s1397_s11  ;;  %1071 = vrot.lane.b32.xlu0 %v1504_v19, %s1397_s11 }
  0xb8   :  { %v850_v49 = vpop.permute.xlu1 %849  ;;  %v848_v50 = vpop.permute.xlu0 %847 }
  0xb9   :  { %v884_v51 = vmax.bf16 %v850_v49, %v828_v39  ;;  %v883_v52 = vmax.bf16 %v848_v50, %v827_v40 }
  0xba   :  { %1077 = vrot.lane.b32.xlu1 %v1514_v22, %s1397_s11  ;;  %1075 = vrot.lane.b32.xlu0 %v1519_v23, %s1397_s11 }
  0xbc   :  { %v854_v55 = vpop.permute.xlu1 %853  ;;  %v852_v56 = vpop.permute.xlu0 %851 }
  0xbd   :  { %v886_v2 = vmax.bf16 %v854_v55, %v830_v53  ;;  %v885_v44 = vmax.bf16 %v852_v56, %v829_v54 }
  0xbe   :  { %1081 = vrot.lane.b32.xlu1 %v1530_v25, %s1397_s11  ;;  %1079 = vrot.lane.b32.xlu0 %v1535_v26, %s1397_s11 }
  0xc0   :  { %v858_v57 = vpop.permute.xlu1 %857  ;;  %v856_v58 = vpop.permute.xlu0 %855 }
  0xc1   :  { %v888_v16 = vmax.bf16 %v858_v57, %v832_v9  ;;  %v887_v46 = vmax.bf16 %v856_v58, %v831_v12 }
  0xc2   :  { %1085 = vrot.lane.b32.xlu1 %v1549_v27, %s1397_s11  ;;  %1083 = vrot.lane.b32.xlu0 %v1554_v28, %s1397_s11 }
  0xc4   :  { %v862_v60 = vpop.permute.xlu1 %861  ;;  %v860_v20 = vpop.permute.xlu0 %859 }
  0xc5   :  { %v890_v21 = vmax.bf16 %v862_v60, %v834_v17  ;;  %v889_v24 = vmax.bf16 %v860_v20, %v833_v59 }
  0xc6   :  { %1117 = vrot.lane.b32.xlu1 %v1449_v5, %s1398_s12  ;;  %1115 = vrot.lane.b32.xlu0 %v1433_v1, %s1398_s12 }
  0xc8   :  { %v894_v47 = vpop.permute.xlu1 %893  ;;  %v892_v48 = vpop.permute.xlu0 %891 }
  0xc9   :  { %v1790_v31 = vmax.bf16 %v894_v47, %v878_v13  ;;  %v1795_v61 = vmax.bf16 %v892_v48, %v877_v14 }
  0xca   :  { %1121 = vrot.lane.b32.xlu1 %v1444_v4, %s1398_s12  ;;  %1119 = vrot.lane.b32.xlu0 %v1428_v0, %s1398_s12 }
  0xcc   :  { %v898_v5 = vpop.permute.xlu1 %897  ;;  %v896_v1 = vpop.permute.xlu0 %895 }
  0xcd   :  { %v1801_v62 = vmax.bf16 %v898_v5, %v880_v29  ;;  %v1803_v32 = vmax.bf16 %v896_v1, %v879_v30 }
  0xce   :  { %1125 = vrot.lane.b32.xlu1 %v1472_v10, %s1398_s12  ;;  %1123 = vrot.lane.b32.xlu0 %v1477_v11, %s1398_s12 }
  0xd0   :  { %v902_v3 = vpop.permute.xlu1 %901  ;;  %v900_v6 = vpop.permute.xlu0 %899 }
  0xd1   :  { %v1809_v7 = vmax.bf16 %v902_v3, %v882_v37  ;;  %v1811_v4 = vmax.bf16 %v900_v6, %v881_v38 }
  0xd2   :  { %1129 = vrot.lane.b32.xlu1 %v1499_v18, %s1398_s12  ;;  %1127 = vrot.lane.b32.xlu0 %v1504_v19, %s1398_s12 }
  0xd4   :  { %v906_v0 = vpop.permute.xlu1 %905  ;;  %v904_v8 = vpop.permute.xlu0 %903 }
  0xd5   :  { %v1817_v13 = vmax.bf16 %v906_v0, %v884_v51  ;;  %v1819_v10 = vmax.bf16 %v904_v8, %v883_v52 }
  0xd6   :  { %1133 = vrot.lane.b32.xlu1 %v1514_v22, %s1398_s12  ;;  %1131 = vrot.lane.b32.xlu0 %v1519_v23, %s1398_s12 }
  0xd8   :  { %v910_v11 = vpop.permute.xlu1 %909  ;;  %v908_v14 = vpop.permute.xlu0 %907 }
  0xd9   :  { %v1825_v29 = vmax.bf16 %v910_v11, %v886_v2  ;;  %v1827_v18 = vmax.bf16 %v908_v14, %v885_v44 }
  0xda   :  { %1137 = vrot.lane.b32.xlu1 %v1530_v25, %s1398_s12  ;;  %1135 = vrot.lane.b32.xlu0 %v1535_v26, %s1398_s12 }
  0xdb   :  { %2188 = vst [vmem:[#allocation2_spill] sm:$0xff] %v1827_v18 }
  0xdc   :  { %v914_v19 = vpop.permute.xlu1 %913  ;;  %v912_v30 = vpop.permute.xlu0 %911 }
  0xdd   :  { %v1833_v33 = vmax.bf16 %v914_v19, %v888_v16  ;;  %v1835_v22 = vmax.bf16 %v912_v30, %v887_v46 }
  0xde   :  { %1141 = vrot.lane.b32.xlu1 %v1549_v27, %s1398_s12  ;;  %1139 = vrot.lane.b32.xlu0 %v1554_v28, %s1398_s12 }
  0xdf   :  { %2189 = vst [vmem:[#allocation3_spill] sm:$0xff] %v1833_v33  ;;  %2190 = vst [vmem:[#allocation4_spill] sm:$0xff] %v1835_v22 }
  0xe0   :  { %v918_v23 = vpop.permute.xlu1 %917  ;;  %v916_v34 = vpop.permute.xlu0 %915 }
  0xe1   :  { %v1841_v35 = vmax.bf16 %v918_v23, %v890_v21  ;;  %v1843_v25 = vmax.bf16 %v916_v34, %v889_v24 }
  0xe3   :  { %2191 = vst [vmem:[#allocation5_spill] sm:$0xff] %v1841_v35  ;;  %2192 = vst [vmem:[#allocation6_spill] sm:$0xff] %v1843_v25  ;;  %v180_v27 = vpop.f32.mrb[0].mxu0  ;;  %v283_v39 = vpop.f32.mrb[0].mxu1 }
  0xe4   :  { %v1845_v36 = vpop.permute.xlu1 %949  ;;  %v1847_v26 = vpop.permute.xlu0 %947  ;;  %v1287_v28 = vpack.c.bf16 %v283_v39, %v283_v39  ;;  %v595_v42 = vmul.f32 %v180_v27, %v180_v27  ;;  %v597_v56 = vmul.f32 %v283_v39, %v283_v39 }
  0xe5   :  { %v182_v40 = vpop.f32.mrb[1].mxu0  ;;  %v1332_v49 = vpop.f32.mrb[1].mxu1 }
  0xe6   :  { %v1286_v51 = vpack.c.bf16 %v182_v40, %v180_v27  ;;  %v596_v54 = vmul.f32 %v182_v40, %v182_v40  ;;  %v184_v55 = vpop.f32.mrb[2].mxu0  ;;  %479 = vst [vmem:[%s2175_s2 + $0x8] sm:$0xf] %v1287_v28  ;;  %v286_v63 = vpop.f32.mrb[2].mxu1 }
  0xe7   :  { %v506_v43 = vadd.f32 %v184_v55, %v180_v27  ;;  %v598_v2 = vmul.f32 %v184_v55, %v184_v55  ;;  %v186_v44 = vpop.f32.mrb[3].mxu0  ;;  %v1289_v9 = vpack.c.bf16 %v286_v63, %v286_v63  ;;  %v544_v12 = vadd.f32 %v286_v63, %v283_v39  ;;  %v1333_v57 = vpop.f32.mrb[3].mxu1 }
  0xe8   :  { %v1853_v50 = vpop.permute.xlu1 %953  ;;  %v1855_v41 = vpop.permute.xlu0 %951  ;;  %478 = vst [vmem:[%s2175_s2] sm:$0xff] %v1286_v51  ;;  %v1288_v58 = vpack.c.bf16 %v186_v44, %v184_v55  ;;  %v525_v15 = vadd.f32 %v186_v44, %v182_v40  ;;  %v599_v45 = vmul.f32 %v186_v44, %v186_v44  ;;  %v600_v16 = vmul.f32 %v286_v63, %v286_v63 }
  0xe9   :  { %v637_v59 = vadd.f32 %v598_v2, %v595_v42  ;;  %481 = vst [vmem:[%s2175_s2 + $0x14] sm:$0xf] %v1289_v9 }
  0xea   :  { %480 = vst [vmem:[%s2175_s2 + $0xc] sm:$0xff] %v1288_v58  ;;  %v656_v21 = vadd.f32 %v599_v45, %v596_v54  ;;  %v675_v24 = vadd.f32 %v600_v16, %v597_v56 }
  0xeb   :  { %v190_v47 = vpop.f32.mrb[4].mxu0  ;;  %v291_v48 = vpop.f32.mrb[4].mxu1 }
  0xec   :  { %v1867_v46 = vpop.permute.xlu1 %957  ;;  %v1869_v17 = vpop.permute.xlu0 %955  ;;  %v507_v5 = vadd.f32 %v506_v43, %v190_v47  ;;  %v601_v1 = vmul.f32 %v190_v47, %v190_v47  ;;  %v1291_v6 = vpack.c.bf16 %v291_v48, %v291_v48  ;;  %v545_v0 = vadd.f32 %v544_v12, %v291_v48 }
  0xed   :  { %v192_v3 = vpop.f32.mrb[5].mxu0  ;;  %v1336_v8 = vpop.f32.mrb[5].mxu1  ;;  %v603_v34 = vmul.f32 %v291_v48, %v291_v48 }
  0xee   :  { %v1290_v19 = vpack.c.bf16 %v192_v3, %v190_v47  ;;  %v526_v30 = vadd.f32 %v525_v15, %v192_v3  ;;  %v602_v23 = vmul.f32 %v192_v3, %v192_v3  ;;  %v638_v40 = vadd.f32 %v637_v59, %v601_v1  ;;  %v194_v28 = vpop.f32.mrb[6].mxu0  ;;  %483 = vst [vmem:[%s2175_s2 + $0x20] sm:$0xf] %v1291_v6  ;;  %v294_v49 = vpop.f32.mrb[6].mxu1 }
  0xef   :  { %v508_v51 = vadd.f32 %v507_v5, %v194_v28  ;;  %v604_v54 = vmul.f32 %v194_v28, %v194_v28  ;;  %v196_v55 = vpop.f32.mrb[7].mxu0  ;;  %v676_v56 = vadd.f32 %v675_v24, %v603_v34  ;;  %v1337_v63 = vpop.f32.mrb[7].mxu1  ;;  %v1293_v9 = vpack.c.bf16 %v294_v49, %v294_v49 }
  0xf0   :  { %v1881_v11 = vpop.permute.xlu1 %961  ;;  %v1883_v14 = vpop.permute.xlu0 %959  ;;  %482 = vst [vmem:[%s2175_s2 + $0x18] sm:$0xff] %v1290_v19  ;;  %v657_v42 = vadd.f32 %v656_v21, %v602_v23  ;;  %v1292_v43 = vpack.c.bf16 %v196_v55, %v194_v28  ;;  %v527_v2 = vadd.f32 %v526_v30, %v196_v55  ;;  %v605_v44 = vmul.f32 %v196_v55, %v196_v55 }
  0xf1   :  { %v639_v58 = vadd.f32 %v638_v40, %v604_v54  ;;  %v546_v15 = vadd.f32 %v545_v0, %v294_v49  ;;  %v606_v45 = vmul.f32 %v294_v49, %v294_v49  ;;  %485 = vst [vmem:[%s2175_s2 + $0x2c] sm:$0xf] %v1293_v9 }
  0xf2   :  { %484 = vst [vmem:[%s2175_s2 + $0x24] sm:$0xff] %v1292_v43  ;;  %v658_v21 = vadd.f32 %v657_v42, %v605_v44 }
  0xf3   :  { %v200_v24 = vpop.f32.mrb[8].mxu0  ;;  %v677_v47 = vadd.f32 %v676_v56, %v606_v45  ;;  %v299_v48 = vpop.f32.mrb[8].mxu1 }
  0xf4   :  { %v1895_v12 = vpop.permute.xlu1 %965  ;;  %v1897_v57 = vpop.permute.xlu0 %963  ;;  %v509_v5 = vadd.f32 %v508_v51, %v200_v24  ;;  %v607_v1 = vmul.f32 %v200_v24, %v200_v24  ;;  %v1295_v6 = vpack.c.bf16 %v299_v48, %v299_v48  ;;  %v547_v0 = vadd.f32 %v546_v15, %v299_v48 }
  0xf5   :  { %2193 = vst [vmem:[#allocation7_spill] sm:$0xff] %v1897_v57  ;;  %v202_v3 = vpop.f32.mrb[9].mxu0  ;;  %v1340_v8 = vpop.f32.mrb[9].mxu1  ;;  %v609_v28 = vmul.f32 %v299_v48, %v299_v48 }
  0xf6   :  { %v1294_v23 = vpack.c.bf16 %v202_v3, %v200_v24  ;;  %v528_v34 = vadd.f32 %v527_v2, %v202_v3  ;;  %v608_v40 = vmul.f32 %v202_v3, %v202_v3  ;;  %v640_v51 = vadd.f32 %v639_v58, %v607_v1  ;;  %v204_v54 = vpop.f32.mrb[10].mxu0  ;;  %487 = vst [vmem:[%s2175_s2 + $0x38] sm:$0xf] %v1295_v6  ;;  %v302_v55 = vpop.f32.mrb[10].mxu1 }
  0xf7   :  { %v510_v63 = vadd.f32 %v509_v5, %v204_v54  ;;  %v610_v43 = vmul.f32 %v204_v54, %v204_v54  ;;  %v206_v2 = vpop.f32.mrb[11].mxu0  ;;  %v678_v44 = vadd.f32 %v677_v47, %v609_v28  ;;  %v1341_v9 = vpop.f32.mrb[11].mxu1  ;;  %v1297_v58 = vpack.c.bf16 %v302_v55, %v302_v55 }
  0xf8   :  { %v1909_v19 = vpop.permute.xlu1 %969  ;;  %v1911_v30 = vpop.permute.xlu0 %967  ;;  %486 = vst [vmem:[%s2175_s2 + $0x30] sm:$0xff] %v1294_v23  ;;  %v659_v56 = vadd.f32 %v658_v21, %v608_v40  ;;  %v1296_v15 = vpack.c.bf16 %v206_v2, %v204_v54  ;;  %v529_v45 = vadd.f32 %v528_v34, %v206_v2  ;;  %v611_v24 = vmul.f32 %v206_v2, %v206_v2 }
  0xf9   :  { %2194 = vst [vmem:[#allocation8_spill] sm:$0xff] %v1909_v19  ;;  %2195 = vst [vmem:[#allocation9_spill] sm:$0xff] %v1911_v30  ;;  %v641_v3 = vadd.f32 %v640_v51, %v610_v43  ;;  %v548_v6 = vadd.f32 %v547_v0, %v302_v55  ;;  %v612_v8 = vmul.f32 %v302_v55, %v302_v55 }
  0xfa   :  { %488 = vst [vmem:[%s2175_s2 + $0x3c] sm:$0xff] %v1296_v15  ;;  %v660_v47 = vadd.f32 %v659_v56, %v611_v24  ;;  %489 = vst [vmem:[%s2175_s2 + $0x44] sm:$0xf] %v1297_v58 }
  0xfb   :  { %v210_v5 = vpop.f32.mrb[12].mxu0  ;;  %v679_v34 = vadd.f32 %v678_v44, %v612_v8  ;;  %v307_v40 = vpop.f32.mrb[12].mxu1 }
  0xfc   :  { %v1923_v48 = vpop.permute.xlu1 %973  ;;  %v1925_v1 = vpop.permute.xlu0 %971  ;;  %v511_v0 = vadd.f32 %v510_v63, %v210_v5  ;;  %v613_v28 = vmul.f32 %v210_v5, %v210_v5  ;;  %v1299_v54 = vpack.c.bf16 %v307_v40, %v307_v40  ;;  %v549_v55 = vadd.f32 %v548_v6, %v307_v40 }
  0xfd   :  { %2196 = vst [vmem:[#allocation10_spill] sm:$0xff] %v1923_v48  ;;  %2197 = vst [vmem:[#allocation11_spill] sm:$0xff] %v1925_v1  ;;  %v212_v51 = vpop.f32.mrb[13].mxu0  ;;  %v1344_v43 = vpop.f32.mrb[13].mxu1  ;;  %v615_v24 = vmul.f32 %v307_v40, %v307_v40 }
  0xfe   :  { %v1298_v21 = vpack.c.bf16 %v212_v51, %v210_v5  ;;  %v530_v15 = vadd.f32 %v529_v45, %v212_v51  ;;  %v614_v56 = vmul.f32 %v212_v51, %v212_v51  ;;  %v642_v23 = vadd.f32 %v641_v3, %v613_v28  ;;  %v214_v42 = vpop.f32.mrb[14].mxu0  ;;  %491 = vst [vmem:[%s2175_s2 + $0x50] sm:$0xf] %v1299_v54  ;;  %v310_v63 = vpop.f32.mrb[14].mxu1 }
  0xff   :  { %v512_v58 = vadd.f32 %v511_v0, %v214_v42  ;;  %v616_v6 = vmul.f32 %v214_v42, %v214_v42  ;;  %v216_v8 = vpop.f32.mrb[15].mxu0  ;;  %v680_v43 = vadd.f32 %v679_v34, %v615_v24  ;;  %v1345_v5 = vpop.f32.mrb[15].mxu1  ;;  %v1301_v3 = vpack.c.bf16 %v310_v63, %v310_v63 }
 0x100   :  { %v1937_v2 = vpop.permute.xlu1 %1005  ;;  %v1939_v9 = vpop.permute.xlu0 %1003  ;;  %490 = vst [vmem:[%s2175_s2 + $0x48] sm:$0xff] %v1298_v21  ;;  %v661_v44 = vadd.f32 %v660_v47, %v614_v56  ;;  %v1300_v45 = vpack.c.bf16 %v216_v8, %v214_v42  ;;  %v531_v51 = vadd.f32 %v530_v15, %v216_v8  ;;  %v617_v40 = vmul.f32 %v216_v8, %v216_v8 }
 0x101   :  { %v643_v54 = vadd.f32 %v642_v23, %v616_v6  ;;  %v550_v59 = vadd.f32 %v549_v55, %v310_v63  ;;  %v618_v16 = vmul.f32 %v310_v63, %v310_v63  ;;  %493 = vst [vmem:[%s2175_s2 + $0x5c] sm:$0xf] %v1301_v3 }
 0x102   :  { %492 = vst [vmem:[%s2175_s2 + $0x54] sm:$0xff] %v1300_v45  ;;  %v662_v21 = vadd.f32 %v661_v44, %v617_v40 }
 0x103   :  { %v220_v42 = vpop.f32.mrb[16].mxu0  ;;  %v681_v47 = vadd.f32 %v680_v43, %v618_v16  ;;  %v315_v34 = vpop.f32.mrb[16].mxu1 }
 0x104   :  { %v1947_v28 = vpop.permute.xlu1 %1009  ;;  %v1949_v49 = vpop.permute.xlu0 %1007  ;;  %v513_v0 = vadd.f32 %v512_v58, %v220_v42  ;;  %v619_v15 = vmul.f32 %v220_v42, %v220_v42  ;;  %v1303_v24 = vpack.c.bf16 %v315_v34, %v315_v34  ;;  %v551_v8 = vadd.f32 %v550_v59, %v315_v34 }
 0x105   :  { %v222_v56 = vpop.f32.mrb[17].mxu0  ;;  %v1348_v23 = vpop.f32.mrb[17].mxu1  ;;  %v621_v45 = vmul.f32 %v315_v34, %v315_v34 }
 0x106   :  { %v1302_v6 = vpack.c.bf16 %v222_v56, %v220_v42  ;;  %v532_v5 = vadd.f32 %v531_v51, %v222_v56  ;;  %v620_v44 = vmul.f32 %v222_v56, %v222_v56  ;;  %v644_v40 = vadd.f32 %v643_v54, %v619_v15  ;;  %v224_v39 = vpop.f32.mrb[18].mxu0  ;;  %495 = vst [vmem:[%s2175_s2 + $0x68] sm:$0xf] %v1303_v24  ;;  %v318_v16 = vpop.f32.mrb[18].mxu1 }
 0x107   :  { %v514_v58 = vadd.f32 %v513_v0, %v224_v39  ;;  %v622_v43 = vmul.f32 %v224_v39, %v224_v39  ;;  %v226_v3 = vpop.f32.mrb[19].mxu0  ;;  %v682_v23 = vadd.f32 %v681_v47, %v621_v45  ;;  %v1349_v42 = vpop.f32.mrb[19].mxu1  ;;  %v1305_v54 = vpack.c.bf16 %v318_v16, %v318_v16 }
 0x108   :  { %v1957_v55 = vpop.permute.xlu1 %1013  ;;  %v1959_v63 = vpop.permute.xlu0 %1011  ;;  %494 = vst [vmem:[%s2175_s2 + $0x60] sm:$0xff] %v1302_v6  ;;  %v663_v59 = vadd.f32 %v662_v21, %v620_v44  ;;  %v1304_v51 = vpack.c.bf16 %v226_v3, %v224_v39  ;;  %v533_v56 = vadd.f32 %v532_v5, %v226_v3  ;;  %v623_v34 = vmul.f32 %v226_v3, %v226_v3 }
 0x109   :  { %v645_v24 = vadd.f32 %v644_v40, %v622_v43  ;;  %v552_v20 = vadd.f32 %v551_v8, %v318_v16  ;;  %v624_v60 = vmul.f32 %v318_v16, %v318_v16  ;;  %497 = vst [vmem:[%s2175_s2 + $0x74] sm:$0xf] %v1305_v54 }
 0x10a   :  { %496 = vst [vmem:[%s2175_s2 + $0x6c] sm:$0xff] %v1304_v51  ;;  %v664_v21 = vadd.f32 %v663_v59, %v623_v34 }
 0x10b   :  { %v230_v39 = vpop.f32.mrb[20].mxu0  ;;  %v683_v47 = vadd.f32 %v682_v23, %v624_v60  ;;  %v323_v0 = vpop.f32.mrb[20].mxu1 }
 0x10c   :  { %v1967_v15 = vpop.permute.xlu1 %1017  ;;  %v1969_v27 = vpop.permute.xlu0 %1015  ;;  %v515_v6 = vadd.f32 %v514_v58, %v230_v39  ;;  %v625_v5 = vmul.f32 %v230_v39, %v230_v39  ;;  %v1307_v45 = vpack.c.bf16 %v323_v0, %v323_v0  ;;  %v553_v3 = vadd.f32 %v552_v20, %v323_v0 }
 0x10d   :  { %v232_v44 = vpop.f32.mrb[21].mxu0  ;;  %v1352_v40 = vpop.f32.mrb[21].mxu1  ;;  %v627_v51 = vmul.f32 %v323_v0, %v323_v0 }
 0x10e   :  { %v1306_v43 = vpack.c.bf16 %v232_v44, %v230_v39  ;;  %v534_v42 = vadd.f32 %v533_v56, %v232_v44  ;;  %v626_v59 = vmul.f32 %v232_v44, %v232_v44  ;;  %v646_v34 = vadd.f32 %v645_v24, %v625_v5  ;;  %v234_v53 = vpop.f32.mrb[22].mxu0  ;;  %499 = vst [vmem:[%s2175_s2 + $0x80] sm:$0xf] %v1307_v45  ;;  %v326_v60 = vpop.f32.mrb[22].mxu1 }
 0x10f   :  { %v516_v58 = vadd.f32 %v515_v6, %v234_v53  ;;  %v628_v23 = vmul.f32 %v234_v53, %v234_v53  ;;  %v236_v54 = vpop.f32.mrb[23].mxu0  ;;  %v684_v40 = vadd.f32 %v683_v47, %v627_v51  ;;  %v1353_v39 = vpop.f32.mrb[23].mxu1  ;;  %v1309_v24 = vpack.c.bf16 %v326_v60, %v326_v60 }
 0x110   :  { %v1977_v8 = vpop.permute.xlu1 %1021  ;;  %v1979_v16 = vpop.permute.xlu0 %1019  ;;  %498 = vst [vmem:[%s2175_s2 + $0x78] sm:$0xff] %v1306_v43  ;;  %v665_v20 = vadd.f32 %v664_v21, %v626_v59  ;;  %v1308_v56 = vpack.c.bf16 %v236_v54, %v234_v53  ;;  %v535_v44 = vadd.f32 %v534_v42, %v236_v54  ;;  %v629_v0 = vmul.f32 %v236_v54, %v236_v54 }
 0x111   :  { %2198 = vst [vmem:[#allocation12_spill] sm:$0xff] %v1979_v16  ;;  %v647_v45 = vadd.f32 %v646_v34, %v628_v23  ;;  %v554_v38 = vadd.f32 %v553_v3, %v326_v60  ;;  %v630_v37 = vmul.f32 %v326_v60, %v326_v60  ;;  %501 = vst [vmem:[%s2175_s2 + $0x8c] sm:$0xf] %v1309_v24 }
 0x112   :  { %500 = vst [vmem:[%s2175_s2 + $0x84] sm:$0xff] %v1308_v56  ;;  %v666_v21 = vadd.f32 %v665_v20, %v629_v0 }
 0x113   :  { %v240_v53 = vpop.f32.mrb[24].mxu0  ;;  %v685_v47 = vadd.f32 %v684_v40, %v630_v37  ;;  %v331_v6 = vpop.f32.mrb[24].mxu1 }
 0x114   :  { %v1987_v5 = vpop.permute.xlu1 %1025  ;;  %v1989_v52 = vpop.permute.xlu0 %1023  ;;  %v517_v43 = vadd.f32 %v516_v58, %v240_v53  ;;  %v631_v42 = vmul.f32 %v240_v53, %v240_v53  ;;  %v1311_v51 = vpack.c.bf16 %v331_v6, %v331_v6  ;;  %v555_v54 = vadd.f32 %v554_v38, %v331_v6 }
 0x115   :  { %2199 = vst [vmem:[#allocation13_spill] sm:$0xff] %v1987_v5  ;;  %2200 = vst [vmem:[#allocation14_spill] sm:$0xff] %v1989_v52  ;;  %v242_v59 = vpop.f32.mrb[25].mxu0  ;;  %v1356_v34 = vpop.f32.mrb[25].mxu1  ;;  %v633_v56 = vmul.f32 %v331_v6, %v331_v6 }
 0x116   :  { %v1310_v23 = vpack.c.bf16 %v242_v59, %v240_v53  ;;  %v536_v39 = vadd.f32 %v535_v44, %v242_v59  ;;  %v632_v20 = vmul.f32 %v242_v59, %v242_v59  ;;  %v648_v0 = vadd.f32 %v647_v45, %v631_v42  ;;  %v244_v25 = vpop.f32.mrb[26].mxu0  ;;  %503 = vst [vmem:[%s2175_s2 + $0x98] sm:$0xf] %v1311_v51  ;;  %v334_v37 = vpop.f32.mrb[26].mxu1 }
 0x117   :  { %v518_v58 = vadd.f32 %v517_v43, %v244_v25  ;;  %v634_v40 = vmul.f32 %v244_v25, %v244_v25  ;;  %v246_v24 = vpop.f32.mrb[27].mxu0  ;;  %v686_v34 = vadd.f32 %v685_v47, %v633_v56  ;;  %v1357_v53 = vpop.f32.mrb[27].mxu1  ;;  %v1313_v45 = vpack.c.bf16 %v334_v37, %v334_v37 }
 0x118   :  { %v1997_v3 = vpop.permute.xlu1 %1029  ;;  %v1999_v60 = vpop.permute.xlu0 %1027  ;;  %502 = vst [vmem:[%s2175_s2 + $0x90] sm:$0xff] %v1310_v23  ;;  %v667_v38 = vadd.f32 %v666_v21, %v632_v20  ;;  %v1312_v44 = vpack.c.bf16 %v246_v24, %v244_v25  ;;  %v537_v59 = vadd.f32 %v536_v39, %v246_v24  ;;  %v635_v6 = vmul.f32 %v246_v24, %v246_v24 }
 0x119   :  { %2201 = vst [vmem:[#allocation15_spill] sm:$0xff] %v1997_v3  ;;  %2202 = vst [vmem:[#allocation16_spill] sm:$0xff] %v1999_v60  ;;  %v519_v42 = vrot.slane %v518_v58, 4  ;;  %v649_v60 = vadd.f32 %v648_v0, %v634_v40  ;;  %v556_v3 = vadd.f32 %v555_v54, %v334_v37  ;;  %v636_v35 = vmul.f32 %v334_v37, %v334_v37 }
 0x11a   :  { %504 = vst [vmem:[%s2175_s2 + $0x9c] sm:$0xff] %v1312_v44  ;;  %v538_v21 = vrot.slane %v537_v59, 4  ;;  %v1399_v43 = vmov 1966171168   ;;  %v570_v23 = vlaneseq  ;;  %v668_v25 = vadd.f32 %v667_v38, %v635_v6  ;;  %505 = vst [vmem:[%s2175_s2 + $0xa4] sm:$0xf] %v1313_v45 }
 0x11b   :  { %v568_v47 = vunpack.c.l.s4 %v1399_v43  ;;  %v520_v39 = vadd.f32 %v519_v42, %v518_v58  ;;  %v650_v20 = vrot.slane %v649_v60, 4  ;;  %v557_v56 = vrot.slane %v556_v3, 4 }
 0x11c   :  { %v2007_v1 = vpop.permute.xlu1 %1061  ;;  %v2009_v51 = vpop.permute.xlu0 %1059  ;;  %v687_v0 = vadd.f32 %v686_v34, %v636_v35  ;;  %v539_v40 = vadd.f32 %v538_v21, %v537_v59  ;;  %v669_v54 = vrot.slane %v668_v25, 4  ;;  %v571_v6 = vshrl.u32 %v570_v23, 7 }
 0x11d   :  { %v521_v37 = vrot.slane %v520_v39, 2  ;;  %v651_v24 = vadd.f32 %v650_v20, %v649_v60  ;;  %v558_v53 = vadd.f32 %v557_v56, %v556_v3  ;;  %v569_v38 = vunpack.c.0.s8 %v568_v47 }
 0x11e   :  { %v688_v48 = vrot.slane %v687_v0, 4  ;;  %v540_v43 = vrot.slane %v539_v40, 2  ;;  %v670_v22 = vadd.f32 %v669_v54, %v668_v25  ;;  %vm592_vm3 = vcmp.lt.s32.totalorder %v570_v23, 384 }
 0x11f   :  { %v522_v30 = vadd.f32 %v521_v37, %v520_v39  ;;  %v652_v45 = vrot.slane %v651_v24, 2  ;;  %v559_v58 = vrot.slane %v558_v53, 2  ;;  %v572_v33 = vsub.s32 %v569_v38, %v571_v6 }
 0x120   :  { %v2017_v44 = vpop.permute.xlu1 %1065  ;;  %v2019_v52 = vpop.permute.xlu0 %1063  ;;  %v689_v42 = vadd.f32 %v688_v48, %v687_v0  ;;  %v541_v5 = vadd.f32 %v540_v43, %v539_v40  ;;  %v671_v35 = vrot.slane %v670_v22, 2 }
 0x121   :  { %v523_v34 = vrot.slane %v522_v30, 1  ;;  %v653_v59 = vadd.f32 %v652_v45, %v651_v24  ;;  %v560_v21 = vadd.f32 %v559_v58, %v558_v53 }
 0x122   :  { %v690_v60 = vrot.slane %v689_v42, 2  ;;  %v542_v56 = vrot.slane %v541_v5, 1  ;;  %v672_v19 = vadd.f32 %v671_v35, %v670_v22 }
 0x123   :  { %v524_v47 = vadd.f32 %v523_v34, %v522_v30  ;;  %v654_v16 = vrot.slane %v653_v59, 1  ;;  %v561_v25 = vrot.slane %v560_v21, 1 }
 0x124   :  { %v2021_v3 = vpop.permute.xlu1 %1069  ;;  %v2023_v20 = vpop.permute.xlu0 %1067  ;;  %v691_v39 = vadd.f32 %v690_v60, %v689_v42  ;;  %v543_v54 = vadd.f32 %v542_v56, %v541_v5  ;;  %v673_v37 = vrot.slane %v672_v19, 1  ;;  %v2204_v60 = vmax.bf16 %v1847_v26, %v1795_v61 }
 0x125   :  { %v655_v48 = vadd.f32 %v654_v16, %v653_v59  ;;  %v562_v0 = vadd.f32 %v561_v25, %v560_v21 }
 0x126   :  { %v692_v40 = vrot.slane %v691_v39, 1  ;;  %v566_v53 = vcombine.low %v524_v47, %v543_v54  ;;  %v674_v45 = vadd.f32 %v673_v37, %v672_v19  ;;  %v1045_v56 = vmax.bf16 %v1939_v9, %v2204_v60 }
 0x127   :  { %v580_v58 = vrot.slane %v562_v0, %v572_v33  ;;  %v2205_v54 = vmax.bf16 %v1853_v50, %v1801_v62  ;;  %v2208_v50 = vmax.bf16 %v1869_v17, %v1811_v4 }
 0x128   :  { %v2025_v43 = vpop.permute.xlu1 %1073  ;;  %v2027_v24 = vpop.permute.xlu0 %1071  ;;  %v693_v18 = vadd.f32 %v692_v40, %v691_v39  ;;  %v573_v57 = vrot.slane %v566_v53, %v572_v33  ;;  %v697_v38 = vcombine.low %v655_v48, %v674_v45  ;;  %v1101_v47 = vmax.bf16 %v2009_v51, %v1045_v56 }
 0x129   :  { %v1048_v37 = vmax.bf16 %v1947_v28, %v2205_v54  ;;  %v2207_v48 = vmax.bf16 %v1867_v46, %v1809_v7  ;;  %v2210_v40 = vmax.bf16 %v1883_v14, %v1819_v10  ;;  %v2219_v54 = vld [vmem:[#allocation13_spill] sm:$0xff] }
 0x12a   :  { %v711_v22 = vrot.slane %v693_v18, %v572_v33  ;;  %v704_v5 = vrot.slane %v697_v38, %v572_v33  ;;  %v581_v42 = vcombine.low %v573_v57, %v580_v58  ;;  %v2203_v57 = vmax.bf16 %v1845_v36, %v1790_v31 }
 0x12b   :  { %v2206_v31 = vmax.bf16 %v1855_v41, %v1803_v32  ;;  %v1104_v26 = vmax.bf16 %v2017_v44, %v1048_v37  ;;  %v1050_v62 = vmax.bf16 %v1957_v55, %v2207_v48  ;;  %v1049_v32 = vmax.bf16 %v1959_v63, %v2208_v50 }
 0x12c   :  { %v2029_v30 = vpop.permute.xlu1 %1077  ;;  %v2031_v6 = vpop.permute.xlu0 %1075  ;;  %v588_v16 = vrot.slane %v581_v42, %v572_v33  ;;  %v712_v35 = vcombine.low %v704_v5, %v711_v22  ;;  %v1046_v23 = vmax.bf16 %v1937_v2, %v2203_v57  ;;  %v2209_v55 = vmax.bf16 %v1881_v11, %v1817_v13  ;;  %v2212_v5 = vld [vmem:[#allocation7_spill] sm:$0xff]  ;;  %v2213_v42 = vld [vmem:[#allocation2_spill] sm:$0xff] }
 0x12d   :  { %v1047_v36 = vmax.bf16 %v1949_v49, %v2206_v31  ;;  %v1106_v7 = vmax.bf16 %v2021_v3, %v1050_v62  ;;  %v1105_v4 = vmax.bf16 %v2023_v20, %v1049_v32  ;;  %v1051_v53 = vmax.bf16 %v1969_v27, %v2210_v40  ;;  %v2220_v31 = vld [vmem:[#allocation9_spill] sm:$0xff] }
 0x12e   :  { %594 = vst.msk [vmem:[%s2176_s3] ss:$2 sm:$0x7] %vm592_vm3, %v588_v16  ;;  %v719_v19 = vrot.slane %v712_v35, %v572_v33  ;;  %v1102_v33 = vmax.bf16 %v2007_v1, %v1046_v23  ;;  %v1052_v63 = vmax.bf16 %v1967_v15, %v2209_v55  ;;  %v2211_v27 = vmax.bf16 %v1895_v12, %v1825_v29  ;;  %v2215_v35 = vld [vmem:[#allocation12_spill] sm:$0xff] }
 0x12f   :  { %v1103_v1 = vmax.bf16 %v2019_v52, %v1047_v36  ;;  %v1107_v10 = vmax.bf16 %v2027_v24, %v1051_v53  ;;  %v2214_v16 = vmax.bf16 %v2212_v5, %v2213_v42  ;;  %v2221_v36 = vld [vmem:[#allocation4_spill] sm:$0xff] }
 0x130   :  { %v2033_v34 = vpop.permute.xlu1 %1081  ;;  %v2035_v59 = vpop.permute.xlu0 %1079  ;;  %1285 = vst.msk [vmem:[%s2176_s3 + $0x1] ss:$2 sm:$0x7] %vm592_vm3, %v719_v19  ;;  %v1108_v13 = vmax.bf16 %v2025_v43, %v1052_v63  ;;  %v1054_v15 = vmax.bf16 %v1977_v8, %v2211_v27 }
 0x131   :  { %v1053_v19 = vmax.bf16 %v2215_v35, %v2214_v16 }
 0x132   :  { %v1110_v29 = vmax.bf16 %v2029_v30, %v1054_v15 }
 0x133   :  { %v1109_v12 = vmax.bf16 %v2031_v6, %v1053_v19 }
 0x134   :  { %v2043_v18 = vpop.permute.xlu1 %1085  ;;  %v2045_v21 = vpop.permute.xlu0 %1083 }
 0x138   :  { %v1118_v25 = vpop.permute.xlu1 %1117  ;;  %v1116_v39 = vpop.permute.xlu0 %1115 }
 0x139   :  { %v1158_v2 = vmax.bf16 %v1118_v25, %v1102_v33  ;;  %v1157_v61 = vmax.bf16 %v1116_v39, %v1101_v47  ;;  %v2216_v47 = vld [vmem:[#allocation8_spill] sm:$0xff]  ;;  %v2217_v25 = vld [vmem:[#allocation3_spill] sm:$0xff] }
 0x13a   :  { %v2218_v39 = vmax.bf16 %v2216_v47, %v2217_v25 }
 0x13b   :  { %v1172_v9 = vunpack.c.l.bf16 %v1158_v2  ;;  %v1171_v51 = vunpack.c.l.bf16 %v1157_v61  ;;  %v2222_v2 = vmax.bf16 %v2220_v31, %v2221_v36  ;;  %v2223_v61 = vld [vmem:[#allocation14_spill] sm:$0xff] }
 0x13c   :  { %v1122_v41 = vpop.permute.xlu1 %1121  ;;  %v1120_v49 = vpop.permute.xlu0 %1119  ;;  %v1056_v37 = vmax.bf16 %v2219_v54, %v2218_v39 }
 0x13d   :  { %v1187_v28 = vsel %vm1185_vm4, %v1172_v9, 0.0  ;;  %v1186_v44 = vsel %vm1185_vm4, %v1171_v51, 0.0  ;;  %v1160_v0 = vmax.bf16 %v1122_v41, %v1104_v26  ;;  %v1159_v52 = vmax.bf16 %v1120_v49, %v1103_v1  ;;  %v2224_v49 = vld [vmem:[#allocation10_spill] sm:$0xff] }
 0x13e   :  { %1201 = vst [vmem:[%s2177_s4 + $0x8] sm:$0xff] %v1187_v28  ;;  %1200 = vst [vmem:[%s2177_s4] sm:$0xff] %v1186_v44  ;;  %v1055_v26 = vmax.bf16 %v2223_v61, %v2222_v2  ;;  %v1112_v62 = vmax.bf16 %v2033_v34, %v1056_v37  ;;  %v2225_v28 = vld [vmem:[#allocation5_spill] sm:$0xff] }
 0x13f   :  { %v1174_v46 = vunpack.c.l.bf16 %v1160_v0  ;;  %v1173_v17 = vunpack.c.l.bf16 %v1159_v52  ;;  %v2226_v44 = vmax.bf16 %v2224_v49, %v2225_v28  ;;  %v2227_v0 = vld [vmem:[#allocation15_spill] sm:$0xff] }
 0x140   :  { %v1126_v45 = vpop.permute.xlu1 %1125  ;;  %v1124_v58 = vpop.permute.xlu0 %1123  ;;  %v1111_v50 = vmax.bf16 %v2035_v59, %v1055_v26 }
 0x141   :  { %v1189_v38 = vsel %vm1185_vm4, %v1174_v46, 0.0  ;;  %v1188_v3 = vsel %vm1185_vm4, %v1173_v17, 0.0  ;;  %v1162_v22 = vmax.bf16 %v1126_v45, %v1106_v7  ;;  %v1161_v20 = vmax.bf16 %v1124_v58, %v1105_v4  ;;  %v2228_v7 = vld [vmem:[#allocation11_spill] sm:$0xff]  ;;  %v2229_v4 = vld [vmem:[#allocation6_spill] sm:$0xff]  ;;  %v2231_v17 = vld [vmem:[#allocation16_spill] sm:$0xff] }
 0x142   :  { %1203 = vst [vmem:[%s2177_s4 + $0x18] sm:$0xff] %v1189_v38  ;;  %1202 = vst [vmem:[%s2177_s4 + $0x10] sm:$0xff] %v1188_v3  ;;  %v1058_v52 = vmax.bf16 %v2227_v0, %v2226_v44  ;;  %v2230_v46 = vmax.bf16 %v2228_v7, %v2229_v4 }
 0x143   :  { %v1176_v11 = vunpack.c.l.bf16 %v1162_v22  ;;  %v1175_v14 = vunpack.c.l.bf16 %v1161_v20 }
 0x144   :  { %v1130_v57 = vpop.permute.xlu1 %1129  ;;  %v1128_v23 = vpop.permute.xlu0 %1127  ;;  %v1057_v55 = vmax.bf16 %v2231_v17, %v2230_v46  ;;  %v1114_v58 = vmax.bf16 %v2043_v18, %v1058_v52 }
 0x145   :  { %v1191_v60 = vsel %vm1185_vm4, %v1176_v11, 0.0  ;;  %v1190_v43 = vsel %vm1185_vm4, %v1175_v14, 0.0  ;;  %v1164_v56 = vmax.bf16 %v1130_v57, %v1108_v13  ;;  %v1163_v24 = vmax.bf16 %v1128_v23, %v1107_v10 }
 0x146   :  { %1205 = vst [vmem:[%s2177_s4 + $0x28] sm:$0xff] %v1191_v60  ;;  %1204 = vst [vmem:[%s2177_s4 + $0x20] sm:$0xff] %v1190_v43  ;;  %v1113_v38 = vmax.bf16 %v2045_v21, %v1057_v55 }
 0x147   :  { %v1178_v8 = vunpack.c.l.bf16 %v1164_v56  ;;  %v1177_v33 = vunpack.c.l.bf16 %v1163_v24 }
 0x148   :  { %v1134_v1 = vpop.permute.xlu1 %1133  ;;  %v1132_v9 = vpop.permute.xlu0 %1131 }
 0x149   :  { %v1193_v51 = vsel %vm1185_vm4, %v1178_v8, 0.0  ;;  %v1192_v30 = vsel %vm1185_vm4, %v1177_v33, 0.0  ;;  %v1166_v48 = vmax.bf16 %v1134_v1, %v1110_v29  ;;  %v1165_v6 = vmax.bf16 %v1132_v9, %v1109_v12 }
 0x14a   :  { %1207 = vst [vmem:[%s2177_s4 + $0x38] sm:$0xff] %v1193_v51  ;;  %1206 = vst [vmem:[%s2177_s4 + $0x30] sm:$0xff] %v1192_v30 }
 0x14b   :  { %v1180_v32 = vunpack.c.l.bf16 %v1166_v48  ;;  %v1179_v41 = vunpack.c.l.bf16 %v1165_v6 }
 0x14c   :  { %v1138_v63 = vpop.permute.xlu1 %1137  ;;  %v1136_v40 = vpop.permute.xlu0 %1135 }
 0x14d   :  { %v1195_v53 = vsel %vm1185_vm4, %v1180_v32, 0.0  ;;  %v1194_v34 = vsel %vm1185_vm4, %v1179_v41, 0.0  ;;  %v1168_v45 = vmax.bf16 %v1138_v63, %v1112_v62  ;;  %v1167_v59 = vmax.bf16 %v1136_v40, %v1111_v50 }
 0x14e   :  { %1209 = vst [vmem:[%s2177_s4 + $0x48] sm:$0xff] %v1195_v53  ;;  %1208 = vst [vmem:[%s2177_s4 + $0x40] sm:$0xff] %v1194_v34 }
 0x14f   :  { %v1182_v3 = vunpack.c.l.bf16 %v1168_v45  ;;  %v1181_v22 = vunpack.c.l.bf16 %v1167_v59 }
 0x150   :  { %v1142_v20 = vpop.permute.xlu1 %1141  ;;  %v1140_v13 = vpop.permute.xlu0 %1139 }
 0x151   :  { %v1197_v10 = vsel %vm1185_vm4, %v1182_v3, 0.0  ;;  %v1196_v11 = vsel %vm1185_vm4, %v1181_v22, 0.0  ;;  %v1170_v14 = vmax.bf16 %v1142_v20, %v1114_v58  ;;  %v1169_v27 = vmax.bf16 %v1140_v13, %v1113_v38 }
 0x152   :  { %1211 = vst [vmem:[%s2177_s4 + $0x58] sm:$0xff] %v1197_v10  ;;  %1210 = vst [vmem:[%s2177_s4 + $0x50] sm:$0xff] %v1196_v11 }
 0x153   :  { %v1184_v18 = vunpack.c.l.bf16 %v1170_v14  ;;  %v1183_v21 = vunpack.c.l.bf16 %v1169_v27 }
 0x155   :  { %v1199_v15 = vsel %vm1185_vm4, %v1184_v18, 0.0  ;;  %v1198_v5 = vsel %vm1185_vm4, %v1183_v21, 0.0 }
 0x156   :  { %1213 = vst [vmem:[%s2177_s4 + $0x68] sm:$0xff] %v1199_v15  ;;  %1212 = vst [vmem:[%s2177_s4 + $0x60] sm:$0xff] %v1198_v5 }

// kernel: inception_b_forward.8
= control target key start
LH: loop header
LB: loop body
LE: loop exit
PB: predicated region body
PF: predicated region fallthrough
CT: control target
= control target key end

     0   :  { %v86_v0 = vlaneseq  ;;  %s601_s0 = inlined_call_operand.vmem [shape: bf16[112,384], index: 0, kind: input, shape index: {}]   ;;  %s602_s1 = inlined_call_operand.vmem [shape: f32[1,384], index: 1, kind: input, shape index: {}]   ;;  %s603_s2 = inlined_call_operand.vmem [shape: f32[1,384], index: 2, kind: input, shape index: {}]   ;;  %s604_s3 = inlined_call_operand.vmem [shape: f32[112,384], index: 3, kind: output, shape index: {}]  }
   0x1   :  { %v14_v1 = vld [vmem:[%s601_s0] sm:$0xff]  ;;  %v15_v6 = vld [vmem:[%s601_s0 + $0x8] ss:$12 sps:$4 sm:$0xff]   ;;  %v16_v7 = vld [vmem:[%s601_s0 + $0xc] sm:$0xff] }
   0x2   :  { %v84_v2 = vld [vmem:[%s602_s1] sm:$0x7]  ;;  %v42_v3 = vunpack.c.l.bf16 %v14_v1  ;;  %v87_v4 = vshrl.u32 %v86_v0, 7  ;;  %v43_v5 = vunpack.c.h.bf16 %v14_v1  ;;  %v18_v8 = vld [vmem:[%s601_s0 + $0x18] sm:$0xff]  ;;  %v44_v10 = vunpack.c.l.bf16 %v15_v6  ;;  %v20_v15 = vld [vmem:[%s601_s0 + $0x24] sm:$0xff] }
   0x3   :  { %v143_v9 = vld [vmem:[%s603_s2] sm:$0x7]  ;;  %v45_v11 = vunpack.c.l.bf16 %v16_v7  ;;  %v46_v12 = vunpack.c.h.bf16 %v16_v7  ;;  %v47_v13 = vunpack.c.h.bf16 %v15_v6  ;;  %v48_v19 = vunpack.c.l.bf16 %v18_v8  ;;  %v22_v20 = vld [vmem:[%s601_s0 + $0x30] sm:$0xff]  ;;  %v23_v49 = vld [vmem:[%s601_s0 + $0x38] ss:$12 sps:$4 sm:$0xff]  }
   0x4   :  { %v19_v14 = vld [vmem:[%s601_s0 + $0x20] ss:$12 sps:$4 sm:$0xff]   ;;  %v88_v16 = vsub.s32 0, %v87_v4  ;;  %v92_v17 = vsub.s32 1, %v87_v4  ;;  %v96_v18 = vsub.s32 2, %v87_v4  ;;  %v49_v21 = vunpack.c.h.bf16 %v18_v8 }
   0x5   :  { %v50_v22 = vunpack.c.l.bf16 %v19_v14  ;;  %v51_v23 = vunpack.c.l.bf16 %v20_v15  ;;  %v52_v24 = vunpack.c.h.bf16 %v20_v15  ;;  %v53_v31 = vunpack.c.h.bf16 %v19_v14  ;;  %v24_v54 = vld [vmem:[%s601_s0 + $0x3c] sm:$0xff] }
   0x6   :  { %v337_v25 = vrot.slane %v84_v2, %v88_v16  ;;  %v339_v26 = vrot.slane %v143_v9, %v88_v16  ;;  %v341_v27 = vrot.slane %v84_v2, %v92_v17  ;;  %v343_v28 = vrot.slane %v143_v9, %v92_v17  ;;  %v27_v16 = vld [vmem:[%s601_s0 + $0x50] ss:$12 sps:$4 sm:$0xff]  }
   0x7   :  { %v345_v29 = vrot.slane %v84_v2, %v96_v18  ;;  %v347_v30 = vrot.slane %v143_v9, %v96_v18  ;;  %v54_v32 = vunpack.c.l.bf16 %v22_v20  ;;  %v55_v0 = vunpack.c.h.bf16 %v22_v20 }
   0x8   :  { %v101_v33 = vmul.f32 %v337_v25, %v42_v3  ;;  %v102_v34 = vmul.f32 %v341_v27, %v43_v5  ;;  %v104_v35 = vmul.f32 %v337_v25, %v45_v11  ;;  %v105_v36 = vmul.f32 %v341_v27, %v46_v12  ;;  %v26_v11 = vld [vmem:[%s601_s0 + $0x48] sm:$0xff] }
   0x9   :  { %v103_v37 = vmul.f32 %v345_v29, %v44_v10  ;;  %v106_v38 = vmul.f32 %v345_v29, %v47_v13  ;;  %v107_v39 = vmul.f32 %v337_v25, %v48_v19  ;;  %v108_v40 = vmul.f32 %v341_v27, %v49_v21 }
   0xa   :  { %v160_v41 = vadd.f32 %v339_v26, %v101_v33  ;;  %v161_v42 = vadd.f32 %v343_v28, %v102_v34  ;;  %v163_v43 = vadd.f32 %v339_v26, %v104_v35  ;;  %v164_v44 = vadd.f32 %v343_v28, %v105_v36 }
   0xb   :  { %v162_v45 = vadd.f32 %v347_v30, %v103_v37  ;;  %v165_v46 = vadd.f32 %v347_v30, %v106_v38  ;;  %v166_v47 = vadd.f32 %v339_v26, %v107_v39  ;;  %v167_v48 = vadd.f32 %v343_v28, %v108_v40 }
   0xc   :  { %v202_v50 = vmax.f32 %v160_v41, 0.0  ;;  %v203_v51 = vmax.f32 %v161_v42, 0.0  ;;  %v205_v52 = vmax.f32 %v163_v43, 0.0  ;;  %v206_v53 = vmax.f32 %v164_v44, 0.0 }
   0xd   :  { %v204_v55 = vmax.f32 %v162_v45, 0.0  ;;  %v207_v56 = vmax.f32 %v165_v46, 0.0  ;;  %v208_v57 = vmax.f32 %v166_v47, 0.0  ;;  %v209_v58 = vmax.f32 %v167_v48, 0.0 }
   0xe   :  { %244 = vst [vmem:[%s604_s3] sm:$0xff] %v202_v50  ;;  %245 = vst [vmem:[%s604_s3 + $0x8] sm:$0xff] %v203_v51  ;;  %v109_v59 = vmul.f32 %v345_v29, %v50_v22  ;;  %v110_v60 = vmul.f32 %v337_v25, %v51_v23  ;;  %v111_v61 = vmul.f32 %v341_v27, %v52_v24  ;;  %v56_v1 = vunpack.c.l.bf16 %v23_v49 }
   0xf   :  { %247 = vst [vmem:[%s604_s3 + $0x18] sm:$0xff] %v205_v52  ;;  %248 = vst [vmem:[%s604_s3 + $0x20] sm:$0xff] %v206_v53  ;;  %v112_v62 = vmul.f32 %v345_v29, %v53_v31  ;;  %v113_v63 = vmul.f32 %v337_v25, %v54_v32  ;;  %v57_v2 = vunpack.c.l.bf16 %v24_v54  ;;  %v114_v8 = vmul.f32 %v341_v27, %v55_v0  ;;  %v28_v31 = vld [vmem:[%s601_s0 + $0x54] sm:$0xff]  ;;  %v30_v52 = vld [vmem:[%s601_s0 + $0x60] sm:$0xff] }
  0x10   :  { %246 = vst [vmem:[%s604_s3 + $0x10] sm:$0xff] %v204_v55  ;;  %249 = vst [vmem:[%s604_s3 + $0x28] sm:$0xff] %v207_v56  ;;  %v168_v3 = vadd.f32 %v347_v30, %v109_v59  ;;  %v169_v4 = vadd.f32 %v339_v26, %v110_v60  ;;  %v170_v5 = vadd.f32 %v343_v28, %v111_v61  ;;  %v58_v21 = vunpack.c.h.bf16 %v24_v54  ;;  %v31_v53 = vld [vmem:[%s601_s0 + $0x68] ss:$12 sps:$4 sm:$0xff]   ;;  %v32_v54 = vld [vmem:[%s601_s0 + $0x6c] sm:$0xff] }
  0x11   :  { %250 = vst [vmem:[%s604_s3 + $0x30] sm:$0xff] %v208_v57  ;;  %251 = vst [vmem:[%s604_s3 + $0x38] sm:$0xff] %v209_v58  ;;  %v171_v6 = vadd.f32 %v347_v30, %v112_v62  ;;  %v172_v7 = vadd.f32 %v339_v26, %v113_v63  ;;  %v115_v9 = vmul.f32 %v345_v29, %v56_v1  ;;  %v59_v22 = vunpack.c.h.bf16 %v23_v49 }
  0x12   :  { %v116_v10 = vmul.f32 %v337_v25, %v57_v2  ;;  %v210_v12 = vmax.f32 %v168_v3, 0.0  ;;  %v211_v13 = vmax.f32 %v169_v4, 0.0  ;;  %v212_v14 = vmax.f32 %v170_v5, 0.0  ;;  %v34_v3 = vld [vmem:[%s601_s0 + $0x78] sm:$0xff] }
  0x13   :  { %v213_v15 = vmax.f32 %v171_v6, 0.0  ;;  %v214_v17 = vmax.f32 %v172_v7, 0.0  ;;  %v173_v18 = vadd.f32 %v343_v28, %v114_v8  ;;  %v174_v19 = vadd.f32 %v347_v30, %v115_v9 }
  0x14   :  { %v175_v20 = vadd.f32 %v339_v26, %v116_v10  ;;  %252 = vst [vmem:[%s604_s3 + $0x40] sm:$0xff] %v210_v12  ;;  %253 = vst [vmem:[%s604_s3 + $0x48] sm:$0xff] %v211_v13  ;;  %v60_v23 = vunpack.c.l.bf16 %v26_v11  ;;  %v61_v24 = vunpack.c.h.bf16 %v26_v11  ;;  %v62_v35 = vunpack.c.l.bf16 %v27_v16 }
  0x15   :  { %254 = vst [vmem:[%s604_s3 + $0x50] sm:$0xff] %v212_v14  ;;  %255 = vst [vmem:[%s604_s3 + $0x58] sm:$0xff] %v213_v15  ;;  %v215_v32 = vmax.f32 %v173_v18, 0.0  ;;  %v216_v33 = vmax.f32 %v174_v19, 0.0  ;;  %v117_v36 = vmul.f32 %v341_v27, %v58_v21  ;;  %v118_v37 = vmul.f32 %v345_v29, %v59_v22 }
  0x16   :  { %256 = vst [vmem:[%s604_s3 + $0x60] sm:$0xff] %v214_v17  ;;  %v217_v34 = vmax.f32 %v175_v20, 0.0  ;;  %v119_v38 = vmul.f32 %v337_v25, %v60_v23  ;;  %v120_v39 = vmul.f32 %v341_v27, %v61_v24  ;;  %v121_v40 = vmul.f32 %v345_v29, %v62_v35  ;;  %v35_v24 = vld [vmem:[%s601_s0 + $0x80] ss:$12 sps:$4 sm:$0xff]  }
  0x17   :  { %257 = vst [vmem:[%s604_s3 + $0x68] sm:$0xff] %v215_v32  ;;  %258 = vst [vmem:[%s604_s3 + $0x70] sm:$0xff] %v216_v33  ;;  %v63_v41 = vunpack.c.l.bf16 %v28_v31  ;;  %v64_v42 = vunpack.c.h.bf16 %v28_v31  ;;  %v65_v43 = vunpack.c.h.bf16 %v27_v16  ;;  %v176_v44 = vadd.f32 %v343_v28, %v117_v36  ;;  %v36_v31 = vld [vmem:[%s601_s0 + $0x84] sm:$0xff]  ;;  %v38_v36 = vld [vmem:[%s601_s0 + $0x90] sm:$0xff] }
  0x18   :  { %259 = vst [vmem:[%s604_s3 + $0x78] sm:$0xff] %v217_v34  ;;  %v177_v45 = vadd.f32 %v347_v30, %v118_v37  ;;  %v178_v46 = vadd.f32 %v339_v26, %v119_v38  ;;  %v179_v47 = vadd.f32 %v343_v28, %v120_v39  ;;  %v180_v48 = vadd.f32 %v347_v30, %v121_v40 }
  0x19   :  { %v122_v49 = vmul.f32 %v337_v25, %v63_v41  ;;  %v123_v50 = vmul.f32 %v341_v27, %v64_v42  ;;  %v124_v51 = vmul.f32 %v345_v29, %v65_v43  ;;  %v218_v55 = vmax.f32 %v176_v44, 0.0 }
  0x1a   :  { %v219_v56 = vmax.f32 %v177_v45, 0.0  ;;  %v220_v57 = vmax.f32 %v178_v46, 0.0  ;;  %v221_v58 = vmax.f32 %v179_v47, 0.0  ;;  %v222_v59 = vmax.f32 %v180_v48, 0.0  ;;  %v39_v45 = vld [vmem:[%s601_s0 + $0x98] ss:$12 sps:$4 sm:$0xff]  }
  0x1b   :  { %v181_v60 = vadd.f32 %v339_v26, %v122_v49  ;;  %v182_v61 = vadd.f32 %v343_v28, %v123_v50  ;;  %v183_v62 = vadd.f32 %v347_v30, %v124_v51  ;;  %260 = vst [vmem:[%s604_s3 + $0x80] sm:$0xff] %v218_v55  ;;  %v66_v63 = vunpack.c.l.bf16 %v30_v52  ;;  %v40_v46 = vld [vmem:[%s601_s0 + $0x9c] sm:$0xff] }
  0x1c   :  { %261 = vst [vmem:[%s604_s3 + $0x88] sm:$0xff] %v219_v56  ;;  %262 = vst [vmem:[%s604_s3 + $0x90] sm:$0xff] %v220_v57  ;;  %v67_v0 = vunpack.c.h.bf16 %v30_v52  ;;  %v68_v1 = vunpack.c.l.bf16 %v31_v53  ;;  %v69_v2 = vunpack.c.l.bf16 %v32_v54  ;;  %v70_v7 = vunpack.c.h.bf16 %v32_v54 }
  0x1d   :  { %263 = vst [vmem:[%s604_s3 + $0x98] sm:$0xff] %v221_v58  ;;  %264 = vst [vmem:[%s604_s3 + $0xa0] sm:$0xff] %v222_v59  ;;  %v223_v4 = vmax.f32 %v181_v60, 0.0  ;;  %v224_v5 = vmax.f32 %v182_v61, 0.0  ;;  %v225_v6 = vmax.f32 %v183_v62, 0.0  ;;  %v125_v8 = vmul.f32 %v337_v25, %v66_v63 }
  0x1e   :  { %v126_v9 = vmul.f32 %v341_v27, %v67_v0  ;;  %v127_v10 = vmul.f32 %v345_v29, %v68_v1  ;;  %v128_v11 = vmul.f32 %v337_v25, %v69_v2  ;;  %v129_v12 = vmul.f32 %v341_v27, %v70_v7 }
  0x1f   :  { %265 = vst [vmem:[%s604_s3 + $0xa8] sm:$0xff] %v223_v4  ;;  %266 = vst [vmem:[%s604_s3 + $0xb0] sm:$0xff] %v224_v5  ;;  %v71_v13 = vunpack.c.h.bf16 %v31_v53  ;;  %v72_v14 = vunpack.c.l.bf16 %v34_v3  ;;  %v73_v15 = vunpack.c.h.bf16 %v34_v3  ;;  %v184_v16 = vadd.f32 %v339_v26, %v125_v8 }
  0x20   :  { %267 = vst [vmem:[%s604_s3 + $0xb8] sm:$0xff] %v225_v6  ;;  %v185_v17 = vadd.f32 %v343_v28, %v126_v9  ;;  %v186_v18 = vadd.f32 %v347_v30, %v127_v10  ;;  %v187_v19 = vadd.f32 %v339_v26, %v128_v11  ;;  %v188_v20 = vadd.f32 %v343_v28, %v129_v12 }
  0x21   :  { %v130_v21 = vmul.f32 %v345_v29, %v71_v13  ;;  %v131_v22 = vmul.f32 %v337_v25, %v72_v14  ;;  %v132_v23 = vmul.f32 %v341_v27, %v73_v15  ;;  %v226_v32 = vmax.f32 %v184_v16, 0.0 }
  0x22   :  { %v227_v33 = vmax.f32 %v185_v17, 0.0  ;;  %v228_v34 = vmax.f32 %v186_v18, 0.0  ;;  %v229_v35 = vmax.f32 %v187_v19, 0.0  ;;  %v230_v37 = vmax.f32 %v188_v20, 0.0 }
  0x23   :  { %v189_v38 = vadd.f32 %v347_v30, %v130_v21  ;;  %v190_v39 = vadd.f32 %v339_v26, %v131_v22  ;;  %v191_v40 = vadd.f32 %v343_v28, %v132_v23  ;;  %268 = vst [vmem:[%s604_s3 + $0xc0] sm:$0xff] %v226_v32  ;;  %v74_v41 = vunpack.c.l.bf16 %v35_v24 }
  0x24   :  { %269 = vst [vmem:[%s604_s3 + $0xc8] sm:$0xff] %v227_v33  ;;  %270 = vst [vmem:[%s604_s3 + $0xd0] sm:$0xff] %v228_v34  ;;  %v75_v42 = vunpack.c.l.bf16 %v36_v31  ;;  %v76_v43 = vunpack.c.h.bf16 %v36_v31  ;;  %v77_v44 = vunpack.c.h.bf16 %v35_v24  ;;  %v78_v50 = vunpack.c.l.bf16 %v38_v36 }
  0x25   :  { %271 = vst [vmem:[%s604_s3 + $0xd8] sm:$0xff] %v229_v35  ;;  %272 = vst [vmem:[%s604_s3 + $0xe0] sm:$0xff] %v230_v37  ;;  %v231_v47 = vmax.f32 %v189_v38, 0.0  ;;  %v232_v48 = vmax.f32 %v190_v39, 0.0  ;;  %v233_v49 = vmax.f32 %v191_v40, 0.0  ;;  %v133_v51 = vmul.f32 %v345_v29, %v74_v41 }
  0x26   :  { %v134_v52 = vmul.f32 %v337_v25, %v75_v42  ;;  %v135_v53 = vmul.f32 %v341_v27, %v76_v43  ;;  %v136_v54 = vmul.f32 %v345_v29, %v77_v44  ;;  %v137_v55 = vmul.f32 %v337_v25, %v78_v50 }
  0x27   :  { %273 = vst [vmem:[%s604_s3 + $0xe8] sm:$0xff] %v231_v47  ;;  %274 = vst [vmem:[%s604_s3 + $0xf0] sm:$0xff] %v232_v48  ;;  %v79_v56 = vunpack.c.h.bf16 %v38_v36  ;;  %v80_v57 = vunpack.c.l.bf16 %v39_v45  ;;  %v81_v58 = vunpack.c.l.bf16 %v40_v46  ;;  %v192_v59 = vadd.f32 %v347_v30, %v133_v51 }
  0x28   :  { %275 = vst [vmem:[%s604_s3 + $0xf8] sm:$0xff] %v233_v49  ;;  %v193_v60 = vadd.f32 %v339_v26, %v134_v52  ;;  %v194_v61 = vadd.f32 %v343_v28, %v135_v53  ;;  %v195_v62 = vadd.f32 %v347_v30, %v136_v54  ;;  %v196_v63 = vadd.f32 %v339_v26, %v137_v55 }
  0x29   :  { %v138_v0 = vmul.f32 %v341_v27, %v79_v56  ;;  %v139_v1 = vmul.f32 %v345_v29, %v80_v57  ;;  %v140_v2 = vmul.f32 %v337_v25, %v81_v58  ;;  %v234_v3 = vmax.f32 %v192_v59, 0.0 }
  0x2a   :  { %v235_v4 = vmax.f32 %v193_v60, 0.0  ;;  %v236_v5 = vmax.f32 %v194_v61, 0.0  ;;  %v237_v6 = vmax.f32 %v195_v62, 0.0  ;;  %v238_v7 = vmax.f32 %v196_v63, 0.0 }
  0x2b   :  { %v197_v8 = vadd.f32 %v343_v28, %v138_v0  ;;  %v198_v9 = vadd.f32 %v347_v30, %v139_v1  ;;  %v199_v10 = vadd.f32 %v339_v26, %v140_v2  ;;  %276 = vst [vmem:[%s604_s3 + $0x100] sm:$0xff] %v234_v3  ;;  %v82_v25 = vunpack.c.h.bf16 %v40_v46 }
  0x2c   :  { %277 = vst [vmem:[%s604_s3 + $0x108] sm:$0xff] %v235_v4  ;;  %278 = vst [vmem:[%s604_s3 + $0x110] sm:$0xff] %v236_v5  ;;  %v83_v11 = vunpack.c.h.bf16 %v39_v45 }
  0x2d   :  { %279 = vst [vmem:[%s604_s3 + $0x118] sm:$0xff] %v237_v6  ;;  %280 = vst [vmem:[%s604_s3 + $0x120] sm:$0xff] %v238_v7  ;;  %v239_v26 = vmax.f32 %v197_v8, 0.0  ;;  %v240_v12 = vmax.f32 %v198_v9, 0.0  ;;  %v241_v13 = vmax.f32 %v199_v10, 0.0  ;;  %v141_v14 = vmul.f32 %v341_v27, %v82_v25 }
  0x2e   :  { %v142_v15 = vmul.f32 %v345_v29, %v83_v11 }
  0x2f   :  { %281 = vst [vmem:[%s604_s3 + $0x128] sm:$0xff] %v239_v26  ;;  %282 = vst [vmem:[%s604_s3 + $0x130] sm:$0xff] %v240_v12  ;;  %v200_v16 = vadd.f32 %v343_v28, %v141_v14 }
  0x30   :  { %283 = vst [vmem:[%s604_s3 + $0x138] sm:$0xff] %v241_v13  ;;  %v201_v17 = vadd.f32 %v347_v30, %v142_v15 }
  0x31   :  { %v242_v18 = vmax.f32 %v200_v16, 0.0 }
  0x32   :  { %v243_v27 = vmax.f32 %v201_v17, 0.0 }
  0x33   :  { %284 = vst [vmem:[%s604_s3 + $0x140] sm:$0xff] %v242_v18 }
  0x34   :  { %285 = vst [vmem:[%s604_s3 + $0x148] sm:$0xff] %v243_v27 }

</bundles_post_ra>
